<compile_context>
chip_gen: v6e
topology: v6e:2x2x1
jax: 0.10.0
libtpu: 0.0.40
codegen_flags: <defaults>
</compile_context>

<pallas_src>
import jax
import jax.numpy as jnp
from jax.experimental import pallas as pl
from jax.experimental.pallas import tpu as pltpu


# ---------------------------------------------------------------------------
# Kernel 1: fused CNN stack for one batch element (grid over batch, parallel).
# ---------------------------------------------------------------------------
def _cnn_kernel(pat_ref, w1_ref, s1_ref, b1_ref,
                w2_ref, s2_ref, b2_ref,
                w3_ref, s3_ref, b3_ref,
                w4_ref, s4_ref, b4_ref, o_ref):
    f32 = jnp.float32

    # ---- conv1 (k=50, s=6; contraction padded to K=128) + BN + ReLU --------
    # pat_ref[0]: (504, 128); rows 0,1,502,503 are all-zero pad rows.
    y = jnp.dot(pat_ref[0], w1_ref[...], preferred_element_type=f32)   # (504, 128)
    y = jnp.maximum(y * s1_ref[...] + b1_ref[...], 0.0)
    # Rows 0,1,502,503 correspond to ConstantPad1d((2,2)) before MaxPool1d(8):
    # force them to exact zeros (BN shift would otherwise leak through ReLU).
    row = jax.lax.broadcasted_iota(jnp.int32, (504, 1), 0)
    y = jnp.where((row >= 2) & (row < 502), y, 0.0)

    # ---- MaxPool1d(8, 8): (504,128) -> (63,128); keep 64 rows (row 63 = 0) --
    h = jnp.max(y.reshape(63, 8, 128), axis=1)                          # (63, 128)
    h = jnp.concatenate([h, jnp.zeros((1, 128), f32)], axis=0)          # (64, 128)

    row64 = jax.lax.broadcasted_iota(jnp.int32, (64, 1), 0)
    valid64 = row64 < 63

    def convk8(hin, w_ref, s_ref, sh_ref):
        # hin: (64,128), rows 0..62 valid, row 63 == 0 (acts as extra pad).
        # ConstantPad1d((3,4)) then Conv1d(k=8,s=1) folded into ONE K=1024 matmul.
        hp = jnp.concatenate(
            [jnp.zeros((3, 128), f32), hin, jnp.zeros((4, 128), f32)], axis=0)  # (71,128)
        xcat = jnp.concatenate([hp[k:k + 64, :] for k in range(8)], axis=1)     # (64,1024)
        z = jnp.dot(xcat, w_ref[...], preferred_element_type=f32)               # (64, 128)
        z = jnp.maximum(z * s_ref[...] + sh_ref[...], 0.0)
        return jnp.where(valid64, z, 0.0)                                       # row 63 -> 0

    h = convk8(h, w2_ref, s2_ref, b2_ref)
    h = convk8(h, w3_ref, s3_ref, b3_ref)
    h = convk8(h, w4_ref, s4_ref, b4_ref)

    # ---- ConstantPad1d((0,1)) + MaxPool1d(4,4): row 63 is exactly that pad --
    # Output layout: o[0, p, i, c] = pooled position l = 2*i + p, channel c.
    # (The LSTM input weight rows are permuted at init to match this order.)
    h3 = h.reshape(8, 8, 128)
    o_ref[0, 0, :, :] = jnp.max(h3[:, 0:4, :], axis=1).astype(o_ref.dtype)
    o_ref[0, 1, :, :] = jnp.max(h3[:, 4:8, :], axis=1).astype(o_ref.dtype)


def cnn_block(patches, params):
    N = patches.shape[0]

    def const(shape):
        nd = len(shape)
        return pl.BlockSpec(shape, lambda b, nd=nd: (0,) * nd)

    return pl.pallas_call(
        _cnn_kernel,
        out_shape=jax.ShapeDtypeStruct((N, 2, 8, 128), jnp.float32),
        grid=(N,),
        in_specs=[
            pl.BlockSpec((1, 504, 128), lambda b: (b, 0, 0)),
            const((128, 128)), const((1, 128)), const((1, 128)),
            const((1024, 128)), const((1, 128)), const((1, 128)),
            const((1024, 128)), const((1, 128)), const((1, 128)),
            const((1024, 128)), const((1, 128)), const((1, 128)),
        ],
        out_specs=pl.BlockSpec((1, 2, 8, 128), lambda b: (b, 0, 0, 0)),
        compiler_params=pltpu.CompilerParams(dimension_semantics=("parallel",)),
    )(patches,
      params["w1"], params["s1"], params["sh1"],
      params["w2"], params["s2"], params["sh2"],
      params["w3"], params["s3"], params["sh3"],
      params["w4"], params["s4"], params["sh4"])


# ---------------------------------------------------------------------------
# Kernel 2: single-layer LSTM over the (unbatched) sequence + final Linear.
# ---------------------------------------------------------------------------
def _lstm_fc_kernel(x_ref, wih_ref, whh_ref, b_ref, wfc_ref, bfc_ref,
                    o_ref, hseq_ref):
    f32 = jnp.float32
    T = x_ref.shape[0]
    H = whh_ref.shape[0]

    # Input projection for the whole sequence in one matmul: (T, 4H).
    xw = jnp.dot(x_ref[...], wih_ref[...], preferred_element_type=f32)
    whh = whh_ref[...]
    b = b_ref[...]

    hseq_ref[...] = jnp.zeros_like(hseq_ref)
    h = jnp.zeros((1, H), f32)
    c = jnp.zeros((1, H), f32)
    for t in range(T):  # static unroll over the short sequence
        z = xw[t:t + 1, :] + jnp.dot(h, whh, preferred_element_type=f32) + b
        i_g = jax.nn.sigmoid(z[:, 0:H])
        f_g = jax.nn.sigmoid(z[:, H:2 * H])
        g_g = jnp.tanh(z[:, 2 * H:3 * H])
        o_g = jax.nn.sigmoid(z[:, 3 * H:4 * H])
        c = f_g * c + i_g * g_g
        h = o_g * jnp.tanh(c)
        hseq_ref[pl.ds(t, 1), :] = h      # write h_t into VMEM scratch row t

    out = jnp.dot(hseq_ref[...], wfc_ref[...], preferred_element_type=f32) + bfc_ref[...]
    o_ref[...] = out[0:T, :].astype(o_ref.dtype)


def lstm_fc_block(x, wih_t, whh_t, b, wfc_t, bfc):
    T = x.shape[0]
    H = whh_t.shape[0]
    ncls = wfc_t.shape[1]
    Tp = max(8, ((T + 7) // 8) * 8)   # sublane-aligned scratch length

    def vmem():
        return pl.BlockSpec(memory_space=pltpu.MemorySpace.VMEM)

    return pl.pallas_call(
        _lstm_fc_kernel,
        out_shape=jax.ShapeDtypeStruct((T, ncls), jnp.float32),
        in_specs=[vmem() for _ in range(6)],
        out_specs=vmem(),
        scratch_shapes=[pltpu.VMEM((Tp, H), jnp.float32)],
    )(x, wih_t, whh_t, b, wfc_t, bfc)


# ---------------------------------------------------------------------------
# JAX glue: gather-free im2col for conv1 (static slices + reshape only).
# ---------------------------------------------------------------------------
def _build_conv1_patches(x):
    # x: (N, 1, 3000). Returns (N, 504, 128) fp32 patches:
    #   row p (2 <= p <= 501): window starting at 6*(p-2) of the (22,22)-padded
    #   signal, taps 0..49 in lanes 0..49 (lanes 50..127 multiplied by zero
    #   weight rows); rows 0,1,502,503 are the MaxPool1d(8) zero-pad rows.
    N = x.shape[0]
    sig = x[:, 0, :].astype(jnp.float32)                 # (N, 3000)
    sig = jnp.pad(sig, ((0, 0), (22, 26)))               # (N, 3048) = (N, 508*6)
    r = sig.reshape(N, 508, 6)
    cols = [r[:, s:s + 500, :] for s in range(9)]        # 9 static slices, no gather
    pat = jnp.concatenate(cols, axis=-1)                 # (N, 500, 54); lane k = offset k
    pat = jnp.pad(pat, ((0, 0), (2, 2), (0, 128 - 54)))  # (N, 504, 128)
    return pat


def tinysleepnet_forward(x, params):
    # x: (N, 1, 3000) in PyTorch NCL layout. Dropouts are identity (inference).
    N = x.shape[0]
    patches = _build_conv1_patches(x)                    # (N, 504, 128)
    pooled = cnn_block(patches, params)                  # (N, 2, 8, 128)
    feat = pooled.reshape(N, 2048)                       # order matches permuted wih_t
    return lstm_fc_block(feat, params["wih_t"], params["whh_t"], params["b"],
                         params["wfc_t"], params["bfc"])  # (N, num_classes)


# ---------------------------------------------------------------------------
# Deterministic synthetic parameters (shapes follow the PyTorch module),
# pre-transformed into the kernel-friendly layouts.
# ---------------------------------------------------------------------------
def init_params(key, num_classes):
    ks = jax.random.split(key, 16)
    p = {}

    def bn_fold(k):
        kg, kb, km, kv = jax.random.split(k, 4)
        gamma = 1.0 + 0.1 * jax.random.normal(kg, (128,), jnp.float32)
        beta = 0.1 * jax.random.normal(kb, (128,), jnp.float32)
        mean = 0.1 * jax.random.normal(km, (128,), jnp.float32)
        var = jax.random.uniform(kv, (128,), jnp.float32, 0.5, 1.5)
        scale = gamma / jnp.sqrt(var + 1e-3)              # eps = 0.001, eval mode
        shift = beta - mean * scale
        return scale.reshape(1, 128), shift.reshape(1, 128)

    # conv1: torch (128, 1, 50) -> (128, 128) with tap rows 50..127 zero-padded.
    w1 = 0.05 * jax.random.normal(ks[0], (128, 1, 50), jnp.float32)
    w1k = jnp.transpose(w1[:, 0, :], (1, 0))              # (50, 128)
    p["w1"] = jnp.pad(w1k, ((0, 128 - 50), (0, 0)))       # (128, 128)
    p["s1"], p["sh1"] = bn_fold(ks[1])

    # conv2/3/4: torch (128_out, 128_in, 8) -> tap-major concat layout (1024, 128):
    # row index = k*128 + c_in, matching the in-kernel lane-concat of 8 shifts.
    for i, name in enumerate(("2", "3", "4")):
        w = 0.03 * jax.random.normal(ks[2 + 2 * i], (128, 128, 8), jnp.float32)
        p["w" + name] = jnp.transpose(w, (2, 1, 0)).reshape(1024, 128)
        p["s" + name], p["sh" + name] = bn_fold(ks[3 + 2 * i])

    # LSTM: torch weight_ih (512, 2048) with input column index c*16 + l
    # (PyTorch Flatten of (N, 128, 16)). The fused CNN kernel emits features in
    # order p*1024 + i*128 + c with l = 2*i + p, so permute wih rows ONCE here
    # (removes any runtime transpose between the CNN and LSTM kernels).
    wih = 0.02 * jax.random.normal(ks[8], (512, 2048), jnp.float32)
    whh = 0.05 * jax.random.normal(ks[9], (512, 128), jnp.float32)
    bih = 0.05 * jax.random.normal(ks[10], (512,), jnp.float32)
    bhh = 0.05 * jax.random.normal(ks[11], (512,), jnp.float32)
    wih_perm = wih.reshape(512, 128, 8, 2).transpose(3, 2, 1, 0).reshape(2048, 512)
    p["wih_t"] = wih_perm                                 # (2048, 512), gate order i,f,g,o
    p["whh_t"] = whh.T                                    # (128, 512)
    p["b"] = (bih + bhh).reshape(1, 512)

    # fc: torch weight (num_classes, 128), bias (num_classes,)
    wfc = 0.1 * jax.random.normal(ks[12], (num_classes, 128), jnp.float32)
    bfc = 0.05 * jax.random.normal(ks[13], (num_classes,), jnp.float32)
    p["wfc_t"] = wfc.T
    p["bfc"] = bfc.reshape(1, num_classes)
    return p


if __name__ == "__main__":
    num_classes = 5
    N = 4   # number of sleep epochs (acts as the LSTM sequence length)
    key = jax.random.PRNGKey(0)
    kx, kp = jax.random.split(key)
    x = jax.random.normal(kx, (N, 1, 3000), jnp.float32)
    params = init_params(kp, num_classes)

    out = jax.jit(tinysleepnet_forward)(x, params)
    out = jax.block_until_ready(out)
    assert out.shape == (N, num_classes)
    assert bool(jnp.all(jnp.isfinite(out)))
    print("KERNEL_OK")
</pallas_src>

<mosaic_0001>
module attributes {stable_mosaic.version = 11 : i64} {
  func.func @_cnn_kernel(%arg0: i32, %arg1: memref<1x504x128xf32, #tpu.memory_space<vmem>>, %arg2: memref<128x128xf32, #tpu.memory_space<vmem>>, %arg3: memref<1x128xf32, #tpu.memory_space<vmem>>, %arg4: memref<1x128xf32, #tpu.memory_space<vmem>>, %arg5: memref<1024x128xf32, #tpu.memory_space<vmem>>, %arg6: memref<1x128xf32, #tpu.memory_space<vmem>>, %arg7: memref<1x128xf32, #tpu.memory_space<vmem>>, %arg8: memref<1024x128xf32, #tpu.memory_space<vmem>>, %arg9: memref<1x128xf32, #tpu.memory_space<vmem>>, %arg10: memref<1x128xf32, #tpu.memory_space<vmem>>, %arg11: memref<1024x128xf32, #tpu.memory_space<vmem>>, %arg12: memref<1x128xf32, #tpu.memory_space<vmem>>, %arg13: memref<1x128xf32, #tpu.memory_space<vmem>>, %arg14: memref<1x2x8x128xf32, #tpu.memory_space<vmem>>) attributes {dimension_semantics = [#tpu.dimension_semantics<parallel>], iteration_bounds = array<i64: 4>, scalar_prefetch = 0 : i64, scratch_operands = 0 : i64, tpu.core_type = #tpu.core_type<tc>, window_params = [{transform_indices = @transform_0, window_bounds = array<i64: 1, 504, 128>}, {pipeline_mode = #tpu.pipeline_mode<synchronous>, transform_indices = @transform_1, window_bounds = array<i64: 128, 128>}, {pipeline_mode = #tpu.pipeline_mode<synchronous>, transform_indices = @transform_2, window_bounds = array<i64: 1, 128>}, {pipeline_mode = #tpu.pipeline_mode<synchronous>, transform_indices = @transform_3, window_bounds = array<i64: 1, 128>}, {pipeline_mode = #tpu.pipeline_mode<synchronous>, transform_indices = @transform_4, window_bounds = array<i64: 1024, 128>}, {pipeline_mode = #tpu.pipeline_mode<synchronous>, transform_indices = @transform_5, window_bounds = array<i64: 1, 128>}, {pipeline_mode = #tpu.pipeline_mode<synchronous>, transform_indices = @transform_6, window_bounds = array<i64: 1, 128>}, {pipeline_mode = #tpu.pipeline_mode<synchronous>, transform_indices = @transform_7, window_bounds = array<i64: 1024, 128>}, {pipeline_mode = #tpu.pipeline_mode<synchronous>, transform_indices = @transform_8, window_bounds = array<i64: 1, 128>}, {pipeline_mode = #tpu.pipeline_mode<synchronous>, transform_indices = @transform_9, window_bounds = array<i64: 1, 128>}, {pipeline_mode = #tpu.pipeline_mode<synchronous>, transform_indices = @transform_10, window_bounds = array<i64: 1024, 128>}, {pipeline_mode = #tpu.pipeline_mode<synchronous>, transform_indices = @transform_11, window_bounds = array<i64: 1, 128>}, {pipeline_mode = #tpu.pipeline_mode<synchronous>, transform_indices = @transform_12, window_bounds = array<i64: 1, 128>}, {transform_indices = @transform_13, window_bounds = array<i64: 1, 2, 8, 128>}]} {
    %c0 = arith.constant 0 : index
    %c0_0 = arith.constant 0 : index
    %c0_1 = arith.constant 0 : index
    %0 = vector.load %arg1[%c0, %c0_0, %c0_1] : memref<1x504x128xf32, #tpu.memory_space<vmem>>, vector<1x504x128xf32>
    %1 = vector.shape_cast %0 : vector<1x504x128xf32> to vector<504x128xf32>
    %c0_2 = arith.constant 0 : index
    %c0_3 = arith.constant 0 : index
    %2 = vector.load %arg2[%c0_2, %c0_3] : memref<128x128xf32, #tpu.memory_space<vmem>>, vector<128x128xf32>
    %cst = arith.constant dense<0.000000e+00> : vector<504x128xf32>
    %3 = tpu.matmul %1, %2, %cst {dimension_numbers = #tpu.dot_dimension_numbers<[1], [0], [0], [1], [0, 0, 1, 1], [], []>} : vector<504x128xf32>, vector<128x128xf32>, vector<504x128xf32> -> vector<504x128xf32>
    %c0_4 = arith.constant 0 : index
    %c0_5 = arith.constant 0 : index
    %4 = vector.load %arg3[%c0_4, %c0_5] : memref<1x128xf32, #tpu.memory_space<vmem>>, vector<1x128xf32>
    %5 = vector.broadcast %4 : vector<1x128xf32> to vector<504x128xf32>
    %6 = arith.mulf %3, %5 : vector<504x128xf32>
    %c0_6 = arith.constant 0 : index
    %c0_7 = arith.constant 0 : index
    %7 = vector.load %arg4[%c0_6, %c0_7] : memref<1x128xf32, #tpu.memory_space<vmem>>, vector<1x128xf32>
    %8 = vector.broadcast %7 : vector<1x128xf32> to vector<504x128xf32>
    %9 = arith.addf %6, %8 : vector<504x128xf32>
    %cst_8 = arith.constant 0.000000e+00 : f32
    %10 = vector.broadcast %cst_8 : f32 to vector<504x128xf32>
    %11 = arith.maximumf %9, %10 : vector<504x128xf32>
    %12 = tpu.iota {dimensions = array<i32: 0>} : vector<504x1xi32>
    %c2_i32 = arith.constant 2 : i32
    %13 = vector.broadcast %c2_i32 : i32 to vector<504x1xi32>
    %14 = arith.cmpi sge, %12, %13 : vector<504x1xi32>
    %c502_i32 = arith.constant 502 : i32
    %15 = vector.broadcast %c502_i32 : i32 to vector<504x1xi32>
    %16 = arith.cmpi slt, %12, %15 : vector<504x1xi32>
    %17 = arith.andi %14, %16 : vector<504x1xi1>
    %cst_9 = arith.constant 0.000000e+00 : f32
    %18 = vector.shape_cast %17 : vector<504x1xi1> to vector<504x1xi1>
    %19 = vector.broadcast %18 : vector<504x1xi1> to vector<504x128xi1>
    %20 = vector.broadcast %cst_9 : f32 to vector<504x128xf32>
    %21 = arith.select %19, %11, %20 : vector<504x128xi1>, vector<504x128xf32>
    %22 = vector.shape_cast %21 : vector<504x128xf32> to vector<63x8x128xf32>
    %cst_10 = arith.constant dense<0xFF800000> : vector<63x128xf32>
    %23 = vector.multi_reduction <maximumf>, %22, %cst_10 [1] : vector<63x8x128xf32> to vector<63x128xf32>
    %cst_11 = arith.constant 0.000000e+00 : f32
    %24 = vector.broadcast %cst_11 : f32 to vector<1x128xf32>
    %25 = tpu.concatenate %23, %24 in 0 : vector<63x128xf32>, vector<1x128xf32> -> vector<64x128xf32>
    %26 = tpu.iota {dimensions = array<i32: 0>} : vector<64x1xi32>
    %c63_i32 = arith.constant 63 : i32
    %27 = vector.broadcast %c63_i32 : i32 to vector<64x1xi32>
    %28 = arith.cmpi slt, %26, %27 : vector<64x1xi32>
    %cst_12 = arith.constant 0.000000e+00 : f32
    %29 = vector.broadcast %cst_12 : f32 to vector<3x128xf32>
    %cst_13 = arith.constant 0.000000e+00 : f32
    %30 = vector.broadcast %cst_13 : f32 to vector<4x128xf32>
    %31 = tpu.concatenate %29, %25, %30 in 0 : vector<3x128xf32>, vector<64x128xf32>, vector<4x128xf32> -> vector<71x128xf32>
    %32 = vector.extract_strided_slice %31 {offsets = [0, 0], sizes = [64, 128], strides = [1, 1]} : vector<71x128xf32> to vector<64x128xf32>
    %33 = vector.extract_strided_slice %31 {offsets = [1, 0], sizes = [64, 128], strides = [1, 1]} : vector<71x128xf32> to vector<64x128xf32>
    %34 = vector.extract_strided_slice %31 {offsets = [2, 0], sizes = [64, 128], strides = [1, 1]} : vector<71x128xf32> to vector<64x128xf32>
    %35 = vector.extract_strided_slice %31 {offsets = [3, 0], sizes = [64, 128], strides = [1, 1]} : vector<71x128xf32> to vector<64x128xf32>
    %36 = vector.extract_strided_slice %31 {offsets = [4, 0], sizes = [64, 128], strides = [1, 1]} : vector<71x128xf32> to vector<64x128xf32>
    %37 = vector.extract_strided_slice %31 {offsets = [5, 0], sizes = [64, 128], strides = [1, 1]} : vector<71x128xf32> to vector<64x128xf32>
    %38 = vector.extract_strided_slice %31 {offsets = [6, 0], sizes = [64, 128], strides = [1, 1]} : vector<71x128xf32> to vector<64x128xf32>
    %39 = vector.extract_strided_slice %31 {offsets = [7, 0], sizes = [64, 128], strides = [1, 1]} : vector<71x128xf32> to vector<64x128xf32>
    %40 = tpu.concatenate %32, %33, %34, %35, %36, %37, %38, %39 in 1 : vector<64x128xf32>, vector<64x128xf32>, vector<64x128xf32>, vector<64x128xf32>, vector<64x128xf32>, vector<64x128xf32>, vector<64x128xf32>, vector<64x128xf32> -> vector<64x1024xf32>
    %c0_14 = arith.constant 0 : index
    %c0_15 = arith.constant 0 : index
    %41 = vector.load %arg5[%c0_14, %c0_15] : memref<1024x128xf32, #tpu.memory_space<vmem>>, vector<1024x128xf32>
    %cst_16 = arith.constant dense<0.000000e+00> : vector<64x128xf32>
    %42 = tpu.matmul %40, %41, %cst_16 {dimension_numbers = #tpu.dot_dimension_numbers<[1], [0], [0], [1], [0, 0, 1, 1], [], []>} : vector<64x1024xf32>, vector<1024x128xf32>, vector<64x128xf32> -> vector<64x128xf32>
    %c0_17 = arith.constant 0 : index
    %c0_18 = arith.constant 0 : index
    %43 = vector.load %arg6[%c0_17, %c0_18] : memref<1x128xf32, #tpu.memory_space<vmem>>, vector<1x128xf32>
    %44 = vector.broadcast %43 : vector<1x128xf32> to vector<64x128xf32>
    %45 = arith.mulf %42, %44 : vector<64x128xf32>
    %c0_19 = arith.constant 0 : index
    %c0_20 = arith.constant 0 : index
    %46 = vector.load %arg7[%c0_19, %c0_20] : memref<1x128xf32, #tpu.memory_space<vmem>>, vector<1x128xf32>
    %47 = vector.broadcast %46 : vector<1x128xf32> to vector<64x128xf32>
    %48 = arith.addf %45, %47 : vector<64x128xf32>
    %cst_21 = arith.constant 0.000000e+00 : f32
    %49 = vector.broadcast %cst_21 : f32 to vector<64x128xf32>
    %50 = arith.maximumf %48, %49 : vector<64x128xf32>
    %cst_22 = arith.constant 0.000000e+00 : f32
    %51 = vector.shape_cast %28 : vector<64x1xi1> to vector<64x1xi1>
    %52 = vector.broadcast %51 : vector<64x1xi1> to vector<64x128xi1>
    %53 = vector.broadcast %cst_22 : f32 to vector<64x128xf32>
    %54 = arith.select %52, %50, %53 : vector<64x128xi1>, vector<64x128xf32>
    %cst_23 = arith.constant 0.000000e+00 : f32
    %55 = vector.broadcast %cst_23 : f32 to vector<3x128xf32>
    %cst_24 = arith.constant 0.000000e+00 : f32
    %56 = vector.broadcast %cst_24 : f32 to vector<4x128xf32>
    %57 = tpu.concatenate %55, %54, %56 in 0 : vector<3x128xf32>, vector<64x128xf32>, vector<4x128xf32> -> vector<71x128xf32>
    %58 = vector.extract_strided_slice %57 {offsets = [0, 0], sizes = [64, 128], strides = [1, 1]} : vector<71x128xf32> to vector<64x128xf32>
    %59 = vector.extract_strided_slice %57 {offsets = [1, 0], sizes = [64, 128], strides = [1, 1]} : vector<71x128xf32> to vector<64x128xf32>
    %60 = vector.extract_strided_slice %57 {offsets = [2, 0], sizes = [64, 128], strides = [1, 1]} : vector<71x128xf32> to vector<64x128xf32>
    %61 = vector.extract_strided_slice %57 {offsets = [3, 0], sizes = [64, 128], strides = [1, 1]} : vector<71x128xf32> to vector<64x128xf32>
    %62 = vector.extract_strided_slice %57 {offsets = [4, 0], sizes = [64, 128], strides = [1, 1]} : vector<71x128xf32> to vector<64x128xf32>
    %63 = vector.extract_strided_slice %57 {offsets = [5, 0], sizes = [64, 128], strides = [1, 1]} : vector<71x128xf32> to vector<64x128xf32>
    %64 = vector.extract_strided_slice %57 {offsets = [6, 0], sizes = [64, 128], strides = [1, 1]} : vector<71x128xf32> to vector<64x128xf32>
    %65 = vector.extract_strided_slice %57 {offsets = [7, 0], sizes = [64, 128], strides = [1, 1]} : vector<71x128xf32> to vector<64x128xf32>
    %66 = tpu.concatenate %58, %59, %60, %61, %62, %63, %64, %65 in 1 : vector<64x128xf32>, vector<64x128xf32>, vector<64x128xf32>, vector<64x128xf32>, vector<64x128xf32>, vector<64x128xf32>, vector<64x128xf32>, vector<64x128xf32> -> vector<64x1024xf32>
    %c0_25 = arith.constant 0 : index
    %c0_26 = arith.constant 0 : index
    %67 = vector.load %arg8[%c0_25, %c0_26] : memref<1024x128xf32, #tpu.memory_space<vmem>>, vector<1024x128xf32>
    %cst_27 = arith.constant dense<0.000000e+00> : vector<64x128xf32>
    %68 = tpu.matmul %66, %67, %cst_27 {dimension_numbers = #tpu.dot_dimension_numbers<[1], [0], [0], [1], [0, 0, 1, 1], [], []>} : vector<64x1024xf32>, vector<1024x128xf32>, vector<64x128xf32> -> vector<64x128xf32>
    %c0_28 = arith.constant 0 : index
    %c0_29 = arith.constant 0 : index
    %69 = vector.load %arg9[%c0_28, %c0_29] : memref<1x128xf32, #tpu.memory_space<vmem>>, vector<1x128xf32>
    %70 = vector.broadcast %69 : vector<1x128xf32> to vector<64x128xf32>
    %71 = arith.mulf %68, %70 : vector<64x128xf32>
    %c0_30 = arith.constant 0 : index
    %c0_31 = arith.constant 0 : index
    %72 = vector.load %arg10[%c0_30, %c0_31] : memref<1x128xf32, #tpu.memory_space<vmem>>, vector<1x128xf32>
    %73 = vector.broadcast %72 : vector<1x128xf32> to vector<64x128xf32>
    %74 = arith.addf %71, %73 : vector<64x128xf32>
    %cst_32 = arith.constant 0.000000e+00 : f32
    %75 = vector.broadcast %cst_32 : f32 to vector<64x128xf32>
    %76 = arith.maximumf %74, %75 : vector<64x128xf32>
    %cst_33 = arith.constant 0.000000e+00 : f32
    %77 = vector.shape_cast %28 : vector<64x1xi1> to vector<64x1xi1>
    %78 = vector.broadcast %77 : vector<64x1xi1> to vector<64x128xi1>
    %79 = vector.broadcast %cst_33 : f32 to vector<64x128xf32>
    %80 = arith.select %78, %76, %79 : vector<64x128xi1>, vector<64x128xf32>
    %cst_34 = arith.constant 0.000000e+00 : f32
    %81 = vector.broadcast %cst_34 : f32 to vector<3x128xf32>
    %cst_35 = arith.constant 0.000000e+00 : f32
    %82 = vector.broadcast %cst_35 : f32 to vector<4x128xf32>
    %83 = tpu.concatenate %81, %80, %82 in 0 : vector<3x128xf32>, vector<64x128xf32>, vector<4x128xf32> -> vector<71x128xf32>
    %84 = vector.extract_strided_slice %83 {offsets = [0, 0], sizes = [64, 128], strides = [1, 1]} : vector<71x128xf32> to vector<64x128xf32>
    %85 = vector.extract_strided_slice %83 {offsets = [1, 0], sizes = [64, 128], strides = [1, 1]} : vector<71x128xf32> to vector<64x128xf32>
    %86 = vector.extract_strided_slice %83 {offsets = [2, 0], sizes = [64, 128], strides = [1, 1]} : vector<71x128xf32> to vector<64x128xf32>
    %87 = vector.extract_strided_slice %83 {offsets = [3, 0], sizes = [64, 128], strides = [1, 1]} : vector<71x128xf32> to vector<64x128xf32>
    %88 = vector.extract_strided_slice %83 {offsets = [4, 0], sizes = [64, 128], strides = [1, 1]} : vector<71x128xf32> to vector<64x128xf32>
    %89 = vector.extract_strided_slice %83 {offsets = [5, 0], sizes = [64, 128], strides = [1, 1]} : vector<71x128xf32> to vector<64x128xf32>
    %90 = vector.extract_strided_slice %83 {offsets = [6, 0], sizes = [64, 128], strides = [1, 1]} : vector<71x128xf32> to vector<64x128xf32>
    %91 = vector.extract_strided_slice %83 {offsets = [7, 0], sizes = [64, 128], strides = [1, 1]} : vector<71x128xf32> to vector<64x128xf32>
    %92 = tpu.concatenate %84, %85, %86, %87, %88, %89, %90, %91 in 1 : vector<64x128xf32>, vector<64x128xf32>, vector<64x128xf32>, vector<64x128xf32>, vector<64x128xf32>, vector<64x128xf32>, vector<64x128xf32>, vector<64x128xf32> -> vector<64x1024xf32>
    %c0_36 = arith.constant 0 : index
    %c0_37 = arith.constant 0 : index
    %93 = vector.load %arg11[%c0_36, %c0_37] : memref<1024x128xf32, #tpu.memory_space<vmem>>, vector<1024x128xf32>
    %cst_38 = arith.constant dense<0.000000e+00> : vector<64x128xf32>
    %94 = tpu.matmul %92, %93, %cst_38 {dimension_numbers = #tpu.dot_dimension_numbers<[1], [0], [0], [1], [0, 0, 1, 1], [], []>} : vector<64x1024xf32>, vector<1024x128xf32>, vector<64x128xf32> -> vector<64x128xf32>
    %c0_39 = arith.constant 0 : index
    %c0_40 = arith.constant 0 : index
    %95 = vector.load %arg12[%c0_39, %c0_40] : memref<1x128xf32, #tpu.memory_space<vmem>>, vector<1x128xf32>
    %96 = vector.broadcast %95 : vector<1x128xf32> to vector<64x128xf32>
    %97 = arith.mulf %94, %96 : vector<64x128xf32>
    %c0_41 = arith.constant 0 : index
    %c0_42 = arith.constant 0 : index
    %98 = vector.load %arg13[%c0_41, %c0_42] : memref<1x128xf32, #tpu.memory_space<vmem>>, vector<1x128xf32>
    %99 = vector.broadcast %98 : vector<1x128xf32> to vector<64x128xf32>
    %100 = arith.addf %97, %99 : vector<64x128xf32>
    %cst_43 = arith.constant 0.000000e+00 : f32
    %101 = vector.broadcast %cst_43 : f32 to vector<64x128xf32>
    %102 = arith.maximumf %100, %101 : vector<64x128xf32>
    %cst_44 = arith.constant 0.000000e+00 : f32
    %103 = vector.shape_cast %28 : vector<64x1xi1> to vector<64x1xi1>
    %104 = vector.broadcast %103 : vector<64x1xi1> to vector<64x128xi1>
    %105 = vector.broadcast %cst_44 : f32 to vector<64x128xf32>
    %106 = arith.select %104, %102, %105 : vector<64x128xi1>, vector<64x128xf32>
    %107 = vector.shape_cast %106 : vector<64x128xf32> to vector<8x8x128xf32>
    %108 = vector.extract_strided_slice %107 {offsets = [0, 0, 0], sizes = [8, 4, 128], strides = [1, 1, 1]} : vector<8x8x128xf32> to vector<8x4x128xf32>
    %cst_45 = arith.constant dense<0xFF800000> : vector<8x128xf32>
    %109 = vector.multi_reduction <maximumf>, %108, %cst_45 [1] : vector<8x4x128xf32> to vector<8x128xf32>
    %c0_46 = arith.constant 0 : index
    %c0_47 = arith.constant 0 : index
    %c0_48 = arith.constant 0 : index
    %c0_49 = arith.constant 0 : index
    %110 = vector.load %arg14[%c0_46, %c0_47, %c0_48, %c0_49] : memref<1x2x8x128xf32, #tpu.memory_space<vmem>>, vector<1x1x8x128xf32>
    %111 = vector.shape_cast %110 : vector<1x1x8x128xf32> to vector<8x128xf32>
    %112 = vector.shape_cast %109 : vector<8x128xf32> to vector<1x1x8x128xf32>
    tpu.vector_store %arg14[%c0_46, %c0_47, %c0_48, %c0_49], %112 {strides = array<i32>} : memref<1x2x8x128xf32, #tpu.memory_space<vmem>>, vector<1x1x8x128xf32>,
    %113 = vector.extract_strided_slice %107 {offsets = [0, 4, 0], sizes = [8, 4, 128], strides = [1, 1, 1]} : vector<8x8x128xf32> to vector<8x4x128xf32>
    %cst_50 = arith.constant dense<0xFF800000> : vector<8x128xf32>
    %114 = vector.multi_reduction <maximumf>, %113, %cst_50 [1] : vector<8x4x128xf32> to vector<8x128xf32>
    %c0_51 = arith.constant 0 : index
    %c1 = arith.constant 1 : index
    %c0_52 = arith.constant 0 : index
    %c0_53 = arith.constant 0 : index
    %115 = vector.load %arg14[%c0_51, %c1, %c0_52, %c0_53] : memref<1x2x8x128xf32, #tpu.memory_space<vmem>>, vector<1x1x8x128xf32>
    %116 = vector.shape_cast %115 : vector<1x1x8x128xf32> to vector<8x128xf32>
    %117 = vector.shape_cast %114 : vector<8x128xf32> to vector<1x1x8x128xf32>
    tpu.vector_store %arg14[%c0_51, %c1, %c0_52, %c0_53], %117 {strides = array<i32>} : memref<1x2x8x128xf32, #tpu.memory_space<vmem>>, vector<1x1x8x128xf32>,
    return
  }
  func.func @transform_0(%arg0: i32) -> (i32, i32, i32) {
    %c0_i32 = arith.constant 0 : i32
    %c0_i32_0 = arith.constant 0 : i32
    %c0_i32_1 = arith.constant 0 : i32
    return %arg0, %c0_i32, %c0_i32_0 : i32, i32, i32
  }
  func.func @transform_1(%arg0: i32) -> (i32, i32) {
    %c0_i32 = arith.constant 0 : i32
    %c0_i32_0 = arith.constant 0 : i32
    %c0_i32_1 = arith.constant 0 : i32
    return %c0_i32, %c0_i32_0 : i32, i32
  }
  func.func @transform_2(%arg0: i32) -> (i32, i32) {
    %c0_i32 = arith.constant 0 : i32
    %c0_i32_0 = arith.constant 0 : i32
    %c0_i32_1 = arith.constant 0 : i32
    return %c0_i32, %c0_i32_0 : i32, i32
  }
  func.func @transform_3(%arg0: i32) -> (i32, i32) {
    %c0_i32 = arith.constant 0 : i32
    %c0_i32_0 = arith.constant 0 : i32
    %c0_i32_1 = arith.constant 0 : i32
    return %c0_i32, %c0_i32_0 : i32, i32
  }
  func.func @transform_4(%arg0: i32) -> (i32, i32) {
    %c0_i32 = arith.constant 0 : i32
    %c0_i32_0 = arith.constant 0 : i32
    %c0_i32_1 = arith.constant 0 : i32
    return %c0_i32, %c0_i32_0 : i32, i32
  }
  func.func @transform_5(%arg0: i32) -> (i32, i32) {
    %c0_i32 = arith.constant 0 : i32
    %c0_i32_0 = arith.constant 0 : i32
    %c0_i32_1 = arith.constant 0 : i32
    return %c0_i32, %c0_i32_0 : i32, i32
  }
  func.func @transform_6(%arg0: i32) -> (i32, i32) {
    %c0_i32 = arith.constant 0 : i32
    %c0_i32_0 = arith.constant 0 : i32
    %c0_i32_1 = arith.constant 0 : i32
    return %c0_i32, %c0_i32_0 : i32, i32
  }
  func.func @transform_7(%arg0: i32) -> (i32, i32) {
    %c0_i32 = arith.constant 0 : i32
    %c0_i32_0 = arith.constant 0 : i32
    %c0_i32_1 = arith.constant 0 : i32
    return %c0_i32, %c0_i32_0 : i32, i32
  }
  func.func @transform_8(%arg0: i32) -> (i32, i32) {
    %c0_i32 = arith.constant 0 : i32
    %c0_i32_0 = arith.constant 0 : i32
    %c0_i32_1 = arith.constant 0 : i32
    return %c0_i32, %c0_i32_0 : i32, i32
  }
  func.func @transform_9(%arg0: i32) -> (i32, i32) {
    %c0_i32 = arith.constant 0 : i32
    %c0_i32_0 = arith.constant 0 : i32
    %c0_i32_1 = arith.constant 0 : i32
    return %c0_i32, %c0_i32_0 : i32, i32
  }
  func.func @transform_10(%arg0: i32) -> (i32, i32) {
    %c0_i32 = arith.constant 0 : i32
    %c0_i32_0 = arith.constant 0 : i32
    %c0_i32_1 = arith.constant 0 : i32
    return %c0_i32, %c0_i32_0 : i32, i32
  }
  func.func @transform_11(%arg0: i32) -> (i32, i32) {
    %c0_i32 = arith.constant 0 : i32
    %c0_i32_0 = arith.constant 0 : i32
    %c0_i32_1 = arith.constant 0 : i32
    return %c0_i32, %c0_i32_0 : i32, i32
  }
  func.func @transform_12(%arg0: i32) -> (i32, i32) {
    %c0_i32 = arith.constant 0 : i32
    %c0_i32_0 = arith.constant 0 : i32
    %c0_i32_1 = arith.constant 0 : i32
    return %c0_i32, %c0_i32_0 : i32, i32
  }
  func.func @transform_13(%arg0: i32) -> (i32, i32, i32, i32) {
    %c0_i32 = arith.constant 0 : i32
    %c0_i32_0 = arith.constant 0 : i32
    %c0_i32_1 = arith.constant 0 : i32
    %c0_i32_2 = arith.constant 0 : i32
    return %arg0, %c0_i32, %c0_i32_0, %c0_i32_1 : i32, i32, i32, i32
  }
}

module attributes {stable_mosaic.version = 11 : i64} {
  func.func @_lstm_fc_kernel(%arg0: memref<4x2048xf32, #tpu.memory_space<vmem>>, %arg1: memref<2048x512xf32, #tpu.memory_space<vmem>>, %arg2: memref<128x512xf32, #tpu.memory_space<vmem>>, %arg3: memref<1x512xf32, #tpu.memory_space<vmem>>, %arg4: memref<128x5xf32, #tpu.memory_space<vmem>>, %arg5: memref<1x5xf32, #tpu.memory_space<vmem>>, %arg6: memref<4x5xf32, #tpu.memory_space<vmem>>, %arg7: memref<8x128xf32, #tpu.memory_space<vmem>>) attributes {dimension_semantics = [], scalar_prefetch = 0 : i64, scratch_operands = 1 : i64, tpu.core_type = #tpu.core_type<tc>} {
    %c0 = arith.constant 0 : index
    %c0_0 = arith.constant 0 : index
    %0 = vector.load %arg0[%c0, %c0_0] : memref<4x2048xf32, #tpu.memory_space<vmem>>, vector<4x2048xf32>
    %c0_1 = arith.constant 0 : index
    %c0_2 = arith.constant 0 : index
    %1 = vector.load %arg1[%c0_1, %c0_2] : memref<2048x512xf32, #tpu.memory_space<vmem>>, vector<2048x512xf32>
    %cst = arith.constant dense<0.000000e+00> : vector<4x512xf32>
    %2 = tpu.matmul %0, %1, %cst {dimension_numbers = #tpu.dot_dimension_numbers<[1], [0], [0], [1], [0, 0, 1, 1], [], []>} : vector<4x2048xf32>, vector<2048x512xf32>, vector<4x512xf32> -> vector<4x512xf32>
    %c0_3 = arith.constant 0 : index
    %c0_4 = arith.constant 0 : index
    %3 = vector.load %arg2[%c0_3, %c0_4] : memref<128x512xf32, #tpu.memory_space<vmem>>, vector<128x512xf32>
    %c0_5 = arith.constant 0 : index
    %c0_6 = arith.constant 0 : index
    %4 = vector.load %arg3[%c0_5, %c0_6] : memref<1x512xf32, #tpu.memory_space<vmem>>, vector<1x512xf32>
    %cst_7 = arith.constant 0.000000e+00 : f32
    %5 = vector.broadcast %cst_7 : f32 to vector<8x128xf32>
    %c0_8 = arith.constant 0 : index
    %c0_9 = arith.constant 0 : index
    %6 = vector.load %arg7[%c0_8, %c0_9] : memref<8x128xf32, #tpu.memory_space<vmem>>, vector<8x128xf32>
    tpu.vector_store %arg7[%c0_8, %c0_9], %5 {strides = array<i32>} : memref<8x128xf32, #tpu.memory_space<vmem>>, vector<8x128xf32>,
    %cst_10 = arith.constant 0.000000e+00 : f32
    %7 = vector.broadcast %cst_10 : f32 to vector<1x128xf32>
    %cst_11 = arith.constant 0.000000e+00 : f32
    %8 = vector.broadcast %cst_11 : f32 to vector<1x128xf32>
    %9 = vector.extract_strided_slice %2 {offsets = [0, 0], sizes = [1, 512], strides = [1, 1]} : vector<4x512xf32> to vector<1x512xf32>
    %cst_12 = arith.constant dense<0.000000e+00> : vector<1x512xf32>
    %10 = tpu.matmul %7, %3, %cst_12 {dimension_numbers = #tpu.dot_dimension_numbers<[1], [0], [0], [1], [0, 0, 1, 1], [], []>} : vector<1x128xf32>, vector<128x512xf32>, vector<1x512xf32> -> vector<1x512xf32>
    %11 = arith.addf %9, %10 : vector<1x512xf32>
    %12 = arith.addf %11, %4 : vector<1x512xf32>
    %13 = vector.extract_strided_slice %12 {offsets = [0, 0], sizes = [1, 128], strides = [1, 1]} : vector<1x512xf32> to vector<1x128xf32>
    %14 = arith.negf %13 : vector<1x128xf32>
    %15 = math.exp %14 : vector<1x128xf32>
    %cst_13 = arith.constant 1.000000e+00 : f32
    %16 = vector.broadcast %cst_13 : f32 to vector<1x128xf32>
    %17 = arith.addf %16, %15 : vector<1x128xf32>
    %18 = arith.divf %16, %17 : vector<1x128xf32>
    %19 = vector.extract_strided_slice %12 {offsets = [0, 128], sizes = [1, 128], strides = [1, 1]} : vector<1x512xf32> to vector<1x128xf32>
    %20 = arith.negf %19 : vector<1x128xf32>
    %21 = math.exp %20 : vector<1x128xf32>
    %cst_14 = arith.constant 1.000000e+00 : f32
    %22 = vector.broadcast %cst_14 : f32 to vector<1x128xf32>
    %23 = arith.addf %22, %21 : vector<1x128xf32>
    %24 = arith.divf %22, %23 : vector<1x128xf32>
    %25 = vector.extract_strided_slice %12 {offsets = [0, 256], sizes = [1, 128], strides = [1, 1]} : vector<1x512xf32> to vector<1x128xf32>
    %26 = math.tanh %25 : vector<1x128xf32>
    %27 = vector.extract_strided_slice %12 {offsets = [0, 384], sizes = [1, 128], strides = [1, 1]} : vector<1x512xf32> to vector<1x128xf32>
    %28 = arith.negf %27 : vector<1x128xf32>
    %29 = math.exp %28 : vector<1x128xf32>
    %cst_15 = arith.constant 1.000000e+00 : f32
    %30 = vector.broadcast %cst_15 : f32 to vector<1x128xf32>
    %31 = arith.addf %30, %29 : vector<1x128xf32>
    %32 = arith.divf %30, %31 : vector<1x128xf32>
    %33 = arith.mulf %24, %8 : vector<1x128xf32>
    %34 = arith.mulf %18, %26 : vector<1x128xf32>
    %35 = arith.addf %33, %34 : vector<1x128xf32>
    %36 = math.tanh %35 : vector<1x128xf32>
    %37 = arith.mulf %32, %36 : vector<1x128xf32>
    %c0_16 = arith.constant 0 : index
    %c0_17 = arith.constant 0 : index
    %38 = vector.load %arg7[%c0_16, %c0_17] : memref<8x128xf32, #tpu.memory_space<vmem>>, vector<1x128xf32>
    tpu.vector_store %arg7[%c0_16, %c0_17], %37 {strides = array<i32>} : memref<8x128xf32, #tpu.memory_space<vmem>>, vector<1x128xf32>,
    %39 = vector.extract_strided_slice %2 {offsets = [1, 0], sizes = [1, 512], strides = [1, 1]} : vector<4x512xf32> to vector<1x512xf32>
    %cst_18 = arith.constant dense<0.000000e+00> : vector<1x512xf32>
    %40 = tpu.matmul %37, %3, %cst_18 {dimension_numbers = #tpu.dot_dimension_numbers<[1], [0], [0], [1], [0, 0, 1, 1], [], []>} : vector<1x128xf32>, vector<128x512xf32>, vector<1x512xf32> -> vector<1x512xf32>
    %41 = arith.addf %39, %40 : vector<1x512xf32>
    %42 = arith.addf %41, %4 : vector<1x512xf32>
    %43 = vector.extract_strided_slice %42 {offsets = [0, 0], sizes = [1, 128], strides = [1, 1]} : vector<1x512xf32> to vector<1x128xf32>
    %44 = arith.negf %43 : vector<1x128xf32>
    %45 = math.exp %44 : vector<1x128xf32>
    %cst_19 = arith.constant 1.000000e+00 : f32
    %46 = vector.broadcast %cst_19 : f32 to vector<1x128xf32>
    %47 = arith.addf %46, %45 : vector<1x128xf32>
    %48 = arith.divf %46, %47 : vector<1x128xf32>
    %49 = vector.extract_strided_slice %42 {offsets = [0, 128], sizes = [1, 128], strides = [1, 1]} : vector<1x512xf32> to vector<1x128xf32>
    %50 = arith.negf %49 : vector<1x128xf32>
    %51 = math.exp %50 : vector<1x128xf32>
    %cst_20 = arith.constant 1.000000e+00 : f32
    %52 = vector.broadcast %cst_20 : f32 to vector<1x128xf32>
    %53 = arith.addf %52, %51 : vector<1x128xf32>
    %54 = arith.divf %52, %53 : vector<1x128xf32>
    %55 = vector.extract_strided_slice %42 {offsets = [0, 256], sizes = [1, 128], strides = [1, 1]} : vector<1x512xf32> to vector<1x128xf32>
    %56 = math.tanh %55 : vector<1x128xf32>
    %57 = vector.extract_strided_slice %42 {offsets = [0, 384], sizes = [1, 128], strides = [1, 1]} : vector<1x512xf32> to vector<1x128xf32>
    %58 = arith.negf %57 : vector<1x128xf32>
    %59 = math.exp %58 : vector<1x128xf32>
    %cst_21 = arith.constant 1.000000e+00 : f32
    %60 = vector.broadcast %cst_21 : f32 to vector<1x128xf32>
    %61 = arith.addf %60, %59 : vector<1x128xf32>
    %62 = arith.divf %60, %61 : vector<1x128xf32>
    %63 = arith.mulf %54, %35 : vector<1x128xf32>
    %64 = arith.mulf %48, %56 : vector<1x128xf32>
    %65 = arith.addf %63, %64 : vector<1x128xf32>
    %66 = math.tanh %65 : vector<1x128xf32>
    %67 = arith.mulf %62, %66 : vector<1x128xf32>
    %c1 = arith.constant 1 : index
    %c0_22 = arith.constant 0 : index
    %68 = vector.load %arg7[%c1, %c0_22] : memref<8x128xf32, #tpu.memory_space<vmem>>, vector<1x128xf32>
    tpu.vector_store %arg7[%c1, %c0_22], %67 {strides = array<i32>} : memref<8x128xf32, #tpu.memory_space<vmem>>, vector<1x128xf32>,
    %69 = vector.extract_strided_slice %2 {offsets = [2, 0], sizes = [1, 512], strides = [1, 1]} : vector<4x512xf32> to vector<1x512xf32>
    %cst_23 = arith.constant dense<0.000000e+00> : vector<1x512xf32>
    %70 = tpu.matmul %67, %3, %cst_23 {dimension_numbers = #tpu.dot_dimension_numbers<[1], [0], [0], [1], [0, 0, 1, 1], [], []>} : vector<1x128xf32>, vector<128x512xf32>, vector<1x512xf32> -> vector<1x512xf32>
    %71 = arith.addf %69, %70 : vector<1x512xf32>
    %72 = arith.addf %71, %4 : vector<1x512xf32>
    %73 = vector.extract_strided_slice %72 {offsets = [0, 0], sizes = [1, 128], strides = [1, 1]} : vector<1x512xf32> to vector<1x128xf32>
    %74 = arith.negf %73 : vector<1x128xf32>
    %75 = math.exp %74 : vector<1x128xf32>
    %cst_24 = arith.constant 1.000000e+00 : f32
    %76 = vector.broadcast %cst_24 : f32 to vector<1x128xf32>
    %77 = arith.addf %76, %75 : vector<1x128xf32>
    %78 = arith.divf %76, %77 : vector<1x128xf32>
    %79 = vector.extract_strided_slice %72 {offsets = [0, 128], sizes = [1, 128], strides = [1, 1]} : vector<1x512xf32> to vector<1x128xf32>
    %80 = arith.negf %79 : vector<1x128xf32>
    %81 = math.exp %80 : vector<1x128xf32>
    %cst_25 = arith.constant 1.000000e+00 : f32
    %82 = vector.broadcast %cst_25 : f32 to vector<1x128xf32>
    %83 = arith.addf %82, %81 : vector<1x128xf32>
    %84 = arith.divf %82, %83 : vector<1x128xf32>
    %85 = vector.extract_strided_slice %72 {offsets = [0, 256], sizes = [1, 128], strides = [1, 1]} : vector<1x512xf32> to vector<1x128xf32>
    %86 = math.tanh %85 : vector<1x128xf32>
    %87 = vector.extract_strided_slice %72 {offsets = [0, 384], sizes = [1, 128], strides = [1, 1]} : vector<1x512xf32> to vector<1x128xf32>
    %88 = arith.negf %87 : vector<1x128xf32>
    %89 = math.exp %88 : vector<1x128xf32>
    %cst_26 = arith.constant 1.000000e+00 : f32
    %90 = vector.broadcast %cst_26 : f32 to vector<1x128xf32>
    %91 = arith.addf %90, %89 : vector<1x128xf32>
    %92 = arith.divf %90, %91 : vector<1x128xf32>
    %93 = arith.mulf %84, %65 : vector<1x128xf32>
    %94 = arith.mulf %78, %86 : vector<1x128xf32>
    %95 = arith.addf %93, %94 : vector<1x128xf32>
    %96 = math.tanh %95 : vector<1x128xf32>
    %97 = arith.mulf %92, %96 : vector<1x128xf32>
    %c2 = arith.constant 2 : index
    %c0_27 = arith.constant 0 : index
    %98 = vector.load %arg7[%c2, %c0_27] : memref<8x128xf32, #tpu.memory_space<vmem>>, vector<1x128xf32>
    tpu.vector_store %arg7[%c2, %c0_27], %97 {strides = array<i32>} : memref<8x128xf32, #tpu.memory_space<vmem>>, vector<1x128xf32>,
    %99 = vector.extract_strided_slice %2 {offsets = [3, 0], sizes = [1, 512], strides = [1, 1]} : vector<4x512xf32> to vector<1x512xf32>
    %cst_28 = arith.constant dense<0.000000e+00> : vector<1x512xf32>
    %100 = tpu.matmul %97, %3, %cst_28 {dimension_numbers = #tpu.dot_dimension_numbers<[1], [0], [0], [1], [0, 0, 1, 1], [], []>} : vector<1x128xf32>, vector<128x512xf32>, vector<1x512xf32> -> vector<1x512xf32>
    %101 = arith.addf %99, %100 : vector<1x512xf32>
    %102 = arith.addf %101, %4 : vector<1x512xf32>
    %103 = vector.extract_strided_slice %102 {offsets = [0, 0], sizes = [1, 128], strides = [1, 1]} : vector<1x512xf32> to vector<1x128xf32>
    %104 = arith.negf %103 : vector<1x128xf32>
    %105 = math.exp %104 : vector<1x128xf32>
    %cst_29 = arith.constant 1.000000e+00 : f32
    %106 = vector.broadcast %cst_29 : f32 to vector<1x128xf32>
    %107 = arith.addf %106, %105 : vector<1x128xf32>
    %108 = arith.divf %106, %107 : vector<1x128xf32>
    %109 = vector.extract_strided_slice %102 {offsets = [0, 128], sizes = [1, 128], strides = [1, 1]} : vector<1x512xf32> to vector<1x128xf32>
    %110 = arith.negf %109 : vector<1x128xf32>
    %111 = math.exp %110 : vector<1x128xf32>
    %cst_30 = arith.constant 1.000000e+00 : f32
    %112 = vector.broadcast %cst_30 : f32 to vector<1x128xf32>
    %113 = arith.addf %112, %111 : vector<1x128xf32>
    %114 = arith.divf %112, %113 : vector<1x128xf32>
    %115 = vector.extract_strided_slice %102 {offsets = [0, 256], sizes = [1, 128], strides = [1, 1]} : vector<1x512xf32> to vector<1x128xf32>
    %116 = math.tanh %115 : vector<1x128xf32>
    %117 = vector.extract_strided_slice %102 {offsets = [0, 384], sizes = [1, 128], strides = [1, 1]} : vector<1x512xf32> to vector<1x128xf32>
    %118 = arith.negf %117 : vector<1x128xf32>
    %119 = math.exp %118 : vector<1x128xf32>
    %cst_31 = arith.constant 1.000000e+00 : f32
    %120 = vector.broadcast %cst_31 : f32 to vector<1x128xf32>
    %121 = arith.addf %120, %119 : vector<1x128xf32>
    %122 = arith.divf %120, %121 : vector<1x128xf32>
    %123 = arith.mulf %114, %95 : vector<1x128xf32>
    %124 = arith.mulf %108, %116 : vector<1x128xf32>
    %125 = arith.addf %123, %124 : vector<1x128xf32>
    %126 = math.tanh %125 : vector<1x128xf32>
    %127 = arith.mulf %122, %126 : vector<1x128xf32>
    %c3 = arith.constant 3 : index
    %c0_32 = arith.constant 0 : index
    %128 = vector.load %arg7[%c3, %c0_32] : memref<8x128xf32, #tpu.memory_space<vmem>>, vector<1x128xf32>
    tpu.vector_store %arg7[%c3, %c0_32], %127 {strides = array<i32>} : memref<8x128xf32, #tpu.memory_space<vmem>>, vector<1x128xf32>,
    %c0_33 = arith.constant 0 : index
    %c0_34 = arith.constant 0 : index
    %129 = vector.load %arg7[%c0_33, %c0_34] : memref<8x128xf32, #tpu.memory_space<vmem>>, vector<8x128xf32>
    %c0_35 = arith.constant 0 : index
    %c0_36 = arith.constant 0 : index
    %130 = vector.load %arg4[%c0_35, %c0_36] : memref<128x5xf32, #tpu.memory_space<vmem>>, vector<128x5xf32>
    %cst_37 = arith.constant dense<0.000000e+00> : vector<8x5xf32>
    %131 = tpu.matmul %129, %130, %cst_37 {dimension_numbers = #tpu.dot_dimension_numbers<[1], [0], [0], [1], [0, 0, 1, 1], [], []>} : vector<8x128xf32>, vector<128x5xf32>, vector<8x5xf32> -> vector<8x5xf32>
    %c0_38 = arith.constant 0 : index
    %c0_39 = arith.constant 0 : index
    %132 = vector.load %arg5[%c0_38, %c0_39] : memref<1x5xf32, #tpu.memory_space<vmem>>, vector<1x5xf32>
    %133 = vector.broadcast %132 : vector<1x5xf32> to vector<8x5xf32>
    %134 = arith.addf %131, %133 : vector<8x5xf32>
    %135 = vector.extract_strided_slice %134 {offsets = [0, 0], sizes = [4, 5], strides = [1, 1]} : vector<8x5xf32> to vector<4x5xf32>
    %c0_40 = arith.constant 0 : index
    %c0_41 = arith.constant 0 : index
    %136 = vector.load %arg6[%c0_40, %c0_41] : memref<4x5xf32, #tpu.memory_space<vmem>>, vector<4x5xf32>
    tpu.vector_store %arg6[%c0_40, %c0_41], %135 {strides = array<i32>} : memref<4x5xf32, #tpu.memory_space<vmem>>, vector<4x5xf32>,
    return
  }
}

</mosaic_0001>

<bundles_post_ra>
// kernel: tinysleepnet_forward.2
= control target key start
LH: loop header
LB: loop body
LE: loop exit
PB: predicated region body
PF: predicated region fallthrough
CT: control target
= control target key end

     0   :  { %s5783_s25 = smov 0   ;;  %s8786_s0 = inlined_call_operand.vmem [shape: f32[4,504,128], index: 0, kind: input, shape index: {}]   ;;  %s8787_s1 = inlined_call_operand.vmem [shape: f32[128,128], index: 1, kind: input, shape index: {}]   ;;  %s8788_s2 = inlined_call_operand.vmem [shape: f32[1,128], index: 2, kind: input, shape index: {}]   ;;  %s8789_s3 = inlined_call_operand.vmem [shape: f32[1,128], index: 3, kind: input, shape index: {}]   ;;  %s8790_s4 = inlined_call_operand.vmem [shape: f32[1024,128], index: 4, kind: input, shape index: {}]   ;;  %s8791_s5 = inlined_call_operand.vmem [shape: f32[1,128], index: 5, kind: input, shape index: {}]   ;;  %s8792_s6 = inlined_call_operand.vmem [shape: f32[1,128], index: 6, kind: input, shape index: {}]   ;;  %s8793_s7 = inlined_call_operand.vmem [shape: f32[1024,128], index: 7, kind: input, shape index: {}]   ;;  %s8794_s8 = inlined_call_operand.vmem [shape: f32[1,128], index: 8, kind: input, shape index: {}]   ;;  %s8795_s9 = inlined_call_operand.vmem [shape: f32[1,128], index: 9, kind: input, shape index: {}]   ;;  %s8796_s10 = inlined_call_operand.vmem [shape: f32[1024,128], index: 10, kind: input, shape index: {}]   ;;  %s8797_s11 = inlined_call_operand.vmem [shape: f32[1,128], index: 11, kind: input, shape index: {}]   ;;  %s8798_s12 = inlined_call_operand.vmem [shape: f32[1,128], index: 12, kind: input, shape index: {}]   ;;  %s8799_s13 = inlined_call_operand.vmem [shape: f32[4,2,8,128], index: 13, kind: output, shape index: {}]  }
   0x1 LB: > { %s4692_s26 = sadd.s32 4294967295, %s5709_s25   ;;  %p4696_p0 = scmp.ge.s32.totalorder %s5709_s25, 1  ;;  %s5709_s25 = sphi %s5783_s25, %s23_s25  }
   0x2   : > { %p387_p1 = scmp.lt.s32.totalorder %s5709_s25, 5 }
   0x4   : > { %p388_p2 = pnand %p4696_p0, %p387_p1 }
   0x6   : > { %391 = sbr.rel (%p388_p2) target bundleno = 1413 (0x585), region = 72 }
   0xb   : > { %v519_v0 = vld [vmem:[%s8787_s1 + $0x78] sm:$0xff]  ;;  %v5711_v1 = vmov 0.0   ;;  %v518_v2 = vld [vmem:[%s8787_s1 + $0x70] sm:$0xff]  ;;  %vm5712_vm0 = vmmov 0   ;;  %v517_v3 = vld [vmem:[%s8787_s1 + $0x68] sm:$0xff]  ;;  %p431_p3 = scmp.lt.s32.totalorder %s4692_s26, 3 }
   0xc   : > { %5469 = vmatprep.subr.mxu0 %v5711_v1  ;;  %5501 = vmatprep.mubr.msk.f32.mxu0 %vm5712_vm0, %v5711_v1  ;;  %v516_v4 = vld [vmem:[%s8787_s1 + $0x60] sm:$0xff]  ;;  %v515_v5 = vld [vmem:[%s8787_s1 + $0x58] sm:$0xff]  ;;  %v514_v6 = vld [vmem:[%s8787_s1 + $0x50] sm:$0xff]  ;;  %vm1986_vm2 = vcmask 1041409   ;;  %vm1988_vm3 = vcmask 1042434   ;;  %vm1990_vm4 = vcmask 1043459  }
   0xd   : > { %5470 = vmatpush3.msra.mxu0 %v519_v0  ;;  %v513_v7 = vld [vmem:[%s8787_s1 + $0x48] sm:$0xff]  ;;  %v512_v8 = vld [vmem:[%s8787_s1 + $0x40] sm:$0xff]  ;;  %v511_v9 = vld [vmem:[%s8787_s1 + $0x38] sm:$0xff]  ;;  %s8858_s26 = smov (!%p431_p3, %s4692_s26), 3  ;;  %vm1992_vm5 = vcmask 1044484   ;;  %vm1994_vm6 = vcmask 1045509  }
   0xe   : > { %5471 = vmatprep.subr.mxu0 %v5711_v1  ;;  %v510_v10 = vld [vmem:[%s8787_s1 + $0x30] sm:$0xff]  ;;  %v509_v11 = vld [vmem:[%s8787_s1 + $0x28] sm:$0xff]  ;;  %v508_v12 = vld [vmem:[%s8787_s1 + $0x20] sm:$0xff]  ;;  %s5690_s21 = smul.u32 504, %s8858_s26  ;;  %vm1996_vm7 = vcmask 1046534   ;;  %vm1998_vm8 = vcmask 1047559  }
   0xf   : > { %5472 = vmatpush3.msra.mxu0 %v518_v2  ;;  %v507_v13 = vld [vmem:[%s8787_s1 + $0x18] sm:$0xff]  ;;  %v506_v14 = vld [vmem:[%s8787_s1 + $0x10] sm:$0xff]  ;;  %v505_v15 = vld [vmem:[%s8787_s1 + $0x8] sm:$0xff]  ;;  %vm2060_vm9 = vcmask 1042432   ;;  %vm2049_vm10 = vcmask 1046528   ;;  %vm2140_vm11 = vcmask 1044480  }
  0x10   : > { %5473 = vmatprep.subr.mxu0 %v5711_v1  ;;  %s5862_s30 = scalar_lea.vmem %s8786_s0, %s5690_s21  ;;  %v504_v16 = vld [vmem:[%s8787_s1] sm:$0xff]  ;;  %v2300_v48 = vld [vmem:[%s8790_s4 + $0xf8] sm:$0xff]  ;;  %v2299_v51 = vld [vmem:[%s8790_s4 + $0xf0] sm:$0xff]  ;;  %vm2114_vm12 = vcmask 1045504   ;;  %vm2166_vm13 = vcmask 1043456   ;;  %vm2243_vm14 = vcmask 1040384  }
  0x11   : > { %5474 = vmatpush3.msra.mxu0 %v517_v3  ;;  %v441_v17 = vld [vmem:[%s5862_s30] sm:$0xff]  ;;  %v442_v18 = vld [vmem:[%s5862_s30 + $0x8] sm:$0xff]  ;;  %v443_v19 = vld [vmem:[%s5862_s30 + $0x10] sm:$0xff]  ;;  %4797 = vmatprep.subr.mxu1 %v2300_v48  ;;  %vm2217_vm15 = vcmask 1041408  }
  0x12   : > { %5475 = vmatprep.subr.mxu0 %v5711_v1  ;;  %v444_v20 = vld [vmem:[%s5862_s30 + $0x18] sm:$0xff]  ;;  %v445_v21 = vld [vmem:[%s5862_s30 + $0x20] sm:$0xff]  ;;  %v446_v22 = vld [vmem:[%s5862_s30 + $0x28] sm:$0xff] }
  0x13   : > { %5476 = vmatpush3.msra.mxu0 %v516_v4  ;;  %v447_v23 = vld [vmem:[%s5862_s30 + $0x30] sm:$0xff]  ;;  %v448_v24 = vld [vmem:[%s5862_s30 + $0x38] sm:$0xff]  ;;  %v449_v25 = vld [vmem:[%s5862_s30 + $0x40] sm:$0xff] }
  0x14   : > { %5477 = vmatprep.subr.mxu0 %v5711_v1  ;;  %v450_v26 = vld [vmem:[%s5862_s30 + $0x48] sm:$0xff]  ;;  %v451_v27 = vld [vmem:[%s5862_s30 + $0x50] sm:$0xff]  ;;  %v452_v28 = vld [vmem:[%s5862_s30 + $0x58] sm:$0xff] }
  0x15   : > { %5478 = vmatpush3.msra.mxu0 %v515_v5  ;;  %v453_v29 = vld [vmem:[%s5862_s30 + $0x60] sm:$0xff]  ;;  %v454_v30 = vld [vmem:[%s5862_s30 + $0x68] sm:$0xff]  ;;  %v455_v31 = vld [vmem:[%s5862_s30 + $0x70] sm:$0xff] }
  0x16   : > { %5479 = vmatprep.subr.mxu0 %v5711_v1  ;;  %v456_v32 = vld [vmem:[%s5862_s30 + $0x78] sm:$0xff]  ;;  %v457_v33 = vld [vmem:[%s5862_s30 + $0x80] sm:$0xff]  ;;  %v458_v34 = vld [vmem:[%s5862_s30 + $0x88] sm:$0xff] }
  0x17   : > { %5480 = vmatpush3.msra.mxu0 %v514_v6  ;;  %v459_v35 = vld [vmem:[%s5862_s30 + $0x90] sm:$0xff]  ;;  %v460_v36 = vld [vmem:[%s5862_s30 + $0x98] sm:$0xff]  ;;  %v461_v37 = vld [vmem:[%s5862_s30 + $0xa0] sm:$0xff] }
  0x18   : > { %5481 = vmatprep.subr.mxu0 %v5711_v1  ;;  %v462_v38 = vld [vmem:[%s5862_s30 + $0xa8] sm:$0xff]  ;;  %v463_v39 = vld [vmem:[%s5862_s30 + $0xb0] sm:$0xff]  ;;  %v464_v40 = vld [vmem:[%s5862_s30 + $0xb8] sm:$0xff] }
  0x19   : > { %5482 = vmatpush3.msra.mxu0 %v513_v7  ;;  %v465_v41 = vld [vmem:[%s5862_s30 + $0xc0] sm:$0xff]  ;;  %v466_v42 = vld [vmem:[%s5862_s30 + $0xc8] sm:$0xff]  ;;  %v467_v43 = vld [vmem:[%s5862_s30 + $0xd0] sm:$0xff] }
  0x1a   : > { %5483 = vmatprep.subr.mxu0 %v5711_v1  ;;  %v468_v44 = vld [vmem:[%s5862_s30 + $0xd8] sm:$0xff]  ;;  %v469_v45 = vld [vmem:[%s5862_s30 + $0xe0] sm:$0xff]  ;;  %v470_v46 = vld [vmem:[%s5862_s30 + $0xe8] sm:$0xff] }
  0x1b   : > { %5484 = vmatpush3.msra.mxu0 %v512_v8  ;;  %v471_v47 = vld [vmem:[%s5862_s30 + $0xf0] sm:$0xff]  ;;  %v2284_v49 = vld [vmem:[%s8790_s4 + $0x78] sm:$0xff]  ;;  %v2298_v53 = vld [vmem:[%s8790_s4 + $0xe8] sm:$0xff] }
  0x1c   : > { %5485 = vmatprep.subr.mxu0 %v5711_v1  ;;  %v472_v50 = vld [vmem:[%s5862_s30 + $0xf8] sm:$0xff]  ;;  %4798 = vmatpush3.msra.mxu1 %v2284_v49  ;;  %v2283_v52 = vld [vmem:[%s8790_s4 + $0x70] sm:$0xff]  ;;  %v2282_v54 = vld [vmem:[%s8790_s4 + $0x68] sm:$0xff] }
  0x1d   : > { %5486 = vmatpush3.msra.mxu0 %v511_v9  ;;  %4799 = vmatprep.subr.mxu1 %v2299_v51  ;;  %v473_v55 = vld [vmem:[%s5862_s30 + $0x100] sm:$0xff]  ;;  %v2296_v58 = vld [vmem:[%s8790_s4 + $0xd8] sm:$0xff]  ;;  %v474_v60 = vld [vmem:[%s5862_s30 + $0x108] sm:$0xff] }
  0x1e   : > { %5487 = vmatprep.subr.mxu0 %v5711_v1  ;;  %4800 = vmatpush3.msra.mxu1 %v2283_v52  ;;  %v2297_v56 = vld [vmem:[%s8790_s4 + $0xe0] sm:$0xff]  ;;  %v2280_v59 = vld [vmem:[%s8790_s4 + $0x58] sm:$0xff]  ;;  %v2295_v61 = vld [vmem:[%s8790_s4 + $0xd0] sm:$0xff] }
  0x1f   : > { %5488 = vmatpush3.msra.mxu0 %v510_v10  ;;  %4801 = vmatprep.subr.mxu1 %v2298_v53  ;;  %v2281_v57 = vld [vmem:[%s8790_s4 + $0x60] sm:$0xff]  ;;  %v2279_v62 = vld [vmem:[%s8790_s4 + $0x50] sm:$0xff]  ;;  %v2294_v63 = vld [vmem:[%s8790_s4 + $0xc8] sm:$0xff]  ;;  %v1103_v53 = vlaneseq }
  0x20   : > { %5489 = vmatprep.subr.mxu0 %v5711_v1  ;;  %4802 = vmatpush3.msra.mxu1 %v2282_v54  ;;  %v2278_v0 = vld [vmem:[%s8790_s4 + $0x48] sm:$0xff]  ;;  %v475_v2 = vld [vmem:[%s5862_s30 + $0x110] sm:$0xff]  ;;  %v2293_v3 = vld [vmem:[%s8790_s4 + $0xc0] sm:$0xff] }
  0x21   : > { %5490 = vmatpush3.msra.mxu0 %v509_v11  ;;  %4803 = vmatprep.subr.mxu1 %v2297_v56  ;;  %v2277_v4 = vld [vmem:[%s8790_s4 + $0x40] sm:$0xff]  ;;  %v2292_v5 = vld [vmem:[%s8790_s4 + $0xb8] sm:$0xff]  ;;  %v2291_v8 = vld [vmem:[%s8790_s4 + $0xb0] sm:$0xff] }
  0x22   : > { %5491 = vmatprep.subr.mxu0 %v5711_v1  ;;  %4804 = vmatpush3.msra.mxu1 %v2281_v57  ;;  %v2276_v6 = vld [vmem:[%s8790_s4 + $0x38] sm:$0xff]  ;;  %v2275_v9 = vld [vmem:[%s8790_s4 + $0x30] sm:$0xff]  ;;  %v2290_v10 = vld [vmem:[%s8790_s4 + $0xa8] sm:$0xff] }
  0x23   : > { %5492 = vmatpush3.msra.mxu0 %v508_v12  ;;  %4805 = vmatprep.subr.mxu1 %v2296_v58  ;;  %v476_v7 = vld [vmem:[%s5862_s30 + $0x118] sm:$0xff]  ;;  %v2274_v11 = vld [vmem:[%s8790_s4 + $0x28] sm:$0xff]  ;;  %v477_v12 = vld [vmem:[%s5862_s30 + $0x120] sm:$0xff] }
  0x24   : > { %5493 = vmatprep.subr.mxu0 %v5711_v1  ;;  %4806 = vmatpush3.msra.mxu1 %v2280_v59  ;;  %v494_v49 = vld [vmem:[%s5862_s30 + $0x1a8] sm:$0xff]  ;;  %v6134_v52 = vld [vmem:[%s8789_s3] ss:$0 sm:$0xff]  ;;  %v495_v56 = vld [vmem:[%s5862_s30 + $0x1b0] sm:$0xff]  ;;  %v6141_v59 = vshrl.u32 %v1103_v53, 7 }
  0x25   : > { %5494 = vmatpush3.msra.mxu0 %v507_v13  ;;  %4807 = vmatprep.subr.mxu1 %v2295_v61  ;;  %v2289_v13 = vld [vmem:[%s8790_s4 + $0xa0] sm:$0xff] }
  0x26   : > { %5495 = vmatprep.subr.mxu0 %v5711_v1  ;;  %4808 = vmatpush3.msra.mxu1 %v2279_v62  ;;  %8823 = vst [vmem:[#allocation2_spill] sm:$0xff] %v6141_v59  ;;  %v496_v62 = vld [vmem:[%s5862_s30 + $0x1b8] sm:$0xff]  ;;  %vm1167_vm1 = vcmp.ge.s32.totalorder %v6141_v59, 2 }
  0x27   : > { %5496 = vmatpush3.msra.mxu0 %v506_v14  ;;  %4809 = vmatprep.subr.mxu1 %v2294_v63  ;;  %v2273_v14 = vld [vmem:[%s8790_s4 + $0x20] sm:$0xff] }
  0x28   : > { %5497 = vmatprep.subr.mxu0 %v5711_v1  ;;  %4810 = vmatpush3.msra.mxu1 %v2278_v0 }
  0x29   : > { %5498 = vmatpush3.msra.mxu0 %v505_v15  ;;  %4811 = vmatprep.subr.mxu1 %v2293_v3  ;;  %v2288_v15 = vld [vmem:[%s8790_s4 + $0x98] sm:$0xff] }
  0x2a   : > { %5499 = vmatprep.subr.mxu0 %v5711_v1  ;;  %4812 = vmatpush3.msra.mxu1 %v2277_v4 }
  0x2b   : > { %5500 = vmatpush3.msra.mxu0 %v504_v16  ;;  %4813 = vmatprep.subr.mxu1 %v2292_v5  ;;  %v2272_v16 = vld [vmem:[%s8790_s4 + $0x18] sm:$0xff] }
  0x2c   : > { %5502 = vmatmul.mubr.f32.vlgmr.msra.gmra.mxu0 %v441_v17  ;;  %4814 = vmatpush3.msra.mxu1 %v2276_v6  ;;  %v478_v17 = vld [vmem:[%s5862_s30 + $0x128] sm:$0xff]  ;;  %v497_v6 = vld [vmem:[%s5862_s30 + $0x1c0] sm:$0xff] }
  0x2d   : > { %5504 = vmatprep.mubr.msk.f32.mxu0 %vm5712_vm0, %v5711_v1  ;;  %4815 = vmatprep.subr.mxu1 %v2291_v8 }
  0x2e   : > { %4816 = vmatpush3.msra.mxu1 %v2275_v9 }
  0x2f   : > { %4817 = vmatprep.subr.mxu1 %v2290_v10 }
  0x30   : > { %5505 = vmatmul.mubr.f32.gmra.mxu0 %v442_v18  ;;  %4818 = vmatpush3.msra.mxu1 %v2274_v11  ;;  %v2287_v18 = vld [vmem:[%s8790_s4 + $0x90] sm:$0xff] }
  0x31   : > { %5507 = vmatprep.mubr.msk.f32.mxu0 %vm5712_vm0, %v5711_v1  ;;  %4819 = vmatprep.subr.mxu1 %v2289_v13 }
  0x32   : > { %4820 = vmatpush3.msra.mxu1 %v2273_v14 }
  0x33   : > { %4821 = vmatprep.subr.mxu1 %v2288_v15 }
  0x34   : > { %5508 = vmatmul.mubr.f32.gmra.mxu0 %v443_v19  ;;  %4822 = vmatpush3.msra.mxu1 %v2272_v16  ;;  %v2271_v19 = vld [vmem:[%s8790_s4 + $0x10] sm:$0xff]  ;;  %v498_v16 = vld [vmem:[%s5862_s30 + $0x1c8] sm:$0xff] }
  0x35   : > { %5510 = vmatprep.mubr.msk.f32.mxu0 %vm5712_vm0, %v5711_v1  ;;  %4823 = vmatprep.subr.mxu1 %v2287_v18 }
  0x36   : > { %4824 = vmatpush3.msra.mxu1 %v2271_v19 }
  0x38   : > { %5511 = vmatmul.mubr.f32.gmra.mxu0 %v444_v20  ;;  %v2286_v20 = vld [vmem:[%s8790_s4 + $0x88] sm:$0xff] }
  0x39   : > { %5513 = vmatprep.mubr.msk.f32.mxu0 %vm5712_vm0, %v5711_v1  ;;  %4825 = vmatprep.subr.mxu1 %v2286_v20 }
  0x3c   : > { %5514 = vmatmul.mubr.f32.gmra.mxu0 %v445_v21  ;;  %v2270_v21 = vld [vmem:[%s8790_s4 + $0x8] sm:$0xff] }
  0x3d   : > { %5516 = vmatprep.mubr.msk.f32.mxu0 %vm5712_vm0, %v5711_v1  ;;  %4826 = vmatpush3.msra.mxu1 %v2270_v21 }
  0x40   : > { %5517 = vmatmul.mubr.f32.gmra.mxu0 %v446_v22  ;;  %v479_v22 = vld [vmem:[%s5862_s30 + $0x130] sm:$0xff] }
  0x41   : > { %5519 = vmatprep.mubr.msk.f32.mxu0 %vm5712_vm0, %v5711_v1 }
  0x44   : > { %5520 = vmatmul.mubr.f32.gmra.mxu0 %v447_v23  ;;  %v2285_v23 = vld [vmem:[%s8790_s4 + $0x80] sm:$0xff] }
  0x45   : > { %5522 = vmatprep.mubr.msk.f32.mxu0 %vm5712_vm0, %v5711_v1  ;;  %4827 = vmatprep.subr.mxu1 %v2285_v23 }
  0x48   : > { %5523 = vmatmul.mubr.f32.gmra.mxu0 %v448_v24  ;;  %v2269_v24 = vld [vmem:[%s8790_s4] sm:$0xff] }
  0x49   : > { %5525 = vmatprep.mubr.msk.f32.mxu0 %vm5712_vm0, %v5711_v1  ;;  %4828 = vmatpush3.msra.mxu1 %v2269_v24 }
  0x4c   : > { %5526 = vmatmul.mubr.f32.gmra.mxu0 %v449_v25  ;;  %v480_v25 = vld [vmem:[%s5862_s30 + $0x138] sm:$0xff] }
  0x4d   : > { %5528 = vmatprep.mubr.msk.f32.mxu0 %vm5712_vm0, %v5711_v1 }
  0x50   : > { %5529 = vmatmul.mubr.f32.gmra.mxu0 %v450_v26  ;;  %v481_v26 = vld [vmem:[%s5862_s30 + $0x140] sm:$0xff] }
  0x51   : > { %5531 = vmatprep.mubr.msk.f32.mxu0 %vm5712_vm0, %v5711_v1 }
  0x54   : > { %5532 = vmatmul.mubr.f32.gmra.mxu0 %v451_v27  ;;  %v482_v27 = vld [vmem:[%s5862_s30 + $0x148] sm:$0xff] }
  0x55   : > { %5534 = vmatprep.mubr.msk.f32.mxu0 %vm5712_vm0, %v5711_v1 }
  0x58   : > { %5535 = vmatmul.mubr.f32.gmra.mxu0 %v452_v28  ;;  %v483_v28 = vld [vmem:[%s5862_s30 + $0x150] sm:$0xff] }
  0x59   : > { %5537 = vmatprep.mubr.msk.f32.mxu0 %vm5712_vm0, %v5711_v1 }
  0x5c   : > { %5538 = vmatmul.mubr.f32.gmra.mxu0 %v453_v29  ;;  %v484_v29 = vld [vmem:[%s5862_s30 + $0x158] sm:$0xff] }
  0x5d   : > { %5540 = vmatprep.mubr.msk.f32.mxu0 %vm5712_vm0, %v5711_v1 }
  0x60   : > { %5541 = vmatmul.mubr.f32.gmra.mxu0 %v454_v30  ;;  %v485_v30 = vld [vmem:[%s5862_s30 + $0x160] sm:$0xff] }
  0x61   : > { %5543 = vmatprep.mubr.msk.f32.mxu0 %vm5712_vm0, %v5711_v1 }
  0x64   : > { %5544 = vmatmul.mubr.f32.gmra.mxu0 %v455_v31  ;;  %v486_v31 = vld [vmem:[%s5862_s30 + $0x168] sm:$0xff] }
  0x65   : > { %5546 = vmatprep.mubr.msk.f32.mxu0 %vm5712_vm0, %v5711_v1 }
  0x68   : > { %5547 = vmatmul.mubr.f32.gmra.mxu0 %v456_v32  ;;  %v487_v32 = vld [vmem:[%s5862_s30 + $0x170] sm:$0xff] }
  0x69   : > { %5549 = vmatprep.mubr.msk.f32.mxu0 %vm5712_vm0, %v5711_v1 }
  0x6c   : > { %5550 = vmatmul.mubr.f32.gmra.mxu0 %v457_v33  ;;  %v488_v33 = vld [vmem:[%s5862_s30 + $0x178] sm:$0xff] }
  0x6d   : > { %5552 = vmatprep.mubr.msk.f32.mxu0 %vm5712_vm0, %v5711_v1 }
  0x70   : > { %5553 = vmatmul.mubr.f32.gmra.mxu0 %v458_v34  ;;  %v489_v34 = vld [vmem:[%s5862_s30 + $0x180] sm:$0xff] }
  0x71   : > { %5555 = vmatprep.mubr.msk.f32.mxu0 %vm5712_vm0, %v5711_v1 }
  0x74   : > { %5556 = vmatmul.mubr.f32.gmra.mxu0 %v459_v35 }
  0x75   : > { %5558 = vmatprep.mubr.msk.f32.mxu0 %vm5712_vm0, %v5711_v1 }
  0x78   : > { %5559 = vmatmul.mubr.f32.gmra.mxu0 %v460_v36  ;;  %v490_v36 = vld [vmem:[%s5862_s30 + $0x188] sm:$0xff] }
  0x79   : > { %5561 = vmatprep.mubr.msk.f32.mxu0 %vm5712_vm0, %v5711_v1 }
  0x7c   : > { %5562 = vmatmul.mubr.f32.gmra.mxu0 %v461_v37 }
  0x7d   : > { %5564 = vmatprep.mubr.msk.f32.mxu0 %vm5712_vm0, %v5711_v1 }
  0x80   : > { %5565 = vmatmul.mubr.f32.gmra.mxu0 %v462_v38 }
  0x81   : > { %5567 = vmatprep.mubr.msk.f32.mxu0 %vm5712_vm0, %v5711_v1 }
  0x84   : > { %5568 = vmatmul.mubr.f32.gmra.mxu0 %v463_v39  ;;  %v491_v39 = vld [vmem:[%s5862_s30 + $0x190] sm:$0xff] }
  0x85   : > { %5570 = vmatprep.mubr.msk.f32.mxu0 %vm5712_vm0, %v5711_v1 }
  0x88   : > { %5571 = vmatmul.mubr.f32.gmra.mxu0 %v464_v40 }
  0x89   : > { %5573 = vmatprep.mubr.msk.f32.mxu0 %vm5712_vm0, %v5711_v1 }
  0x8c   : > { %5574 = vmatmul.mubr.f32.gmra.mxu0 %v465_v41 }
  0x8d   : > { %5576 = vmatprep.mubr.msk.f32.mxu0 %vm5712_vm0, %v5711_v1 }
  0x90   : > { %5577 = vmatmul.mubr.f32.gmra.mxu0 %v466_v42  ;;  %v492_v42 = vld [vmem:[%s5862_s30 + $0x198] sm:$0xff] }
  0x91   : > { %5579 = vmatprep.mubr.msk.f32.mxu0 %vm5712_vm0, %v5711_v1 }
  0x94   : > { %5580 = vmatmul.mubr.f32.gmra.mxu0 %v467_v43 }
  0x95   : > { %5582 = vmatprep.mubr.msk.f32.mxu0 %vm5712_vm0, %v5711_v1 }
  0x98   : > { %5583 = vmatmul.mubr.f32.gmra.mxu0 %v468_v44 }
  0x99   : > { %5585 = vmatprep.mubr.msk.f32.mxu0 %vm5712_vm0, %v5711_v1 }
  0x9c   : > { %5586 = vmatmul.mubr.f32.gmra.mxu0 %v469_v45  ;;  %v493_v45 = vld [vmem:[%s5862_s30 + $0x1a0] sm:$0xff] }
  0x9d   : > { %5588 = vmatprep.mubr.msk.f32.mxu0 %vm5712_vm0, %v5711_v1 }
  0xa0   : > { %5589 = vmatmul.mubr.f32.gmra.mxu0 %v470_v46 }
  0xa1   : > { %5591 = vmatprep.mubr.msk.f32.mxu0 %vm5712_vm0, %v5711_v1 }
  0xa4   : > { %5592 = vmatmul.mubr.f32.gmra.mxu0 %v471_v47  ;;  %v6125_v47 = vld [vmem:[%s8788_s2] ss:$0 sm:$0xff] }
  0xa5   : > { %5594 = vmatprep.mubr.msk.f32.mxu0 %vm5712_vm0, %v5711_v1 }
  0xa8   : > { %5595 = vmatmul.mubr.f32.gmra.mxu0 %v472_v50 }
  0xa9   : > { %5597 = vmatprep.mubr.msk.f32.mxu0 %vm5712_vm0, %v5711_v1 }
  0xac   : > { %5598 = vmatmul.mubr.f32.gmra.mxu0 %v473_v55 }
  0xad   : > { %5600 = vmatprep.mubr.msk.f32.mxu0 %vm5712_vm0, %v5711_v1 }
  0xb0   : > { %5601 = vmatmul.mubr.f32.gmra.mxu0 %v474_v60 }
  0xb1   : > { %5603 = vmatprep.mubr.msk.f32.mxu0 %vm5712_vm0, %v5711_v1 }
  0xb4   : > { %5604 = vmatmul.mubr.f32.gmra.mxu0 %v475_v2 }
  0xb5   : > { %5606 = vmatprep.mubr.msk.f32.mxu0 %vm5712_vm0, %v5711_v1 }
  0xb8   : > { %5607 = vmatmul.mubr.f32.gmra.mxu0 %v476_v7 }
  0xb9   : > { %5609 = vmatprep.mubr.msk.f32.mxu0 %vm5712_vm0, %v5711_v1 }
  0xbc   : > { %5610 = vmatmul.mubr.f32.gmra.mxu0 %v477_v12 }
  0xbd   : > { %5612 = vmatprep.mubr.msk.f32.mxu0 %vm5712_vm0, %v5711_v1 }
  0xc0   : > { %5613 = vmatmul.mubr.f32.gmra.mxu0 %v478_v17 }
  0xc1   : > { %5615 = vmatprep.mubr.msk.f32.mxu0 %vm5712_vm0, %v5711_v1 }
  0xc4   : > { %5616 = vmatmul.mubr.f32.gmra.mxu0 %v479_v22 }
  0xc5   : > { %5618 = vmatprep.mubr.msk.f32.mxu0 %vm5712_vm0, %v5711_v1 }
  0xc8   : > { %5619 = vmatmul.mubr.f32.gmra.mxu0 %v480_v25 }
  0xc9   : > { %5621 = vmatprep.mubr.msk.f32.mxu0 %vm5712_vm0, %v5711_v1 }
  0xcc   : > { %5622 = vmatmul.mubr.f32.gmra.mxu0 %v481_v26 }
  0xcd   : > { %5624 = vmatprep.mubr.msk.f32.mxu0 %vm5712_vm0, %v5711_v1 }
  0xd0   : > { %5625 = vmatmul.mubr.f32.gmra.mxu0 %v482_v27  ;;  %v499_v27 = vld [vmem:[%s5862_s30 + $0x1d0] sm:$0xff] }
  0xd1   : > { %5627 = vmatprep.mubr.msk.f32.mxu0 %vm5712_vm0, %v5711_v1 }
  0xd4   : > { %5628 = vmatmul.mubr.f32.gmra.mxu0 %v483_v28 }
  0xd5   : > { %5630 = vmatprep.mubr.msk.f32.mxu0 %vm5712_vm0, %v5711_v1 }
  0xd8   : > { %5631 = vmatmul.mubr.f32.gmra.mxu0 %v484_v29 }
  0xd9   : > { %5633 = vmatprep.mubr.msk.f32.mxu0 %vm5712_vm0, %v5711_v1 }
  0xdc   : > { %5634 = vmatmul.mubr.f32.gmra.mxu0 %v485_v30 }
  0xdd   : > { %5636 = vmatprep.mubr.msk.f32.mxu0 %vm5712_vm0, %v5711_v1 }
  0xe0   : > { %5637 = vmatmul.mubr.f32.gmra.mxu0 %v486_v31 }
  0xe1   : > { %5639 = vmatprep.mubr.msk.f32.mxu0 %vm5712_vm0, %v5711_v1 }
  0xe4   : > { %5640 = vmatmul.mubr.f32.gmra.mxu0 %v487_v32 }
  0xe5   : > { %5642 = vmatprep.mubr.msk.f32.mxu0 %vm5712_vm0, %v5711_v1 }
  0xe8   : > { %5643 = vmatmul.mubr.f32.gmra.mxu0 %v488_v33 }
  0xe9   : > { %5645 = vmatprep.mubr.msk.f32.mxu0 %vm5712_vm0, %v5711_v1 }
  0xec   : > { %v586_v35 = vpop.f32.mrf.mxu0  ;;  %5646 = vmatmul.mubr.f32.gmra.mxu0 %v489_v34 }
  0xed   : > { %5648 = vmatprep.mubr.msk.f32.mxu0 %vm5712_vm0, %v5711_v1  ;;  %v907_v50 = vmul.f32 %v6125_v47, %v586_v35 }
  0xee   : > { %v5503_v37 = vpop.f32.mrf.mxu0 }
  0xef   : > { %v977_v57 = vadd.f32 %v6134_v52, %v907_v50 }
  0xf0   : > { %v591_v38 = vpop.f32.mrf.mxu0  ;;  %5649 = vmatmul.mubr.f32.gmra.mxu0 %v490_v36 }
  0xf1   : > { %5651 = vmatprep.mubr.msk.f32.mxu0 %vm5712_vm0, %v5711_v1  ;;  %v908_v55 = vmul.f32 %v6125_v47, %v591_v38  ;;  %v1040_v63 = vmax.f32 %v977_v57, 0.0  ;;  %v501_v57 = vld [vmem:[%s5862_s30 + $0x1e0] sm:$0xff] }
  0xf2   : > { %v5506_v40 = vpop.f32.mrf.mxu0 }
  0xf3   : > { %v978_v61 = vadd.f32 %v6134_v52, %v908_v55  ;;  %v1482_v7 = vsel %vm1167_vm1, %v1040_v63, 0.0  ;;  %v500_v40 = vld [vmem:[%s5862_s30 + $0x1d8] sm:$0xff] }
  0xf4   : > { %v596_v41 = vpop.f32.mrf.mxu0  ;;  %5652 = vmatmul.mubr.f32.gmra.mxu0 %v491_v39  ;;  %v1545_v13 = vrot.slane %v1482_v7, 4 }
  0xf5   : > { %5654 = vmatprep.mubr.msk.f32.mxu0 %vm5712_vm0, %v5711_v1  ;;  %v909_v0 = vmul.f32 %v6125_v47, %v596_v41  ;;  %v1041_v5 = vmax.f32 %v978_v61, 0.0 }
  0xf6   : > { %v5509_v43 = vpop.f32.mrf.mxu0  ;;  %v1546_v24 = vmax.f32 %v1482_v7, %v1545_v13 }
  0xf7   : > { %v979_v8 = vadd.f32 %v6134_v52, %v909_v0  ;;  %v1551_v14 = vrot.slane %v1041_v5, 4 }
  0xf8   : > { %v601_v44 = vpop.f32.mrf.mxu0  ;;  %5655 = vmatmul.mubr.f32.gmra.mxu0 %v492_v42  ;;  %v1547_v37 = vrot.slane %v1546_v24, 2 }
  0xf9   : > { %5657 = vmatprep.mubr.msk.f32.mxu0 %vm5712_vm0, %v5711_v1  ;;  %v910_v3 = vmul.f32 %v6125_v47, %v601_v44  ;;  %v1042_v17 = vmax.f32 %v979_v8, 0.0  ;;  %v1552_v25 = vmax.f32 %v1041_v5, %v1551_v14 }
  0xfa   : > { %v5512_v46 = vpop.f32.mrf.mxu0 }
  0xfb   : > { %v980_v10 = vadd.f32 %v6134_v52, %v910_v3  ;;  %v1557_v28 = vrot.slane %v1042_v17, 4  ;;  %v1553_v38 = vrot.slane %v1552_v25, 2 }
  0xfc   : > { %v606_v48 = vpop.f32.mrf.mxu0  ;;  %5658 = vmatmul.mubr.f32.gmra.mxu0 %v493_v45 }
  0xfd   : > { %5660 = vmatprep.mubr.msk.f32.mxu0 %vm5712_vm0, %v5711_v1  ;;  %v911_v11 = vmul.f32 %v6125_v47, %v606_v48  ;;  %v1043_v21 = vmax.f32 %v980_v10, 0.0  ;;  %v1558_v41 = vmax.f32 %v1042_v17, %v1557_v28 }
  0xfe   : > { %v5515_v51 = vpop.f32.mrf.mxu0 }
  0xff   : > { %v981_v22 = vadd.f32 %v6134_v52, %v911_v11  ;;  %v1563_v33 = vrot.slane %v1043_v21, 4 }
 0x100   : > { %v611_v54 = vpop.f32.mrf.mxu0  ;;  %5661 = vmatmul.mubr.f32.gmra.mxu0 %v494_v49 }
 0x101   : > { %5663 = vmatprep.mubr.msk.f32.mxu0 %vm5712_vm0, %v5711_v1  ;;  %v912_v15 = vmul.f32 %v6125_v47, %v611_v54  ;;  %v1044_v34 = vmax.f32 %v981_v22, 0.0  ;;  %v1564_v48 = vmax.f32 %v1043_v21, %v1563_v33  ;;  %v1548_v54 = vmax.f32 %v1546_v24, %v1547_v37 }
 0x102   : > { %v5518_v58 = vpop.f32.mrf.mxu0 }
 0x103   : > { %v982_v26 = vadd.f32 %v6134_v52, %v912_v15  ;;  %v1569_v49 = vrot.slane %v1044_v34, 4  ;;  %v1554_v58 = vmax.f32 %v1552_v25, %v1553_v38  ;;  %v1549_v8 = vrot.slane %v1548_v54, 1 }
 0x104   : > { %v616_v60 = vpop.f32.mrf.mxu0  ;;  %5664 = vmatmul.mubr.f32.gmra.mxu0 %v495_v56 }
 0x105   : > { %5666 = vmatprep.mubr.msk.f32.mxu0 %vm5712_vm0, %v5711_v1  ;;  %v913_v18 = vmul.f32 %v6125_v47, %v616_v60  ;;  %v1045_v39 = vmax.f32 %v982_v26, 0.0  ;;  %v1559_v60 = vrot.slane %v1558_v41, 2  ;;  %v1570_v5 = vmax.f32 %v1044_v34, %v1569_v49 }
 0x106   : > { %v5521_v2 = vpop.f32.mrf.mxu0  ;;  %v1555_v13 = vrot.slane %v1554_v58, 1  ;;  %v1550_v26 = vmax.f32 %v1548_v54, %v1549_v8 }
 0x107   : > { %v983_v29 = vadd.f32 %v6134_v52, %v913_v18  ;;  %v1575_v55 = vrot.slane %v1045_v39, 4  ;;  %v1560_v14 = vmax.f32 %v1558_v41, %v1559_v60  ;;  %v1571_v22 = vrot.slane %v1570_v5, 2 }
 0x108   : > { %v621_v4 = vpop.f32.mrf.mxu0  ;;  %5667 = vmatmul.mubr.f32.gmra.mxu0 %v496_v62 }
 0x109   : > { %5669 = vmatprep.mubr.msk.f32.mxu0 %vm5712_vm0, %v5711_v1  ;;  %v914_v20 = vmul.f32 %v6125_v47, %v621_v4  ;;  %v1046_v42 = vmax.f32 %v983_v29, 0.0  ;;  %v1565_v4 = vrot.slane %v1564_v48, 2  ;;  %v1572_v41 = vmax.f32 %v1570_v5, %v1571_v22 }
 0x10a   : > { %v5524_v9 = vpop.f32.mrf.mxu0 }
 0x10b   : > { %v984_v32 = vadd.f32 %v6134_v52, %v914_v20  ;;  %v1581_v61 = vrot.slane %v1046_v42, 4  ;;  %v1576_v9 = vmax.f32 %v1045_v39, %v1575_v55  ;;  %v1566_v21 = vmax.f32 %v1564_v48, %v1565_v4 }
 0x10c   : > { %v626_v12 = vpop.f32.mrf.mxu0  ;;  %5670 = vmatmul.mubr.f32.gmra.mxu0 %v497_v6 }
 0x10d   : > { %5672 = vmatprep.mubr.msk.f32.mxu0 %vm5712_vm0, %v5711_v1  ;;  %v915_v35 = vmul.f32 %v6125_v47, %v626_v12  ;;  %v1047_v46 = vmax.f32 %v984_v32, 0.0  ;;  %v502_v12 = vld [vmem:[%s5862_s30 + $0x1e8] sm:$0xff]  ;;  %v1582_v15 = vmax.f32 %v1046_v42, %v1581_v61  ;;  %v1561_v32 = vrot.slane %v1560_v14, 1 }
 0x10e   : > { %v5527_v19 = vpop.f32.mrf.mxu0  ;;  %v1573_v61 = vrot.slane %v1572_v41, 1 }
 0x10f   : > { %v6177_v50 = vadd.f32 %v6134_v52, %v915_v35  ;;  %v1587_v0 = vrot.slane %v1047_v46, 4  ;;  %v1583_v33 = vrot.slane %v1582_v15, 2 }
 0x110   : > { %v631_v23 = vpop.f32.mrf.mxu0  ;;  %5673 = vmatmul.mubr.f32.gmra.mxu0 %v498_v16 }
 0x111   : > { %5675 = vmatprep.mubr.msk.f32.mxu0 %vm5712_vm0, %v5711_v1  ;;  %v916_v30 = vmul.f32 %v6125_v47, %v631_v23  ;;  %v1048_v6 = vmax.f32 %v6177_v50, 0.0  ;;  %v1588_v18 = vmax.f32 %v1047_v46, %v1587_v0  ;;  %v1562_v50 = vmax.f32 %v1560_v14, %v1561_v32 }
 0x112   : > { %v5530_v31 = vpop.f32.mrf.mxu0 }
 0x113   : > { %v986_v43 = vadd.f32 %v6134_v52, %v916_v30  ;;  %v1593_v23 = vrot.slane %v1048_v6, 4  ;;  %v503_v30 = vld [vmem:[%s5862_s30 + $0x1f0] sm:$0xff]  ;;  %v1556_v31 = vmax.f32 %v1554_v58, %v1555_v13  ;;  %s4717_s30 = sshll.u32 %s8858_s26, 4 }
 0x114   : > { %v636_v36 = vpop.f32.mrf.mxu0  ;;  %5676 = vmatmul.mubr.f32.gmra.mxu0 %v499_v27  ;;  %v1577_v27 = vrot.slane %v1576_v9, 2  ;;  %s440_s16 = scalar_lea.vmem %s8799_s13, %s4717_s30 }
 0x115   : > { %5678 = vmatprep.mubr.msk.f32.mxu0 %vm5712_vm0, %v5711_v1  ;;  %v917_v44 = vmul.f32 %v6125_v47, %v636_v36  ;;  %v1049_v62 = vmax.f32 %v986_v43, 0.0  ;;  %v1589_v36 = vrot.slane %v1588_v18, 2  ;;  %v1594_v42 = vmax.f32 %v1048_v6, %v1593_v23 }
 0x116   : > { %v5533_v45 = vpop.f32.mrf.mxu0  ;;  %v1987_v49 = vsel %vm1986_vm2, %v1556_v31, %v1550_v26 }
 0x117   : > { %v987_v51 = vadd.f32 %v6134_v52, %v917_v44  ;;  %v1599_v16 = vrot.slane %v1049_v62, 4  ;;  %v1590_v55 = vmax.f32 %v1588_v18, %v1589_v36  ;;  %v1989_v6 = vsel %vm1988_vm3, %v1562_v50, %v1987_v49 }
 0x118   : > { %v641_v53 = vpop.f32.mrf.mxu0  ;;  %5679 = vmatmul.mubr.f32.gmra.mxu0 %v500_v40  ;;  %v1567_v40 = vrot.slane %v1566_v21, 1 }
 0x119   : > { %v918_v56 = vmul.f32 %v6125_v47, %v641_v53  ;;  %5681 = vmatprep.mubr.msk.f32.mxu0 %vm5712_vm0, %v5711_v1  ;;  %v1050_v2 = vmax.f32 %v987_v51, 0.0  ;;  %v1600_v34 = vmax.f32 %v1049_v62, %v1599_v16  ;;  %v1584_v51 = vmax.f32 %v1582_v15, %v1583_v33 }
 0x11a   : > { %v5536_v63 = vpop.f32.mrf.mxu0  ;;  %v1568_v60 = vmax.f32 %v1566_v21, %v1567_v40  ;;  %v1595_v62 = vrot.slane %v1594_v42, 2  ;;  %v1574_v15 = vmax.f32 %v1572_v41, %v1573_v61 }
 0x11b   : > { %v988_v3 = vadd.f32 %v6134_v52, %v918_v56  ;;  %v1605_v19 = vrot.slane %v1050_v2, 4  ;;  %v1601_v53 = vrot.slane %v1600_v34, 2 }
 0x11c   : > { %v646_v7 = vpop.f32.mrf.mxu0  ;;  %5682 = vmatmul.mubr.f32.gmra.mxu0 %v501_v57  ;;  %v1596_v16 = vmax.f32 %v1594_v42, %v1595_v62 }
 0x11d   : > { %v1051_v10 = vmax.f32 %v988_v3, 0.0  ;;  %v919_v11 = vmul.f32 %v6125_v47, %v646_v7  ;;  %5684 = vmatprep.mubr.msk.f32.mxu0 %vm5712_vm0, %v5711_v1  ;;  %v1606_v37 = vmax.f32 %v1050_v2, %v1605_v19  ;;  %v1585_v7 = vrot.slane %v1584_v51, 1 }
 0x11e   : > { %v5539_v17 = vpop.f32.mrf.mxu0  ;;  %v1602_v8 = vmax.f32 %v1600_v34, %v1601_v53  ;;  %v1597_v34 = vrot.slane %v1596_v16, 1 }
 0x11f   : > { %v989_v20 = vadd.f32 %v6134_v52, %v919_v11  ;;  %v1611_v24 = vrot.slane %v1051_v10, 4  ;;  %v1607_v56 = vrot.slane %v1606_v37, 2  ;;  %v1591_v11 = vrot.slane %v1590_v55, 1 }
 0x120   : > { %v651_v25 = vpop.f32.mrf.mxu0  ;;  %5685 = vmatmul.mubr.f32.gmra.mxu0 %v502_v12 }
 0x121   : > { %v1052_v28 = vmax.f32 %v989_v20, 0.0  ;;  %v920_v29 = vmul.f32 %v6125_v47, %v651_v25  ;;  %5687 = vmatprep.mubr.msk.f32.mxu0 %vm5712_vm0, %v5711_v1  ;;  %v1612_v43 = vmax.f32 %v1051_v10, %v1611_v24  ;;  %v1578_v1 = vmax.f32 %v1576_v9, %v1577_v27  ;;  %vm6247_vm0 = vmneg %vm2060_vm9 }
 0x122   : > { %v5542_v35 = vpop.f32.mrf.mxu0  ;;  %v1608_v12 = vmax.f32 %v1606_v37, %v1607_v56  ;;  %v1991_v20 = vsel %vm1990_vm4, %v1568_v60, %v1989_v6  ;;  %v1586_v24 = vmax.f32 %v1584_v51, %v1585_v7  ;;  %v1603_v25 = vrot.slane %v1602_v8, 1 }
 0x123   : > { %v1617_v38 = vrot.slane %v1052_v28, 4  ;;  %v990_v39 = vadd.f32 %v6134_v52, %v920_v29  ;;  %v1613_v63 = vrot.slane %v1612_v43, 2  ;;  %v1579_v2 = vrot.slane %v1578_v1, 1 }
 0x124   : > { %v656_v44 = vpop.f32.mrf.mxu0  ;;  %5688 = vmatmul.mubr.f32.gmra.mxu0 %v503_v30  ;;  %v1592_v29 = vmax.f32 %v1590_v55, %v1591_v11  ;;  %v1609_v30 = vrot.slane %v1608_v12, 1  ;;  %v1993_v33 = vsel %vm1992_vm5, %v1574_v15, %v1991_v20  ;;  %v1598_v51 = vmax.f32 %v1596_v16, %v1597_v34 }
 0x125   : > { %v1618_v45 = vmax.f32 %v1052_v28, %v1617_v38  ;;  %v1053_v46 = vmax.f32 %v990_v39, 0.0  ;;  %v921_v48 = vmul.f32 %v6125_v47, %v656_v44  ;;  %v1614_v17 = vmax.f32 %v1612_v43, %v1613_v63 }
 0x126   : > { %v5545_v54 = vpop.f32.mrf.mxu0  ;;  %v1580_v21 = vmax.f32 %v1578_v1, %v1579_v2  ;;  %v1604_v43 = vmax.f32 %v1602_v8, %v1603_v25 }
 0x127   : > { %v1623_v57 = vrot.slane %v1053_v46, 4  ;;  %v991_v58 = vadd.f32 %v6134_v52, %v921_v48  ;;  %v1619_v3 = vrot.slane %v1618_v45, 2  ;;  %v1615_v35 = vrot.slane %v1614_v17, 1 }
 0x128   : > { %v661_v0 = vpop.f32.mrf.mxu0  ;;  %v1995_v38 = vsel %vm1994_vm6, %v1580_v21, %v1993_v33  ;;  %v1610_v48 = vmax.f32 %v1608_v12, %v1609_v30  ;;  %v2000_v61 = vsel %vm1986_vm2, %v1604_v43, %v1598_v51 }
 0x129   : > { %v1624_v4 = vmax.f32 %v1053_v46, %v1623_v57  ;;  %v1054_v5 = vmax.f32 %v991_v58, 0.0  ;;  %v922_v9 = vmul.f32 %v6125_v47, %v661_v0  ;;  %v1620_v22 = vmax.f32 %v1618_v45, %v1619_v3 }
 0x12a   : > { %v5548_v10 = vpop.f32.mrf.mxu0  ;;  %v1997_v42 = vsel %vm1996_vm7, %v1586_v24, %v1995_v38  ;;  %v1616_v53 = vmax.f32 %v1614_v17, %v1615_v35  ;;  %v2001_v2 = vsel %vm1988_vm3, %v1610_v48, %v2000_v61 }
 0x12b   : > { %v1625_v13 = vrot.slane %v1624_v4, 2  ;;  %v1629_v14 = vrot.slane %v1054_v5, 4  ;;  %v992_v18 = vadd.f32 %v6134_v52, %v922_v9  ;;  %v1621_v39 = vrot.slane %v1620_v22, 1 }
 0x12c   : > { %v666_v19 = vpop.f32.mrf.mxu0  ;;  %v1999_v46 = vsel %vm1998_vm8, %v1592_v29, %v1997_v42  ;;  %v2002_v6 = vsel %vm1990_vm4, %v1616_v53, %v2001_v2 }
 0x12d   : > { %v1630_v23 = vmax.f32 %v1054_v5, %v1629_v14  ;;  %v1626_v26 = vmax.f32 %v1624_v4, %v1625_v13  ;;  %v1055_v27 = vmax.f32 %v992_v18, 0.0  ;;  %v923_v32 = vmul.f32 %v6125_v47, %v666_v19 }
 0x12e   : > { %v5551_v28 = vpop.f32.mrf.mxu0  ;;  %v1622_v56 = vmax.f32 %v1620_v22, %v1621_v39  ;;  %v6212_v60 = vrot.slane %v1999_v46, 5 }
 0x12f   : > { %v1631_v31 = vrot.slane %v1630_v23, 2  ;;  %v1635_v36 = vrot.slane %v1055_v27, 4  ;;  %v1627_v44 = vrot.slane %v1626_v26, 1  ;;  %v993_v50 = vadd.f32 %v6134_v52, %v923_v32 }
 0x130   : > { %v671_v37 = vpop.f32.mrf.mxu0  ;;  %v2003_v9 = vsel %vm1992_vm5, %v1622_v56, %v2002_v6  ;;  %v6223_v16 = vsel %vm2060_vm9, 0.0, %v6212_v60 }
 0x131   : > { %v1632_v40 = vmax.f32 %v1630_v23, %v1631_v31  ;;  %v924_v41 = vmul.f32 %v6125_v47, %v671_v37  ;;  %v1636_v1 = vmax.f32 %v1055_v27, %v1635_v36  ;;  %v1628_v62 = vmax.f32 %v1626_v26, %v1627_v44 }
 0x132   : > { %v5554_v45 = vpop.f32.mrf.mxu0  ;;  %v1056_v4 = vmax.f32 %v993_v50, 0.0  ;;  %v2089_v24 = vrot.slane %v6223_v16, 1  ;;  %v2141_v29 = vrot.slane %v6223_v16, 3  ;;  %v2115_v32 = vrot.slane %v6223_v16, 2 }
 0x133   : > { %v1633_v49 = vrot.slane %v1632_v40, 1  ;;  %v1637_v54 = vrot.slane %v1636_v1, 2  ;;  %v994_v57 = vadd.f32 %v6134_v52, %v924_v41  ;;  %v2004_v12 = vsel %vm1994_vm6, %v1628_v62, %v2003_v9 }
 0x134   : > { %v676_v55 = vpop.f32.mrf.mxu0  ;;  %v1641_v18 = vrot.slane %v1056_v4, 4  ;;  %v2192_v33 = vrot.slane %v6223_v16, 5  ;;  %v8824_v41 = vmov 0  ;;  %v2167_v43 = vrot.slane %v6223_v16, 4 }
 0x135   : > { %v925_v58 = vmul.f32 %v6125_v47, %v676_v55  ;;  %v1638_v63 = vmax.f32 %v1636_v1, %v1637_v54  ;;  %v1634_v3 = vmax.f32 %v1632_v40, %v1633_v49  ;;  %v1057_v10 = vmax.f32 %v994_v57, 0.0 }
 0x136   : > { %v5557_v0 = vpop.f32.mrf.mxu0  ;;  %v1642_v31 = vmax.f32 %v1056_v4, %v1641_v18  ;;  %v8825_v41 = vsel %vm6247_vm0, 4294967295, %v8824_v41  ;;  %v2244_v53 = vrot.slane %v6223_v16, 7 }
 0x137   : > { %v995_v5 = vadd.f32 %v6134_v52, %v925_v58  ;;  %v1639_v7 = vrot.slane %v1638_v63, 1  ;;  %v2005_v17 = vsel %vm1996_vm7, %v1634_v3, %v2004_v12  ;;  %v1647_v23 = vrot.slane %v1057_v10, 4  ;;  %8826 = vst [vmem:[#allocation3_spill] sm:$0xff] %v8825_v41 }
 0x138   : > { %v681_v8 = vpop.f32.mrf.mxu0  ;;  %v1643_v54 = vrot.slane %v1642_v31, 2  ;;  %v2218_v12 = vrot.slane %v6223_v16, 6 }
 0x139   : > { %v926_v11 = vmul.f32 %v6125_v47, %v681_v8  ;;  %v1640_v13 = vmax.f32 %v1638_v63, %v1639_v7  ;;  %v1058_v14 = vmax.f32 %v995_v5, 0.0  ;;  %v1648_v39 = vmax.f32 %v1057_v10, %v1647_v23 }
 0x13a   : > { %v5560_v15 = vpop.f32.mrf.mxu0 }
 0x13b   : > { %v996_v19 = vadd.f32 %v6134_v52, %v926_v11  ;;  %v6228_v20 = vsel %vm1998_vm8, %v1640_v13, %v2005_v17  ;;  %v1653_v25 = vrot.slane %v1058_v14, 4  ;;  %v1649_v61 = vrot.slane %v1648_v39, 2 }
 0x13c   : > { %v686_v21 = vpop.f32.mrf.mxu0  ;;  %v2062_v22 = vrot.slane %v6228_v20, 5 }
 0x13d   : > { %v1059_v26 = vmax.f32 %v996_v19, 0.0  ;;  %v927_v27 = vmul.f32 %v6125_v47, %v686_v21  ;;  %v1654_v44 = vmax.f32 %v1058_v14, %v1653_v25  ;;  %v1650_v14 = vmax.f32 %v1648_v39, %v1649_v61 }
 0x13e   : > { %v5563_v28 = vpop.f32.mrf.mxu0  ;;  %v6238_v30 = vsel %vm2060_vm9, %v6212_v60, %v2062_v22  ;;  %v1644_v19 = vmax.f32 %v1642_v31, %v1643_v54 }
 0x13f   : > { %v1659_v34 = vrot.slane %v1059_v26, 4  ;;  %v997_v35 = vadd.f32 %v6134_v52, %v927_v27  ;;  %v2090_v37 = vrot.slane %v6238_v30, 1  ;;  %v2142_v38 = vrot.slane %v6238_v30, 3 }
 0x140   : > { %v691_v36 = vpop.f32.mrf.mxu0  ;;  %v2116_v42 = vrot.slane %v6238_v30, 2  ;;  %v2193_v57 = vrot.slane %v6238_v30, 5  ;;  %v2168_v58 = vrot.slane %v6238_v30, 4  ;;  %v2245_v0 = vrot.slane %v6238_v30, 7 }
 0x141   : > { %v928_v40 = vmul.f32 %v6125_v47, %v691_v36  ;;  %v1060_v1 = vmax.f32 %v997_v35, 0.0  ;;  %v2091_v46 = vsel %vm2049_vm10, %v2089_v24, %v2090_v37  ;;  %v6259_v48 = vsel %vm2140_vm11, %v2141_v29, %v2142_v38 }
 0x142   : > { %v5566_v45 = vpop.f32.mrf.mxu0  ;;  %v1660_v49 = vmax.f32 %v1059_v26, %v1659_v34  ;;  %2461 = vmatprep.mubr.f32.mxu1 %v2091_v46  ;;  %v6265_v51 = vsel %vm2114_vm12, %v2115_v32, %v2116_v42  ;;  %v1655_v2 = vrot.slane %v1654_v44, 2  ;;  %v6278_v5 = vsel %vm2060_vm9, %v2192_v33, %v2193_v57 }
 0x143   : > { %v998_v50 = vadd.f32 %v6134_v52, %v928_v40  ;;  %v1665_v55 = vrot.slane %v1060_v1, 4  ;;  %4703 = vmatmul.mubr.msk.f32.vlgmr.msra.gmra.mxu1 %vm6247_vm0, %v6212_v60  ;;  %v6283_v60 = vsel %vm2166_vm13, %v2167_v43, %v2168_v58  ;;  %v6289_v9 = vsel %vm2243_vm14, %v2244_v53, %v2245_v0 }
 0x144   : > { %v696_v56 = vpop.f32.mrf.mxu0  ;;  %v1661_v6 = vrot.slane %v1660_v49, 2  ;;  %v2219_v13 = vrot.slane %v6238_v30, 6  ;;  %v1656_v21 = vmax.f32 %v1654_v44, %v1655_v2  ;;  %v1651_v32 = vrot.slane %v1650_v14, 1 }
 0x145   : > { %v1061_v62 = vmax.f32 %v998_v50, 0.0  ;;  %v929_v63 = vmul.f32 %v6125_v47, %v696_v56  ;;  %v1666_v3 = vmax.f32 %v1060_v1, %v1665_v55  ;;  %v1645_v39 = vrot.slane %v1644_v19, 1 }
 0x146   : > { %v5569_v4 = vpop.f32.mrf.mxu0  ;;  %v6297_v24 = vsel %vm2217_vm15, %v2218_v12, %v2219_v13  ;;  %v1662_v25 = vmax.f32 %v1660_v49, %v1661_v6  ;;  %v1657_v36 = vrot.slane %v1656_v21, 1  ;;  %v1652_v49 = vmax.f32 %v1650_v14, %v1651_v32 }
 0x147   : > { %v1671_v7 = vrot.slane %v1061_v62, 4  ;;  %v999_v8 = vadd.f32 %v6134_v52, %v929_v63  ;;  %v1667_v10 = vrot.slane %v1666_v3, 2 }
 0x148   : > { %v701_v11 = vpop.f32.mrf.mxu0  ;;  %v1663_v40 = vrot.slane %v1662_v25, 1  ;;  %v1658_v55 = vmax.f32 %v1656_v21, %v1657_v36 }
 0x149   : > { %v1672_v15 = vmax.f32 %v1061_v62, %v1671_v7  ;;  %v1062_v17 = vmax.f32 %v999_v8, 0.0  ;;  %v930_v18 = vmul.f32 %v6125_v47, %v701_v11  ;;  %v1668_v28 = vmax.f32 %v1666_v3, %v1667_v10 }
 0x14a   : > { %v5572_v23 = vpop.f32.mrf.mxu0  ;;  %v1646_v62 = vmax.f32 %v1644_v19, %v1645_v39  ;;  %v1664_v63 = vmax.f32 %v1662_v25, %v1663_v40 }
 0x14b   : > { %v1673_v26 = vrot.slane %v1672_v15, 2  ;;  %v1677_v27 = vrot.slane %v1062_v17, 4  ;;  %v1000_v16 = vadd.f32 %v6134_v52, %v930_v18  ;;  %v1669_v1 = vrot.slane %v1668_v28, 1 }
 0x14c   : > { %v706_v29 = vpop.f32.mrf.mxu0  ;;  %v2007_v10 = vsel %vm1986_vm2, %v1652_v49, %v1646_v62 }
 0x14d   : > { %v1674_v33 = vmax.f32 %v1672_v15, %v1673_v26  ;;  %v1678_v34 = vmax.f32 %v1062_v17, %v1677_v27  ;;  %v1063_v35 = vmax.f32 %v1000_v16, 0.0  ;;  %v931_v45 = vmul.f32 %v6125_v47, %v706_v29 }
 0x14e   : > { %v5575_v31 = vpop.f32.mrf.mxu0  ;;  %v1670_v4 = vmax.f32 %v1668_v28, %v1669_v1  ;;  %v2008_v15 = vsel %vm1988_vm3, %v1658_v55, %v2007_v10 }
 0x14f   : > { %v1679_v43 = vrot.slane %v1678_v34, 2  ;;  %v1683_v44 = vrot.slane %v1063_v35, 4  ;;  %v1675_v50 = vrot.slane %v1674_v33, 1  ;;  %v1001_v6 = vadd.f32 %v6134_v52, %v931_v45 }
 0x150   : > { %v711_v46 = vpop.f32.mrf.mxu0  ;;  %v2009_v19 = vsel %vm1990_vm4, %v1664_v63, %v2008_v15 }
 0x151   : > { %v1680_v53 = vmax.f32 %v1678_v34, %v1679_v43  ;;  %v1684_v54 = vmax.f32 %v1063_v35, %v1683_v44  ;;  %v932_v56 = vmul.f32 %v6125_v47, %v711_v46  ;;  %v1676_v11 = vmax.f32 %v1674_v33, %v1675_v50 }
 0x152   : > { %v5578_v61 = vpop.f32.mrf.mxu0  ;;  %v2010_v25 = vsel %vm1992_vm5, %v1670_v4, %v2009_v19  ;;  %v1064_v26 = vmax.f32 %v1001_v6, 0.0 }
 0x153   : > { %v1681_v2 = vrot.slane %v1680_v53, 1  ;;  %v1685_v3 = vrot.slane %v1684_v54, 2  ;;  %v1002_v7 = vadd.f32 %v6134_v52, %v932_v56  ;;  %v2011_v28 = vsel %vm1994_vm6, %v1676_v11, %v2010_v25 }
 0x154   : > { %v716_v8 = vpop.f32.mrf.mxu0  ;;  %v1689_v44 = vrot.slane %v1064_v26, 4 }
 0x155   : > { %v1686_v12 = vmax.f32 %v1684_v54, %v1685_v3  ;;  %v933_v14 = vmul.f32 %v6125_v47, %v716_v8  ;;  %v1682_v17 = vmax.f32 %v1680_v53, %v1681_v2  ;;  %v1065_v27 = vmax.f32 %v1002_v7, 0.0 }
 0x156   : > { %v5581_v18 = vpop.f32.mrf.mxu0  ;;  %v1690_v3 = vmax.f32 %v1064_v26, %v1689_v44 }
 0x157   : > { %v1687_v21 = vrot.slane %v1686_v12, 1  ;;  %v1003_v23 = vadd.f32 %v6134_v52, %v933_v14  ;;  %v2012_v34 = vsel %vm1996_vm7, %v1682_v17, %v2011_v28  ;;  %v1695_v40 = vrot.slane %v1065_v27, 4 }
 0x158   : > { %v721_v16 = vpop.f32.mrf.mxu0  ;;  %v1691_v18 = vrot.slane %v1690_v3, 2 }
 0x159   : > { %v1688_v29 = vmax.f32 %v1686_v12, %v1687_v21  ;;  %v1066_v32 = vmax.f32 %v1003_v23, 0.0  ;;  %v934_v33 = vmul.f32 %v6125_v47, %v721_v16  ;;  %v1696_v56 = vmax.f32 %v1065_v27, %v1695_v40  ;;  %v2332_v40 = vld [vmem:[%s8790_s4 + $0x1f8] sm:$0xff] }
 0x15a   : > { %v5584_v35 = vpop.f32.mrf.mxu0  ;;  %4853 = vmatprep.subr.mxu1 %v2332_v40 }
 0x15b   : > { %v6314_v36 = vsel %vm1998_vm8, %v1688_v29, %v2012_v34  ;;  %v1004_v31 = vadd.f32 %v6134_v52, %v934_v33  ;;  %v1701_v1 = vrot.slane %v1066_v32, 4 }
 0x15c   : > { %v2064_v39 = vrot.slane %v6314_v36, 5  ;;  %v726_v43 = vpop.f32.mrf.mxu0  ;;  %v2320_v36 = vld [vmem:[%s8790_s4 + $0x198] sm:$0xff] }
 0x15d   : > { %v1067_v45 = vmax.f32 %v1004_v31, 0.0  ;;  %v935_v46 = vmul.f32 %v6125_v47, %v726_v43  ;;  %v1702_v4 = vmax.f32 %v1066_v32, %v1701_v1  ;;  %v1692_v43 = vmax.f32 %v1690_v3, %v1691_v18 }
 0x15e   : > { %v6324_v49 = vsel %vm2060_vm9, %v2062_v22, %v2064_v39  ;;  %v5587_v50 = vpop.f32.mrf.mxu0 }
 0x15f   : > { %v1707_v53 = vrot.slane %v1067_v45, 4  ;;  %v1005_v54 = vadd.f32 %v6134_v52, %v935_v46  ;;  %v2092_v55 = vrot.slane %v6324_v49, 1  ;;  %v2144_v62 = vrot.slane %v6324_v49, 3  ;;  %v2316_v46 = vld [vmem:[%s8790_s4 + $0x178] sm:$0xff] }
 0x160   : > { %v731_v61 = vpop.f32.mrf.mxu0  ;;  %v2118_v63 = vrot.slane %v6324_v49, 2  ;;  %v2195_v2 = vrot.slane %v6324_v49, 5  ;;  %v2170_v17 = vrot.slane %v6324_v49, 4  ;;  %v1703_v19 = vrot.slane %v1702_v4, 2  ;;  %4854 = vmatpush3.msra.mxu1 %v2316_v46 }
 0x161   : > { %v1068_v20 = vmax.f32 %v1005_v54, 0.0  ;;  %v936_v22 = vmul.f32 %v6125_v47, %v731_v61  ;;  %v2093_v7 = vsel %vm2049_vm10, %v2090_v37, %v2092_v55  ;;  %v6342_v8 = vsel %vm2140_vm11, %v2142_v38, %v2144_v62 }
 0x162   : > { %v5590_v6 = vpop.f32.mrf.mxu0  ;;  %v6349_v10 = vsel %vm2114_vm12, %v2116_v42, %v2118_v63  ;;  %v1708_v11 = vmax.f32 %v1067_v45, %v1707_v53  ;;  %2466 = vmatprep.mubr.f32.mxu1 %v2093_v7  ;;  %v1697_v37 = vrot.slane %v1696_v56, 2  ;;  %v6358_v38 = vsel %vm2060_vm9, %v2193_v57, %v2195_v2  ;;  %v2331_v53 = vld [vmem:[%s8790_s4 + $0x1f0] sm:$0xff] }
 0x163   : > { %v1713_v12 = vrot.slane %v1068_v20, 4  ;;  %v1006_v14 = vadd.f32 %v6134_v52, %v936_v22  ;;  %2467 = vmatmul.mubr.f32.gmra.mxu1 %v6238_v30  ;;  %v2247_v42 = vrot.slane %v6324_v49, 7  ;;  %v6368_v27 = vsel %vm2166_vm13, %v2168_v58, %v2170_v17  ;;  %4855 = vmatprep.subr.mxu1 %v2331_v53  ;;  %v2330_v6 = vld [vmem:[%s8790_s4 + $0x1e8] sm:$0xff]  ;;  %v2327_v53 = vld [vmem:[%s8790_s4 + $0x1d0] sm:$0xff] }
 0x164   : > { %v736_v15 = vpop.f32.mrf.mxu0  ;;  %v2221_v16 = vrot.slane %v6324_v49, 6  ;;  %v1709_v28 = vrot.slane %v1708_v11, 2  ;;  %v1698_v32 = vmax.f32 %v1696_v56, %v1697_v37  ;;  %v1704_v44 = vmax.f32 %v1702_v4, %v1703_v19  ;;  %v2315_v4 = vld [vmem:[%s8790_s4 + $0x170] sm:$0xff]  ;;  %v2314_v37 = vld [vmem:[%s8790_s4 + $0x168] sm:$0xff]  ;;  %v2329_v19 = vld [vmem:[%s8790_s4 + $0x1e0] sm:$0xff] }
 0x165   : > { %v1714_v21 = vmax.f32 %v1068_v20, %v1713_v12  ;;  %v1069_v23 = vmax.f32 %v1006_v14, 0.0  ;;  %v937_v25 = vmul.f32 %v6125_v47, %v736_v15  ;;  %v6375_v57 = vsel %vm2243_vm14, %v2245_v0, %v2247_v42  ;;  %4856 = vmatpush3.msra.mxu1 %v2315_v4 }
 0x166   : > { %v5593_v26 = vpop.f32.mrf.mxu0  ;;  %v6384_v58 = vsel %vm2217_vm15, %v2219_v13, %v2221_v16  ;;  %v1710_v30 = vmax.f32 %v1708_v11, %v1709_v28  ;;  %v1699_v54 = vrot.slane %v1698_v32, 1  ;;  %v1693_v7 = vrot.slane %v1692_v43, 1  ;;  %4857 = vmatprep.subr.mxu1 %v2330_v6  ;;  %v2313_v28 = vld [vmem:[%s8790_s4 + $0x160] sm:$0xff] }
 0x167   : > { %v1719_v29 = vrot.slane %v1069_v23, 4  ;;  %v1715_v33 = vrot.slane %v1714_v21, 2  ;;  %v1007_v34 = vadd.f32 %v6134_v52, %v937_v25  ;;  %v1705_v11 = vrot.slane %v1704_v44, 1  ;;  %4858 = vmatpush3.msra.mxu1 %v2314_v37 }
 0x168   : > { %v741_v35 = vpop.f32.mrf.mxu0  ;;  %v1711_v15 = vrot.slane %v1710_v30, 1  ;;  %4859 = vmatprep.subr.mxu1 %v2329_v19 }
 0x169   : > { %v1720_v31 = vmax.f32 %v1069_v23, %v1719_v29  ;;  %v938_v0 = vmul.f32 %v6125_v47, %v741_v35  ;;  %v1070_v1 = vmax.f32 %v1007_v34, 0.0  ;;  %v1716_v56 = vmax.f32 %v1714_v21, %v1715_v33  ;;  %4860 = vmatpush3.msra.mxu1 %v2313_v28 }
 0x16a   : > { %v5596_v45 = vpop.f32.mrf.mxu0  ;;  %v1700_v21 = vmax.f32 %v1698_v32, %v1699_v54  ;;  %v1694_v32 = vmax.f32 %v1692_v43, %v1693_v7  ;;  %v1712_v46 = vmax.f32 %v1710_v30, %v1711_v15  ;;  %v2326_v7 = vld [vmem:[%s8790_s4 + $0x1c8] sm:$0xff] }
 0x16b   : > { %v1721_v50 = vrot.slane %v1720_v31, 2  ;;  %v1008_v13 = vadd.f32 %v6134_v52, %v938_v0  ;;  %v1725_v61 = vrot.slane %v1070_v1, 4  ;;  %v1717_v23 = vrot.slane %v1716_v56, 1  ;;  %v2312_v45 = vld [vmem:[%s8790_s4 + $0x158] sm:$0xff] }
 0x16c   : > { %v746_v3 = vpop.f32.mrf.mxu0  ;;  %v1706_v0 = vmax.f32 %v1704_v44, %v1705_v11  ;;  %v2014_v43 = vsel %vm1986_vm2, %v1700_v21, %v1694_v32  ;;  %v2308_v32 = vld [vmem:[%s8790_s4 + $0x138] sm:$0xff] }
 0x16d   : > { %v1722_v20 = vmax.f32 %v1720_v31, %v1721_v50  ;;  %v1071_v22 = vmax.f32 %v1008_v13, 0.0  ;;  %v1726_v12 = vmax.f32 %v1070_v1, %v1725_v61  ;;  %v939_v34 = vmul.f32 %v6125_v47, %v746_v3  ;;  %v2328_v31 = vld [vmem:[%s8790_s4 + $0x1d8] sm:$0xff]  ;;  %v2311_v3 = vld [vmem:[%s8790_s4 + $0x150] sm:$0xff] }
 0x16e   : > { %v5599_v14 = vpop.f32.mrf.mxu0  ;;  %4861 = vmatprep.subr.mxu1 %v2328_v31  ;;  %v1718_v44 = vmax.f32 %v1716_v56, %v1717_v23  ;;  %v2015_v56 = vsel %vm1988_vm3, %v1706_v0, %v2014_v43  ;;  %v2309_v23 = vld [vmem:[%s8790_s4 + $0x140] sm:$0xff]  ;;  %v2322_v43 = vld [vmem:[%s8790_s4 + $0x1a8] sm:$0xff] }
 0x16f   : > { %v1731_v18 = vrot.slane %v1071_v22, 4  ;;  %v1727_v25 = vrot.slane %v1726_v12, 2  ;;  %v1723_v29 = vrot.slane %v1722_v20, 1  ;;  %4862 = vmatpush3.msra.mxu1 %v2312_v45  ;;  %v2016_v14 = vsel %vm1990_vm4, %v1712_v46, %v2015_v56  ;;  %v6476_v46 = vld [vmem:[%s8789_s3] ss:$0 sm:$0xff] }
 0x170   : > { %v751_v26 = vpop.f32.mrf.mxu0  ;;  %4863 = vmatprep.subr.mxu1 %v2327_v53  ;;  %v2017_v19 = vsel %vm1992_vm5, %v1718_v44, %v2016_v14  ;;  %v2307_v53 = vld [vmem:[%s8790_s4 + $0x130] sm:$0xff]  ;;  %v2306_v44 = vld [vmem:[%s8790_s4 + $0x128] sm:$0xff] }
 0x171   : > { %v1732_v33 = vmax.f32 %v1071_v22, %v1731_v18  ;;  %v940_v35 = vmul.f32 %v6125_v47, %v751_v26  ;;  %v1728_v40 = vmax.f32 %v1726_v12, %v1727_v25  ;;  %v1724_v30 = vmax.f32 %v1722_v20, %v1723_v29  ;;  %4864 = vmatpush3.msra.mxu1 %v2311_v3  ;;  %v2310_v20 = vld [vmem:[%s8790_s4 + $0x148] sm:$0xff]  ;;  %v2325_v18 = vld [vmem:[%s8790_s4 + $0x1c0] sm:$0xff] }
 0x172   : > { %v5602_v1 = vpop.f32.mrf.mxu0  ;;  %v6431_v22 = vadd.f32 %v6134_v52, %v939_v34  ;;  %4865 = vmatprep.subr.mxu1 %v2326_v7  ;;  %v6460_v34 = vld [vmem:[%s8788_s2] ss:$0 sm:$0xff] }
 0x173   : > { %v1733_v50 = vrot.slane %v1732_v33, 2  ;;  %v6421_v13 = vadd.f32 %v6134_v52, %v940_v35  ;;  %v1729_v54 = vrot.slane %v1728_v40, 1  ;;  %4866 = vmatpush3.msra.mxu1 %v2310_v20  ;;  %v2018_v25 = vsel %vm1994_vm6, %v1724_v30, %v2017_v19  ;;  %v2323_v1 = vld [vmem:[%s8790_s4 + $0x1b0] sm:$0xff]  ;;  %v2321_v3 = vld [vmem:[%s8790_s4 + $0x1a0] sm:$0xff] }
 0x174   : > { %v756_v61 = vpop.f32.mrf.mxu0  ;;  %4867 = vmatprep.subr.mxu1 %v2325_v18  ;;  %v1072_v28 = vmax.f32 %v6431_v22, 0.0  ;;  %v2305_v7 = vld [vmem:[%s8790_s4 + $0x120] sm:$0xff] }
 0x175   : > { %v1734_v4 = vmax.f32 %v1732_v33, %v1733_v50  ;;  %v941_v6 = vmul.f32 %v6125_v47, %v756_v61  ;;  %v1730_v11 = vmax.f32 %v1728_v40, %v1729_v54  ;;  %v1073_v15 = vmax.f32 %v6421_v13, 0.0  ;;  %4868 = vmatpush3.msra.mxu1 %v2309_v23 }
 0x176   : > { %v5605_v12 = vpop.f32.mrf.mxu0  ;;  %v1737_v54 = vrot.slane %v1072_v28, 4 }
 0x177   : > { %v1735_v37 = vrot.slane %v1734_v4, 1  ;;  %v1011_v47 = vadd.f32 %v6134_v52, %v941_v6  ;;  %v2324_v52 = vld [vmem:[%s8790_s4 + $0x1b8] sm:$0xff]  ;;  %v2019_v29 = vsel %vm1996_vm7, %v1730_v11, %v2018_v25  ;;  %v1743_v40 = vrot.slane %v1073_v15, 4 }
 0x178   : > { %v761_v21 = vpop.f32.mrf.mxu0  ;;  %4869 = vmatprep.subr.mxu1 %v2324_v52  ;;  %v1738_v18 = vmax.f32 %v1072_v28, %v1737_v54  ;;  %v2319_v28 = vld [vmem:[%s8790_s4 + $0x190] sm:$0xff] }
 0x179   : > { %v1736_v26 = vmax.f32 %v1734_v4, %v1735_v37  ;;  %v1074_v33 = vmax.f32 %v1011_v47, 0.0  ;;  %v942_v35 = vmul.f32 %v6460_v34, %v761_v21  ;;  %4870 = vmatpush3.msra.mxu1 %v2308_v32  ;;  %v1744_v56 = vmax.f32 %v1073_v15, %v1743_v40  ;;  %v2304_v21 = vld [vmem:[%s8790_s4 + $0x118] sm:$0xff] }
 0x17a   : > { %v5608_v31 = vpop.f32.mrf.mxu0  ;;  %4871 = vmatprep.subr.mxu1 %v2323_v1 }
 0x17b   : > { %v6467_v0 = vsel %vm1998_vm8, %v1736_v26, %v2019_v29  ;;  %v1012_v50 = vadd.f32 %v6476_v46, %v942_v35  ;;  %4872 = vmatpush3.msra.mxu1 %v2307_v53  ;;  %v1749_v4 = vrot.slane %v1074_v33, 4  ;;  %v1745_v31 = vrot.slane %v1744_v56, 2 }
 0x17c   : > { %v2066_v45 = vrot.slane %v6467_v0, 5  ;;  %v766_v13 = vpop.f32.mrf.mxu0  ;;  %4873 = vmatprep.subr.mxu1 %v2322_v43 }
 0x17d   : > { %v943_v61 = vmul.f32 %v6460_v34, %v766_v13  ;;  %v1075_v22 = vmax.f32 %v1012_v50, 0.0  ;;  %4874 = vmatpush3.msra.mxu1 %v2306_v44  ;;  %v1750_v23 = vmax.f32 %v1074_v33, %v1749_v4  ;;  %v1739_v13 = vrot.slane %v1738_v18, 2 }
 0x17e   : > { %v6497_v30 = vsel %vm2060_vm9, %v2064_v39, %v2066_v45  ;;  %v5611_v6 = vpop.f32.mrf.mxu0  ;;  %4875 = vmatprep.subr.mxu1 %v2321_v3  ;;  %v2302_v3 = vld [vmem:[%s8790_s4 + $0x108] sm:$0xff] }
 0x17f   : > { %v1013_v11 = vadd.f32 %v6476_v46, %v943_v61  ;;  %v2094_v12 = vrot.slane %v6497_v30, 1  ;;  %v1755_v20 = vrot.slane %v1075_v22, 4  ;;  %v2146_v39 = vrot.slane %v6497_v30, 3  ;;  %4876 = vmatpush3.msra.mxu1 %v2305_v7 }
 0x180   : > { %v771_v14 = vpop.f32.mrf.mxu0  ;;  %v2120_v37 = vrot.slane %v6497_v30, 2  ;;  %v2197_v47 = vrot.slane %v6497_v30, 5  ;;  %4877 = vmatprep.subr.mxu1 %v2320_v36  ;;  %v2172_v1 = vrot.slane %v6497_v30, 4  ;;  %v2249_v50 = vrot.slane %v6497_v30, 7 }
 0x181   : > { %v1076_v15 = vmax.f32 %v1013_v11, 0.0  ;;  %v944_v19 = vmul.f32 %v6460_v34, %v771_v14  ;;  %v2095_v26 = vsel %vm2049_vm10, %v2092_v55, %v2094_v12  ;;  %v6527_v52 = vsel %vm2140_vm11, %v2144_v62, %v2146_v39  ;;  %4878 = vmatpush3.msra.mxu1 %v2304_v21  ;;  %v2303_v62 = vld [vmem:[%s8790_s4 + $0x110] sm:$0xff] }
 0x182   : > { %v5614_v25 = vpop.f32.mrf.mxu0  ;;  %v6534_v29 = vsel %vm2114_vm12, %v2118_v63, %v2120_v37  ;;  %v1756_v55 = vmax.f32 %v1075_v22, %v1755_v20  ;;  %2471 = vmatprep.mubr.f32.mxu1 %v2095_v26  ;;  %4879 = vmatprep.subr.mxu1 %v2319_v28  ;;  %v2318_v63 = vld [vmem:[%s8790_s4 + $0x188] sm:$0xff]  ;;  %v6549_v40 = vsel %vm2060_vm9, %v2195_v2, %v2197_v47  ;;  %v1751_v54 = vrot.slane %v1750_v23, 2  ;;  %v2317_v20 = vld [vmem:[%s8790_s4 + $0x180] sm:$0xff] }
 0x183   : > { %v1761_v33 = vrot.slane %v1076_v15, 4  ;;  %v1014_v35 = vadd.f32 %v6476_v46, %v944_v19  ;;  %2472 = vmatmul.mubr.f32.gmra.mxu1 %v6324_v49  ;;  %v6562_v2 = vsel %vm2166_vm13, %v2170_v17, %v2172_v1  ;;  %v6569_v4 = vsel %vm2243_vm14, %v2247_v42, %v2249_v50  ;;  %v2301_v17 = vld [vmem:[%s8790_s4 + $0x100] sm:$0xff]  ;;  %v2364_v42 = vld [vmem:[%s8790_s4 + $0x2f8] sm:$0xff] }
 0x184   : > { %v776_v32 = vpop.f32.mrf.mxu0  ;;  %4880 = vmatpush3.msra.mxu1 %v2303_v62  ;;  %v8800_v22 = vrot.slane %v6497_v30, 6  ;;  %v1757_v6 = vrot.slane %v1756_v55, 2  ;;  %v1746_v14 = vmax.f32 %v1744_v56, %v1745_v31  ;;  %v1740_v28 = vmax.f32 %v1738_v18, %v1739_v13 }
 0x185   : > { %v1762_v53 = vmax.f32 %v1076_v15, %v1761_v33  ;;  %v1077_v43 = vmax.f32 %v1014_v35, 0.0  ;;  %v945_v44 = vmul.f32 %v6460_v34, %v776_v32  ;;  %4881 = vmatprep.subr.mxu1 %v2318_v63  ;;  %v1752_v33 = vmax.f32 %v1750_v23, %v1751_v54 }
 0x186   : > { %v5617_v61 = vpop.f32.mrf.mxu0  ;;  %4882 = vmatpush3.msra.mxu1 %v2302_v3  ;;  %v6587_v19 = vsel %vm2217_vm15, %v2221_v16, %v8800_v22  ;;  %v1758_v56 = vmax.f32 %v1756_v55, %v1757_v6  ;;  %v1747_v63 = vrot.slane %v1746_v14, 1 }
 0x187   : > { %v1767_v7 = vrot.slane %v1077_v43, 4  ;;  %v1015_v11 = vadd.f32 %v6476_v46, %v945_v44  ;;  %v1763_v36 = vrot.slane %v1762_v53, 2  ;;  %4883 = vmatprep.subr.mxu1 %v2317_v20 }
 0x188   : > { %v781_v15 = vpop.f32.mrf.mxu0  ;;  %4884 = vmatpush3.msra.mxu1 %v2301_v17  ;;  %v1759_v20 = vrot.slane %v1758_v56, 1  ;;  %v1748_v23 = vmax.f32 %v1746_v14, %v1747_v63 }
 0x189   : > { %v1768_v21 = vmax.f32 %v1077_v43, %v1767_v7  ;;  %v1078_v25 = vmax.f32 %v1015_v11, 0.0  ;;  %v946_v26 = vmul.f32 %v6460_v34, %v781_v15  ;;  %4909 = vmatprep.subr.mxu1 %v2364_v42  ;;  %v1764_v44 = vmax.f32 %v1762_v53, %v1763_v36 }
 0x18a   : > { %v5620_v35 = vpop.f32.mrf.mxu0  ;;  %v1741_v43 = vrot.slane %v1740_v28, 1  ;;  %v1753_v7 = vrot.slane %v1752_v33, 1 }
 0x18b   : > { %v1769_v31 = vrot.slane %v1768_v21, 2  ;;  %v1773_v32 = vrot.slane %v1078_v25, 4  ;;  %v1016_v62 = vadd.f32 %v6476_v46, %v946_v26  ;;  %v1765_v13 = vrot.slane %v1764_v44, 1 }
 0x18c   : > { %v786_v49 = vpop.f32.mrf.mxu0  ;;  %v1742_v36 = vmax.f32 %v1740_v28, %v1741_v43  ;;  %v1760_v26 = vmax.f32 %v1758_v56, %v1759_v20 }
 0x18d   : > { %v1770_v61 = vmax.f32 %v1768_v21, %v1769_v31  ;;  %v1774_v16 = vmax.f32 %v1078_v25, %v1773_v32  ;;  %v1079_v3 = vmax.f32 %v1016_v62, 0.0  ;;  %v947_v55 = vmul.f32 %v6460_v34, %v786_v49 }
 0x18e   : > { %v5623_v11 = vpop.f32.mrf.mxu0  ;;  %v1754_v21 = vmax.f32 %v1752_v33, %v1753_v7  ;;  %v1766_v62 = vmax.f32 %v1764_v44, %v1765_v13  ;;  %v2021_v49 = vsel %vm1986_vm2, %v1748_v23, %v1742_v36 }
 0x18f   : > { %v1775_v17 = vrot.slane %v1774_v16, 2  ;;  %v1779_v18 = vrot.slane %v1079_v3, 4  ;;  %v1771_v6 = vrot.slane %v1770_v61, 1  ;;  %v1017_v14 = vadd.f32 %v6476_v46, %v947_v55 }
 0x190   : > { %v791_v54 = vpop.f32.mrf.mxu0 }
 0x191   : > { %v1776_v42 = vmax.f32 %v1774_v16, %v1775_v17  ;;  %v1780_v15 = vmax.f32 %v1079_v3, %v1779_v18  ;;  %v948_v53 = vmul.f32 %v6460_v34, %v791_v54  ;;  %v1772_v11 = vmax.f32 %v1770_v61, %v1771_v6 }
 0x192   : > { %v5626_v25 = vpop.f32.mrf.mxu0  ;;  %v2022_v3 = vsel %vm1988_vm3, %v1754_v21, %v2021_v49  ;;  %v1080_v17 = vmax.f32 %v1017_v14, 0.0 }
 0x193   : > { %v1777_v35 = vrot.slane %v1776_v42, 1  ;;  %v1781_v31 = vrot.slane %v1780_v15, 2  ;;  %v1018_v32 = vadd.f32 %v6476_v46, %v948_v53  ;;  %v2023_v56 = vsel %vm1990_vm4, %v1760_v26, %v2022_v3 }
 0x194   : > { %v796_v63 = vpop.f32.mrf.mxu0  ;;  %v2024_v44 = vsel %vm1992_vm5, %v1766_v62, %v2023_v56  ;;  %v1785_v25 = vrot.slane %v1080_v17, 4 }
 0x195   : > { %v1782_v22 = vmax.f32 %v1780_v15, %v1781_v31  ;;  %v949_v16 = vmul.f32 %v6460_v34, %v796_v63  ;;  %v1778_v28 = vmax.f32 %v1776_v42, %v1777_v35  ;;  %v1081_v7 = vmax.f32 %v1018_v32, 0.0 }
 0x196   : > { %v5629_v33 = vpop.f32.mrf.mxu0  ;;  %v2025_v23 = vsel %vm1994_vm6, %v1772_v11, %v2024_v44 }
 0x197   : > { %v1783_v43 = vrot.slane %v1782_v22, 1  ;;  %v1019_v20 = vadd.f32 %v6476_v46, %v949_v16  ;;  %v2026_v54 = vsel %vm1996_vm7, %v1778_v28, %v2025_v23  ;;  %v1791_v15 = vrot.slane %v1081_v7, 4 }
 0x198   : > { %v801_v18 = vpop.f32.mrf.mxu0  ;;  %v1786_v33 = vmax.f32 %v1080_v17, %v1785_v25 }
 0x199   : > { %v1784_v61 = vmax.f32 %v1782_v22, %v1783_v43  ;;  %v1082_v13 = vmax.f32 %v1019_v20, 0.0  ;;  %v950_v55 = vmul.f32 %v6460_v34, %v801_v18  ;;  %v1792_v62 = vmax.f32 %v1081_v7, %v1791_v15 }
 0x19a   : > { %v5632_v6 = vpop.f32.mrf.mxu0 }
 0x19b   : > { %v6605_v42 = vsel %vm1998_vm8, %v1784_v61, %v2026_v54  ;;  %v1020_v53 = vadd.f32 %v6476_v46, %v950_v55  ;;  %v1797_v26 = vrot.slane %v1082_v13, 4  ;;  %v1793_v17 = vrot.slane %v1792_v62, 2 }
 0x19c   : > { %v2068_v36 = vrot.slane %v6605_v42, 5  ;;  %v806_v21 = vpop.f32.mrf.mxu0  ;;  %v1787_v55 = vrot.slane %v1786_v33, 2 }
 0x19d   : > { %v1083_v35 = vmax.f32 %v1020_v53, 0.0  ;;  %v951_v22 = vmul.f32 %v6460_v34, %v806_v21  ;;  %v1798_v56 = vmax.f32 %v1082_v13, %v1797_v26 }
 0x19e   : > { %v6615_v31 = vsel %vm2060_vm9, %v2066_v45, %v2068_v36  ;;  %v5635_v32 = vpop.f32.mrf.mxu0 }
 0x19f   : > { %v1803_v14 = vrot.slane %v1083_v35, 4  ;;  %v1021_v63 = vadd.f32 %v6476_v46, %v951_v22  ;;  %v8807_v11 = vrot.slane %v6615_v31, 1  ;;  %v8806_v16 = vrot.slane %v6615_v31, 3 }
 0x1a0   : > { %v811_v49 = vpop.f32.mrf.mxu0  ;;  %v8804_v3 = vrot.slane %v6615_v31, 2  ;;  %v8803_v28 = vrot.slane %v6615_v31, 5  ;;  %v8802_v13 = vrot.slane %v6615_v31, 4  ;;  %v1799_v54 = vrot.slane %v1798_v56, 2 }
 0x1a1   : > { %v1084_v0 = vmax.f32 %v1021_v63, 0.0  ;;  %v952_v45 = vmul.f32 %v6460_v34, %v811_v49  ;;  %v2097_v7 = vsel %vm2049_vm10, %v2094_v12, %v8807_v11  ;;  %v6633_v20 = vsel %vm2140_vm11, %v2146_v39, %v8806_v16 }
 0x1a2   : > { %v5638_v43 = vpop.f32.mrf.mxu0  ;;  %v6640_v44 = vsel %vm2114_vm12, %v2120_v37, %v8804_v3  ;;  %v1804_v18 = vmax.f32 %v1083_v35, %v1803_v14  ;;  %2476 = vmatprep.mubr.f32.mxu1 %v2097_v7  ;;  %v6649_v39 = vsel %vm2060_vm9, %v2197_v47, %v8803_v28  ;;  %v8801_v37 = vrot.slane %v6615_v31, 7 }
 0x1a3   : > { %v1809_v23 = vrot.slane %v1084_v0, 4  ;;  %v1022_v12 = vadd.f32 %v6476_v46, %v952_v45  ;;  %2477 = vmatmul.mubr.f32.gmra.mxu1 %v6497_v30  ;;  %v6659_v25 = vsel %vm2166_vm13, %v2172_v1, %v8802_v13  ;;  %v8805_v26 = vrot.slane %v6615_v31, 6 }
 0x1a4   : > { %v816_v61 = vpop.f32.mrf.mxu0  ;;  %v6666_v47 = vsel %vm2243_vm14, %v2249_v50, %v8801_v37  ;;  %v1805_v35 = vrot.slane %v1804_v18, 2  ;;  %v1794_v32 = vmax.f32 %v1792_v62, %v1793_v17  ;;  %v8827_v1 = vrot.slane %v6497_v30, 6 }
 0x1a5   : > { %v1810_v6 = vmax.f32 %v1084_v0, %v1809_v23  ;;  %v953_v15 = vmul.f32 %v6460_v34, %v816_v61  ;;  %v1085_v53 = vmax.f32 %v1022_v12, 0.0  ;;  %v1788_v43 = vmax.f32 %v1786_v33, %v1787_v55 }
 0x1a6   : > { %v5641_v21 = vpop.f32.mrf.mxu0  ;;  %v6675_v0 = vsel %vm2217_vm15, %v8827_v1, %v8805_v26  ;;  %v1800_v7 = vmax.f32 %v1798_v56, %v1799_v54  ;;  %v1806_v61 = vmax.f32 %v1804_v18, %v1805_v35  ;;  %v1795_v17 = vrot.slane %v1794_v32, 1 }
 0x1a7   : > { %v1023_v22 = vadd.f32 %v6476_v46, %v953_v15  ;;  %v1811_v14 = vrot.slane %v1810_v6, 2  ;;  %v1815_v63 = vrot.slane %v1085_v53, 4  ;;  %8828 = vst [vmem:[#allocation4_spill] sm:$0xff] %v6675_v0  ;;  %v1789_v3 = vrot.slane %v1788_v43, 1 }
 0x1a8   : > { %v821_v49 = vpop.f32.mrf.mxu0  ;;  %v1801_v1 = vrot.slane %v1800_v7, 1  ;;  %v1807_v16 = vrot.slane %v1806_v61, 1  ;;  %v1796_v56 = vmax.f32 %v1794_v32, %v1795_v17 }
 0x1a9   : > { %v1086_v45 = vmax.f32 %v1023_v22, 0.0  ;;  %v954_v50 = vmul.f32 %v6460_v34, %v821_v49  ;;  %v1816_v23 = vmax.f32 %v1085_v53, %v1815_v63  ;;  %v1812_v21 = vmax.f32 %v1810_v6, %v1811_v14 }
 0x1aa   : > { %v5644_v12 = vpop.f32.mrf.mxu0  ;;  %v1790_v6 = vmax.f32 %v1788_v43, %v1789_v3  ;;  %v1802_v14 = vmax.f32 %v1800_v7, %v1801_v1 }
 0x1ab   : > { %v1821_v15 = vrot.slane %v1086_v45, 4  ;;  %v1024_v62 = vadd.f32 %v6476_v46, %v954_v50  ;;  %v1817_v37 = vrot.slane %v1816_v23, 2  ;;  %v1813_v55 = vrot.slane %v1812_v21, 1 }
 0x1ac   : > { %v826_v13 = vpop.f32.mrf.mxu0 }
 0x1ad   : > { %v1822_v28 = vmax.f32 %v1086_v45, %v1821_v15  ;;  %v1087_v30 = vmax.f32 %v1024_v62, 0.0  ;;  %v1818_v26 = vmax.f32 %v1816_v23, %v1817_v37  ;;  %v1808_v45 = vmax.f32 %v1806_v61, %v1807_v16 }
 0x1ae   : > { %v5647_v22 = vpop.f32.mrf.mxu0  ;;  %v955_v37 = vmul.f32 %v6460_v34, %v826_v13  ;;  %v1814_v23 = vmax.f32 %v1812_v21, %v1813_v55 }
 0x1af   : > { %v1823_v49 = vrot.slane %v1822_v28, 2  ;;  %v1827_v33 = vrot.slane %v1087_v30, 4  ;;  %v1819_v18 = vrot.slane %v1818_v26, 1  ;;  %v2028_v22 = vsel %vm1986_vm2, %v1796_v56, %v1790_v6 }
 0x1b0   : > { %v831_v54 = vpop.f32.mrf.mxu0  ;;  %v1025_v61 = vadd.f32 %v6476_v46, %v955_v37 }
 0x1b1   : > { %v1824_v53 = vmax.f32 %v1822_v28, %v1823_v49  ;;  %v1828_v35 = vmax.f32 %v1087_v30, %v1827_v33  ;;  %v956_v63 = vmul.f32 %v6460_v34, %v831_v54  ;;  %v1820_v32 = vmax.f32 %v1818_v26, %v1819_v18 }
 0x1b2   : > { %v5650_v50 = vpop.f32.mrf.mxu0  ;;  %v2029_v28 = vsel %vm1988_vm3, %v1802_v14, %v2028_v22 }
 0x1b3   : > { %v1825_v12 = vrot.slane %v1824_v53, 1  ;;  %v1829_v15 = vrot.slane %v1828_v35, 2  ;;  %v1026_v11 = vadd.f32 %v6476_v46, %v956_v63  ;;  %v2030_v16 = vsel %vm1990_vm4, %v1808_v45, %v2029_v28 }
 0x1b4   : > { %v836_v62 = vpop.f32.mrf.mxu0  ;;  %v2031_v13 = vsel %vm1992_vm5, %v1814_v23, %v2030_v16 }
 0x1b5   : > { %v1830_v17 = vmax.f32 %v1828_v35, %v1829_v15  ;;  %v1826_v30 = vmax.f32 %v1824_v53, %v1825_v12  ;;  %v957_v3 = vmul.f32 %v6460_v34, %v836_v62  ;;  %v2032_v26 = vsel %vm1994_vm6, %v1820_v32, %v2031_v13 }
 0x1b6   : > { %v5653_v43 = vpop.f32.mrf.mxu0  ;;  %v1089_v33 = vmax.f32 %v1026_v11, 0.0  ;;  %v1088_v35 = vmax.f32 %v1025_v61, 0.0  ;;  %v8829_v61 = vrot.slane %v6615_v31, 1 }
 0x1b7   : > { %v1831_v7 = vrot.slane %v1830_v17, 1  ;;  %v1027_v21 = vadd.f32 %v6476_v46, %v957_v3  ;;  %v2033_v55 = vsel %vm1996_vm7, %v1826_v30, %v2032_v26  ;;  %v8831_v26 = vrot.slane %v6615_v31, 2 }
 0x1b8   : > { %v841_v1 = vpop.f32.mrf.mxu0  ;;  %v1839_v50 = vrot.slane %v1089_v33, 4  ;;  %v1833_v23 = vrot.slane %v1088_v35, 4 }
 0x1b9   : > { %v1832_v49 = vmax.f32 %v1830_v17, %v1831_v7  ;;  %v958_v56 = vmul.f32 %v6460_v34, %v841_v1  ;;  %v1090_v54 = vmax.f32 %v1027_v21, 0.0  ;;  %v8830_v21 = vrot.slane %v6615_v31, 3 }
 0x1ba   : > { %v5656_v18 = vpop.f32.mrf.mxu0  ;;  %v1840_v43 = vmax.f32 %v1089_v33, %v1839_v50  ;;  %v1834_v33 = vmax.f32 %v1088_v35, %v1833_v23 }
 0x1bb   : > { %v6693_v53 = vsel %vm1998_vm8, %v1832_v49, %v2033_v55  ;;  %v1028_v63 = vadd.f32 %v6476_v46, %v958_v56  ;;  %v1845_v15 = vrot.slane %v1090_v54, 4 }
 0x1bc   : > { %v8814_v6 = vrot.slane %v6693_v53, 5  ;;  %v846_v14 = vpop.f32.mrf.mxu0  ;;  %v1841_v35 = vrot.slane %v1840_v43, 2 }
 0x1bd   : > { %v1091_v45 = vmax.f32 %v1028_v63, 0.0  ;;  %v959_v12 = vmul.f32 %v6460_v34, %v846_v14  ;;  %v1846_v16 = vmax.f32 %v1090_v54, %v1845_v15  ;;  %v8832_v63 = vrot.slane %v6615_v31, 5 }
 0x1be   : > { %v6703_v11 = vsel %vm2060_vm9, %v2068_v36, %v8814_v6  ;;  %v5659_v37 = vpop.f32.mrf.mxu0 }
 0x1bf   : > { %v1029_v62 = vadd.f32 %v6476_v46, %v959_v12  ;;  %v8813_v22 = vrot.slane %v6703_v11, 1  ;;  %v1851_v32 = vrot.slane %v1091_v45, 4  ;;  %v8809_v28 = vrot.slane %v6703_v11, 3 }
 0x1c0   : > { %v851_v17 = vpop.f32.mrf.mxu0  ;;  %v8808_v30 = vrot.slane %v6703_v11, 2  ;;  %v8812_v3 = vrot.slane %v6703_v11, 5  ;;  %v8811_v50 = vrot.slane %v6703_v11, 4  ;;  %v8810_v12 = vrot.slane %v6703_v11, 7 }
 0x1c1   : > { %v1092_v42 = vmax.f32 %v1029_v62, 0.0  ;;  %v960_v36 = vmul.f32 %v6460_v34, %v851_v17  ;;  %v2099_v13 = vsel %vm2049_vm10, %v8829_v61, %v8813_v22  ;;  %v6721_v1 = vsel %vm2140_vm11, %v8830_v21, %v8809_v28 }
 0x1c2   : > { %v5662_v7 = vpop.f32.mrf.mxu0  ;;  %v6728_v49 = vsel %vm2114_vm12, %v8831_v26, %v8808_v30  ;;  %2481 = vmatprep.mubr.f32.mxu1 %v2099_v13  ;;  %v1852_v54 = vmax.f32 %v1091_v45, %v1851_v32  ;;  %v6737_v14 = vsel %vm2060_vm9, %v8832_v63, %v8812_v3  ;;  %v1847_v45 = vrot.slane %v1846_v16, 2 }
 0x1c3   : > { %v1857_v56 = vrot.slane %v1092_v42, 4  ;;  %v1030_v55 = vadd.f32 %v6476_v46, %v960_v36  ;;  %2482 = vmatmul.mubr.f32.gmra.mxu1 %v6615_v31  ;;  %v8833_v32 = vrot.slane %v6615_v31, 4  ;;  %v8834_v36 = vrot.slane %v6615_v31, 7 }
 0x1c4   : > { %v856_v18 = vpop.f32.mrf.mxu0  ;;  %v1835_v61 = vrot.slane %v1834_v33, 2  ;;  %v1853_v26 = vrot.slane %v1852_v54, 2  ;;  %v1842_v63 = vmax.f32 %v1840_v43, %v1841_v35  ;;  %v1848_v30 = vmax.f32 %v1846_v16, %v1847_v45 }
 0x1c5   : > { %v1858_v15 = vmax.f32 %v1092_v42, %v1857_v56  ;;  %v1093_v37 = vmax.f32 %v1030_v55, 0.0  ;;  %v961_v23 = vmul.f32 %v6460_v34, %v856_v18  ;;  %v6747_v17 = vsel %vm2166_vm13, %v8833_v32, %v8811_v50 }
 0x1c6   : > { %v5665_v62 = vpop.f32.mrf.mxu0  ;;  %v6754_v7 = vsel %vm2243_vm14, %v8834_v36, %v8810_v12  ;;  %v8817_v42 = vrot.slane %v6703_v11, 6  ;;  %v8836_v55 = vrot.slane %v6615_v31, 6  ;;  %v1836_v50 = vmax.f32 %v1834_v33, %v1835_v61 }
 0x1c7   : > { %8835 = vst [vmem:[#allocation5_spill] sm:$0xff] %v6754_v7  ;;  %v1863_v13 = vrot.slane %v1093_v37, 4  ;;  %v1031_v21 = vadd.f32 %v6476_v46, %v961_v23  ;;  %v1859_v62 = vrot.slane %v1858_v15, 2  ;;  %v1854_v22 = vmax.f32 %v1852_v54, %v1853_v26 }
 0x1c8   : > { %v861_v56 = vpop.f32.mrf.mxu0  ;;  %v6763_v18 = vsel %vm2217_vm15, %v8836_v55, %v8817_v42  ;;  %v1843_v7 = vrot.slane %v1842_v63, 1  ;;  %v1849_v55 = vrot.slane %v1848_v30, 1 }
 0x1c9   : > { %8837 = vst [vmem:[#allocation6_spill] sm:$0xff] %v6763_v18  ;;  %v1864_v32 = vmax.f32 %v1093_v37, %v1863_v13  ;;  %v1094_v36 = vmax.f32 %v1031_v21, 0.0  ;;  %v962_v28 = vmul.f32 %v6460_v34, %v861_v56  ;;  %v1860_v31 = vmax.f32 %v1858_v15, %v1859_v62 }
 0x1ca   : > { %v5668_v12 = vpop.f32.mrf.mxu0  ;;  %v1837_v37 = vrot.slane %v1836_v50, 1  ;;  %v1855_v45 = vrot.slane %v1854_v22, 1  ;;  %v1844_v61 = vmax.f32 %v1842_v63, %v1843_v7  ;;  %v1850_v26 = vmax.f32 %v1848_v30, %v1849_v55 }
 0x1cb   : > { %v1865_v3 = vrot.slane %v1864_v32, 2  ;;  %v1869_v23 = vrot.slane %v1094_v36, 4  ;;  %v1032_v6 = vadd.f32 %v6476_v46, %v962_v28  ;;  %v1861_v21 = vrot.slane %v1860_v31, 1 }
 0x1cc   : > { %v866_v41 = vpop.f32.mrf.mxu0 }
 0x1cd   : > { %v1870_v0 = vmax.f32 %v1094_v36, %v1869_v23  ;;  %v1866_v42 = vmax.f32 %v1864_v32, %v1865_v3  ;;  %v1095_v43 = vmax.f32 %v1032_v6, 0.0  ;;  %v963_v16 = vmul.f32 %v6460_v34, %v866_v41 }
 0x1ce   : > { %v5671_v35 = vpop.f32.mrf.mxu0  ;;  %v1838_v36 = vmax.f32 %v1836_v50, %v1837_v37  ;;  %v1856_v23 = vmax.f32 %v1854_v22, %v1855_v45  ;;  %v1862_v7 = vmax.f32 %v1860_v31, %v1861_v21 }
 0x1cf   : > { %v1871_v13 = vrot.slane %v1870_v0, 2  ;;  %v1875_v12 = vrot.slane %v1095_v43, 4  ;;  %v1867_v56 = vrot.slane %v1866_v42, 1  ;;  %v1033_v6 = vadd.f32 %v6476_v46, %v963_v16 }
 0x1d0   : > { %v871_v33 = vpop.f32.mrf.mxu0  ;;  %v2035_v18 = vsel %vm1986_vm2, %v1844_v61, %v1838_v36 }
 0x1d1   : > { %v1872_v54 = vmax.f32 %v1870_v0, %v1871_v13  ;;  %v964_v28 = vmul.f32 %v6460_v34, %v871_v33  ;;  %v1876_v15 = vmax.f32 %v1095_v43, %v1875_v12  ;;  %v2036_v63 = vsel %vm1988_vm3, %v1850_v26, %v2035_v18 }
 0x1d2   : > { %v5674_v62 = vpop.f32.mrf.mxu0  ;;  %v1868_v30 = vmax.f32 %v1866_v42, %v1867_v56  ;;  %v1096_v50 = vmax.f32 %v1033_v6, 0.0  ;;  %v2037_v12 = vsel %vm1990_vm4, %v1856_v23, %v2036_v63 }
 0x1d3   : > { %v1873_v3 = vrot.slane %v1872_v54, 1  ;;  %v1034_v32 = vadd.f32 %v6476_v46, %v964_v28  ;;  %v1877_v41 = vrot.slane %v1876_v15, 2  ;;  %v2038_v33 = vsel %vm1992_vm5, %v1862_v7, %v2037_v12 }
 0x1d4   : > { %v876_v35 = vpop.f32.mrf.mxu0  ;;  %v2039_v21 = vsel %vm1994_vm6, %v1868_v30, %v2038_v33 }
 0x1d5   : > { %v965_v0 = vmul.f32 %v6460_v34, %v876_v35  ;;  %v1878_v55 = vmax.f32 %v1876_v15, %v1877_v41  ;;  %v1874_v13 = vmax.f32 %v1872_v54, %v1873_v3  ;;  %v1097_v37 = vmax.f32 %v1034_v32, 0.0 }
 0x1d6   : > { %v5677_v43 = vpop.f32.mrf.mxu0  ;;  %v1881_v54 = vrot.slane %v1096_v50, 4  ;;  %v8838_v41 = vrot.slane %v6693_v53, 5  ;;  %v8839_v53 = vrot.slane %v6703_v11, 1 }
 0x1d7   : > { %v1035_v16 = vadd.f32 %v6476_v46, %v965_v0  ;;  %v1879_v22 = vrot.slane %v1878_v55, 1  ;;  %v2040_v28 = vsel %vm1996_vm7, %v1874_v13, %v2039_v21  ;;  %v1887_v26 = vrot.slane %v1097_v37, 4 }
 0x1d8   : > { %v881_v45 = vpop.f32.mrf.mxu0  ;;  %v1882_v7 = vmax.f32 %v1096_v50, %v1881_v54 }
 0x1d9   : > { %v1098_v61 = vmax.f32 %v1035_v16, 0.0  ;;  %v966_v31 = vmul.f32 %v6460_v34, %v881_v45  ;;  %v1880_v18 = vmax.f32 %v1878_v55, %v1879_v22  ;;  %v1888_v0 = vmax.f32 %v1097_v37, %v1887_v26 }
 0x1da   : > { %v5680_v42 = vpop.f32.mrf.mxu0  ;;  %v1883_v50 = vrot.slane %v1882_v7, 2 }
 0x1db   : > { %v1036_v56 = vadd.f32 %v6476_v46, %v966_v31  ;;  %v6782_v15 = vsel %vm1998_vm8, %v1880_v18, %v2040_v28  ;;  %v1893_v62 = vrot.slane %v1098_v61, 4  ;;  %v1889_v37 = vrot.slane %v1888_v0, 2 }
 0x1dc   : > { %v886_v36 = vpop.f32.mrf.mxu0  ;;  %v8821_v3 = vrot.slane %v6782_v15, 5  ;;  %v1166_v31 = vadd.s32 496, %v6141_v59 }
 0x1dd   : > { %v1099_v6 = vmax.f32 %v1036_v56, 0.0  ;;  %v967_v32 = vmul.f32 %v6460_v34, %v886_v36  ;;  %v1894_v63 = vmax.f32 %v1098_v61, %v1893_v62 }
 0x1de   : > { %v5683_v23 = vpop.f32.mrf.mxu0  ;;  %v6791_v35 = vsel %vm2060_vm9, %v8838_v41, %v8821_v3  ;;  %vm1292_vm1 = vcmp.lt.s32.totalorder %v1166_v31, 502 }
 0x1df   : > { %v1899_v30 = vrot.slane %v1099_v6, 4  ;;  %v1037_v55 = vadd.f32 %v6476_v46, %v967_v32  ;;  %v8820_v13 = vrot.slane %v6791_v35, 1  ;;  %v1895_v21 = vrot.slane %v1894_v63, 2 }
 0x1e0   : > { %v891_v43 = vpop.f32.mrf.mxu0  ;;  %v8818_v28 = vrot.slane %v6791_v35, 5  ;;  %v2178_v54 = vrot.slane %v6791_v35, 4  ;;  %v8819_v36 = vrot.slane %v6791_v35, 7  ;;  %v8840_v23 = vrot.slane %v6703_v11, 5 }
 0x1e1   : > { %v968_v16 = vmul.f32 %v6460_v34, %v891_v43  ;;  %v1900_v12 = vmax.f32 %v1099_v6, %v1899_v30  ;;  %v1100_v22 = vmax.f32 %v1037_v55, 0.0  ;;  %v2101_v33 = vsel %vm2049_vm10, %v8839_v53, %v8820_v13 }
 0x1e2   : > { %v5686_v45 = vpop.f32.mrf.mxu0  ;;  %2486 = vmatprep.mubr.f32.mxu1 %v2101_v33  ;;  %v6813_v41 = vsel %vm2060_vm9, %v8840_v23, %v8818_v28  ;;  %v8841_v30 = vrot.slane %v6703_v11, 4  ;;  %v1890_v43 = vmax.f32 %v1888_v0, %v1889_v37  ;;  %v1896_v53 = vmax.f32 %v1894_v63, %v1895_v21 }
 0x1e3   : > { %v1038_v61 = vadd.f32 %v6476_v46, %v968_v16  ;;  %v1905_v18 = vrot.slane %v1100_v22, 4  ;;  %2487 = vmatmul.mubr.f32.gmra.mxu1 %v6703_v11  ;;  %v1901_v26 = vrot.slane %v1900_v12, 2  ;;  %v8843_v37 = vrot.slane %v6703_v11, 6 }
 0x1e4   : > { %v896_v42 = vpop.f32.mrf.mxu0  ;;  %v6818_v55 = vsel %vm2166_vm13, %v8841_v30, %v2178_v54 }
 0x1e5   : > { %v1101_v56 = vmax.f32 %v1038_v61, 0.0  ;;  %v969_v62 = vmul.f32 %v6460_v34, %v896_v42  ;;  %v1906_v6 = vmax.f32 %v1100_v22, %v1905_v18  ;;  %v8842_v22 = vrot.slane %v6703_v11, 7 }
 0x1e6   : > { %v5689_v32 = vpop.f32.mrf.mxu0  ;;  %v2229_v61 = vrot.slane %v6791_v35, 6  ;;  %v1884_v18 = vmax.f32 %v1882_v7, %v1883_v50  ;;  %v1902_v42 = vmax.f32 %v1900_v12, %v1901_v26 }
 0x1e7   : > { %v1911_v16 = vrot.slane %v1101_v56, 4  ;;  %v1039_v34 = vadd.f32 %v6476_v46, %v969_v62  ;;  %v6826_v45 = vsel %vm2243_vm14, %v8842_v22, %v8819_v36  ;;  %v1907_v33 = vrot.slane %v1906_v6, 2 }
 0x1e8   : > { %v6832_v46 = vsel %vm2217_vm15, %v8843_v37, %v2229_v61  ;;  %v1891_v62 = vrot.slane %v1890_v43, 1  ;;  %v1897_v22 = vrot.slane %v1896_v53, 1  ;;  %v1885_v63 = vrot.slane %v1884_v18, 1 }
 0x1e9   : > { %v1912_v32 = vmax.f32 %v1101_v56, %v1911_v16  ;;  %v1102_v23 = vmax.f32 %v1039_v34, 0.0  ;;  %v1908_v0 = vmax.f32 %v1906_v6, %v1907_v33  ;;  %8844 = vst [vmem:[#allocation7_spill] sm:$0xff] %v6832_v46  ;;  %v1903_v21 = vrot.slane %v1902_v42, 1 }
 0x1ea   : > { %v1892_v7 = vmax.f32 %v1890_v43, %v1891_v62  ;;  %v1898_v50 = vmax.f32 %v1896_v53, %v1897_v22  ;;  %v1886_v56 = vmax.f32 %v1884_v18, %v1885_v63 }
 0x1eb   : > { %v1913_v30 = vrot.slane %v1912_v32, 2  ;;  %v1544_v28 = vsel %vm1292_vm1, %v1102_v23, 0.0  ;;  %v1909_v13 = vrot.slane %v1908_v0, 1  ;;  %v1904_v6 = vmax.f32 %v1902_v42, %v1903_v21 }
 0x1ec   : > { %v1917_v36 = vrot.slane %v1544_v28, 4  ;;  %v2042_v33 = vsel %vm1986_vm2, %v1892_v7, %v1886_v56 }
 0x1ed   : > { %v1914_v31 = vmax.f32 %v1912_v32, %v1913_v30  ;;  %v1910_v16 = vmax.f32 %v1908_v0, %v1909_v13  ;;  %v2043_v23 = vsel %vm1988_vm3, %v1898_v50, %v2042_v33  ;;  %v2363_v33 = vld [vmem:[%s8790_s4 + $0x2f0] sm:$0xff] }
 0x1ee   : > { %v1918_v3 = vmax.f32 %v1544_v28, %v1917_v36  ;;  %v2044_v46 = vsel %vm1990_vm4, %v1904_v6, %v2043_v23  ;;  %v2360_v23 = vld [vmem:[%s8790_s4 + $0x2d8] sm:$0xff] }
 0x1ef   : > { %v1915_v12 = vrot.slane %v1914_v31, 1  ;;  %v2045_v32 = vsel %vm1992_vm5, %v1910_v16, %v2044_v46  ;;  %v8846_v46 = vrot.slane %v6791_v35, 1 }
 0x1f0   : > { %v1919_v26 = vrot.slane %v1918_v3, 2 }
 0x1f1   : > { %v1916_v37 = vmax.f32 %v1914_v31, %v1915_v12 }
 0x1f2   : > { %v1920_v34 = vmax.f32 %v1918_v3, %v1919_v26  ;;  %v8845_v3 = vrot.slane %v6782_v15, 5 }
 0x1f3   : > { %v2046_v28 = vsel %vm1994_vm6, %v1916_v37, %v2045_v32  ;;  %v2346_v37 = vld [vmem:[%s8790_s4 + $0x268] sm:$0xff]  ;;  %v2344_v32 = vld [vmem:[%s8790_s4 + $0x258] sm:$0xff] }
 0x1f4   : > { %v1921_v59 = vrot.slane %v1920_v34, 1 }
 0x1f6   : > { %v1922_v30 = vmax.f32 %v1920_v34, %v1921_v59  ;;  %v2348_v34 = vld [vmem:[%s8790_s4 + $0x278] sm:$0xff] }
 0x1f8   : > { %v2047_v36 = vsel %vm1996_vm7, %v1922_v30, %v2046_v28  ;;  %v2358_v30 = vld [vmem:[%s8790_s4 + $0x2c8] sm:$0xff] }
 0x1f9   : > { %v2050_v43 = vsel %vm2049_vm10, %v2047_v36, 0.0  ;;  %v2342_v28 = vld [vmem:[%s8790_s4 + $0x248] sm:$0xff]  ;;  %v2152_v36 = vrot.slane %v6791_v35, 3 }
 0x1fa   : > { %v2074_v53 = vrot.slane %v2050_v43, 5  ;;  %v2356_v43 = vld [vmem:[%s8790_s4 + $0x2b8] sm:$0xff] }
 0x1fc   : > { %v6844_v13 = vsel %vm2060_vm9, %v8845_v3, %v2074_v53  ;;  %v6847_v18 = vsel %vm2060_vm9, %v2074_v53, 0.0  ;;  %v2340_v53 = vld [vmem:[%s8790_s4 + $0x238] sm:$0xff]  ;;  %v2126_v3 = vrot.slane %v6791_v35, 2 }
 0x1fd   : > { %v2102_v42 = vrot.slane %v6844_v13, 1  ;;  %v2104_v0 = vrot.slane %v6847_v18, 1  ;;  %v2180_v59 = vrot.slane %v6844_v13, 4  ;;  %v2182_v63 = vrot.slane %v6847_v18, 4 }
 0x1fe   : > { %v2257_v21 = vrot.slane %v6844_v13, 7  ;;  %v2231_v31 = vrot.slane %v6844_v13, 6  ;;  %v2259_v7 = vrot.slane %v6847_v18, 7  ;;  %v2233_v12 = vrot.slane %v6847_v18, 6 }
 0x1ff   : > { %v2103_v62 = vsel %vm2049_vm10, %v8846_v46, %v2102_v42  ;;  %v6856_v22 = vsel %vm2166_vm13, %v2178_v54, %v2180_v59  ;;  %v2105_v15 = vsel %vm2049_vm10, %v2102_v42, %v2104_v0  ;;  %v6866_v50 = vsel %vm2166_vm13, %v2180_v59, %v2182_v63  ;;  %v2339_v0 = vld [vmem:[%s8790_s4 + $0x230] sm:$0xff]  ;;  %v2354_v46 = vld [vmem:[%s8790_s4 + $0x2a8] sm:$0xff]  ;;  %v2353_v63 = vld [vmem:[%s8790_s4 + $0x2a0] sm:$0xff] }
 0x200   : > { %2491 = vmatprep.mubr.f32.mxu1 %v2103_v62  ;;  %v8847_v54 = vrot.slane %v6791_v35, 7  ;;  %v6874_v56 = vsel %vm2217_vm15, %v2229_v61, %v2231_v31  ;;  %v6877_v6 = vsel %vm2243_vm14, %v2257_v21, %v2259_v7  ;;  %v6880_v16 = vsel %vm2217_vm15, %v2231_v31, %v2233_v12  ;;  %v2347_v61 = vld [vmem:[%s8790_s4 + $0x270] sm:$0xff]  ;;  %v2337_v7 = vld [vmem:[%s8790_s4 + $0x220] sm:$0xff] }
 0x201   : > { %2492 = vmatmul.mubr.f32.gmra.mxu1 %v6791_v35  ;;  %v2154_v59 = vrot.slane %v6844_v13, 3  ;;  %v8849_v62 = vrot.slane %v6703_v11, 2  ;;  %v2156_v12 = vrot.slane %v6847_v18, 3 }
 0x202   : > { %2496 = vmatprep.mubr.f32.mxu1 %v2105_v15  ;;  %v6871_v26 = vsel %vm2243_vm14, %v8847_v54, %v2257_v21  ;;  %v2128_v21 = vrot.slane %v6844_v13, 2  ;;  %v2336_v54 = vld [vmem:[%s8790_s4 + $0x218] sm:$0xff] }
 0x203   : > { %v2127_v15 = vsel %vm2114_vm12, %v8849_v62, %v2126_v3  ;;  %v2155_v31 = vsel %vm2140_vm11, %v2152_v36, %v2154_v59  ;;  %v2384_v62 = vld [vmem:[%s8790_s4 + $0x398] sm:$0xff] }
 0x205   : > { %2497 = vmatmul.mubr.f32.gmra.mxu1 %v6844_v13 }
 0x206   : > { %2566 = vmatprep.mubr.f32.mxu1 %v6259_v48  ;;  %v2362_v48 = vld [vmem:[%s8790_s4 + $0x2e8] sm:$0xff] }
 0x209   : > { %2567 = vmatmul.mubr.f32.vlgmr.msra.gmra.mxu1 %v6265_v51  ;;  %v2361_v51 = vld [vmem:[%s8790_s4 + $0x2e0] sm:$0xff] }
 0x20a   : > { %4910 = vmatpush3.msra.mxu1 %v2348_v34  ;;  %2571 = vmatprep.mubr.f32.mxu1 %v6342_v8  ;;  %v2345_v8 = vld [vmem:[%s8790_s4 + $0x260] sm:$0xff]  ;;  %v2129_v34 = vsel %vm2114_vm12, %v2126_v3, %v2128_v21  ;;  %v2388_v3 = vld [vmem:[%s8790_s4 + $0x3b8] sm:$0xff] }
 0x20b   : > { %4911 = vmatprep.subr.mxu1 %v2363_v33  ;;  %v2351_v33 = vld [vmem:[%s8790_s4 + $0x290] sm:$0xff] }
 0x20c   : > { %4912 = vmatpush3.msra.mxu1 %v2347_v61  ;;  %v2130_v61 = vrot.slane %v6847_v18, 2 }
 0x20d   : > { %4913 = vmatprep.subr.mxu1 %v2362_v48  ;;  %2572 = vmatmul.mubr.f32.gmra.mxu1 %v6349_v10  ;;  %v2359_v10 = vld [vmem:[%s8790_s4 + $0x2d0] sm:$0xff]  ;;  %v2157_v48 = vsel %vm2140_vm11, %v2154_v59, %v2156_v12  ;;  %v2370_v59 = vld [vmem:[%s8790_s4 + $0x328] sm:$0xff]  ;;  %v8853_v12 = vld [vmem:[#allocation6_spill] sm:$0xff] }
 0x20e   : > { %4914 = vmatpush3.msra.mxu1 %v2346_v37  ;;  %2576 = vmatprep.mubr.f32.mxu1 %v6527_v52  ;;  %v2343_v52 = vld [vmem:[%s8790_s4 + $0x250] sm:$0xff] }
 0x20f   : > { %4915 = vmatprep.subr.mxu1 %v2361_v51  ;;  %v2335_v37 = vld [vmem:[%s8790_s4 + $0x210] sm:$0xff]  ;;  %v2350_v51 = vld [vmem:[%s8790_s4 + $0x288] sm:$0xff] }
 0x210   : > { %4916 = vmatpush3.msra.mxu1 %v2345_v8  ;;  %v2334_v8 = vld [vmem:[%s8790_s4 + $0x208] sm:$0xff] }
 0x211   : > { %4917 = vmatprep.subr.mxu1 %v2360_v23  ;;  %2577 = vmatmul.mubr.f32.gmra.mxu1 %v6534_v29  ;;  %v2357_v29 = vld [vmem:[%s8790_s4 + $0x2c0] sm:$0xff]  ;;  %v2131_v23 = vsel %vm2114_vm12, %v2128_v21, %v2130_v61  ;;  %v2366_v21 = vld [vmem:[%s8790_s4 + $0x308] sm:$0xff] }
 0x212   : > { %4918 = vmatpush3.msra.mxu1 %v2344_v32  ;;  %2581 = vmatprep.mubr.f32.mxu1 %v6633_v20  ;;  %v2341_v20 = vld [vmem:[%s8790_s4 + $0x240] sm:$0xff] }
 0x213   : > { %4919 = vmatprep.subr.mxu1 %v2359_v10  ;;  %v2349_v32 = vld [vmem:[%s8790_s4 + $0x280] sm:$0xff] }
 0x214   : > { %4920 = vmatpush3.msra.mxu1 %v2343_v52  ;;  %v2333_v10 = vld [vmem:[%s8790_s4 + $0x200] sm:$0xff]  ;;  %v2396_v52 = vld [vmem:[%s8790_s4 + $0x3f8] sm:$0xff] }
 0x215   : > { %4921 = vmatprep.subr.mxu1 %v2358_v30  ;;  %2582 = vmatmul.mubr.f32.gmra.mxu1 %v6640_v44  ;;  %v2355_v44 = vld [vmem:[%s8790_s4 + $0x2b0] sm:$0xff]  ;;  %v2380_v30 = vld [vmem:[%s8790_s4 + $0x378] sm:$0xff]  ;;  %v3098_v61 = vld [vmem:[%s8793_s7 + $0x40] sm:$0xff] }
 0x216   : > { %4922 = vmatpush3.msra.mxu1 %v2342_v28  ;;  %2586 = vmatprep.mubr.f32.mxu1 %v6721_v1  ;;  %v8848_v1 = vrot.slane %v6703_v11, 3  ;;  %v2352_v11 = vld [vmem:[%s8790_s4 + $0x298] sm:$0xff]  ;;  %v2395_v28 = vld [vmem:[%s8790_s4 + $0x3f0] sm:$0xff] }
 0x217   : > { %4923 = vmatprep.subr.mxu1 %v2357_v29  ;;  %v2394_v29 = vld [vmem:[%s8790_s4 + $0x3e8] sm:$0xff] }
 0x218   : > { %4924 = vmatpush3.msra.mxu1 %v2341_v20  ;;  %v2153_v42 = vsel %vm2140_vm11, %v8848_v1, %v2152_v36  ;;  %v2378_v20 = vld [vmem:[%s8790_s4 + $0x368] sm:$0xff]  ;;  %v2392_v36 = vld [vmem:[%s8790_s4 + $0x3d8] sm:$0xff] }
 0x219   : > { %4925 = vmatprep.subr.mxu1 %v2356_v43  ;;  %2587 = vmatmul.mubr.f32.gmra.mxu1 %v6728_v49  ;;  %v2338_v49 = vld [vmem:[%s8790_s4 + $0x228] sm:$0xff]  ;;  %v2376_v43 = vld [vmem:[%s8790_s4 + $0x358] sm:$0xff] }
 0x21a   : > { %4926 = vmatpush3.msra.mxu1 %v2340_v53  ;;  %2591 = vmatprep.mubr.f32.mxu1 %v2153_v42  ;;  %v2390_v53 = vld [vmem:[%s8790_s4 + $0x3c8] sm:$0xff]  ;;  %v2372_v1 = vld [vmem:[%s8790_s4 + $0x338] sm:$0xff]  ;;  %v2205_v42 = vrot.slane %v6844_v13, 5  ;;  %v8850_v13 = vrot.slane %v6791_v35, 5  ;;  %v2383_v35 = vld [vmem:[%s8790_s4 + $0x390] sm:$0xff] }
 0x21b   : > { %4927 = vmatprep.subr.mxu1 %v2355_v44  ;;  %v2374_v44 = vld [vmem:[%s8790_s4 + $0x348] sm:$0xff] }
 0x21c   : > { %4928 = vmatpush3.msra.mxu1 %v2339_v0  ;;  %v2386_v0 = vld [vmem:[%s8790_s4 + $0x3a8] sm:$0xff] }
 0x21d   : > { %4929 = vmatprep.subr.mxu1 %v2354_v46  ;;  %2592 = vmatmul.mubr.f32.gmra.mxu1 %v2127_v15  ;;  %v2369_v46 = vld [vmem:[%s8790_s4 + $0x320] sm:$0xff]  ;;  %v2367_v15 = vld [vmem:[%s8790_s4 + $0x310] sm:$0xff] }
 0x21e   : > { %4930 = vmatpush3.msra.mxu1 %v2338_v49  ;;  %2596 = vmatprep.mubr.f32.mxu1 %v2155_v31  ;;  %v2207_v49 = vrot.slane %v6847_v18, 5  ;;  %v2365_v31 = vld [vmem:[%s8790_s4 + $0x300] sm:$0xff] }
 0x21f   : > { %4931 = vmatprep.subr.mxu1 %v2353_v63  ;;  %v2382_v63 = vld [vmem:[%s8790_s4 + $0x388] sm:$0xff] }
 0x220   : > { %4932 = vmatpush3.msra.mxu1 %v2337_v7  ;;  %v2208_v18 = vsel %vm2060_vm9, %v2205_v42, %v2207_v49  ;;  %v8852_v7 = vld [vmem:[#allocation5_spill] sm:$0xff] }
 0x221   : > { %4933 = vmatprep.subr.mxu1 %v2352_v11  ;;  %2597 = vmatmul.mubr.f32.gmra.mxu1 %v2129_v34  ;;  %v3100_v11 = vld [vmem:[%s8793_s7 + $0x50] sm:$0xff]  ;;  %v3099_v34 = vld [vmem:[%s8793_s7 + $0x48] sm:$0xff] }
 0x222   : > { %4934 = vmatpush3.msra.mxu1 %v2336_v54  ;;  %2601 = vmatprep.mubr.f32.mxu1 %v2157_v48  ;;  %v3115_v54 = vld [vmem:[%s8793_s7 + $0xc8] sm:$0xff]  ;;  %v3113_v48 = vld [vmem:[%s8793_s7 + $0xb8] sm:$0xff] }
 0x223   : > { %4935 = vmatprep.subr.mxu1 %v2351_v33  ;;  %v3114_v33 = vld [vmem:[%s8793_s7 + $0xc0] sm:$0xff] }
 0x224   : > { %4936 = vmatpush3.msra.mxu1 %v2335_v37  ;;  %v3097_v37 = vld [vmem:[%s8793_s7 + $0x38] sm:$0xff] }
 0x225   : > { %4937 = vmatprep.subr.mxu1 %v2350_v51  ;;  %2602 = vmatmul.mubr.f32.gmra.mxu1 %v2131_v23  ;;  %v3112_v51 = vld [vmem:[%s8793_s7 + $0xb0] sm:$0xff]  ;;  %v4829_v23 = vpop.f32.mrf.mxu1 }
 0x226   : > { %4938 = vmatpush3.msra.mxu1 %v2334_v8  ;;  %2671 = vmatprep.mubr.f32.mxu1 %v6278_v5  ;;  %v2379_v5 = vld [vmem:[%s8790_s4 + $0x370] sm:$0xff] }
 0x227   : > { %4939 = vmatprep.subr.mxu1 %v2349_v32  ;;  %v3096_v8 = vld [vmem:[%s8793_s7 + $0x30] sm:$0xff]  ;;  %v3111_v32 = vld [vmem:[%s8793_s7 + $0xa8] sm:$0xff] }
 0x228   : > { %4940 = vmatpush3.msra.mxu1 %v2333_v10  ;;  %v3095_v10 = vld [vmem:[%s8793_s7 + $0x28] sm:$0xff] }
 0x229   : > { %4965 = vmatprep.subr.mxu1 %v2396_v52  ;;  %2672 = vmatmul.mubr.f32.vlgmr.msra.gmra.mxu1 %v6283_v60  ;;  %v2393_v60 = vld [vmem:[%s8790_s4 + $0x3e0] sm:$0xff] }
 0x22a   : > { %4966 = vmatpush3.msra.mxu1 %v2380_v30  ;;  %2676 = vmatprep.mubr.f32.mxu1 %v6358_v38  ;;  %v2377_v38 = vld [vmem:[%s8790_s4 + $0x360] sm:$0xff] }
 0x22b   : > { %4967 = vmatprep.subr.mxu1 %v2395_v28  ;;  %v3110_v52 = vld [vmem:[%s8793_s7 + $0xa0] sm:$0xff]  ;;  %v4830_v28 = vpop.f32.mrf.mxu1 }
 0x22c   : > { %4968 = vmatpush3.msra.mxu1 %v2379_v5  ;;  %v3094_v30 = vld [vmem:[%s8793_s7 + $0x20] sm:$0xff]  ;;  %v3109_v5 = vld [vmem:[%s8793_s7 + $0x98] sm:$0xff] }
 0x22d   : > { %4969 = vmatprep.subr.mxu1 %v2394_v29  ;;  %2677 = vmatmul.mubr.f32.gmra.mxu1 %v6368_v27  ;;  %v2391_v27 = vld [vmem:[%s8790_s4 + $0x3d0] sm:$0xff]  ;;  %v3093_v29 = vld [vmem:[%s8793_s7 + $0x18] sm:$0xff] }
 0x22e   : > { %4970 = vmatpush3.msra.mxu1 %v2378_v20  ;;  %2681 = vmatprep.mubr.f32.mxu1 %v6549_v40  ;;  %v2375_v40 = vld [vmem:[%s8790_s4 + $0x350] sm:$0xff]  ;;  %v7212_v20 = vpop.f32.mrf.mxu1 }
 0x22f   : > { %4971 = vmatprep.subr.mxu1 %v2393_v60  ;;  %v3108_v60 = vld [vmem:[%s8793_s7 + $0x90] sm:$0xff] }
 0x230   : > { %4972 = vmatpush3.msra.mxu1 %v2377_v38  ;;  %v3092_v38 = vld [vmem:[%s8793_s7 + $0x10] sm:$0xff] }
 0x231   : > { %4973 = vmatprep.subr.mxu1 %v2392_v36  ;;  %2682 = vmatmul.mubr.f32.gmra.mxu1 %v6562_v2  ;;  %v2389_v2 = vld [vmem:[%s8790_s4 + $0x3c0] sm:$0xff]  ;;  %v3107_v36 = vld [vmem:[%s8793_s7 + $0x88] sm:$0xff] }
 0x232   : > { %4974 = vmatpush3.msra.mxu1 %v2376_v43  ;;  %2686 = vmatprep.mubr.f32.mxu1 %v6649_v39  ;;  %v2373_v39 = vld [vmem:[%s8790_s4 + $0x340] sm:$0xff]  ;;  %v3091_v43 = vld [vmem:[%s8793_s7 + $0x8] sm:$0xff] }
 0x233   : > { %4975 = vmatprep.subr.mxu1 %v2391_v27  ;;  %v7226_v27 = vpop.f32.mrf.mxu1 }
 0x234   : > { %4976 = vmatpush3.msra.mxu1 %v2375_v40  ;;  %v3106_v40 = vld [vmem:[%s8793_s7 + $0x80] sm:$0xff] }
 0x235   : > { %4977 = vmatprep.subr.mxu1 %v2390_v53  ;;  %2687 = vmatmul.mubr.f32.gmra.mxu1 %v6659_v25  ;;  %v2387_v25 = vld [vmem:[%s8790_s4 + $0x3b0] sm:$0xff]  ;;  %v3090_v53 = vld [vmem:[%s8793_s7] sm:$0xff] }
 0x236   : > { %4978 = vmatpush3.msra.mxu1 %v2374_v44  ;;  %2691 = vmatprep.mubr.f32.mxu1 %v6737_v14  ;;  %v2371_v14 = vld [vmem:[%s8790_s4 + $0x330] sm:$0xff] }
 0x237   : > { %4979 = vmatprep.subr.mxu1 %v2389_v2  ;;  %v3153_v2 = vld [vmem:[%s8793_s7 + $0x1f8] sm:$0xff] }
 0x238   : > { %4980 = vmatpush3.msra.mxu1 %v2373_v39 }
 0x239   : > { %4981 = vmatprep.subr.mxu1 %v2388_v3  ;;  %2692 = vmatmul.mubr.f32.gmra.mxu1 %v6747_v17  ;;  %v2385_v17 = vld [vmem:[%s8790_s4 + $0x3a0] sm:$0xff] }
 0x23a   : > { %4982 = vmatpush3.msra.mxu1 %v2372_v1  ;;  %2696 = vmatprep.mubr.f32.mxu1 %v6813_v41  ;;  %v2206_v41 = vsel %vm2060_vm9, %v8850_v13, %v2205_v42 }
 0x23b   : > { %4983 = vmatprep.subr.mxu1 %v2387_v25 }
 0x23c   : > { %4984 = vmatpush3.msra.mxu1 %v2371_v14 }
 0x23d   : > { %4985 = vmatprep.subr.mxu1 %v2386_v0  ;;  %2697 = vmatmul.mubr.f32.gmra.mxu1 %v6818_v55  ;;  %v2368_v55 = vld [vmem:[%s8790_s4 + $0x318] sm:$0xff] }
 0x23e   : > { %4986 = vmatpush3.msra.mxu1 %v2370_v59  ;;  %2701 = vmatprep.mubr.f32.mxu1 %v2206_v41 }
 0x23f   : > { %4987 = vmatprep.subr.mxu1 %v2385_v17 }
 0x240   : > { %4988 = vmatpush3.msra.mxu1 %v2369_v46 }
 0x241   : > { %4989 = vmatprep.subr.mxu1 %v2384_v62  ;;  %2702 = vmatmul.mubr.f32.gmra.mxu1 %v6856_v22  ;;  %v2381_v22 = vld [vmem:[%s8790_s4 + $0x380] sm:$0xff]  ;;  %v4831_v62 = vadd.f32 %v4830_v28, %v4829_v23  ;;  %v3924_v23 = vld [vmem:[%s8796_s10 + $0xe8] sm:$0xff] }
 0x242   : > { %4990 = vmatpush3.msra.mxu1 %v2368_v55  ;;  %2706 = vmatprep.mubr.f32.mxu1 %v2208_v18 }
 0x243   : > { %4991 = vmatprep.subr.mxu1 %v2383_v35  ;;  %v7234_v44 = vpop.f32.mrf.mxu1 }
 0x244   : > { %4992 = vmatpush3.msra.mxu1 %v2367_v15 }
 0x245   : > { %4993 = vmatprep.subr.mxu1 %v2382_v63  ;;  %2707 = vmatmul.mubr.f32.gmra.mxu1 %v6866_v50  ;;  %v8851_v50 = vld [vmem:[#allocation4_spill] sm:$0xff]  ;;  %v7239_v39 = vpop.f32.mrf.mxu1 }
 0x246   : > { %4994 = vmatpush3.msra.mxu1 %v2366_v21  ;;  %2776 = vmatprep.mubr.f32.mxu1 %v6289_v9  ;;  %v8854_v9 = vld [vmem:[#allocation7_spill] sm:$0xff] }
 0x247   : > { %4995 = vmatprep.subr.mxu1 %v2381_v22 }
 0x248   : > { %4996 = vmatpush3.msra.mxu1 %v2365_v31 }
 0x249   : > { %2777 = vmatmul.mubr.f32.vlgmr.msra.gmra.mxu1 %v6297_v24  ;;  %v3121_v24 = vld [vmem:[%s8793_s7 + $0xf8] sm:$0xff] }
 0x24a   : > { %2781 = vmatprep.mubr.f32.mxu1 %v6375_v57  ;;  %v3105_v57 = vld [vmem:[%s8793_s7 + $0x78] sm:$0xff]  ;;  %5021 = vmatprep.subr.mxu1 %v3121_v24 }
 0x24b   : > { %5022 = vmatpush3.msra.mxu1 %v3105_v57  ;;  %v3926_v24 = vld [vmem:[%s8796_s10 + $0xf8] sm:$0xff] }
 0x24c   : > { %5245 = vmatprep.subr.mxu0 %v3926_v24  ;;  %v3910_v57 = vld [vmem:[%s8796_s10 + $0x78] sm:$0xff] }
 0x24d   : > { %2782 = vmatmul.mubr.f32.gmra.mxu1 %v6384_v58  ;;  %v3120_v58 = vld [vmem:[%s8793_s7 + $0xf0] sm:$0xff]  ;;  %5246 = vmatpush3.msra.mxu0 %v3910_v57 }
 0x24e   : > { %2786 = vmatprep.mubr.f32.mxu1 %v6569_v4  ;;  %v3104_v4 = vld [vmem:[%s8793_s7 + $0x70] sm:$0xff]  ;;  %5023 = vmatprep.subr.mxu1 %v3120_v58 }
 0x24f   : > { %5024 = vmatpush3.msra.mxu1 %v3104_v4 }
 0x251   : > { %2787 = vmatmul.mubr.f32.gmra.mxu1 %v6587_v19  ;;  %v3119_v19 = vld [vmem:[%s8793_s7 + $0xe8] sm:$0xff] }
 0x252   : > { %2791 = vmatprep.mubr.f32.mxu1 %v6666_v47  ;;  %v3103_v47 = vld [vmem:[%s8793_s7 + $0x68] sm:$0xff]  ;;  %5025 = vmatprep.subr.mxu1 %v3119_v19 }
 0x253   : > { %5026 = vmatpush3.msra.mxu1 %v3103_v47 }
 0x255   : > { %2792 = vmatmul.mubr.f32.gmra.mxu1 %v8851_v50 }
 0x256   : > { %2796 = vmatprep.mubr.f32.mxu1 %v8852_v7 }
 0x259   : > { %2797 = vmatmul.mubr.f32.gmra.mxu1 %v8853_v12 }
 0x25a   : > { %2801 = vmatprep.mubr.f32.mxu1 %v6826_v45  ;;  %v3118_v45 = vld [vmem:[%s8793_s7 + $0xe0] sm:$0xff] }
 0x25b   : > { %5027 = vmatprep.subr.mxu1 %v3118_v45 }
 0x25d   : > { %2802 = vmatmul.mubr.f32.gmra.mxu1 %v8854_v9 }
 0x25e   : > { %2806 = vmatprep.mubr.f32.mxu1 %v6871_v26  ;;  %v3102_v26 = vld [vmem:[%s8793_s7 + $0x60] sm:$0xff] }
 0x25f   : > { %5028 = vmatpush3.msra.mxu1 %v3102_v26 }
 0x261   : > { %2807 = vmatmul.mubr.f32.gmra.mxu1 %v6874_v56  ;;  %v3117_v56 = vld [vmem:[%s8793_s7 + $0xd8] sm:$0xff] }
 0x262   : > { %2811 = vmatprep.mubr.f32.mxu1 %v6877_v6  ;;  %v3101_v6 = vld [vmem:[%s8793_s7 + $0x58] sm:$0xff]  ;;  %5029 = vmatprep.subr.mxu1 %v3117_v56 }
 0x263   : > { %5030 = vmatpush3.msra.mxu1 %v3101_v6  ;;  %v7241_v3 = vpop.f32.mrf.mxu1 }
 0x265   : > { %2812 = vmatmul.mubr.f32.gmra.mxu1 %v6880_v16  ;;  %v3116_v16 = vld [vmem:[%s8793_s7 + $0xd0] sm:$0xff]  ;;  %v7243_v1 = vpop.f32.mrf.mxu1 }
 0x266   : > { %5031 = vmatprep.subr.mxu1 %v3116_v16  ;;  %v3925_v16 = vld [vmem:[%s8796_s10 + $0xf0] sm:$0xff] }
 0x267   : > { %5032 = vmatpush3.msra.mxu1 %v3100_v11  ;;  %5247 = vmatprep.subr.mxu0 %v3925_v16  ;;  %v3909_v11 = vld [vmem:[%s8796_s10 + $0x70] sm:$0xff] }
 0x268   : > { %5033 = vmatprep.subr.mxu1 %v3115_v54  ;;  %5248 = vmatpush3.msra.mxu0 %v3909_v11 }
 0x269   : > { %5034 = vmatpush3.msra.mxu1 %v3099_v34  ;;  %5249 = vmatprep.subr.mxu0 %v3924_v23 }
 0x26a   : > { %5035 = vmatprep.subr.mxu1 %v3114_v33 }
 0x26b   : > { %5036 = vmatpush3.msra.mxu1 %v3098_v61 }
 0x26c   : > { %5037 = vmatprep.subr.mxu1 %v3113_v48 }
 0x26d   : > { %5038 = vmatpush3.msra.mxu1 %v3097_v37 }
 0x26e   : > { %5039 = vmatprep.subr.mxu1 %v3112_v51 }
 0x26f   : > { %5040 = vmatpush3.msra.mxu1 %v3096_v8 }
 0x270   : > { %5041 = vmatprep.subr.mxu1 %v3111_v32  ;;  %v3908_v32 = vld [vmem:[%s8796_s10 + $0x68] sm:$0xff] }
 0x271   : > { %5042 = vmatpush3.msra.mxu1 %v3095_v10  ;;  %5250 = vmatpush3.msra.mxu0 %v3908_v32 }
 0x272   : > { %5043 = vmatprep.subr.mxu1 %v3110_v52 }
 0x273   : > { %5044 = vmatpush3.msra.mxu1 %v3094_v30 }
 0x274   : > { %5045 = vmatprep.subr.mxu1 %v3109_v5 }
 0x275   : > { %5046 = vmatpush3.msra.mxu1 %v3093_v29 }
 0x276   : > { %5047 = vmatprep.subr.mxu1 %v3108_v60 }
 0x277   : > { %5048 = vmatpush3.msra.mxu1 %v3092_v38 }
 0x278   : > { %5049 = vmatprep.subr.mxu1 %v3107_v36  ;;  %v4834_v36 = vadd.f32 %v7226_v27, %v7212_v20  ;;  %v3923_v20 = vld [vmem:[%s8796_s10 + $0xe0] sm:$0xff] }
 0x279   : > { %5050 = vmatpush3.msra.mxu1 %v3091_v43  ;;  %5251 = vmatprep.subr.mxu0 %v3923_v20  ;;  %v3922_v20 = vld [vmem:[%s8796_s10 + $0xd8] sm:$0xff] }
 0x27a   : > { %5051 = vmatprep.subr.mxu1 %v3106_v40 }
 0x27b   : > { %5052 = vmatpush3.msra.mxu1 %v3090_v53 }
 0x27c   : > { %5077 = vmatprep.subr.mxu1 %v3153_v2  ;;  %v4837_v2 = vadd.f32 %v7239_v39, %v7234_v44 }
 0x283   : > { %v7245_v25 = vpop.f32.mrf.mxu1 }
 0x285   : > { %v7247_v14 = vpop.f32.mrf.mxu1 }
 0x286   : > { %v4843_v27 = vadd.f32 %v7247_v14, %v7245_v25  ;;  %v3907_v25 = vld [vmem:[%s8796_s10 + $0x60] sm:$0xff] }
 0x287   : > { %5252 = vmatpush3.msra.mxu0 %v3907_v25 }
 0x288   : > { %5253 = vmatprep.subr.mxu0 %v3922_v20 }
 0x2a3   : > { %v7249_v42 = vpop.f32.mrf.mxu1 }
 0x2a5   : > { %v7251_v0 = vpop.f32.mrf.mxu1 }
 0x2a6   : > { %v4846_v44 = vadd.f32 %v7251_v0, %v7249_v42 }
 0x2c1   : > { %v7253_v59 = vpop.f32.mrf.mxu1 }
 0x2c3   : > { %v7255_v17 = vpop.f32.mrf.mxu1 }
 0x2c4   : > { %v4849_v39 = vadd.f32 %v7255_v17, %v7253_v59 }
 0x2c5   : > { %v7257_v13 = vpop.f32.mrf.mxu1 }
 0x2c7   : > { %v7259_v41 = vpop.f32.mrf.mxu1 }
 0x2c8   : > { %v4852_v59 = vadd.f32 %v7259_v41, %v7257_v13 }
 0x2c9   : > { %v4885_v46 = vpop.f32.mrf.mxu1 }
 0x2cb   : > { %v4886_v49 = vpop.f32.mrf.mxu1 }
 0x2cc   : > { %v4887_v55 = vadd.f32 %v4886_v49, %v4885_v46  ;;  %v7302_v49 = vld [vmem:[%s8791_s5] ss:$0 sm:$0xff] }
 0x2cd   : > { %v4888_v35 = vpop.f32.mrf.mxu1 }
 0x2ce   : > { %v2569_v18 = vadd.f32 %v4887_v55, %v4831_v62  ;;  %v4840_v55 = vadd.f32 %v7243_v1, %v7241_v3  ;;  %v7318_v3 = vld [vmem:[%s8792_s6] ss:$0 sm:$0xff] }
 0x2cf   : > { %v4889_v15 = vpop.f32.mrf.mxu1 }
 0x2d0   : > { %v4890_v60 = vadd.f32 %v4889_v15, %v4888_v35 }
 0x2d1   : > { %v4891_v63 = vpop.f32.mrf.mxu1 }
 0x2d2   : > { %v2574_v35 = vadd.f32 %v4890_v60, %v4834_v36 }
 0x2d3   : > { %v4892_v21 = vpop.f32.mrf.mxu1 }
 0x2d4   : > { %v4893_v46 = vadd.f32 %v4892_v21, %v4891_v63 }
 0x2d5   : > { %v4894_v22 = vpop.f32.mrf.mxu1 }
 0x2d6   : > { %v2579_v17 = vadd.f32 %v4893_v46, %v4837_v2 }
 0x2d7   : > { %v4895_v31 = vpop.f32.mrf.mxu1 }
 0x2d8   : > { %v4896_v15 = vadd.f32 %v4895_v31, %v4894_v22 }
 0x2d9   : > { %v7261_v50 = vpop.f32.mrf.mxu1 }
 0x2db   : > { %v7263_v7 = vpop.f32.mrf.mxu1 }
 0x2dc   : > { %v4899_v22 = vadd.f32 %v7263_v7, %v7261_v50 }
 0x2dd   : > { %v7265_v12 = vpop.f32.mrf.mxu1 }
 0x2df   : > { %v7267_v9 = vpop.f32.mrf.mxu1 }
 0x2e0   : > { %v4902_v31 = vadd.f32 %v7267_v9, %v7265_v12  ;;  %v2589_v9 = vadd.f32 %v4899_v22, %v4843_v27 }
 0x2e1   : > { %v7275_v58 = vpop.f32.mrf.mxu1 }
 0x2e2   : > { %v2594_v23 = vadd.f32 %v4902_v31, %v4846_v44  ;;  %v3906_v31 = vld [vmem:[%s8796_s10 + $0x58] sm:$0xff] }
 0x2e3   : > { %v7277_v4 = vpop.f32.mrf.mxu1  ;;  %5254 = vmatpush3.msra.mxu0 %v3906_v31 }
 0x2e5   : > { %v7279_v19 = vpop.f32.mrf.mxu1 }
 0x2e7   : > { %v7281_v47 = vpop.f32.mrf.mxu1 }
 0x2e8   : > { %v4908_v16 = vadd.f32 %v7281_v47, %v7279_v19 }
 0x2e9   : > { %v4941_v45 = vpop.f32.mrf.mxu1 }
 0x2ea   : > { %v2604_v19 = vadd.f32 %v4908_v16, %v4852_v59 }
 0x2eb   : > { %v4942_v26 = vpop.f32.mrf.mxu1 }
 0x2ec   : > { %v4943_v5 = vadd.f32 %v4942_v26, %v4941_v45  ;;  %v2584_v45 = vadd.f32 %v4896_v15, %v4840_v55  ;;  %v4905_v26 = vadd.f32 %v7277_v4, %v7275_v58 }
 0x2ed   : > { %v4944_v56 = vpop.f32.mrf.mxu1 }
 0x2ee   : > { %v2674_v43 = vadd.f32 %v4943_v5, %v2569_v18  ;;  %v8855_v18 = vld [vmem:[#allocation2_spill] sm:$0xff]  ;;  %v2599_v4 = vadd.f32 %v4905_v26, %v4849_v39 }
 0x2ef   : > { %v4945_v6 = vpop.f32.mrf.mxu1  ;;  %v7321_v63 = vadd.s32 56, %v8855_v18 }
 0x2f0   : > { %v4946_v40 = vadd.f32 %v4945_v6, %v4944_v56 }
 0x2f1   : > { %v4947_v54 = vpop.f32.mrf.mxu1  ;;  %vm2058_vm1 = vcmp.lt.s32.totalorder %v7321_v63, 63 }
 0x2f2   : > { %v2679_v14 = vadd.f32 %v4946_v40, %v2574_v35 }
 0x2f3   : > { %v4948_v34 = vpop.f32.mrf.mxu1 }
 0x2f4   : > { %v4949_v21 = vadd.f32 %v4948_v34, %v4947_v54 }
 0x2f5   : > { %v4950_v33 = vpop.f32.mrf.mxu1 }
 0x2f6   : > { %v2684_v34 = vadd.f32 %v4949_v21, %v2579_v17 }
 0x2f7   : > { %v4951_v61 = vpop.f32.mrf.mxu1 }
 0x2f8   : > { %v4952_v11 = vadd.f32 %v4951_v61, %v4950_v33 }
 0x2f9   : > { %v4953_v48 = vpop.f32.mrf.mxu1 }
 0x2fa   : > { %v2689_v47 = vadd.f32 %v4952_v11, %v2584_v45  ;;  %v3905_v45 = vld [vmem:[%s8796_s10 + $0x50] sm:$0xff] }
 0x2fb   : > { %v4954_v37 = vpop.f32.mrf.mxu1 }
 0x2fc   : > { %v4955_v13 = vadd.f32 %v4954_v37, %v4953_v48 }
 0x2fd   : > { %v4956_v51 = vpop.f32.mrf.mxu1 }
 0x2fe   : > { %v2694_v33 = vadd.f32 %v4955_v13, %v2589_v9  ;;  %v3904_v9 = vld [vmem:[%s8796_s10 + $0x48] sm:$0xff] }
 0x2ff   : > { %v4957_v8 = vpop.f32.mrf.mxu1 }
 0x300   : > { %v4958_v41 = vadd.f32 %v4957_v8, %v4956_v51 }
 0x301   : > { %v4959_v10 = vpop.f32.mrf.mxu1 }
 0x302   : > { %v7340_v61 = vadd.f32 %v4958_v41, %v2594_v23  ;;  %v3920_v41 = vld [vmem:[%s8796_s10 + $0xc8] sm:$0xff] }
 0x303   : > { %v4960_v52 = vpop.f32.mrf.mxu1 }
 0x304   : > { %v4961_v32 = vadd.f32 %v4960_v52, %v4959_v10 }
 0x305   : > { %v4962_v30 = vpop.f32.mrf.mxu1 }
 0x306   : > { %v7346_v52 = vadd.f32 %v4961_v32, %v2599_v4  ;;  %v3973_v32 = vld [vmem:[%s8796_s10 + $0x270] sm:$0xff] }
 0x307   : > { %v4963_v28 = vpop.f32.mrf.mxu1 }
 0x308   : > { %v4964_v5 = vadd.f32 %v4963_v28, %v4962_v30 }
 0x309   : > { %v4997_v29 = vpop.f32.mrf.mxu1 }
 0x30a   : > { %v7348_v30 = vadd.f32 %v4964_v5, %v2604_v19 }
 0x30b   : > { %v4998_v38 = vpop.f32.mrf.mxu1 }
 0x30c   : > { %v4999_v53 = vadd.f32 %v4998_v38, %v4997_v29 }
 0x30d   : > { %v5000_v62 = vpop.f32.mrf.mxu1 }
 0x30e   : > { %v2779_v24 = vadd.f32 %v4999_v53, %v2674_v43 }
 0x30f   : > { %v5001_v1 = vpop.f32.mrf.mxu1 }
 0x310   : > { %v2824_v42 = vmul.f32 %v7302_v49, %v2779_v24  ;;  %v5002_v0 = vadd.f32 %v5001_v1, %v5000_v62 }
 0x311   : > { %v5003_v57 = vpop.f32.mrf.mxu1 }
 0x312   : > { %v2839_v56 = vadd.f32 %v7318_v3, %v2824_v42  ;;  %v2784_v6 = vadd.f32 %v5002_v0, %v2679_v14 }
 0x313   : > { %v5004_v54 = vpop.f32.mrf.mxu1 }
 0x314   : > { %v2847_v50 = vmax.f32 %v2839_v56, 0.0  ;;  %v2825_v7 = vmul.f32 %v7302_v49, %v2784_v6  ;;  %v5005_v12 = vadd.f32 %v5004_v54, %v5003_v57  ;;  %v3921_v57 = vld [vmem:[%s8796_s10 + $0xd0] sm:$0xff]  ;;  %v3137_v6 = vld [vmem:[%s8793_s7 + $0x178] sm:$0xff] }
 0x315   : > { %v5006_v58 = vpop.f32.mrf.mxu1  ;;  %5255 = vmatprep.subr.mxu0 %v3921_v57 }
 0x316   : > { %v2887_v29 = vrot.slane %v2847_v50, 5  ;;  %v2840_v60 = vadd.f32 %v7318_v3, %v2825_v7  ;;  %v2789_v38 = vadd.f32 %v5005_v12, %v2684_v34  ;;  %v3152_v12 = vld [vmem:[%s8793_s7 + $0x1f0] sm:$0xff]  ;;  %5256 = vmatpush3.msra.mxu0 %v3905_v45  ;;  %v3918_v45 = vld [vmem:[%s8796_s10 + $0xb8] sm:$0xff] }
 0x317   : > { %v5007_v48 = vpop.f32.mrf.mxu1  ;;  %5257 = vmatprep.subr.mxu0 %v3920_v41 }
 0x318   : > { %v7343_v37 = vsel %vm2060_vm9, 0.0, %v2887_v29  ;;  %v2848_v51 = vmax.f32 %v2840_v60, 0.0  ;;  %v2826_v8 = vmul.f32 %v7302_v49, %v2789_v38  ;;  %v5008_v10 = vadd.f32 %v5007_v48, %v5006_v58  ;;  %v3136_v58 = vld [vmem:[%s8793_s7 + $0x170] sm:$0xff]  ;;  %5258 = vmatpush3.msra.mxu0 %v3904_v9 }
 0x319   : > { %v5009_v28 = vpop.f32.mrf.mxu1  ;;  %v2915_v36 = vrot.slane %v7343_v37, 1  ;;  %v2965_v43 = vrot.slane %v7343_v37, 3  ;;  %v2940_v46 = vrot.slane %v7343_v37, 2  ;;  %v3015_v55 = vrot.slane %v7343_v37, 5 }
 0x31a   : > { %v2888_v40 = vrot.slane %v2848_v51, 5  ;;  %v2841_v53 = vadd.f32 %v7318_v3, %v2826_v8  ;;  %v2794_v2 = vadd.f32 %v5008_v10, %v2689_v47  ;;  %v2990_v35 = vrot.slane %v7343_v37, 4  ;;  %v3135_v10 = vld [vmem:[%s8793_s7 + $0x168] sm:$0xff] }
 0x31b   : > { %v5010_v62 = vpop.f32.mrf.mxu1  ;;  %v3065_v15 = vrot.slane %v7343_v37, 7  ;;  %v3040_v24 = vrot.slane %v7343_v37, 6 }
 0x31c   : > { %v7362_v27 = vsel %vm2060_vm9, %v2887_v29, %v2888_v40  ;;  %v2849_v44 = vmax.f32 %v2841_v53, 0.0  ;;  %v2827_v39 = vmul.f32 %v7302_v49, %v2794_v2  ;;  %v5011_v1 = vadd.f32 %v5010_v62, %v5009_v28  ;;  %v3150_v62 = vld [vmem:[%s8793_s7 + $0x1e0] sm:$0xff] }
 0x31d   : > { %v5012_v18 = vpop.f32.mrf.mxu1  ;;  %v2916_v25 = vrot.slane %v7362_v27, 1  ;;  %v2966_v14 = vrot.slane %v7362_v27, 3  ;;  %v2941_v21 = vrot.slane %v7362_v27, 2  ;;  %v3016_v42 = vrot.slane %v7362_v27, 5 }
 0x31e   : > { %v2890_v0 = vrot.slane %v2849_v44, 5  ;;  %v2842_v59 = vadd.f32 %v7318_v3, %v2827_v39  ;;  %v2799_v17 = vadd.f32 %v5011_v1, %v2694_v33  ;;  %v2991_v22 = vrot.slane %v7362_v27, 4  ;;  %v3151_v33 = vld [vmem:[%s8793_s7 + $0x1e8] sm:$0xff]  ;;  %v3134_v44 = vld [vmem:[%s8793_s7 + $0x160] sm:$0xff] }
 0x31f   : > { %v5013_v26 = vpop.f32.mrf.mxu1  ;;  %v2917_v56 = vsel %vm2049_vm10, %v2915_v36, %v2916_v25  ;;  %v7385_v16 = vsel %vm2140_vm11, %v2965_v43, %v2966_v14  ;;  %v7388_v11 = vsel %vm2114_vm12, %v2940_v46, %v2941_v21  ;;  %v7393_v13 = vsel %vm2060_vm9, %v3015_v55, %v3016_v42  ;;  %v3919_v43 = vld [vmem:[%s8796_s10 + $0xc0] sm:$0xff] }
 0x320   : > { %v7399_v54 = vsel %vm2060_vm9, %v2888_v40, %v2890_v0  ;;  %v2850_v34 = vmax.f32 %v2842_v59, 0.0  ;;  %v2828_v50 = vmul.f32 %v7302_v49, %v2799_v17  ;;  %v5014_v7 = vadd.f32 %v5013_v26, %v5012_v18  ;;  %3282 = vmatprep.mubr.f32.mxu1 %v2917_v56  ;;  %v3903_v55 = vld [vmem:[%s8796_s10 + $0x40] sm:$0xff]  ;;  %5259 = vmatprep.subr.mxu0 %v3919_v43 }
 0x321   : > { %v5015_v23 = vpop.f32.mrf.mxu1  ;;  %4707 = vmatmul.mubr.msk.f32.vlgmr.msra.gmra.mxu1 %vm6247_vm0, %v2887_v29  ;;  %v2918_v5 = vrot.slane %v7399_v54, 1  ;;  %v2968_v4 = vrot.slane %v7399_v54, 3  ;;  %v2943_v60 = vrot.slane %v7399_v54, 2  ;;  %v7419_v38 = vsel %vm2166_vm13, %v2990_v35, %v2991_v22  ;;  %5260 = vmatpush3.msra.mxu0 %v3903_v55 }
 0x322   : > { %v2892_v19 = vrot.slane %v2850_v34, 5  ;;  %v2843_v47 = vadd.f32 %v7318_v3, %v2828_v50  ;;  %v2804_v29 = vadd.f32 %v5014_v7, %v7340_v61  ;;  %5078 = vmatpush3.msra.mxu1 %v3137_v6  ;;  %v3018_v48 = vrot.slane %v7399_v54, 5  ;;  %v3148_v34 = vld [vmem:[%s8793_s7 + $0x1d0] sm:$0xff]  ;;  %v3902_v50 = vld [vmem:[%s8796_s10 + $0x38] sm:$0xff]  ;;  %5261 = vmatprep.subr.mxu0 %v3918_v45 }
 0x323   : > { %v5016_v51 = vpop.f32.mrf.mxu1  ;;  %5079 = vmatprep.subr.mxu1 %v3152_v12  ;;  %v2919_v8 = vsel %vm2049_vm10, %v2916_v25, %v2918_v5  ;;  %v7432_v28 = vsel %vm2140_vm11, %v2966_v14, %v2968_v4  ;;  %v7435_v61 = vsel %vm2114_vm12, %v2941_v21, %v2943_v60  ;;  %v2993_v36 = vrot.slane %v7399_v54, 4  ;;  %v3132_v12 = vld [vmem:[%s8793_s7 + $0x150] sm:$0xff]  ;;  %5262 = vmatpush3.msra.mxu0 %v3902_v50 }
 0x324   : > { %v7442_v40 = vsel %vm2060_vm9, %v2890_v0, %v2892_v19  ;;  %v2851_v53 = vmax.f32 %v2843_v47, 0.0  ;;  %v2829_v2 = vmul.f32 %v7302_v49, %v2804_v29  ;;  %v5017_v46 = vadd.f32 %v5016_v51, %v5015_v23  ;;  %3287 = vmatprep.mubr.f32.mxu1 %v2919_v8  ;;  %5080 = vmatpush3.msra.mxu1 %v3136_v58  ;;  %v3149_v0 = vld [vmem:[%s8793_s7 + $0x1d8] sm:$0xff] }
 0x325   : > { %v5018_v35 = vpop.f32.mrf.mxu1  ;;  %3288 = vmatmul.mubr.f32.gmra.mxu1 %v7362_v27  ;;  %5081 = vmatprep.subr.mxu1 %v3151_v33  ;;  %v2920_v20 = vrot.slane %v7442_v40, 1  ;;  %v2970_v39 = vrot.slane %v7442_v40, 3  ;;  %v2945_v1 = vrot.slane %v7442_v40, 2  ;;  %v7461_v18 = vsel %vm2060_vm9, %v3016_v42, %v3018_v48  ;;  %v3131_v33 = vld [vmem:[%s8793_s7 + $0x148] sm:$0xff] }
 0x326   : > { %v2894_v25 = vrot.slane %v2851_v53, 5  ;;  %v2844_v14 = vadd.f32 %v7318_v3, %v2829_v2  ;;  %v2809_v21 = vadd.f32 %v5017_v46, %v7346_v52  ;;  %5082 = vmatpush3.msra.mxu1 %v3135_v10  ;;  %v7473_v59 = vsel %vm2166_vm13, %v2991_v22, %v2993_v36  ;;  %v3133_v52 = vld [vmem:[%s8793_s7 + $0x158] sm:$0xff]  ;;  %v3146_v53 = vld [vmem:[%s8793_s7 + $0x1c0] sm:$0xff] }
 0x327   : > { %v5019_v42 = vpop.f32.mrf.mxu1  ;;  %5083 = vmatprep.subr.mxu1 %v3150_v62  ;;  %v2921_v17 = vsel %vm2049_vm10, %v2918_v5, %v2920_v20  ;;  %v7481_v31 = vsel %vm2140_vm11, %v2968_v4, %v2970_v39  ;;  %v7484_v57 = vsel %vm2114_vm12, %v2943_v60, %v2945_v1  ;;  %v3020_v22 = vrot.slane %v7442_v40, 5 }
 0x328   : > { %v7491_v26 = vsel %vm2060_vm9, %v2892_v19, %v2894_v25  ;;  %v2852_v56 = vmax.f32 %v2844_v14, 0.0  ;;  %v2830_v6 = vmul.f32 %v7302_v49, %v2809_v21  ;;  %v5020_v41 = vadd.f32 %v5019_v42, %v5018_v35  ;;  %3292 = vmatprep.mubr.f32.mxu1 %v2921_v17  ;;  %5084 = vmatpush3.msra.mxu1 %v3134_v44  ;;  %v3147_v19 = vld [vmem:[%s8793_s7 + $0x1c8] sm:$0xff]  ;;  %v3145_v44 = vld [vmem:[%s8793_s7 + $0x1b8] sm:$0xff] }
 0x329   : > { %3293 = vmatmul.mubr.f32.gmra.mxu1 %v7399_v54  ;;  %5085 = vmatprep.subr.mxu1 %v3149_v0  ;;  %v2922_v7 = vrot.slane %v7491_v26, 1  ;;  %v2972_v9 = vrot.slane %v7491_v26, 3  ;;  %v2947_v23 = vrot.slane %v7491_v26, 2  ;;  %v7508_v5 = vsel %vm2060_vm9, %v3018_v48, %v3020_v22  ;;  %v3129_v14 = vld [vmem:[%s8793_s7 + $0x138] sm:$0xff] }
 0x32a   : > { %v2896_v58 = vrot.slane %v2852_v56, 5  ;;  %v2845_v4 = vadd.f32 %v7318_v3, %v2830_v6  ;;  %v2814_v60 = vadd.f32 %v5020_v41, %v7348_v30  ;;  %5086 = vmatpush3.msra.mxu1 %v3133_v52  ;;  %v2995_v47 = vrot.slane %v7442_v40, 4  ;;  %v3144_v52 = vld [vmem:[%s8793_s7 + $0x1b0] sm:$0xff] }
 0x32b   : > { %5087 = vmatprep.subr.mxu1 %v3148_v34  ;;  %v2923_v29 = vsel %vm2049_vm10, %v2920_v20, %v2922_v7  ;;  %v7521_v48 = vsel %vm2140_vm11, %v2970_v39, %v2972_v9  ;;  %v7524_v30 = vsel %vm2114_vm12, %v2945_v1, %v2947_v23  ;;  %v3022_v51 = vrot.slane %v7491_v26, 5  ;;  %v3128_v6 = vld [vmem:[%s8793_s7 + $0x130] sm:$0xff] }
 0x32c   : > { %v7528_v8 = vsel %vm2060_vm9, %v2894_v25, %v2896_v58  ;;  %v2853_v10 = vmax.f32 %v2845_v4, 0.0  ;;  %v2831_v43 = vmul.f32 %v7302_v49, %v2814_v60  ;;  %3297 = vmatprep.mubr.f32.mxu1 %v2923_v29  ;;  %5088 = vmatpush3.msra.mxu1 %v3132_v12  ;;  %v7537_v2 = vsel %vm2166_vm13, %v2993_v36, %v2995_v47  ;;  %v3130_v49 = vld [vmem:[%s8793_s7 + $0x140] sm:$0xff]  ;;  %v3143_v12 = vld [vmem:[%s8793_s7 + $0x1a8] sm:$0xff] }
 0x32d   : > { %3298 = vmatmul.mubr.f32.gmra.mxu1 %v7442_v40  ;;  %5089 = vmatprep.subr.mxu1 %v3147_v19  ;;  %v2924_v46 = vrot.slane %v7528_v8, 1  ;;  %v2974_v62 = vrot.slane %v7528_v8, 3  ;;  %v2949_v55 = vrot.slane %v7528_v8, 2  ;;  %v7547_v35 = vsel %vm2060_vm9, %v3020_v22, %v3022_v51  ;;  %v3127_v19 = vld [vmem:[%s8793_s7 + $0x128] sm:$0xff] }
 0x32e   : > { %v2898_v20 = vrot.slane %v2853_v10, 5  ;;  %v2846_v36 = vadd.f32 %v7318_v3, %v2831_v43  ;;  %5090 = vmatpush3.msra.mxu1 %v3131_v33  ;;  %v2997_v39 = vrot.slane %v7491_v26, 4  ;;  %v3024_v1 = vrot.slane %v7528_v8, 5  ;;  %v3142_v33 = vld [vmem:[%s8793_s7 + $0x1a0] sm:$0xff] }
 0x32f   : > { %5091 = vmatprep.subr.mxu1 %v3146_v53  ;;  %v2925_v25 = vsel %vm2049_vm10, %v2922_v7, %v2924_v46  ;;  %v7560_v21 = vsel %vm2140_vm11, %v2972_v9, %v2974_v62  ;;  %v7563_v3 = vsel %vm2114_vm12, %v2947_v23, %v2949_v55  ;;  %v2999_v0 = vrot.slane %v7528_v8, 4 }
 0x330   : > { %v7567_v42 = vsel %vm2060_vm9, %v2896_v58, %v2898_v20  ;;  %v2854_v17 = vmax.f32 %v2846_v36, 0.0  ;;  %3302 = vmatprep.mubr.f32.mxu1 %v2925_v25  ;;  %5092 = vmatpush3.msra.mxu1 %v3130_v49  ;;  %v7573_v22 = vsel %vm2166_vm13, %v2995_v47, %v2997_v39  ;;  %v7576_v45 = vsel %vm2060_vm9, %v3022_v51, %v3024_v1 }
 0x331   : > { %3303 = vmatmul.mubr.f32.gmra.mxu1 %v7491_v26  ;;  %5093 = vmatprep.subr.mxu1 %v3145_v44  ;;  %v2926_v56 = vrot.slane %v7567_v42, 1  ;;  %v2976_v41 = vrot.slane %v7567_v42, 3  ;;  %v2951_v34 = vrot.slane %v7567_v42, 2  ;;  %v7586_v50 = vsel %vm2166_vm13, %v2997_v39, %v2999_v0 }
 0x332   : > { %v2878_v7 = vsel %vm2058_vm1, %v2854_v17, 0.0  ;;  %5094 = vmatpush3.msra.mxu1 %v3129_v14  ;;  %v3026_v9 = vrot.slane %v7567_v42, 5  ;;  %v3001_v23 = vrot.slane %v7567_v42, 4  ;;  %v3066_v58 = vrot.slane %v7362_v27, 7  ;;  %v3125_v17 = vld [vmem:[%s8793_s7 + $0x118] sm:$0xff] }
 0x333   : > { %v2900_v4 = vrot.slane %v2878_v7, 5  ;;  %5095 = vmatprep.subr.mxu1 %v3144_v52  ;;  %v2927_v60 = vsel %vm2049_vm10, %v2924_v46, %v2926_v56  ;;  %v7601_v47 = vsel %vm2140_vm11, %v2974_v62, %v2976_v41  ;;  %v7604_v29 = vsel %vm2114_vm12, %v2949_v55, %v2951_v34  ;;  %v3126_v62 = vld [vmem:[%s8793_s7 + $0x120] sm:$0xff] }
 0x334   : > { %3307 = vmatprep.mubr.f32.mxu1 %v2927_v60  ;;  %5096 = vmatpush3.msra.mxu1 %v3128_v6  ;;  %v7610_v51 = vsel %vm2060_vm9, %v3024_v1, %v3026_v9  ;;  %v7613_v10 = vsel %vm2166_vm13, %v2999_v0, %v3001_v23  ;;  %v7618_v43 = vsel %vm2243_vm14, %v3065_v15, %v3066_v58  ;;  %v3041_v53 = vrot.slane %v7362_v27, 6 }
 0x335   : > { %v7622_v46 = vsel %vm2060_vm9, %v2898_v20, %v2900_v4  ;;  %v7625_v49 = vsel %vm2060_vm9, %v2900_v4, 0.0  ;;  %3308 = vmatmul.mubr.f32.gmra.mxu1 %v7528_v8  ;;  %5097 = vmatprep.subr.mxu1 %v3143_v12  ;;  %v3068_v55 = vrot.slane %v7399_v54, 7  ;;  %v3043_v15 = vrot.slane %v7399_v54, 6  ;;  %v3141_v20 = vld [vmem:[%s8793_s7 + $0x198] sm:$0xff]  ;;  %v3140_v12 = vld [vmem:[%s8793_s7 + $0x190] sm:$0xff] }
 0x336   : > { %5098 = vmatpush3.msra.mxu1 %v3127_v19  ;;  %v2928_v27 = vrot.slane %v7622_v46, 1  ;;  %v2930_v36 = vrot.slane %v7625_v49, 1  ;;  %v2978_v44 = vrot.slane %v7622_v46, 3  ;;  %v2953_v39 = vrot.slane %v7622_v46, 2 }
 0x337   : > { %5099 = vmatprep.subr.mxu1 %v3142_v33  ;;  %v2980_v1 = vrot.slane %v7625_v49, 3  ;;  %v2955_v25 = vrot.slane %v7625_v49, 2  ;;  %v3028_v54 = vrot.slane %v7622_v46, 5  ;;  %v3003_v14 = vrot.slane %v7622_v46, 4 }
 0x338   : > { %5100 = vmatpush3.msra.mxu1 %v3126_v62  ;;  %v2929_v0 = vsel %vm2049_vm10, %v2926_v56, %v2928_v27  ;;  %v2931_v52 = vsel %vm2049_vm10, %v2928_v27, %v2930_v36  ;;  %v7650_v6 = vsel %vm2140_vm11, %v2976_v41, %v2978_v44  ;;  %v7653_v7 = vsel %vm2114_vm12, %v2951_v34, %v2953_v39  ;;  %v3124_v34 = vld [vmem:[%s8793_s7 + $0x110] sm:$0xff]  ;;  %v3139_v27 = vld [vmem:[%s8793_s7 + $0x188] sm:$0xff] }
 0x339   : > { %3312 = vmatprep.mubr.f32.mxu1 %v2929_v0  ;;  %5101 = vmatprep.subr.mxu1 %v3141_v20  ;;  %v7659_v56 = vsel %vm2140_vm11, %v2978_v44, %v2980_v1  ;;  %v7662_v4 = vsel %vm2114_vm12, %v2953_v39, %v2955_v25  ;;  %v7665_v60 = vsel %vm2060_vm9, %v3026_v9, %v3028_v54  ;;  %v3030_v41 = vrot.slane %v7625_v49, 5 }
 0x33a   : > { %3313 = vmatmul.mubr.f32.gmra.mxu1 %v7567_v42  ;;  %v7673_v19 = vsel %vm2166_vm13, %v3001_v23, %v3003_v14  ;;  %v3005_v33 = vrot.slane %v7625_v49, 4  ;;  %v7679_v62 = vsel %vm2217_vm15, %v3040_v24, %v3041_v53  ;;  %v7682_v9 = vsel %vm2243_vm14, %v3066_v58, %v3068_v55  ;;  %v3123_v58 = vld [vmem:[%s8793_s7 + $0x108] sm:$0xff] }
 0x33b   : > { %5102 = vmatpush3.msra.mxu1 %v3125_v17  ;;  %3317 = vmatprep.mubr.f32.mxu1 %v2931_v52  ;;  %v7688_v20 = vsel %vm2060_vm9, %v3028_v54, %v3030_v41  ;;  %v7691_v23 = vsel %vm2217_vm15, %v3041_v53, %v3043_v15  ;;  %v3070_v37 = vrot.slane %v7442_v40, 7  ;;  %v3045_v24 = vrot.slane %v7442_v40, 6  ;;  %v3138_v53 = vld [vmem:[%s8793_s7 + $0x180] sm:$0xff]  ;;  %v3185_v17 = vld [vmem:[%s8793_s7 + $0x2f8] sm:$0xff] }
 0x33c   : > { %5103 = vmatprep.subr.mxu1 %v3140_v12  ;;  %v7699_v36 = vsel %vm2166_vm13, %v3003_v14, %v3005_v33  ;;  %v3072_v44 = vrot.slane %v7491_v26, 7  ;;  %v3047_v39 = vrot.slane %v7491_v26, 6  ;;  %v3074_v1 = vrot.slane %v7528_v8, 7  ;;  %v3122_v26 = vld [vmem:[%s8793_s7 + $0x100] sm:$0xff] }
 0x33d   : > { %5104 = vmatpush3.msra.mxu1 %v3124_v34  ;;  %v7708_v40 = vsel %vm2243_vm14, %v3068_v55, %v3070_v37  ;;  %v7711_v25 = vsel %vm2217_vm15, %v3043_v15, %v3045_v24  ;;  %v3049_v54 = vrot.slane %v7528_v8, 6  ;;  %v3076_v14 = vrot.slane %v7567_v42, 7 }
 0x33e   : > { %5105 = vmatprep.subr.mxu1 %v3139_v27  ;;  %3318 = vmatmul.mubr.f32.gmra.mxu1 %v7622_v46  ;;  %v7720_v0 = vsel %vm2243_vm14, %v3070_v37, %v3072_v44  ;;  %v7723_v55 = vsel %vm2217_vm15, %v3045_v24, %v3047_v39  ;;  %v7726_v15 = vsel %vm2243_vm14, %v3072_v44, %v3074_v1  ;;  %v3051_v8 = vrot.slane %v7567_v42, 6  ;;  %v3169_v42 = vld [vmem:[%s8793_s7 + $0x278] sm:$0xff]  ;;  %v3184_v37 = vld [vmem:[%s8793_s7 + $0x2f0] sm:$0xff] }
 0x33f   : > { %5106 = vmatpush3.msra.mxu1 %v3123_v58  ;;  %3387 = vmatprep.mubr.f32.mxu1 %v7385_v16  ;;  %v7734_v52 = vsel %vm2217_vm15, %v3047_v39, %v3049_v54  ;;  %v7737_v12 = vsel %vm2243_vm14, %v3074_v1, %v3076_v14  ;;  %v3078_v41 = vrot.slane %v7622_v46, 7  ;;  %v3053_v34 = vrot.slane %v7622_v46, 6  ;;  %v3168_v58 = vld [vmem:[%s8793_s7 + $0x270] sm:$0xff]  ;;  %v3183_v39 = vld [vmem:[%s8793_s7 + $0x2e8] sm:$0xff]  ;;  %v3182_v1 = vld [vmem:[%s8793_s7 + $0x2e0] sm:$0xff] }
 0x340   : > { %5107 = vmatprep.subr.mxu1 %v3138_v53  ;;  %v7745_v16 = vsel %vm2217_vm15, %v3049_v54, %v3051_v8  ;;  %v3080_v33 = vrot.slane %v7625_v49, 7  ;;  %v3055_v27 = vrot.slane %v7625_v49, 6  ;;  %v3181_v53 = vld [vmem:[%s8793_s7 + $0x2d8] sm:$0xff] }
 0x341   : > { %5108 = vmatpush3.msra.mxu1 %v3122_v26  ;;  %v7753_v24 = vsel %vm2243_vm14, %v3076_v14, %v3078_v41  ;;  %v7756_v46 = vsel %vm2217_vm15, %v3051_v8, %v3053_v34  ;;  %v3165_v54 = vld [vmem:[%s8793_s7 + $0x258] sm:$0xff]  ;;  %v3179_v14 = vld [vmem:[%s8793_s7 + $0x2c8] sm:$0xff] }
 0x342   : > { %5133 = vmatprep.subr.mxu1 %v3185_v17  ;;  %3388 = vmatmul.mubr.f32.vlgmr.msra.gmra.mxu1 %v7388_v11  ;;  %v7763_v49 = vsel %vm2243_vm14, %v3078_v41, %v3080_v33  ;;  %v7766_v44 = vsel %vm2217_vm15, %v3053_v34, %v3055_v27  ;;  %v3167_v11 = vld [vmem:[%s8793_s7 + $0x268] sm:$0xff]  ;;  %v3177_v8 = vld [vmem:[%s8793_s7 + $0x2b8] sm:$0xff] }
 0x343   : > { %5134 = vmatpush3.msra.mxu1 %v3169_v42  ;;  %3392 = vmatprep.mubr.f32.mxu1 %v7432_v28  ;;  %v3166_v28 = vld [vmem:[%s8793_s7 + $0x260] sm:$0xff]  ;;  %v3163_v26 = vld [vmem:[%s8793_s7 + $0x248] sm:$0xff]  ;;  %v3161_v17 = vld [vmem:[%s8793_s7 + $0x238] sm:$0xff] }
 0x344   : > { %5135 = vmatprep.subr.mxu1 %v3184_v37  ;;  %v3175_v41 = vld [vmem:[%s8793_s7 + $0x2a8] sm:$0xff]  ;;  %v3173_v42 = vld [vmem:[%s8793_s7 + $0x298] sm:$0xff] }
 0x345   : > { %5136 = vmatpush3.msra.mxu1 %v3168_v58  ;;  %v3159_v34 = vld [vmem:[%s8793_s7 + $0x228] sm:$0xff]  ;;  %v3157_v33 = vld [vmem:[%s8793_s7 + $0x218] sm:$0xff] }
 0x346   : > { %5137 = vmatprep.subr.mxu1 %v3183_v39  ;;  %3393 = vmatmul.mubr.f32.gmra.mxu1 %v7435_v61  ;;  %v3180_v61 = vld [vmem:[%s8793_s7 + $0x2d0] sm:$0xff]  ;;  %v3171_v27 = vld [vmem:[%s8793_s7 + $0x288] sm:$0xff]  ;;  %v3217_v58 = vld [vmem:[%s8793_s7 + $0x3f8] sm:$0xff] }
 0x347   : > { %5138 = vmatpush3.msra.mxu1 %v3167_v11  ;;  %3397 = vmatprep.mubr.f32.mxu1 %v7481_v31  ;;  %v3164_v31 = vld [vmem:[%s8793_s7 + $0x250] sm:$0xff]  ;;  %v3155_v37 = vld [vmem:[%s8793_s7 + $0x208] sm:$0xff]  ;;  %v3201_v39 = vld [vmem:[%s8793_s7 + $0x378] sm:$0xff] }
 0x348   : > { %5139 = vmatprep.subr.mxu1 %v3182_v1  ;;  %v3215_v11 = vld [vmem:[%s8793_s7 + $0x3e8] sm:$0xff] }
 0x349   : > { %5140 = vmatpush3.msra.mxu1 %v3166_v28  ;;  %v3199_v1 = vld [vmem:[%s8793_s7 + $0x368] sm:$0xff]  ;;  %v3213_v28 = vld [vmem:[%s8793_s7 + $0x3d8] sm:$0xff] }
 0x34a   : > { %5141 = vmatprep.subr.mxu1 %v3181_v53  ;;  %3398 = vmatmul.mubr.f32.gmra.mxu1 %v7484_v57  ;;  %v3178_v57 = vld [vmem:[%s8793_s7 + $0x2c0] sm:$0xff]  ;;  %v3197_v53 = vld [vmem:[%s8793_s7 + $0x358] sm:$0xff] }
 0x34b   : > { %5142 = vmatpush3.msra.mxu1 %v3165_v54  ;;  %3402 = vmatprep.mubr.f32.mxu1 %v7521_v48  ;;  %v3162_v48 = vld [vmem:[%s8793_s7 + $0x240] sm:$0xff]  ;;  %v3211_v54 = vld [vmem:[%s8793_s7 + $0x3c8] sm:$0xff] }
 0x34c   : > { %5143 = vmatprep.subr.mxu1 %v3180_v61  ;;  %v3195_v61 = vld [vmem:[%s8793_s7 + $0x348] sm:$0xff] }
 0x34d   : > { %5144 = vmatpush3.msra.mxu1 %v3164_v31  ;;  %v3210_v31 = vld [vmem:[%s8793_s7 + $0x3c0] sm:$0xff] }
 0x34e   : > { %5145 = vmatprep.subr.mxu1 %v3179_v14  ;;  %3403 = vmatmul.mubr.f32.gmra.mxu1 %v7524_v30  ;;  %v3176_v30 = vld [vmem:[%s8793_s7 + $0x2b0] sm:$0xff]  ;;  %v3194_v14 = vld [vmem:[%s8793_s7 + $0x340] sm:$0xff] }
 0x34f   : > { %5146 = vmatpush3.msra.mxu1 %v3163_v26  ;;  %3407 = vmatprep.mubr.f32.mxu1 %v7560_v21  ;;  %v3160_v21 = vld [vmem:[%s8793_s7 + $0x230] sm:$0xff]  ;;  %v3209_v26 = vld [vmem:[%s8793_s7 + $0x3b8] sm:$0xff] }
 0x350   : > { %5147 = vmatprep.subr.mxu1 %v3178_v57  ;;  %v3193_v57 = vld [vmem:[%s8793_s7 + $0x338] sm:$0xff] }
 0x351   : > { %5148 = vmatpush3.msra.mxu1 %v3162_v48  ;;  %v3207_v48 = vld [vmem:[%s8793_s7 + $0x3a8] sm:$0xff] }
 0x352   : > { %5149 = vmatprep.subr.mxu1 %v3177_v8  ;;  %3408 = vmatmul.mubr.f32.gmra.mxu1 %v7563_v3  ;;  %v3174_v3 = vld [vmem:[%s8793_s7 + $0x2a0] sm:$0xff]  ;;  %v3191_v8 = vld [vmem:[%s8793_s7 + $0x328] sm:$0xff] }
 0x353   : > { %5150 = vmatpush3.msra.mxu1 %v3161_v17  ;;  %3412 = vmatprep.mubr.f32.mxu1 %v7601_v47  ;;  %v3158_v47 = vld [vmem:[%s8793_s7 + $0x220] sm:$0xff]  ;;  %v3205_v17 = vld [vmem:[%s8793_s7 + $0x398] sm:$0xff] }
 0x354   : > { %5151 = vmatprep.subr.mxu1 %v3176_v30  ;;  %v3189_v30 = vld [vmem:[%s8793_s7 + $0x318] sm:$0xff] }
 0x355   : > { %5152 = vmatpush3.msra.mxu1 %v3160_v21  ;;  %v3203_v21 = vld [vmem:[%s8793_s7 + $0x388] sm:$0xff] }
 0x356   : > { %5153 = vmatprep.subr.mxu1 %v3175_v41  ;;  %3413 = vmatmul.mubr.f32.gmra.mxu1 %v7604_v29  ;;  %v3172_v29 = vld [vmem:[%s8793_s7 + $0x290] sm:$0xff]  ;;  %v3187_v41 = vld [vmem:[%s8793_s7 + $0x308] sm:$0xff] }
 0x357   : > { %5154 = vmatpush3.msra.mxu1 %v3159_v34  ;;  %3417 = vmatprep.mubr.f32.mxu1 %v7650_v6  ;;  %v3156_v6 = vld [vmem:[%s8793_s7 + $0x210] sm:$0xff]  ;;  %v3916_v34 = vld [vmem:[%s8796_s10 + $0xa8] sm:$0xff] }
 0x358   : > { %5155 = vmatprep.subr.mxu1 %v3174_v3  ;;  %v3900_v3 = vld [vmem:[%s8796_s10 + $0x28] sm:$0xff] }
 0x359   : > { %5156 = vmatpush3.msra.mxu1 %v3158_v47  ;;  %v3938_v47 = vld [vmem:[%s8796_s10 + $0x158] sm:$0xff] }
 0x35a   : > { %5157 = vmatprep.subr.mxu1 %v3173_v42  ;;  %3418 = vmatmul.mubr.f32.gmra.mxu1 %v7653_v7  ;;  %v3170_v7 = vld [vmem:[%s8793_s7 + $0x280] sm:$0xff]  ;;  %v3953_v42 = vld [vmem:[%s8796_s10 + $0x1d0] sm:$0xff] }
 0x35b   : > { %5158 = vmatpush3.msra.mxu1 %v3157_v33  ;;  %3422 = vmatprep.mubr.f32.mxu1 %v7659_v56  ;;  %v3154_v56 = vld [vmem:[%s8793_s7 + $0x200] sm:$0xff]  ;;  %v3937_v33 = vld [vmem:[%s8796_s10 + $0x150] sm:$0xff] }
 0x35c   : > { %5159 = vmatprep.subr.mxu1 %v3172_v29  ;;  %v3952_v29 = vld [vmem:[%s8796_s10 + $0x1c8] sm:$0xff] }
 0x35d   : > { %5160 = vmatpush3.msra.mxu1 %v3156_v6  ;;  %v3936_v6 = vld [vmem:[%s8796_s10 + $0x148] sm:$0xff] }
 0x35e   : > { %5161 = vmatprep.subr.mxu1 %v3171_v27  ;;  %3423 = vmatmul.mubr.f32.gmra.mxu1 %v7662_v4  ;;  %v3216_v4 = vld [vmem:[%s8793_s7 + $0x3f0] sm:$0xff]  ;;  %v3951_v27 = vld [vmem:[%s8796_s10 + $0x1c0] sm:$0xff] }
 0x35f   : > { %5162 = vmatpush3.msra.mxu1 %v3155_v37  ;;  %3492 = vmatprep.mubr.f32.mxu1 %v7393_v13  ;;  %v3200_v13 = vld [vmem:[%s8793_s7 + $0x370] sm:$0xff]  ;;  %v3935_v37 = vld [vmem:[%s8796_s10 + $0x140] sm:$0xff] }
 0x360   : > { %5163 = vmatprep.subr.mxu1 %v3170_v7  ;;  %v3950_v7 = vld [vmem:[%s8796_s10 + $0x1b8] sm:$0xff] }
 0x361   : > { %5164 = vmatpush3.msra.mxu1 %v3154_v56  ;;  %v3911_v56 = vld [vmem:[%s8796_s10 + $0x80] sm:$0xff] }
 0x362   : > { %5189 = vmatprep.subr.mxu1 %v3217_v58  ;;  %3493 = vmatmul.mubr.f32.vlgmr.msra.gmra.mxu1 %v7419_v38  ;;  %v3214_v38 = vld [vmem:[%s8793_s7 + $0x3e0] sm:$0xff]  ;;  %v3934_v58 = vld [vmem:[%s8796_s10 + $0x138] sm:$0xff] }
 0x363   : > { %5190 = vmatpush3.msra.mxu1 %v3201_v39  ;;  %3497 = vmatprep.mubr.f32.mxu1 %v7461_v18  ;;  %v3198_v18 = vld [vmem:[%s8793_s7 + $0x360] sm:$0xff] }
 0x364   : > { %5191 = vmatprep.subr.mxu1 %v3216_v4  ;;  %v3895_v39 = vld [vmem:[%s8796_s10] sm:$0xff]  ;;  %v3949_v4 = vld [vmem:[%s8796_s10 + $0x1b0] sm:$0xff] }
 0x365   : > { %5192 = vmatpush3.msra.mxu1 %v3200_v13  ;;  %v3933_v13 = vld [vmem:[%s8796_s10 + $0x130] sm:$0xff] }
 0x366   : > { %5193 = vmatprep.subr.mxu1 %v3215_v11  ;;  %3498 = vmatmul.mubr.f32.gmra.mxu1 %v7473_v59  ;;  %v3212_v59 = vld [vmem:[%s8793_s7 + $0x3d0] sm:$0xff]  ;;  %v3948_v11 = vld [vmem:[%s8796_s10 + $0x1a8] sm:$0xff] }
 0x367   : > { %5194 = vmatpush3.msra.mxu1 %v3199_v1  ;;  %3502 = vmatprep.mubr.f32.mxu1 %v7508_v5  ;;  %v3196_v5 = vld [vmem:[%s8793_s7 + $0x350] sm:$0xff]  ;;  %v3932_v1 = vld [vmem:[%s8796_s10 + $0x128] sm:$0xff] }
 0x368   : > { %5195 = vmatprep.subr.mxu1 %v3214_v38  ;;  %v3947_v38 = vld [vmem:[%s8796_s10 + $0x1a0] sm:$0xff] }
 0x369   : > { %5196 = vmatpush3.msra.mxu1 %v3198_v18  ;;  %v3931_v18 = vld [vmem:[%s8796_s10 + $0x120] sm:$0xff] }
 0x36a   : > { %5197 = vmatprep.subr.mxu1 %v3213_v28  ;;  %3503 = vmatmul.mubr.f32.gmra.mxu1 %v7537_v2  ;;  %v3917_v2 = vld [vmem:[%s8796_s10 + $0xb0] sm:$0xff]  ;;  %v3946_v28 = vld [vmem:[%s8796_s10 + $0x198] sm:$0xff] }
 0x36b   : > { %5198 = vmatpush3.msra.mxu1 %v3197_v53  ;;  %3507 = vmatprep.mubr.f32.mxu1 %v7547_v35  ;;  %v3901_v35 = vld [vmem:[%s8796_s10 + $0x30] sm:$0xff]  ;;  %v3930_v53 = vld [vmem:[%s8796_s10 + $0x118] sm:$0xff] }
 0x36c   : > { %5199 = vmatprep.subr.mxu1 %v3212_v59  ;;  %5263 = vmatprep.subr.mxu0 %v3917_v2  ;;  %v3928_v2 = vld [vmem:[%s8796_s10 + $0x108] sm:$0xff] }
 0x36d   : > { %5200 = vmatpush3.msra.mxu1 %v3196_v5  ;;  %5264 = vmatpush3.msra.mxu0 %v3901_v35  ;;  %v3945_v5 = vld [vmem:[%s8796_s10 + $0x190] sm:$0xff] }
 0x36e   : > { %5201 = vmatprep.subr.mxu1 %v3211_v54  ;;  %3508 = vmatmul.mubr.f32.gmra.mxu1 %v7573_v22  ;;  %v3208_v22 = vld [vmem:[%s8793_s7 + $0x3b0] sm:$0xff] }
 0x36f   : > { %5202 = vmatpush3.msra.mxu1 %v3195_v61  ;;  %3512 = vmatprep.mubr.f32.mxu1 %v7576_v45  ;;  %v3192_v45 = vld [vmem:[%s8793_s7 + $0x330] sm:$0xff]  ;;  %v3944_v61 = vld [vmem:[%s8796_s10 + $0x188] sm:$0xff] }
 0x370   : > { %5203 = vmatprep.subr.mxu1 %v3210_v31  ;;  %5265 = vmatprep.subr.mxu0 %v3916_v34  ;;  %v3929_v54 = vld [vmem:[%s8796_s10 + $0x110] sm:$0xff] }
 0x371   : > { %5204 = vmatpush3.msra.mxu1 %v3194_v14  ;;  %5266 = vmatpush3.msra.mxu0 %v3900_v3 }
 0x372   : > { %5205 = vmatprep.subr.mxu1 %v3209_v26  ;;  %3513 = vmatmul.mubr.f32.gmra.mxu1 %v7586_v50  ;;  %v3206_v50 = vld [vmem:[%s8793_s7 + $0x3a0] sm:$0xff] }
 0x373   : > { %5206 = vmatpush3.msra.mxu1 %v3193_v57  ;;  %3517 = vmatprep.mubr.f32.mxu1 %v7610_v51  ;;  %v3190_v51 = vld [vmem:[%s8793_s7 + $0x320] sm:$0xff] }
 0x374   : > { %5207 = vmatprep.subr.mxu1 %v3208_v22  ;;  %v3943_v26 = vld [vmem:[%s8796_s10 + $0x180] sm:$0xff]  ;;  %v3990_v22 = vld [vmem:[%s8796_s10 + $0x2f8] sm:$0xff] }
 0x375   : > { %5208 = vmatpush3.msra.mxu1 %v3192_v45  ;;  %v3927_v57 = vld [vmem:[%s8796_s10 + $0x100] sm:$0xff]  ;;  %v4022_v45 = vld [vmem:[%s8796_s10 + $0x3f8] sm:$0xff] }
 0x376   : > { %5209 = vmatprep.subr.mxu1 %v3207_v48  ;;  %3518 = vmatmul.mubr.f32.gmra.mxu1 %v7613_v10  ;;  %v3204_v10 = vld [vmem:[%s8793_s7 + $0x390] sm:$0xff] }
 0x377   : > { %5210 = vmatpush3.msra.mxu1 %v3191_v8  ;;  %3522 = vmatprep.mubr.f32.mxu1 %v7665_v60  ;;  %v3188_v60 = vld [vmem:[%s8793_s7 + $0x310] sm:$0xff] }
 0x378   : > { %5211 = vmatprep.subr.mxu1 %v3206_v50 }
 0x379   : > { %5212 = vmatpush3.msra.mxu1 %v3190_v51 }
 0x37a   : > { %5213 = vmatprep.subr.mxu1 %v3205_v17  ;;  %3523 = vmatmul.mubr.f32.gmra.mxu1 %v7673_v19  ;;  %v3202_v19 = vld [vmem:[%s8793_s7 + $0x380] sm:$0xff] }
 0x37b   : > { %5214 = vmatpush3.msra.mxu1 %v3189_v30  ;;  %3527 = vmatprep.mubr.f32.mxu1 %v7688_v20  ;;  %v3186_v20 = vld [vmem:[%s8793_s7 + $0x300] sm:$0xff] }
 0x37c   : > { %5215 = vmatprep.subr.mxu1 %v3204_v10 }
 0x37d   : > { %5216 = vmatpush3.msra.mxu1 %v3188_v60 }
 0x37e   : > { %5217 = vmatprep.subr.mxu1 %v3203_v21  ;;  %3528 = vmatmul.mubr.f32.gmra.mxu1 %v7699_v36  ;;  %v3913_v36 = vld [vmem:[%s8796_s10 + $0x90] sm:$0xff] }
 0x37f   : > { %5218 = vmatpush3.msra.mxu1 %v3187_v41  ;;  %3597 = vmatprep.mubr.f32.mxu1 %v7618_v43  ;;  %v3915_v43 = vld [vmem:[%s8796_s10 + $0xa0] sm:$0xff] }
 0x380   : > { %5219 = vmatprep.subr.mxu1 %v3202_v19  ;;  %5267 = vmatprep.subr.mxu0 %v3915_v43 }
 0x381   : > { %5220 = vmatpush3.msra.mxu1 %v3186_v20 }
 0x382   : > { %3598 = vmatmul.mubr.f32.vlgmr.msra.gmra.mxu1 %v7679_v62  ;;  %v3899_v62 = vld [vmem:[%s8796_s10 + $0x20] sm:$0xff] }
 0x383   : > { %3602 = vmatprep.mubr.f32.mxu1 %v7682_v9  ;;  %5268 = vmatpush3.msra.mxu0 %v3899_v62  ;;  %v3914_v9 = vld [vmem:[%s8796_s10 + $0x98] sm:$0xff] }
 0x384   : > { %5269 = vmatprep.subr.mxu0 %v3914_v9 }
 0x386   : > { %3603 = vmatmul.mubr.f32.gmra.mxu1 %v7691_v23  ;;  %v3898_v23 = vld [vmem:[%s8796_s10 + $0x18] sm:$0xff] }
 0x387   : > { %3607 = vmatprep.mubr.f32.mxu1 %v7708_v40  ;;  %5270 = vmatpush3.msra.mxu0 %v3898_v23  ;;  %v3897_v40 = vld [vmem:[%s8796_s10 + $0x10] sm:$0xff] }
 0x388   : > { %5271 = vmatprep.subr.mxu0 %v3913_v36 }
 0x389   : > { %5272 = vmatpush3.msra.mxu0 %v3897_v40 }
 0x38a   : > { %3608 = vmatmul.mubr.f32.gmra.mxu1 %v7711_v25  ;;  %v3958_v25 = vld [vmem:[%s8796_s10 + $0x1f8] sm:$0xff] }
 0x38b   : > { %3612 = vmatprep.mubr.f32.mxu1 %v7720_v0  ;;  %v3912_v0 = vld [vmem:[%s8796_s10 + $0x88] sm:$0xff]  ;;  %5301 = vmatprep.subr.mxu1 %v3958_v25 }
 0x38c   : > { %5273 = vmatprep.subr.mxu0 %v3912_v0 }
 0x38e   : > { %3613 = vmatmul.mubr.f32.gmra.mxu1 %v7723_v55  ;;  %v3942_v55 = vld [vmem:[%s8796_s10 + $0x178] sm:$0xff] }
 0x38f   : > { %3617 = vmatprep.mubr.f32.mxu1 %v7726_v15  ;;  %5302 = vmatpush3.msra.mxu1 %v3942_v55  ;;  %v3896_v15 = vld [vmem:[%s8796_s10 + $0x8] sm:$0xff] }
 0x390   : > { %5274 = vmatpush3.msra.mxu0 %v3896_v15 }
 0x391   : > { %5275 = vmatprep.subr.mxu0 %v3911_v56 }
 0x392   : > { %3618 = vmatmul.mubr.f32.gmra.mxu1 %v7734_v52  ;;  %v3957_v52 = vld [vmem:[%s8796_s10 + $0x1f0] sm:$0xff]  ;;  %5276 = vmatpush3.msra.mxu0 %v3895_v39 }
 0x393   : > { %3622 = vmatprep.mubr.f32.mxu1 %v7737_v12  ;;  %v3941_v12 = vld [vmem:[%s8796_s10 + $0x170] sm:$0xff]  ;;  %5303 = vmatprep.subr.mxu1 %v3957_v52 }
 0x394   : > { %5304 = vmatpush3.msra.mxu1 %v3941_v12  ;;  %5357 = vmatprep.subr.mxu0 %v3990_v22 }
 0x396   : > { %3623 = vmatmul.mubr.f32.gmra.mxu1 %v7745_v16  ;;  %v3956_v16 = vld [vmem:[%s8796_s10 + $0x1e8] sm:$0xff] }
 0x397   : > { %3627 = vmatprep.mubr.f32.mxu1 %v7753_v24  ;;  %v3940_v24 = vld [vmem:[%s8796_s10 + $0x168] sm:$0xff]  ;;  %5305 = vmatprep.subr.mxu1 %v3956_v16 }
 0x398   : > { %5306 = vmatpush3.msra.mxu1 %v3940_v24 }
 0x39a   : > { %3628 = vmatmul.mubr.f32.gmra.mxu1 %v7756_v46  ;;  %v3955_v46 = vld [vmem:[%s8796_s10 + $0x1e0] sm:$0xff] }
 0x39b   : > { %3632 = vmatprep.mubr.f32.mxu1 %v7763_v49  ;;  %v3939_v49 = vld [vmem:[%s8796_s10 + $0x160] sm:$0xff]  ;;  %5307 = vmatprep.subr.mxu1 %v3955_v46 }
 0x39c   : > { %5308 = vmatpush3.msra.mxu1 %v3939_v49 }
 0x39e   : > { %3633 = vmatmul.mubr.f32.gmra.mxu1 %v7766_v44  ;;  %v3954_v44 = vld [vmem:[%s8796_s10 + $0x1d8] sm:$0xff] }
 0x39f   : > { %5309 = vmatprep.subr.mxu1 %v3954_v44 }
 0x3a0   : > { %5310 = vmatpush3.msra.mxu1 %v3938_v47 }
 0x3a1   : > { %5311 = vmatprep.subr.mxu1 %v3953_v42 }
 0x3a2   : > { %5312 = vmatpush3.msra.mxu1 %v3937_v33 }
 0x3a3   : > { %5313 = vmatprep.subr.mxu1 %v3952_v29 }
 0x3a4   : > { %5314 = vmatpush3.msra.mxu1 %v3936_v6 }
 0x3a5   : > { %5315 = vmatprep.subr.mxu1 %v3951_v27 }
 0x3a6   : > { %5316 = vmatpush3.msra.mxu1 %v3935_v37 }
 0x3a7   : > { %5317 = vmatprep.subr.mxu1 %v3950_v7 }
 0x3a8   : > { %5318 = vmatpush3.msra.mxu1 %v3934_v58 }
 0x3a9   : > { %5319 = vmatprep.subr.mxu1 %v3949_v4 }
 0x3aa   : > { %5320 = vmatpush3.msra.mxu1 %v3933_v13 }
 0x3ab   : > { %5321 = vmatprep.subr.mxu1 %v3948_v11 }
 0x3ac   : > { %5322 = vmatpush3.msra.mxu1 %v3932_v1 }
 0x3ad   : > { %5323 = vmatprep.subr.mxu1 %v3947_v38 }
 0x3ae   : > { %5324 = vmatpush3.msra.mxu1 %v3931_v18 }
 0x3af   : > { %5325 = vmatprep.subr.mxu1 %v3946_v28 }
 0x3b0   : > { %5326 = vmatpush3.msra.mxu1 %v3930_v53 }
 0x3b1   : > { %5327 = vmatprep.subr.mxu1 %v3945_v5 }
 0x3b2   : > { %5328 = vmatpush3.msra.mxu1 %v3929_v54 }
 0x3b3   : > { %5329 = vmatprep.subr.mxu1 %v3944_v61 }
 0x3b4   : > { %5330 = vmatpush3.msra.mxu1 %v3928_v2 }
 0x3b5   : > { %5331 = vmatprep.subr.mxu1 %v3943_v26 }
 0x3b6   : > { %5332 = vmatpush3.msra.mxu1 %v3927_v57 }
 0x3b7   : > { %5413 = vmatprep.subr.mxu1 %v4022_v45 }
 0x3e1   : > { %v5053_v59 = vpop.f32.mrf.mxu1 }
 0x3e3   : > { %v5054_v31 = vpop.f32.mrf.mxu1 }
 0x3e4   : > { %v5055_v35 = vadd.f32 %v5054_v31, %v5053_v59 }
 0x3e5   : > { %v5056_v14 = vpop.f32.mrf.mxu1 }
 0x3e7   : > { %v5057_v48 = vpop.f32.mrf.mxu1 }
 0x3e8   : > { %v8138_v8 = vadd.f32 %v5057_v48, %v5056_v14 }
 0x3e9   : > { %v5059_v50 = vpop.f32.mrf.mxu1 }
 0x3eb   : > { %v5060_v51 = vpop.f32.mrf.mxu1 }
 0x3ec   : > { %v8140_v17 = vadd.f32 %v5060_v51, %v5059_v50 }
 0x3ed   : > { %v5062_v30 = vpop.f32.mrf.mxu1 }
 0x3ef   : > { %v5063_v10 = vpop.f32.mrf.mxu1 }
 0x3f0   : > { %v8142_v60 = vadd.f32 %v5063_v10, %v5062_v30 }
 0x3f1   : > { %v5065_v21 = vpop.f32.mrf.mxu1 }
 0x3f3   : > { %v5066_v41 = vpop.f32.mrf.mxu1 }
 0x3f4   : > { %v5067_v19 = vadd.f32 %v5066_v41, %v5065_v21 }
 0x3f5   : > { %v5068_v34 = vpop.f32.mrf.mxu1 }
 0x3f7   : > { %v5069_v20 = vpop.f32.mrf.mxu1 }
 0x3f8   : > { %v5070_v3 = vadd.f32 %v5069_v20, %v5068_v34 }
 0x3fa   : > { %v5071_v43 = vpop.f32.mrf.mxu1 }
 0x3fc   : > { %v5072_v62 = vpop.f32.mrf.mxu1 }
 0x3fd   : > { %v5073_v9 = vadd.f32 %v5072_v62, %v5071_v43  ;;  %v8161_v62 = vld [vmem:[%s8795_s9] ss:$0 sm:$0xff] }
 0x3fe   : > { %v5074_v23 = vpop.f32.mrf.mxu1 }
 0x400   : > { %v5075_v36 = vpop.f32.mrf.mxu1 }
 0x401   : > { %v5076_v40 = vadd.f32 %v5075_v36, %v5074_v23 }
 0x402   : > { %v5109_v25 = vpop.f32.mrf.mxu1 }
 0x404   : > { %v5110_v0 = vpop.f32.mrf.mxu1 }
 0x405   : > { %v5111_v55 = vadd.f32 %v5110_v0, %v5109_v25 }
 0x406   : > { %v5112_v15 = vpop.f32.mrf.mxu1 }
 0x407   : > { %v3390_v52 = vadd.f32 %v5111_v55, %v5055_v35 }
 0x408   : > { %v5113_v12 = vpop.f32.mrf.mxu1 }
 0x409   : > { %v5114_v51 = vadd.f32 %v5113_v12, %v5112_v15 }
 0x40a   : > { %v5115_v16 = vpop.f32.mrf.mxu1 }
 0x40b   : > { %v3395_v20 = vadd.f32 %v5114_v51, %v8138_v8 }
 0x40c   : > { %v5116_v24 = vpop.f32.mrf.mxu1 }
 0x40e   : > { %v5118_v46 = vpop.f32.mrf.mxu1 }
 0x410   : > { %v5119_v49 = vpop.f32.mrf.mxu1 }
 0x411   : > { %v5120_v0 = vadd.f32 %v5119_v49, %v5118_v46 }
 0x412   : > { %v5121_v44 = vpop.f32.mrf.mxu1 }
 0x414   : > { %v5122_v47 = vpop.f32.mrf.mxu1 }
 0x415   : > { %v5123_v42 = vadd.f32 %v5122_v47, %v5121_v44 }
 0x416   : > { %v5124_v33 = vpop.f32.mrf.mxu1 }
 0x417   : > { %v8144_v29 = vadd.f32 %v5123_v42, %v5067_v19  ;;  %v8155_v19 = vld [vmem:[%s8794_s8] ss:$0 sm:$0xff] }
 0x418   : > { %v5125_v6 = vpop.f32.mrf.mxu1 }
 0x419   : > { %v5126_v27 = vadd.f32 %v5125_v6, %v5124_v33 }
 0x41a   : > { %v5127_v37 = vpop.f32.mrf.mxu1 }
 0x41b   : > { %v8146_v7 = vadd.f32 %v5126_v27, %v5070_v3  ;;  %v5117_v3 = vadd.f32 %v5116_v24, %v5115_v16  ;;  %v3405_v27 = vadd.f32 %v5120_v0, %v8142_v60  ;;  %v4006_v0 = vld [vmem:[%s8796_s10 + $0x378] sm:$0xff] }
 0x41c   : > { %v5128_v56 = vpop.f32.mrf.mxu1 }
 0x41d   : > { %v5129_v58 = vadd.f32 %v5128_v56, %v5127_v37  ;;  %v3400_v15 = vadd.f32 %v5117_v3, %v8140_v17 }
 0x41e   : > { %v5130_v39 = vpop.f32.mrf.mxu1 }
 0x41f   : > { %v8148_v4 = vadd.f32 %v5129_v58, %v5073_v9 }
 0x420   : > { %v5131_v13 = vpop.f32.mrf.mxu1 }
 0x421   : > { %v5132_v11 = vadd.f32 %v5131_v13, %v5130_v39 }
 0x422   : > { %v5165_v1 = vpop.f32.mrf.mxu1 }
 0x423   : > { %v8150_v38 = vadd.f32 %v5132_v11, %v5076_v40 }
 0x424   : > { %v5166_v18 = vpop.f32.mrf.mxu1 }
 0x425   : > { %v5167_v48 = vadd.f32 %v5166_v18, %v5165_v1 }
 0x426   : > { %v5168_v28 = vpop.f32.mrf.mxu1 }
 0x427   : > { %v3495_v10 = vadd.f32 %v5167_v48, %v3390_v52 }
 0x428   : > { %v5169_v53 = vpop.f32.mrf.mxu1 }
 0x429   : > { %v5170_v21 = vadd.f32 %v5169_v53, %v5168_v28 }
 0x42a   : > { %v5171_v59 = vpop.f32.mrf.mxu1 }
 0x42b   : > { %v3500_v23 = vadd.f32 %v5170_v21, %v3395_v20 }
 0x42c   : > { %v5172_v5 = vpop.f32.mrf.mxu1 }
 0x42d   : > { %v5173_v36 = vadd.f32 %v5172_v5, %v5171_v59 }
 0x42e   : > { %v5174_v54 = vpop.f32.mrf.mxu1 }
 0x42f   : > { %v3505_v47 = vadd.f32 %v5173_v36, %v3400_v15 }
 0x430   : > { %v5175_v61 = vpop.f32.mrf.mxu1 }
 0x431   : > { %v5176_v12 = vadd.f32 %v5175_v61, %v5174_v54 }
 0x432   : > { %v5177_v2 = vpop.f32.mrf.mxu1 }
 0x433   : > { %v3510_v39 = vadd.f32 %v5176_v12, %v3405_v27 }
 0x434   : > { %v5178_v31 = vpop.f32.mrf.mxu1 }
 0x435   : > { %v5179_v16 = vadd.f32 %v5178_v31, %v5177_v2 }
 0x436   : > { %v5180_v35 = vpop.f32.mrf.mxu1 }
 0x437   : > { %v3515_v13 = vadd.f32 %v5179_v16, %v8144_v29  ;;  %v3989_v16 = vld [vmem:[%s8796_s10 + $0x2f0] sm:$0xff] }
 0x438   : > { %v5181_v14 = vpop.f32.mrf.mxu1 }
 0x439   : > { %v5182_v24 = vadd.f32 %v5181_v14, %v5180_v35 }
 0x43a   : > { %v5183_v26 = vpop.f32.mrf.mxu1 }
 0x43b   : > { %v3520_v11 = vadd.f32 %v5182_v24, %v8146_v7  ;;  %v4021_v24 = vld [vmem:[%s8796_s10 + $0x3f0] sm:$0xff] }
 0x43c   : > { %v5184_v57 = vpop.f32.mrf.mxu1 }
 0x43d   : > { %v5185_v37 = vadd.f32 %v5184_v57, %v5183_v26 }
 0x43e   : > { %v5186_v22 = vpop.f32.mrf.mxu1 }
 0x43f   : > { %v8176_v59 = vadd.f32 %v5185_v37, %v8148_v4 }
 0x440   : > { %v5187_v45 = vpop.f32.mrf.mxu1 }
 0x441   : > { %v5188_v56 = vadd.f32 %v5187_v45, %v5186_v22 }
 0x442   : > { %v5221_v50 = vpop.f32.mrf.mxu1 }
 0x443   : > { %v8179_v5 = vadd.f32 %v5188_v56, %v8150_v38 }
 0x444   : > { %v5222_v30 = vpop.f32.mrf.mxu1 }
 0x445   : > { %v5223_v41 = vadd.f32 %v5222_v30, %v5221_v50 }
 0x446   : > { %v5224_v34 = vpop.f32.mrf.mxu1 }
 0x447   : > { %v3600_v43 = vadd.f32 %v5223_v41, %v3495_v10 }
 0x448   : > { %v5225_v9 = vpop.f32.mrf.mxu1 }
 0x449   : > { %v3645_v40 = vmul.f32 %v8155_v19, %v3600_v43  ;;  %v5226_v25 = vadd.f32 %v5225_v9, %v5224_v34 }
 0x44a   : > { %v5227_v55 = vpop.f32.mrf.mxu1 }
 0x44b   : > { %v3660_v52 = vadd.f32 %v8161_v62, %v3645_v40  ;;  %v3605_v8 = vadd.f32 %v5226_v25, %v3500_v23  ;;  %v3974_v25 = vld [vmem:[%s8796_s10 + $0x278] sm:$0xff] }
 0x44c   : > { %v5228_v44 = vpop.f32.mrf.mxu1 }
 0x44d   : > { %v3668_v42 = vmax.f32 %v3660_v52, 0.0  ;;  %v3646_v33 = vmul.f32 %v8155_v19, %v3605_v8  ;;  %v5229_v6 = vadd.f32 %v5228_v44, %v5227_v55 }
 0x44e   : > { %v5230_v46 = vpop.f32.mrf.mxu1 }
 0x44f   : > { %v3692_v49 = vrot.slane %v3668_v42, 5  ;;  %v3661_v17 = vadd.f32 %v8161_v62, %v3646_v33  ;;  %v3610_v58 = vadd.f32 %v5229_v6, %v3505_v47 }
 0x450   : > { %v5231_v1 = vpop.f32.mrf.mxu1 }
 0x451   : > { %v8172_v18 = vsel %vm2060_vm9, 0.0, %v3692_v49  ;;  %v3669_v28 = vmax.f32 %v3661_v17, 0.0  ;;  %v3647_v53 = vmul.f32 %v8155_v19, %v3610_v58  ;;  %v5232_v60 = vadd.f32 %v5231_v1, %v5230_v46 }
 0x452   : > { %v5233_v54 = vpop.f32.mrf.mxu1  ;;  %v3720_v61 = vrot.slane %v8172_v18, 1  ;;  %v3770_v29 = vrot.slane %v8172_v18, 3  ;;  %v3745_v35 = vrot.slane %v8172_v18, 2  ;;  %v3820_v26 = vrot.slane %v8172_v18, 5 }
 0x453   : > { %v3693_v7 = vrot.slane %v3669_v28, 5  ;;  %v3662_v2 = vadd.f32 %v8161_v62, %v3647_v53  ;;  %v3615_v31 = vadd.f32 %v5232_v60, %v3510_v39  ;;  %v3870_v4 = vrot.slane %v8172_v18, 7 }
 0x454   : > { %v5234_v14 = vpop.f32.mrf.mxu1  ;;  %v3795_v57 = vrot.slane %v8172_v18, 4  ;;  %v3845_v38 = vrot.slane %v8172_v18, 6 }
 0x455   : > { %v8190_v22 = vsel %vm2060_vm9, %v3692_v49, %v3693_v7  ;;  %v3670_v45 = vmax.f32 %v3662_v2, 0.0  ;;  %v3648_v48 = vmul.f32 %v8155_v19, %v3615_v31  ;;  %v5235_v50 = vadd.f32 %v5234_v14, %v5233_v54  ;;  %v4005_v54 = vld [vmem:[%s8796_s10 + $0x370] sm:$0xff]  ;;  %v3987_v2 = vld [vmem:[%s8796_s10 + $0x2e0] sm:$0xff] }
 0x456   : > { %v5236_v51 = vpop.f32.mrf.mxu1  ;;  %v3721_v30 = vrot.slane %v8190_v22, 1  ;;  %v3771_v10 = vrot.slane %v8190_v22, 3  ;;  %v3746_v21 = vrot.slane %v8190_v22, 2  ;;  %v3821_v41 = vrot.slane %v8190_v22, 5 }
 0x457   : > { %v3695_v34 = vrot.slane %v3670_v45, 5  ;;  %v3663_v20 = vadd.f32 %v8161_v62, %v3648_v48  ;;  %v3620_v3 = vadd.f32 %v5235_v50, %v3515_v13  ;;  %v3871_v43 = vrot.slane %v8190_v22, 7  ;;  %v3988_v13 = vld [vmem:[%s8796_s10 + $0x2e8] sm:$0xff] }
 0x458   : > { %v5237_v9 = vpop.f32.mrf.mxu1  ;;  %v3722_v23 = vsel %vm2049_vm10, %v3720_v61, %v3721_v30  ;;  %v3772_v36 = vsel %vm2140_vm11, %v3770_v29, %v3771_v10  ;;  %v3747_v40 = vsel %vm2114_vm12, %v3745_v35, %v3746_v21  ;;  %v8211_v55 = vsel %vm2060_vm9, %v3820_v26, %v3821_v41  ;;  %v3972_v61 = vld [vmem:[%s8796_s10 + $0x268] sm:$0xff] }
 0x459   : > { %v8214_v15 = vsel %vm2060_vm9, %v3693_v7, %v3695_v34  ;;  %v3671_v52 = vmax.f32 %v3663_v20, 0.0  ;;  %v3649_v8 = vmul.f32 %v8155_v19, %v3620_v3  ;;  %v5238_v12 = vadd.f32 %v5237_v9, %v5236_v51  ;;  %4087 = vmatprep.mubr.f32.mxu0 %v3722_v23  ;;  %4192 = vmatprep.mubr.f32.mxu1 %v3772_v36  ;;  %v4020_v7 = vld [vmem:[%s8796_s10 + $0x3e8] sm:$0xff]  ;;  %v4019_v9 = vld [vmem:[%s8796_s10 + $0x3e0] sm:$0xff]  ;;  %v3986_v23 = vld [vmem:[%s8796_s10 + $0x2d8] sm:$0xff] }
 0x45a   : > { %v5239_v44 = vpop.f32.mrf.mxu1  ;;  %4711 = vmatmul.mubr.msk.f32.vlgmr.msra.gmra.mxu0 %vm6247_vm0, %v3692_v49  ;;  %4193 = vmatmul.mubr.f32.vlgmr.msra.gmra.mxu1 %v3747_v40  ;;  %v3723_v47 = vrot.slane %v8214_v15, 1  ;;  %v3773_v42 = vrot.slane %v8214_v15, 3  ;;  %v3748_v33 = vrot.slane %v8214_v15, 2  ;;  %v8231_v6 = vsel %vm2243_vm14, %v3870_v4, %v3871_v43  ;;  %v4004_v50 = vld [vmem:[%s8796_s10 + $0x368] sm:$0xff] }
 0x45b   : > { %v3697_v27 = vrot.slane %v3671_v52, 5  ;;  %v3664_v37 = vadd.f32 %v8161_v62, %v3649_v8  ;;  %v3625_v56 = vadd.f32 %v5238_v12, %v3520_v11  ;;  %5358 = vmatpush3.msra.mxu0 %v3974_v25  ;;  %5414 = vmatpush3.msra.mxu1 %v4006_v0  ;;  %v3796_v46 = vrot.slane %v8190_v22, 4 }
 0x45c   : > { %v5240_v49 = vpop.f32.mrf.mxu1  ;;  %5359 = vmatprep.subr.mxu0 %v3989_v16  ;;  %v3724_v17 = vsel %vm2049_vm10, %v3721_v30, %v3723_v47  ;;  %v3774_v58 = vsel %vm2140_vm11, %v3771_v10, %v3773_v42  ;;  %5415 = vmatprep.subr.mxu1 %v4021_v24  ;;  %v3749_v39 = vsel %vm2114_vm12, %v3746_v21, %v3748_v33  ;;  %v3846_v11 = vrot.slane %v8190_v22, 6  ;;  %v3971_v10 = vld [vmem:[%s8796_s10 + $0x260] sm:$0xff]  ;;  %v3970_v24 = vld [vmem:[%s8796_s10 + $0x258] sm:$0xff] }
 0x45d   : > { %v8246_v1 = vsel %vm2060_vm9, %v3695_v34, %v3697_v27  ;;  %v3672_v28 = vmax.f32 %v3664_v37, 0.0  ;;  %v3650_v53 = vmul.f32 %v8155_v19, %v3625_v56  ;;  %v5241_v60 = vadd.f32 %v5240_v49, %v5239_v44  ;;  %4092 = vmatprep.mubr.f32.mxu0 %v3724_v17  ;;  %4197 = vmatprep.mubr.f32.mxu1 %v3774_v58  ;;  %v4003_v16 = vld [vmem:[%s8796_s10 + $0x360] sm:$0xff]  ;;  %v4002_v49 = vld [vmem:[%s8796_s10 + $0x358] sm:$0xff]  ;;  %v3969_v58 = vld [vmem:[%s8796_s10 + $0x250] sm:$0xff] }
 0x45e   : > { %5360 = vmatpush3.msra.mxu0 %v3973_v32  ;;  %v5242_v29 = vpop.f32.mrf.mxu1  ;;  %4198 = vmatmul.mubr.f32.gmra.mxu1 %v3749_v39  ;;  %v3725_v31 = vrot.slane %v8246_v1, 1  ;;  %v3775_v35 = vrot.slane %v8246_v1, 3  ;;  %v3750_v14 = vrot.slane %v8246_v1, 2  ;;  %v8269_v26 = vsel %vm2166_vm13, %v3795_v57, %v3796_v46 }
 0x45f   : > { %v3699_v4 = vrot.slane %v3672_v28, 5  ;;  %v3665_v45 = vadd.f32 %v8161_v62, %v3650_v53  ;;  %v3630_v48 = vadd.f32 %v5241_v60, %v8176_v59  ;;  %4093 = vmatmul.mubr.f32.gmra.mxu0 %v8190_v22  ;;  %5361 = vmatprep.subr.mxu0 %v3988_v13  ;;  %v8282_v51 = vsel %vm2217_vm15, %v3845_v38, %v3846_v11  ;;  %v4017_v60 = vld [vmem:[%s8796_s10 + $0x3d0] sm:$0xff] }
 0x460   : > { %5416 = vmatpush3.msra.mxu1 %v4005_v54  ;;  %5362 = vmatpush3.msra.mxu0 %v3972_v61  ;;  %v5243_v57 = vpop.f32.mrf.mxu1  ;;  %v3726_v30 = vsel %vm2049_vm10, %v3723_v47, %v3725_v31  ;;  %v3776_v59 = vsel %vm2140_vm11, %v3773_v42, %v3775_v35  ;;  %v3751_v21 = vsel %vm2114_vm12, %v3748_v33, %v3750_v14  ;;  %v3823_v34 = vrot.slane %v8214_v15, 5 }
 0x461   : > { %v8292_v18 = vsel %vm2060_vm9, %v3697_v27, %v3699_v4  ;;  %v3673_v38 = vmax.f32 %v3665_v45, 0.0  ;;  %v3651_v20 = vmul.f32 %v8155_v19, %v3630_v48  ;;  %5417 = vmatprep.subr.mxu1 %v4020_v7  ;;  %v5244_v3 = vadd.f32 %v5243_v57, %v5242_v29  ;;  %5363 = vmatprep.subr.mxu0 %v3987_v2  ;;  %v3983_v57 = vld [vmem:[%s8796_s10 + $0x2c0] sm:$0xff] }
 0x462   : > { %5418 = vmatpush3.msra.mxu1 %v4004_v50  ;;  %4097 = vmatprep.mubr.f32.mxu0 %v3726_v30  ;;  %v3727_v36 = vrot.slane %v8292_v18, 1  ;;  %v3777_v40 = vrot.slane %v8292_v18, 3  ;;  %v3752_v25 = vrot.slane %v8292_v18, 2  ;;  %v8309_v0 = vsel %vm2060_vm9, %v3821_v41, %v3823_v34  ;;  %v4018_v41 = vld [vmem:[%s8796_s10 + $0x3d8] sm:$0xff]  ;;  %v4016_v50 = vld [vmem:[%s8796_s10 + $0x3c8] sm:$0xff] }
 0x463   : > { %v3701_v52 = vrot.slane %v3673_v38, 5  ;;  %v3666_v8 = vadd.f32 %v8161_v62, %v3651_v20  ;;  %v3635_v12 = vadd.f32 %v5244_v3, %v8179_v5  ;;  %4202 = vmatprep.mubr.f32.mxu1 %v3776_v59  ;;  %5364 = vmatpush3.msra.mxu0 %v3971_v10  ;;  %v3873_v44 = vrot.slane %v8214_v15, 7  ;;  %v3985_v5 = vld [vmem:[%s8796_s10 + $0x2d0] sm:$0xff] }
 0x464   : > { %5419 = vmatprep.subr.mxu1 %v4019_v9  ;;  %4098 = vmatmul.mubr.f32.gmra.mxu0 %v8214_v15  ;;  %v3728_v47 = vsel %vm2049_vm10, %v3725_v31, %v3727_v36  ;;  %v3778_v42 = vsel %vm2140_vm11, %v3775_v35, %v3777_v40  ;;  %v3753_v33 = vsel %vm2114_vm12, %v3750_v14, %v3752_v25  ;;  %v3798_v27 = vrot.slane %v8214_v15, 4  ;;  %v4001_v14 = vld [vmem:[%s8796_s10 + $0x350] sm:$0xff]  ;;  %v3967_v9 = vld [vmem:[%s8796_s10 + $0x240] sm:$0xff] }
 0x465   : > { %v8332_v37 = vsel %vm2060_vm9, %v3699_v4, %v3701_v52  ;;  %v3674_v56 = vmax.f32 %v3666_v8, 0.0  ;;  %v3652_v32 = vmul.f32 %v8155_v19, %v3635_v12  ;;  %4203 = vmatmul.mubr.f32.gmra.mxu1 %v3751_v21  ;;  %5365 = vmatprep.subr.mxu0 %v3986_v23  ;;  %v8341_v17 = vsel %vm2243_vm14, %v3871_v43, %v3873_v44  ;;  %v3968_v4 = vld [vmem:[%s8796_s10 + $0x248] sm:$0xff] }
 0x466   : > { %5420 = vmatpush3.msra.mxu1 %v4003_v16  ;;  %5366 = vmatpush3.msra.mxu0 %v3970_v24  ;;  %v3729_v39 = vrot.slane %v8332_v37, 1  ;;  %v3779_v19 = vrot.slane %v8332_v37, 3  ;;  %v3754_v13 = vrot.slane %v8332_v37, 2  ;;  %v8354_v28 = vsel %vm2166_vm13, %v3796_v46, %v3798_v27  ;;  %v3984_v46 = vld [vmem:[%s8796_s10 + $0x2c8] sm:$0xff] }
 0x467   : > { %v3703_v43 = vrot.slane %v3674_v56, 5  ;;  %v3667_v53 = vadd.f32 %v8161_v62, %v3652_v32  ;;  %5421 = vmatprep.subr.mxu1 %v4018_v41  ;;  %5367 = vmatprep.subr.mxu0 %v3985_v5  ;;  %v3848_v54 = vrot.slane %v8214_v15, 6  ;;  %v3825_v61 = vrot.slane %v8246_v1, 5  ;;  %v4000_v21 = vld [vmem:[%s8796_s10 + $0x348] sm:$0xff]  ;;  %v3982_v15 = vld [vmem:[%s8796_s10 + $0x2b8] sm:$0xff]  ;;  %v3999_v5 = vld [vmem:[%s8796_s10 + $0x340] sm:$0xff] }
 0x468   : > { %5422 = vmatpush3.msra.mxu1 %v4002_v49  ;;  %4102 = vmatprep.mubr.f32.mxu0 %v3728_v47  ;;  %v3730_v29 = vsel %vm2049_vm10, %v3727_v36, %v3729_v39  ;;  %v3780_v62 = vsel %vm2140_vm11, %v3777_v40, %v3779_v19  ;;  %v8368_v7 = vsel %vm2114_vm12, %v3752_v25, %v3754_v13  ;;  %v3875_v2 = vrot.slane %v8246_v1, 7  ;;  %v3966_v47 = vld [vmem:[%s8796_s10 + $0x238] sm:$0xff]  ;;  %v3981_v49 = vld [vmem:[%s8796_s10 + $0x2b0] sm:$0xff] }
 0x469   : > { %v8372_v31 = vsel %vm2060_vm9, %v3701_v52, %v3703_v43  ;;  %v3675_v35 = vmax.f32 %v3667_v53, 0.0  ;;  %4207 = vmatprep.mubr.f32.mxu1 %v3778_v42  ;;  %5368 = vmatpush3.msra.mxu0 %v3969_v58  ;;  %v8383_v45 = vsel %vm2217_vm15, %v3846_v11, %v3848_v54  ;;  %v8388_v48 = vsel %vm2060_vm9, %v3823_v34, %v3825_v61  ;;  %v4014_v32 = vld [vmem:[%s8796_s10 + $0x3b8] sm:$0xff] }
 0x46a   : > { %5423 = vmatprep.subr.mxu1 %v4017_v60  ;;  %4103 = vmatmul.mubr.f32.gmra.mxu0 %v8246_v1  ;;  %v3731_v22 = vrot.slane %v8372_v31, 1  ;;  %v3781_v11 = vrot.slane %v8372_v31, 3  ;;  %v3756_v30 = vrot.slane %v8372_v31, 2  ;;  %v8401_v59 = vsel %vm2243_vm14, %v3873_v44, %v3875_v2 }
 0x46b   : > { %v3683_v10 = vsel %vm2058_vm1, %v3675_v35, 0.0  ;;  %4208 = vmatmul.mubr.f32.gmra.mxu1 %v3753_v33  ;;  %5369 = vmatprep.subr.mxu0 %v3984_v46  ;;  %v3800_v34 = vrot.slane %v8246_v1, 4  ;;  %v3850_v38 = vrot.slane %v8246_v1, 6  ;;  %v3827_v20 = vrot.slane %v8292_v18, 5  ;;  %v4015_v1 = vld [vmem:[%s8796_s10 + $0x3c0] sm:$0xff] }
 0x46c   : > { %v3705_v3 = vrot.slane %v3683_v10, 5  ;;  %5424 = vmatpush3.msra.mxu1 %v4001_v14  ;;  %5370 = vmatpush3.msra.mxu0 %v3968_v4  ;;  %v3732_v23 = vsel %vm2049_vm10, %v3729_v39, %v3731_v22  ;;  %v3782_v36 = vsel %vm2140_vm11, %v3779_v19, %v3781_v11  ;;  %v8417_v40 = vsel %vm2114_vm12, %v3754_v13, %v3756_v30 }
 0x46d   : > { %5425 = vmatprep.subr.mxu1 %v4016_v50  ;;  %5371 = vmatprep.subr.mxu0 %v3983_v57  ;;  %v8425_v25 = vsel %vm2166_vm13, %v3798_v27, %v3800_v34  ;;  %v8428_v52 = vsel %vm2217_vm15, %v3848_v54, %v3850_v38  ;;  %v8431_v8 = vsel %vm2060_vm9, %v3825_v61, %v3827_v20  ;;  %v3877_v12 = vrot.slane %v8292_v18, 7  ;;  %v3965_v61 = vld [vmem:[%s8796_s10 + $0x230] sm:$0xff]  ;;  %v3980_v57 = vld [vmem:[%s8796_s10 + $0x2a8] sm:$0xff] }
 0x46e   : > { %v8435_v16 = vsel %vm2060_vm9, %v3703_v43, %v3705_v3  ;;  %v8438_v24 = vsel %vm2060_vm9, %v3705_v3, 0.0  ;;  %5426 = vmatpush3.msra.mxu1 %v4000_v21  ;;  %4107 = vmatprep.mubr.f32.mxu0 %v3730_v29  ;;  %v3802_v44 = vrot.slane %v8292_v18, 4  ;;  %v3852_v41 = vrot.slane %v8292_v18, 6  ;;  %v3997_v21 = vld [vmem:[%s8796_s10 + $0x330] sm:$0xff] }
 0x46f   : > { %4212 = vmatprep.mubr.f32.mxu1 %v3780_v62  ;;  %5372 = vmatpush3.msra.mxu0 %v3967_v9  ;;  %v3733_v42 = vrot.slane %v8435_v16, 1  ;;  %v3783_v33 = vrot.slane %v8435_v16, 3  ;;  %v3758_v27 = vrot.slane %v8435_v16, 2  ;;  %v3735_v56 = vrot.slane %v8438_v24, 1 }
 0x470   : > { %5427 = vmatprep.subr.mxu1 %v4015_v1  ;;  %4108 = vmatmul.mubr.f32.gmra.mxu0 %v8292_v18  ;;  %v3785_v58 = vrot.slane %v8438_v24, 3  ;;  %v3760_v39 = vrot.slane %v8438_v24, 2  ;;  %v8465_v19 = vsel %vm2243_vm14, %v3875_v2, %v3877_v12  ;;  %v8468_v13 = vsel %vm2166_vm13, %v3800_v34, %v3802_v44  ;;  %v3998_v18 = vld [vmem:[%s8796_s10 + $0x338] sm:$0xff]  ;;  %v4013_v2 = vld [vmem:[%s8796_s10 + $0x3b0] sm:$0xff]  ;;  %v3964_v34 = vld [vmem:[%s8796_s10 + $0x228] sm:$0xff] }
 0x471   : > { %4213 = vmatmul.mubr.f32.gmra.mxu1 %v8368_v7  ;;  %5373 = vmatprep.subr.mxu0 %v3982_v15  ;;  %v8475_v43 = vsel %vm2049_vm10, %v3731_v22, %v3733_v42  ;;  %v8478_v53 = vsel %vm2140_vm11, %v3781_v11, %v3783_v33  ;;  %v8481_v60 = vsel %vm2114_vm12, %v3756_v30, %v3758_v27  ;;  %v3829_v54 = vrot.slane %v8332_v37, 5 }
 0x472   : > { %5428 = vmatpush3.msra.mxu1 %v3999_v5  ;;  %5374 = vmatpush3.msra.mxu0 %v3966_v47  ;;  %v8488_v46 = vsel %vm2049_vm10, %v3733_v42, %v3735_v56  ;;  %v8491_v29 = vsel %vm2140_vm11, %v3783_v33, %v3785_v58  ;;  %v8494_v62 = vsel %vm2114_vm12, %v3758_v27, %v3760_v39  ;;  %v3879_v7 = vrot.slane %v8332_v37, 7  ;;  %v3978_v58 = vld [vmem:[%s8796_s10 + $0x298] sm:$0xff] }
 0x473   : > { %5429 = vmatprep.subr.mxu1 %v4014_v32  ;;  %5375 = vmatprep.subr.mxu0 %v3981_v49  ;;  %v8501_v35 = vsel %vm2217_vm15, %v3850_v38, %v3852_v41  ;;  %v8504_v14 = vsel %vm2060_vm9, %v3827_v20, %v3829_v54  ;;  %v3804_v4 = vrot.slane %v8332_v37, 4  ;;  %v3854_v50 = vrot.slane %v8332_v37, 6 }
 0x474   : > { %5430 = vmatpush3.msra.mxu1 %v3998_v18  ;;  %4112 = vmatprep.mubr.f32.mxu0 %v3732_v23  ;;  %v8512_v22 = vsel %vm2243_vm14, %v3877_v12, %v3879_v7  ;;  %v3831_v11 = vrot.slane %v8372_v31, 5  ;;  %v3881_v30 = vrot.slane %v8372_v31, 7  ;;  %v3806_v10 = vrot.slane %v8372_v31, 4  ;;  %v4012_v23 = vld [vmem:[%s8796_s10 + $0x3a8] sm:$0xff] }
 0x475   : > { %4217 = vmatprep.mubr.f32.mxu1 %v3782_v36  ;;  %5376 = vmatpush3.msra.mxu0 %v3965_v61  ;;  %v8524_v38 = vsel %vm2166_vm13, %v3802_v44, %v3804_v4  ;;  %v8527_v20 = vsel %vm2217_vm15, %v3852_v41, %v3854_v50  ;;  %v3856_v3 = vrot.slane %v8372_v31, 6  ;;  %v3833_v9 = vrot.slane %v8435_v16, 5  ;;  %v3979_v36 = vld [vmem:[%s8796_s10 + $0x2a0] sm:$0xff] }
 0x476   : > { %5431 = vmatprep.subr.mxu1 %v4013_v2  ;;  %4113 = vmatmul.mubr.f32.gmra.mxu0 %v8332_v37  ;;  %v8539_v1 = vsel %vm2060_vm9, %v3829_v54, %v3831_v11  ;;  %v8542_v12 = vsel %vm2243_vm14, %v3879_v7, %v3881_v30  ;;  %v8545_v15 = vsel %vm2166_vm13, %v3804_v4, %v3806_v10  ;;  %v3883_v44 = vrot.slane %v8435_v16, 7  ;;  %v3996_v37 = vld [vmem:[%s8796_s10 + $0x328] sm:$0xff]  ;;  %v3963_v41 = vld [vmem:[%s8796_s10 + $0x220] sm:$0xff] }
 0x477   : > { %4218 = vmatmul.mubr.f32.gmra.mxu1 %v8417_v40  ;;  %5377 = vmatprep.subr.mxu0 %v3980_v57  ;;  %v8556_v5 = vsel %vm2217_vm15, %v3854_v50, %v3856_v3  ;;  %v8559_v47 = vsel %vm2060_vm9, %v3831_v11, %v3833_v9  ;;  %v3808_v42 = vrot.slane %v8435_v16, 4  ;;  %v3858_v33 = vrot.slane %v8435_v16, 6  ;;  %v4011_v40 = vld [vmem:[%s8796_s10 + $0x3a0] sm:$0xff]  ;;  %v4010_v57 = vld [vmem:[%s8796_s10 + $0x398] sm:$0xff] }
 0x478   : > { %5432 = vmatpush3.msra.mxu1 %v3997_v21  ;;  %5378 = vmatpush3.msra.mxu0 %v3964_v34  ;;  %v8567_v27 = vsel %vm2243_vm14, %v3881_v30, %v3883_v44  ;;  %v3835_v56 = vrot.slane %v8438_v24, 5  ;;  %v3885_v32 = vrot.slane %v8438_v24, 7  ;;  %v3810_v49 = vrot.slane %v8438_v24, 4  ;;  %v3995_v61 = vld [vmem:[%s8796_s10 + $0x320] sm:$0xff]  ;;  %v3994_v11 = vld [vmem:[%s8796_s10 + $0x318] sm:$0xff]  ;;  %v3993_v30 = vld [vmem:[%s8796_s10 + $0x310] sm:$0xff] }
 0x479   : > { %5433 = vmatprep.subr.mxu1 %v4012_v23  ;;  %5379 = vmatprep.subr.mxu0 %v3979_v36  ;;  %v8576_v39 = vsel %vm2166_vm13, %v3806_v10, %v3808_v42  ;;  %v8579_v18 = vsel %vm2217_vm15, %v3856_v3, %v3858_v33  ;;  %v3860_v54 = vrot.slane %v8438_v24, 6  ;;  %v3962_v24 = vld [vmem:[%s8796_s10 + $0x218] sm:$0xff]  ;;  %v4008_v10 = vld [vmem:[%s8796_s10 + $0x388] sm:$0xff]  ;;  %v3959_v34 = vld [vmem:[%s8796_s10 + $0x200] sm:$0xff] }
 0x47a   : > { %5434 = vmatpush3.msra.mxu1 %v3996_v37  ;;  %5380 = vmatpush3.msra.mxu0 %v3963_v41  ;;  %v8586_v7 = vsel %vm2060_vm9, %v3833_v9, %v3835_v56  ;;  %v8589_v2 = vsel %vm2243_vm14, %v3883_v44, %v3885_v32  ;;  %v8592_v4 = vsel %vm2166_vm13, %v3808_v42, %v3810_v49  ;;  %v3992_v21 = vld [vmem:[%s8796_s10 + $0x308] sm:$0xff]  ;;  %v4007_v3 = vld [vmem:[%s8796_s10 + $0x380] sm:$0xff]  ;;  %vm4562_vm9 = vcmask 1047556  }
 0x47b   : > { %5435 = vmatprep.subr.mxu1 %v4011_v40  ;;  %4117 = vmatprep.mubr.f32.mxu0 %v8475_v43  ;;  %v8599_v50 = vsel %vm2217_vm15, %v3858_v33, %v3860_v54  ;;  %v3977_v43 = vld [vmem:[%s8796_s10 + $0x290] sm:$0xff] }
 0x47c   : > { %4222 = vmatprep.mubr.f32.mxu1 %v8478_v53  ;;  %5381 = vmatprep.subr.mxu0 %v3978_v58  ;;  %v3961_v53 = vld [vmem:[%s8796_s10 + $0x210] sm:$0xff] }
 0x47d   : > { %5436 = vmatpush3.msra.mxu1 %v3995_v61  ;;  %4118 = vmatmul.mubr.f32.gmra.mxu0 %v8372_v31  ;;  %v4009_v31 = vld [vmem:[%s8796_s10 + $0x390] sm:$0xff] }
 0x47e   : > { %4223 = vmatmul.mubr.f32.gmra.mxu1 %v8481_v60  ;;  %5382 = vmatpush3.msra.mxu0 %v3962_v24  ;;  %v3976_v60 = vld [vmem:[%s8796_s10 + $0x288] sm:$0xff] }
 0x47f   : > { %5437 = vmatprep.subr.mxu1 %v4010_v57  ;;  %4122 = vmatprep.mubr.f32.mxu0 %v8488_v46  ;;  %v3960_v46 = vld [vmem:[%s8796_s10 + $0x208] sm:$0xff] }
 0x480   : > { %4227 = vmatprep.mubr.f32.mxu1 %v8491_v29  ;;  %5383 = vmatprep.subr.mxu0 %v3977_v43  ;;  %v3975_v29 = vld [vmem:[%s8796_s10 + $0x280] sm:$0xff] }
 0x481   : > { %5438 = vmatpush3.msra.mxu1 %v3994_v11  ;;  %5384 = vmatpush3.msra.mxu0 %v3961_v53 }
 0x482   : > { %5439 = vmatprep.subr.mxu1 %v4009_v31  ;;  %5385 = vmatprep.subr.mxu0 %v3976_v60  ;;  %v8714_v31 = vld [vmem:[%s8798_s12] ss:$0 sm:$0xff] }
 0x483   : > { %5440 = vmatpush3.msra.mxu1 %v3993_v30  ;;  %4123 = vmatmul.mubr.f32.gmra.mxu0 %v8435_v16  ;;  %v3991_v16 = vld [vmem:[%s8796_s10 + $0x300] sm:$0xff] }
 0x484   : > { %4228 = vmatmul.mubr.f32.gmra.mxu1 %v8494_v62  ;;  %5386 = vmatpush3.msra.mxu0 %v3960_v46 }
 0x485   : > { %5441 = vmatprep.subr.mxu1 %v4008_v10  ;;  %5387 = vmatprep.subr.mxu0 %v3975_v29 }
 0x486   : > { %4297 = vmatprep.mubr.f32.mxu0 %v8211_v55  ;;  %5442 = vmatpush3.msra.mxu1 %v3992_v21 }
 0x487   : > { %4402 = vmatprep.mubr.f32.mxu1 %v8231_v6  ;;  %5388 = vmatpush3.msra.mxu0 %v3959_v34 }
 0x488   : > { %5443 = vmatprep.subr.mxu1 %v4007_v3  ;;  %4298 = vmatmul.mubr.f32.vlgmr.msra.gmra.mxu0 %v8269_v26 }
 0x489   : > { %5444 = vmatpush3.msra.mxu1 %v3991_v16  ;;  %4302 = vmatprep.mubr.f32.mxu0 %v8309_v0 }
 0x48a   : > { %4403 = vmatmul.mubr.f32.vlgmr.msra.gmra.mxu1 %v8282_v51 }
 0x48b   : > { %4407 = vmatprep.mubr.f32.mxu1 %v8341_v17 }
 0x48c   : > { %4303 = vmatmul.mubr.f32.gmra.mxu0 %v8354_v28 }
 0x48d   : > { %4307 = vmatprep.mubr.f32.mxu0 %v8388_v48 }
 0x48e   : > { %4408 = vmatmul.mubr.f32.gmra.mxu1 %v8383_v45 }
 0x48f   : > { %4412 = vmatprep.mubr.f32.mxu1 %v8401_v59 }
 0x490   : > { %4308 = vmatmul.mubr.f32.gmra.mxu0 %v8425_v25 }
 0x491   : > { %4312 = vmatprep.mubr.f32.mxu0 %v8431_v8 }
 0x492   : > { %4413 = vmatmul.mubr.f32.gmra.mxu1 %v8428_v52 }
 0x493   : > { %4417 = vmatprep.mubr.f32.mxu1 %v8465_v19 }
 0x494   : > { %4313 = vmatmul.mubr.f32.gmra.mxu0 %v8468_v13 }
 0x495   : > { %4317 = vmatprep.mubr.f32.mxu0 %v8504_v14 }
 0x496   : > { %4418 = vmatmul.mubr.f32.gmra.mxu1 %v8501_v35 }
 0x497   : > { %4422 = vmatprep.mubr.f32.mxu1 %v8512_v22 }
 0x498   : > { %4318 = vmatmul.mubr.f32.gmra.mxu0 %v8524_v38 }
 0x499   : > { %4322 = vmatprep.mubr.f32.mxu0 %v8539_v1 }
 0x49a   : > { %4423 = vmatmul.mubr.f32.gmra.mxu1 %v8527_v20 }
 0x49b   : > { %4427 = vmatprep.mubr.f32.mxu1 %v8542_v12 }
 0x49c   : > { %4323 = vmatmul.mubr.f32.gmra.mxu0 %v8545_v15 }
 0x49d   : > { %4327 = vmatprep.mubr.f32.mxu0 %v8559_v47 }
 0x49e   : > { %4428 = vmatmul.mubr.f32.gmra.mxu1 %v8556_v5 }
 0x49f   : > { %4432 = vmatprep.mubr.f32.mxu1 %v8567_v27 }
 0x4a0   : > { %4328 = vmatmul.mubr.f32.gmra.mxu0 %v8576_v39 }
 0x4a1   : > { %4332 = vmatprep.mubr.f32.mxu0 %v8586_v7 }
 0x4a2   : > { %4433 = vmatmul.mubr.f32.gmra.mxu1 %v8579_v18 }
 0x4a3   : > { %4437 = vmatprep.mubr.f32.mxu1 %v8589_v2 }
 0x4a4   : > { %4333 = vmatmul.mubr.f32.gmra.mxu0 %v8592_v4  ;;  %v8709_v4 = vld [vmem:[%s8797_s11] ss:$0 sm:$0xff] }
 0x4a6   : > { %4438 = vmatmul.mubr.f32.gmra.mxu1 %v8599_v50 }
 0x51a   : > { %v5277_v55 = vpop.f32.mrf.mxu0  ;;  %v5333_v6 = vpop.f32.mrf.mxu1 }
 0x51c   : > { %v5278_v26 = vpop.f32.mrf.mxu0  ;;  %v5334_v51 = vpop.f32.mrf.mxu1 }
 0x51d   : > { %v5279_v42 = vadd.f32 %v5278_v26, %v5277_v55  ;;  %v5335_v33 = vadd.f32 %v5334_v51, %v5333_v6 }
 0x51e   : > { %v5336_v0 = vpop.f32.mrf.mxu1 }
 0x51f   : > { %v5280_v17 = vpop.f32.mrf.mxu0  ;;  %v4195_v58 = vadd.f32 %v5335_v33, %v5279_v42 }
 0x520   : > { %v5337_v45 = vpop.f32.mrf.mxu1 }
 0x521   : > { %v5281_v28 = vpop.f32.mrf.mxu0  ;;  %v5338_v56 = vadd.f32 %v5337_v45, %v5336_v0 }
 0x522   : > { %v5282_v27 = vadd.f32 %v5281_v28, %v5280_v17 }
 0x524   : > { %v5283_v48 = vpop.f32.mrf.mxu0  ;;  %v4200_v2 = vadd.f32 %v5338_v56, %v5282_v27 }
 0x525   : > { %v5339_v59 = vpop.f32.mrf.mxu1 }
 0x526   : > { %v5284_v25 = vpop.f32.mrf.mxu0 }
 0x527   : > { %v5340_v52 = vpop.f32.mrf.mxu1  ;;  %v5285_v57 = vadd.f32 %v5284_v25, %v5283_v48 }
 0x528   : > { %v5341_v43 = vadd.f32 %v5340_v52, %v5339_v59 }
 0x52a   : > { %v5286_v8 = vpop.f32.mrf.mxu0  ;;  %v4205_v3 = vadd.f32 %v5341_v43, %v5285_v57 }
 0x52b   : > { %v5342_v19 = vpop.f32.mrf.mxu1 }
 0x52c   : > { %v5287_v13 = vpop.f32.mrf.mxu0 }
 0x52d   : > { %v5343_v62 = vpop.f32.mrf.mxu1  ;;  %v5288_v26 = vadd.f32 %v5287_v13, %v5286_v8 }
 0x52e   : > { %v5344_v51 = vadd.f32 %v5343_v62, %v5342_v19 }
 0x530   : > { %v5289_v35 = vpop.f32.mrf.mxu0  ;;  %v4210_v56 = vadd.f32 %v5344_v51, %v5288_v26 }
 0x531   : > { %v5345_v14 = vpop.f32.mrf.mxu1 }
 0x532   : > { %v5290_v22 = vpop.f32.mrf.mxu0 }
 0x533   : > { %v5346_v38 = vpop.f32.mrf.mxu1  ;;  %v5291_v59 = vadd.f32 %v5290_v22, %v5289_v35 }
 0x534   : > { %v5347_v42 = vadd.f32 %v5346_v38, %v5345_v14 }
 0x536   : > { %v8682_v20 = vpop.f32.mrf.mxu0  ;;  %v4215_v22 = vadd.f32 %v5347_v42, %v5291_v59 }
 0x537   : > { %v8684_v9 = vpop.f32.mrf.mxu1 }
 0x538   : > { %v8686_v23 = vpop.f32.mrf.mxu0 }
 0x539   : > { %v8688_v36 = vpop.f32.mrf.mxu1 }
 0x53d   : > { %v8690_v1 = vpop.f32.mrf.mxu0 }
 0x53e   : > { %v8692_v12 = vpop.f32.mrf.mxu1 }
 0x53f   : > { %v8694_v15 = vpop.f32.mrf.mxu0 }
 0x540   : > { %v8696_v44 = vpop.f32.mrf.mxu1 }
 0x543   : > { %v8698_v37 = vpop.f32.mrf.mxu0 }
 0x544   : > { %v8700_v41 = vpop.f32.mrf.mxu1 }
 0x545   : > { %v8702_v5 = vpop.f32.mrf.mxu0 }
 0x546   : > { %v8704_v47 = vpop.f32.mrf.mxu1 }
 0x548   : > { %v5389_v40 = vpop.f32.mrf.mxu0 }
 0x54a   : > { %v5445_v32 = vpop.f32.mrf.mxu1  ;;  %v5390_v49 = vpop.f32.mrf.mxu0 }
 0x54b   : > { %v5391_v39 = vadd.f32 %v5390_v49, %v5389_v40 }
 0x54c   : > { %v5446_v18 = vpop.f32.mrf.mxu1  ;;  %v5392_v54 = vpop.f32.mrf.mxu0 }
 0x54d   : > { %v4300_v61 = vadd.f32 %v5391_v39, %v4195_v58  ;;  %v5447_v7 = vadd.f32 %v5446_v18, %v5445_v32 }
 0x54e   : > { %v5448_v24 = vpop.f32.mrf.mxu1  ;;  %v5393_v50 = vpop.f32.mrf.mxu0 }
 0x54f   : > { %v4405_v11 = vadd.f32 %v5447_v7, %v4300_v61  ;;  %v5394_v53 = vadd.f32 %v5393_v50, %v5392_v54 }
 0x550   : > { %v5449_v60 = vpop.f32.mrf.mxu1  ;;  %v5395_v30 = vpop.f32.mrf.mxu0 }
 0x551   : > { %v4450_v46 = vmul.f32 %v8709_v4, %v4405_v11  ;;  %v4305_v10 = vadd.f32 %v5394_v53, %v4200_v2  ;;  %v5450_v29 = vadd.f32 %v5449_v60, %v5448_v24 }
 0x552   : > { %v5451_v21 = vpop.f32.mrf.mxu1  ;;  %v5396_v34 = vpop.f32.mrf.mxu0 }
 0x553   : > { %v4465_v16 = vadd.f32 %v8714_v31, %v4450_v46  ;;  %v4410_v55 = vadd.f32 %v5450_v29, %v4305_v10  ;;  %v5397_v6 = vadd.f32 %v5396_v34, %v5395_v30  ;;  %v5294_v10 = vadd.f32 %v8686_v23, %v8682_v20 }
 0x554   : > { %v5452_v0 = vpop.f32.mrf.mxu1  ;;  %v5398_v17 = vpop.f32.mrf.mxu0 }
 0x555   : > { %v4473_v28 = vmax.f32 %v4465_v16, 0.0  ;;  %v4451_v45 = vmul.f32 %v8709_v4, %v4410_v55  ;;  %v4310_v48 = vadd.f32 %v5397_v6, %v4205_v3  ;;  %v5453_v27 = vadd.f32 %v5452_v0, %v5451_v21 }
 0x556   : > { %v5454_v25 = vpop.f32.mrf.mxu1  ;;  %v5399_v52 = vpop.f32.mrf.mxu0  ;;  %v5350_v3 = vadd.f32 %v8688_v36, %v8684_v9  ;;  %v5297_v9 = vadd.f32 %v8694_v15, %v8690_v1  ;;  %v5353_v36 = vadd.f32 %v8696_v44, %v8692_v12 }
 0x557   : > { %v4489_v33 = vsel %vm2166_vm13, %v4473_v28, -inf  ;;  %v4466_v40 = vadd.f32 %v8714_v31, %v4451_v45  ;;  %v5400_v32 = vadd.f32 %v5399_v52, %v5398_v17  ;;  %v4563_v13 = vsel %vm4562_vm9, %v4473_v28, -inf }
 0x558   : > { %v5455_v8 = vpop.f32.mrf.mxu1  ;;  %v5401_v19 = vpop.f32.mrf.mxu0  ;;  %v4415_v62 = vadd.f32 %v5453_v27, %v4310_v48  ;;  %v4490_v49 = vrot.slane %v4489_v33, 4  ;;  %v4564_v38 = vrot.slane %v4563_v13, 4  ;;  %v4220_v48 = vadd.f32 %v5350_v3, %v5294_v10 }
 0x559   : > { %v4315_v58 = vadd.f32 %v5400_v32, %v4210_v56  ;;  %v4474_v18 = vmax.f32 %v4466_v40, 0.0  ;;  %v5456_v54 = vadd.f32 %v5455_v8, %v5454_v25  ;;  %v5300_v56 = vadd.f32 %v8702_v5, %v8698_v37 }
 0x55a   : > { %v5457_v39 = vpop.f32.mrf.mxu1  ;;  %v5402_v35 = vpop.f32.mrf.mxu0  ;;  %v4452_v2 = vmul.f32 %v8709_v4, %v4415_v62  ;;  %v4491_v43 = vmax.f32 %v4489_v33, %v4490_v49  ;;  %v4565_v29 = vmax.f32 %v4563_v13, %v4564_v38  ;;  %v5356_v32 = vadd.f32 %v8704_v47, %v8700_v41 }
 0x55b   : > { %v5403_v14 = vadd.f32 %v5402_v35, %v5401_v19  ;;  %v4420_v24 = vadd.f32 %v5456_v54, %v4315_v58  ;;  %v4496_v60 = vsel %vm2166_vm13, %v4474_v18, -inf  ;;  %v4570_v16 = vsel %vm4562_vm9, %v4474_v18, -inf }
 0x55c   : > { %v5458_v61 = vpop.f32.mrf.mxu1  ;;  %v5404_v7 = vpop.f32.mrf.mxu0  ;;  %v4467_v55 = vadd.f32 %v8714_v31, %v4452_v2  ;;  %v4492_v26 = vrot.slane %v4491_v43, 2  ;;  %v4497_v51 = vrot.slane %v4496_v60, 4  ;;  %v4566_v28 = vrot.slane %v4565_v29, 2 }
 0x55d   : > { %v4320_v50 = vadd.f32 %v5403_v14, %v4215_v22  ;;  %v5459_v57 = vadd.f32 %v5458_v61, %v5457_v39  ;;  %v4453_v30 = vmul.f32 %v8709_v4, %v4420_v24  ;;  %v4571_v45 = vrot.slane %v4570_v16, 4 }
 0x55e   : > { %v5460_v11 = vpop.f32.mrf.mxu1  ;;  %v5405_v53 = vpop.f32.mrf.mxu0  ;;  %v4475_v59 = vmax.f32 %v4467_v55, 0.0  ;;  %v4493_v52 = vmax.f32 %v4491_v43, %v4492_v26  ;;  %v4498_v42 = vmax.f32 %v4496_v60, %v4497_v51  ;;  %v4567_v8 = vmax.f32 %v4565_v29, %v4566_v28 }
 0x55f   : > { %v4425_v46 = vadd.f32 %v5459_v57, %v4320_v50  ;;  %v4468_v17 = vadd.f32 %v8714_v31, %v4453_v30  ;;  %v5406_v20 = vadd.f32 %v5405_v53, %v5404_v7  ;;  %v4572_v19 = vmax.f32 %v4570_v16, %v4571_v45 }
 0x560   : > { %v5461_v21 = vpop.f32.mrf.mxu1  ;;  %v5407_v34 = vpop.f32.mrf.mxu0  ;;  %v4503_v62 = vsel %vm2166_vm13, %v4475_v59, -inf  ;;  %v4225_v49 = vadd.f32 %v5353_v36, %v5297_v9  ;;  %v4494_v12 = vrot.slane %v4493_v52, 1  ;;  %v4499_v44 = vrot.slane %v4498_v42, 2 }
 0x561   : > { %v4454_v6 = vmul.f32 %v8709_v4, %v4425_v46  ;;  %v4476_v40 = vmax.f32 %v4468_v17, 0.0  ;;  %v4325_v27 = vadd.f32 %v5406_v20, %v4220_v48  ;;  %v5462_v15 = vadd.f32 %v5461_v21, %v5460_v11 }
 0x562   : > { %v5463_v0 = vpop.f32.mrf.mxu1  ;;  %v5408_v23 = vpop.f32.mrf.mxu0  ;;  %v4577_v58 = vsel %vm4562_vm9, %v4475_v59, -inf  ;;  %v4230_v41 = vadd.f32 %v5356_v32, %v5300_v56  ;;  %v4568_v47 = vrot.slane %v4567_v8, 1  ;;  %v4573_v18 = vrot.slane %v4572_v19, 2 }
 0x563   : > { %v4469_v25 = vadd.f32 %v8714_v31, %v4454_v6  ;;  %v4510_v35 = vsel %vm2166_vm13, %v4476_v40, -inf  ;;  %v4584_v37 = vsel %vm4562_vm9, %v4476_v40, -inf  ;;  %v4430_v5 = vadd.f32 %v5462_v15, %v4325_v27 }
 0x564   : > { %v5464_v33 = vpop.f32.mrf.mxu1  ;;  %v5410_v13 = vpop.f32.mrf.mxu0  ;;  %v5409_v22 = vadd.f32 %v5408_v23, %v5407_v34  ;;  %v4504_v54 = vrot.slane %v4503_v62, 4  ;;  %v4500_v24 = vmax.f32 %v4498_v42, %v4499_v44  ;;  %v4578_v50 = vrot.slane %v4577_v58, 4 }
 0x565   : > { %v4477_v1 = vmax.f32 %v4469_v25, 0.0  ;;  %v4455_v7 = vmul.f32 %v8709_v4, %v4430_v5  ;;  %v4511_v57 = vrot.slane %v4510_v35, 4  ;;  %v4585_v43 = vrot.slane %v4584_v37, 4 }
 0x566   : > { %v5466_v39 = vpop.f32.mrf.mxu1  ;;  %v5411_v14 = vpop.f32.mrf.mxu0  ;;  %v4330_v2 = vadd.f32 %v5409_v22, %v4225_v49  ;;  %v8749_v53 = vmax.f32 %v4493_v52, %v4494_v12  ;;  %v5465_v30 = vadd.f32 %v5464_v33, %v5463_v0  ;;  %v4574_v10 = vmax.f32 %v4572_v19, %v4573_v18 }
 0x567   : > { %v4517_v38 = vsel %vm2166_vm13, %v4477_v1, -inf  ;;  %v4591_v61 = vsel %vm4562_vm9, %v4477_v1, -inf  ;;  %v4470_v60 = vadd.f32 %v8714_v31, %v4455_v7  ;;  %v5412_v46 = vadd.f32 %v5411_v14, %v5410_v13 }
 0x568   : > { %v5467_v11 = vpop.f32.mrf.mxu1  ;;  %v4505_v29 = vmax.f32 %v4503_v62, %v4504_v54  ;;  %v4518_v21 = vrot.slane %v4517_v38, 4  ;;  %v4592_v34 = vrot.slane %v4591_v61, 4  ;;  %v4435_v16 = vadd.f32 %v5465_v30, %v4330_v2 }
 0x569   : > { %v4478_v3 = vmax.f32 %v4470_v60, 0.0  ;;  %v4335_v55 = vadd.f32 %v5412_v46, %v4230_v41  ;;  %v5468_v6 = vadd.f32 %v5467_v11, %v5466_v39  ;;  %v4501_v26 = vrot.slane %v4500_v24, 1 }
 0x56a   : > { %v4579_v51 = vmax.f32 %v4577_v58, %v4578_v50  ;;  %v4512_v17 = vmax.f32 %v4510_v35, %v4511_v57  ;;  %v4586_v28 = vmax.f32 %v4584_v37, %v4585_v43  ;;  %v4456_v23 = vmul.f32 %v8709_v4, %v4435_v16 }
 0x56b   : > { %v4524_v45 = vsel %vm2166_vm13, %v4478_v3, -inf  ;;  %v4598_v20 = vsel %vm4562_vm9, %v4478_v3, -inf  ;;  %v4440_v0 = vadd.f32 %v5468_v6, %v4335_v55  ;;  %v4519_v48 = vmax.f32 %v4517_v38, %v4518_v21 }
 0x56c   : > { %v4593_v59 = vmax.f32 %v4591_v61, %v4592_v34  ;;  %v4525_v25 = vrot.slane %v4524_v45, 4  ;;  %v4599_v9 = vrot.slane %v4598_v20, 4  ;;  %v4569_v36 = vmax.f32 %v4567_v8, %v4568_v47 }
 0x56d   : > { %v4575_v52 = vrot.slane %v4574_v10, 1  ;;  %v4471_v42 = vadd.f32 %v8714_v31, %v4456_v23  ;;  %v4457_v33 = vmul.f32 %v8709_v4, %v4440_v0  ;;  %v4506_v40 = vrot.slane %v4505_v29, 2 }
 0x56e   : > { %v4580_v27 = vrot.slane %v4579_v51, 2  ;;  %v4526_v56 = vmax.f32 %v4524_v45, %v4525_v25  ;;  %v4600_v32 = vmax.f32 %v4598_v20, %v4599_v9  ;;  %v4513_v19 = vrot.slane %v4512_v17, 2 }
 0x56f   : > { %v4587_v13 = vrot.slane %v4586_v28, 2  ;;  %v4479_v62 = vmax.f32 %v4471_v42, 0.0  ;;  %v4472_v1 = vadd.f32 %v8714_v31, %v4457_v33  ;;  %v4502_v15 = vmax.f32 %v4500_v24, %v4501_v26 }
 0x570   : > { %v4520_v49 = vrot.slane %v4519_v48, 2  ;;  %v4594_v12 = vrot.slane %v4593_v59, 2  ;;  %v4527_v44 = vrot.slane %v4526_v56, 2  ;;  %v4601_v58 = vrot.slane %v4600_v32, 2 }
 0x571   : > { %v4531_v8 = vsel %vm2166_vm13, %v4479_v62, -inf  ;;  %v4605_v39 = vsel %vm4562_vm9, %v4479_v62, -inf  ;;  %v4480_v35 = vmax.f32 %v4472_v1, 0.0  ;;  %v4507_v4 = vmax.f32 %v4505_v29, %v4506_v40 }
 0x572   : > { %v4581_v37 = vmax.f32 %v4579_v51, %v4580_v27  ;;  %v4532_v5 = vrot.slane %v4531_v8, 4  ;;  %v4606_v22 = vrot.slane %v4605_v39, 4  ;;  %v4576_v41 = vmax.f32 %v4574_v10, %v4575_v52 }
 0x573   : > { %v4514_v47 = vmax.f32 %v4512_v17, %v4513_v19  ;;  %v4588_v18 = vmax.f32 %v4586_v28, %v4587_v13  ;;  %v4488_v31 = vsel %vm2058_vm1, %v4480_v35, 0.0  ;;  %v4521_v54 = vmax.f32 %v4519_v48, %v4520_v49 }
 0x574   : > { %v4595_v14 = vmax.f32 %v4593_v59, %v4594_v12  ;;  %v4533_v38 = vmax.f32 %v4531_v8, %v4532_v5  ;;  %v4607_v61 = vmax.f32 %v4605_v39, %v4606_v22  ;;  %v4528_v7 = vmax.f32 %v4526_v56, %v4527_v44 }
 0x575   : > { %v4602_v2 = vmax.f32 %v4600_v32, %v4601_v58  ;;  %v4538_v24 = vsel %vm2166_vm13, %v4488_v31, -inf  ;;  %v4612_v50 = vsel %vm4562_vm9, %v4488_v31, -inf  ;;  %v4508_v57 = vrot.slane %v4507_v4, 1 }
 0x576   : > { %v4582_v43 = vrot.slane %v4581_v37, 1  ;;  %v4534_v11 = vrot.slane %v4533_v38, 2  ;;  %v4608_v60 = vrot.slane %v4607_v61, 2  ;;  %v4515_v30 = vrot.slane %v4514_v47, 1 }
 0x577   : > { %v4589_v46 = vrot.slane %v4588_v18, 1  ;;  %v4539_v10 = vrot.slane %v4538_v24, 4  ;;  %v4613_v29 = vrot.slane %v4612_v50, 4  ;;  %v4522_v63 = vrot.slane %v4521_v54, 1 }
 0x578   : > { %v4596_v21 = vrot.slane %v4595_v14, 1  ;;  %v4535_v34 = vmax.f32 %v4533_v38, %v4534_v11  ;;  %v4609_v3 = vmax.f32 %v4607_v61, %v4608_v60  ;;  %v4529_v16 = vrot.slane %v4528_v7, 1 }
 0x579   : > { %v4603_v55 = vrot.slane %v4602_v2, 1  ;;  %v4540_v6 = vmax.f32 %v4538_v24, %v4539_v10  ;;  %v4614_v26 = vmax.f32 %v4612_v50, %v4613_v29  ;;  %v4509_v51 = vmax.f32 %v4507_v4, %v4508_v57 }
 0x57a   : > { %v4583_v17 = vmax.f32 %v4581_v37, %v4582_v43  ;;  %v4536_v28 = vrot.slane %v4535_v34, 1  ;;  %v4610_v45 = vrot.slane %v4609_v3, 1  ;;  %v4516_v20 = vmax.f32 %v4514_v47, %v4515_v30 }
 0x57b   : > { %v4590_v23 = vmax.f32 %v4588_v18, %v4589_v46  ;;  %v4541_v0 = vrot.slane %v4540_v6, 2  ;;  %v4615_v48 = vrot.slane %v4614_v26, 2  ;;  %v4553_v59 = vsel %vm1986_vm2, %v4502_v15, %v8749_v53 }
 0x57c   : > { %v4627_v25 = vsel %vm1986_vm2, %v4576_v41, %v4569_v36  ;;  %v4523_v9 = vmax.f32 %v4521_v54, %v4522_v63  ;;  %v4597_v52 = vmax.f32 %v4595_v14, %v4596_v21  ;;  %v4530_v42 = vmax.f32 %v4528_v7, %v4529_v16 }
 0x57d   : > { %v4604_v33 = vmax.f32 %v4602_v2, %v4603_v55  ;;  %v4542_v40 = vmax.f32 %v4540_v6, %v4541_v0  ;;  %v4616_v27 = vmax.f32 %v4614_v26, %v4615_v48  ;;  %v4554_v56 = vsel %vm1988_vm3, %v4509_v51, %v4553_v59 }
 0x57e   : > { %v4628_v32 = vsel %vm1988_vm3, %v4583_v17, %v4627_v25  ;;  %v4537_v19 = vmax.f32 %v4535_v34, %v4536_v28  ;;  %v4611_v13 = vmax.f32 %v4609_v3, %v4610_v45  ;;  %v4555_v62 = vsel %vm1990_vm4, %v4516_v20, %v4554_v56 }
 0x57f   : > { %v4629_v1 = vsel %vm1990_vm4, %v4590_v23, %v4628_v32  ;;  %v4543_v53 = vrot.slane %v4542_v40, 1  ;;  %v4617_v15 = vrot.slane %v4616_v27, 1  ;;  %v4556_v36 = vsel %vm1992_vm5, %v4523_v9, %v4555_v62 }
 0x580   : > { %v4630_v49 = vsel %vm1992_vm5, %v4597_v52, %v4629_v1  ;;  %v4557_v12 = vsel %vm1994_vm6, %v4530_v42, %v4556_v36 }
 0x581   : > { %v4631_v44 = vsel %vm1994_vm6, %v4604_v33, %v4630_v49  ;;  %v4544_v58 = vmax.f32 %v4542_v40, %v4543_v53  ;;  %v4618_v8 = vmax.f32 %v4616_v27, %v4617_v15  ;;  %v4558_v39 = vsel %vm1996_vm7, %v4537_v19, %v4557_v12 }
 0x582   : > { %v4632_v35 = vsel %vm1996_vm7, %v4611_v13, %v4631_v44 }
 0x583   : > { %v4559_v4 = vsel %vm1998_vm8, %v4544_v58, %v4558_v39  ;;  %v4633_v37 = vsel %vm1998_vm8, %v4618_v8, %v4632_v35 }
 0x584   : > { %4561 = vst [vmem:[%s440_s16] sm:$0xff] %v4559_v4  ;;  %4714 = vst [vmem:[%s440_s16 + $0x8] sm:$0xff] %v4633_v37 }
 0x585 PF: > { %s23_s25 = sadd.s32 1, %s5709_s25  }
 0x586   : > { %p20_p4 = scmp.ge.s32.totalorder %s23_s25, 6  }
 0x588   :  { %22 = sbr.rel (!%p20_p4) target bundleno = 1 (0x1), region = 103 }

// kernel: tinysleepnet_forward.3
= control target key start
LH: loop header
LB: loop body
LE: loop exit
PB: predicated region body
PF: predicated region fallthrough
CT: control target
= control target key end

     0   :  { %s7248_s0 = inlined_call_operand.vmem [shape: f32[4,2048], index: 0, kind: input, shape index: {}]   ;;  %s7249_s1 = inlined_call_operand.vmem [shape: f32[2048,512], index: 1, kind: input, shape index: {}]   ;;  %s7250_s2 = inlined_call_operand.vmem [shape: f32[128,512], index: 2, kind: input, shape index: {}]   ;;  %s7251_s3 = inlined_call_operand.vmem [shape: f32[1,512], index: 3, kind: input, shape index: {}]   ;;  %s7252_s4 = inlined_call_operand.vmem [shape: f32[128,5], index: 4, kind: input, shape index: {}]   ;;  %s7253_s5 = inlined_call_operand.vmem [shape: f32[1,5], index: 5, kind: input, shape index: {}]   ;;  %s7254_s6 = inlined_call_operand.hbm [shape: f32[4,5], index: 6, kind: output, shape index: {}]  }
   0x1   :  { %v93_v0 = vld [vmem:[%s7249_s1 + $0x1e8] sm:$0xff]  ;;  %v92_v2 = vld [vmem:[%s7249_s1 + $0x1e0] sm:$0xff] }
   0x2   :  { %v221_v1 = vld [vmem:[%s7249_s1 + $0x5e8] sm:$0xff]  ;;  %1080 = vmatprep.subr.mxu0 %v93_v0  ;;  %v220_v3 = vld [vmem:[%s7249_s1 + $0x5e0] sm:$0xff] }
   0x3   :  { %1151 = vmatprep.subr.mxu1 %v221_v1  ;;  %v89_v4 = vld [vmem:[%s7249_s1 + $0x1c8] sm:$0xff]  ;;  %1081 = vmatpush1.msra.mxu0 %v92_v2  ;;  %v88_v6 = vld [vmem:[%s7249_s1 + $0x1c0] sm:$0xff] }
   0x4   :  { %v217_v5 = vld [vmem:[%s7249_s1 + $0x5c8] sm:$0xff]  ;;  %1152 = vmatpush1.msra.mxu1 %v220_v3  ;;  %v216_v7 = vld [vmem:[%s7249_s1 + $0x5c0] sm:$0xff]  ;;  %1082 = vmatprep.subr.mxu0 %v89_v4 }
   0x5   :  { %v85_v8 = vld [vmem:[%s7249_s1 + $0x1a8] sm:$0xff]  ;;  %1153 = vmatprep.subr.mxu1 %v217_v5  ;;  %v84_v10 = vld [vmem:[%s7249_s1 + $0x1a0] sm:$0xff]  ;;  %1083 = vmatpush1.msra.mxu0 %v88_v6 }
   0x6   :  { %v213_v9 = vld [vmem:[%s7249_s1 + $0x5a8] sm:$0xff]  ;;  %v212_v11 = vld [vmem:[%s7249_s1 + $0x5a0] sm:$0xff]  ;;  %1154 = vmatpush1.msra.mxu1 %v216_v7  ;;  %1084 = vmatprep.subr.mxu0 %v85_v8 }
   0x7   :  { %v81_v12 = vld [vmem:[%s7249_s1 + $0x188] sm:$0xff]  ;;  %1155 = vmatprep.subr.mxu1 %v213_v9  ;;  %v80_v14 = vld [vmem:[%s7249_s1 + $0x180] sm:$0xff]  ;;  %1085 = vmatpush1.msra.mxu0 %v84_v10 }
   0x8   :  { %v209_v13 = vld [vmem:[%s7249_s1 + $0x588] sm:$0xff]  ;;  %v208_v15 = vld [vmem:[%s7249_s1 + $0x580] sm:$0xff]  ;;  %1156 = vmatpush1.msra.mxu1 %v212_v11  ;;  %1086 = vmatprep.subr.mxu0 %v81_v12 }
   0x9   :  { %v77_v16 = vld [vmem:[%s7249_s1 + $0x168] sm:$0xff]  ;;  %1157 = vmatprep.subr.mxu1 %v209_v13  ;;  %v76_v18 = vld [vmem:[%s7249_s1 + $0x160] sm:$0xff]  ;;  %1087 = vmatpush1.msra.mxu0 %v80_v14 }
   0xa   :  { %v205_v17 = vld [vmem:[%s7249_s1 + $0x568] sm:$0xff]  ;;  %v204_v19 = vld [vmem:[%s7249_s1 + $0x560] sm:$0xff]  ;;  %1158 = vmatpush1.msra.mxu1 %v208_v15  ;;  %1088 = vmatprep.subr.mxu0 %v77_v16 }
   0xb   :  { %v73_v20 = vld [vmem:[%s7249_s1 + $0x148] sm:$0xff]  ;;  %1159 = vmatprep.subr.mxu1 %v205_v17  ;;  %v72_v22 = vld [vmem:[%s7249_s1 + $0x140] sm:$0xff]  ;;  %1089 = vmatpush1.msra.mxu0 %v76_v18 }
   0xc   :  { %v201_v21 = vld [vmem:[%s7249_s1 + $0x548] sm:$0xff]  ;;  %v200_v23 = vld [vmem:[%s7249_s1 + $0x540] sm:$0xff]  ;;  %1160 = vmatpush1.msra.mxu1 %v204_v19  ;;  %1090 = vmatprep.subr.mxu0 %v73_v20 }
   0xd   :  { %v69_v24 = vld [vmem:[%s7249_s1 + $0x128] sm:$0xff]  ;;  %1161 = vmatprep.subr.mxu1 %v201_v21  ;;  %v68_v26 = vld [vmem:[%s7249_s1 + $0x120] sm:$0xff]  ;;  %1091 = vmatpush1.msra.mxu0 %v72_v22 }
   0xe   :  { %v197_v25 = vld [vmem:[%s7249_s1 + $0x528] sm:$0xff]  ;;  %v196_v27 = vld [vmem:[%s7249_s1 + $0x520] sm:$0xff]  ;;  %1162 = vmatpush1.msra.mxu1 %v200_v23  ;;  %1092 = vmatprep.subr.mxu0 %v69_v24 }
   0xf   :  { %v65_v28 = vld [vmem:[%s7249_s1 + $0x108] sm:$0xff]  ;;  %1163 = vmatprep.subr.mxu1 %v197_v25  ;;  %v64_v30 = vld [vmem:[%s7249_s1 + $0x100] sm:$0xff]  ;;  %1093 = vmatpush1.msra.mxu0 %v68_v26 }
  0x10   :  { %v193_v29 = vld [vmem:[%s7249_s1 + $0x508] sm:$0xff]  ;;  %v192_v31 = vld [vmem:[%s7249_s1 + $0x500] sm:$0xff]  ;;  %1164 = vmatpush1.msra.mxu1 %v196_v27  ;;  %1094 = vmatprep.subr.mxu0 %v65_v28 }
  0x11   :  { %v61_v32 = vld [vmem:[%s7249_s1 + $0xe8] sm:$0xff]  ;;  %1165 = vmatprep.subr.mxu1 %v193_v29  ;;  %v60_v34 = vld [vmem:[%s7249_s1 + $0xe0] sm:$0xff]  ;;  %1095 = vmatpush1.msra.mxu0 %v64_v30 }
  0x12   :  { %v189_v33 = vld [vmem:[%s7249_s1 + $0x4e8] sm:$0xff]  ;;  %v188_v35 = vld [vmem:[%s7249_s1 + $0x4e0] sm:$0xff]  ;;  %1166 = vmatpush1.msra.mxu1 %v192_v31  ;;  %1096 = vmatprep.subr.mxu0 %v61_v32 }
  0x13   :  { %v57_v36 = vld [vmem:[%s7249_s1 + $0xc8] sm:$0xff]  ;;  %1167 = vmatprep.subr.mxu1 %v189_v33  ;;  %v56_v38 = vld [vmem:[%s7249_s1 + $0xc0] sm:$0xff]  ;;  %1097 = vmatpush1.msra.mxu0 %v60_v34 }
  0x14   :  { %v185_v37 = vld [vmem:[%s7249_s1 + $0x4c8] sm:$0xff]  ;;  %v184_v39 = vld [vmem:[%s7249_s1 + $0x4c0] sm:$0xff]  ;;  %1168 = vmatpush1.msra.mxu1 %v188_v35  ;;  %1098 = vmatprep.subr.mxu0 %v57_v36 }
  0x15   :  { %v53_v40 = vld [vmem:[%s7249_s1 + $0xa8] sm:$0xff]  ;;  %1169 = vmatprep.subr.mxu1 %v185_v37  ;;  %v52_v42 = vld [vmem:[%s7249_s1 + $0xa0] sm:$0xff]  ;;  %1099 = vmatpush1.msra.mxu0 %v56_v38 }
  0x16   :  { %v181_v41 = vld [vmem:[%s7249_s1 + $0x4a8] sm:$0xff]  ;;  %v180_v43 = vld [vmem:[%s7249_s1 + $0x4a0] sm:$0xff]  ;;  %1170 = vmatpush1.msra.mxu1 %v184_v39  ;;  %1100 = vmatprep.subr.mxu0 %v53_v40 }
  0x17   :  { %v49_v44 = vld [vmem:[%s7249_s1 + $0x88] sm:$0xff]  ;;  %1171 = vmatprep.subr.mxu1 %v181_v41  ;;  %v48_v46 = vld [vmem:[%s7249_s1 + $0x80] sm:$0xff]  ;;  %1101 = vmatpush1.msra.mxu0 %v52_v42 }
  0x18   :  { %v177_v45 = vld [vmem:[%s7249_s1 + $0x488] sm:$0xff]  ;;  %v176_v47 = vld [vmem:[%s7249_s1 + $0x480] sm:$0xff]  ;;  %1172 = vmatpush1.msra.mxu1 %v180_v43  ;;  %1102 = vmatprep.subr.mxu0 %v49_v44 }
  0x19   :  { %v45_v48 = vld [vmem:[%s7249_s1 + $0x68] sm:$0xff]  ;;  %1173 = vmatprep.subr.mxu1 %v177_v45  ;;  %v44_v50 = vld [vmem:[%s7249_s1 + $0x60] sm:$0xff]  ;;  %1103 = vmatpush1.msra.mxu0 %v48_v46 }
  0x1a   :  { %v173_v49 = vld [vmem:[%s7249_s1 + $0x468] sm:$0xff]  ;;  %v172_v51 = vld [vmem:[%s7249_s1 + $0x460] sm:$0xff]  ;;  %1174 = vmatpush1.msra.mxu1 %v176_v47  ;;  %1104 = vmatprep.subr.mxu0 %v45_v48 }
  0x1b   :  { %v41_v52 = vld [vmem:[%s7249_s1 + $0x48] sm:$0xff]  ;;  %1175 = vmatprep.subr.mxu1 %v173_v49  ;;  %v40_v54 = vld [vmem:[%s7249_s1 + $0x40] sm:$0xff]  ;;  %1105 = vmatpush1.msra.mxu0 %v44_v50 }
  0x1c   :  { %v169_v53 = vld [vmem:[%s7249_s1 + $0x448] sm:$0xff]  ;;  %v168_v55 = vld [vmem:[%s7249_s1 + $0x440] sm:$0xff]  ;;  %1176 = vmatpush1.msra.mxu1 %v172_v51  ;;  %1106 = vmatprep.subr.mxu0 %v41_v52 }
  0x1d   :  { %v37_v56 = vld [vmem:[%s7249_s1 + $0x28] sm:$0xff]  ;;  %1177 = vmatprep.subr.mxu1 %v169_v53  ;;  %v36_v58 = vld [vmem:[%s7249_s1 + $0x20] sm:$0xff]  ;;  %1107 = vmatpush1.msra.mxu0 %v40_v54 }
  0x1e   :  { %v165_v57 = vld [vmem:[%s7249_s1 + $0x428] sm:$0xff]  ;;  %v164_v59 = vld [vmem:[%s7249_s1 + $0x420] sm:$0xff]  ;;  %1178 = vmatpush1.msra.mxu1 %v168_v55  ;;  %1108 = vmatprep.subr.mxu0 %v37_v56 }
  0x1f   :  { %v33_v60 = vld [vmem:[%s7249_s1 + $0x8] sm:$0xff]  ;;  %1179 = vmatprep.subr.mxu1 %v165_v57  ;;  %v32_v62 = vld [vmem:[%s7249_s1] sm:$0xff]  ;;  %1109 = vmatpush1.msra.mxu0 %v36_v58 }
  0x20   :  { %v161_v61 = vld [vmem:[%s7249_s1 + $0x408] sm:$0xff]  ;;  %v160_v63 = vld [vmem:[%s7249_s1 + $0x400] sm:$0xff]  ;;  %1180 = vmatpush1.msra.mxu1 %v164_v59  ;;  %1110 = vmatprep.subr.mxu0 %v33_v60 }
  0x21   :  { %v157_v0 = vld [vmem:[%s7249_s1 + $0x3e8] sm:$0xff]  ;;  %1181 = vmatprep.subr.mxu1 %v161_v61  ;;  %v156_v2 = vld [vmem:[%s7249_s1 + $0x3e0] sm:$0xff]  ;;  %1111 = vmatpush1.msra.mxu0 %v32_v62 }
  0x22   :  { %v285_v1 = vld [vmem:[%s7249_s1 + $0x7e8] sm:$0xff]  ;;  %v284_v3 = vld [vmem:[%s7249_s1 + $0x7e0] sm:$0xff]  ;;  %1182 = vmatpush1.msra.mxu1 %v160_v63  ;;  %1112 = vmatprep.subr.mxu0 %v157_v0 }
  0x23   :  { %v153_v4 = vld [vmem:[%s7249_s1 + $0x3c8] sm:$0xff]  ;;  %1183 = vmatprep.subr.mxu1 %v285_v1  ;;  %v152_v6 = vld [vmem:[%s7249_s1 + $0x3c0] sm:$0xff]  ;;  %1113 = vmatpush2.msra.mxu0 %v156_v2 }
  0x24   :  { %v281_v5 = vld [vmem:[%s7249_s1 + $0x7c8] sm:$0xff]  ;;  %v280_v7 = vld [vmem:[%s7249_s1 + $0x7c0] sm:$0xff]  ;;  %1184 = vmatpush2.msra.mxu1 %v284_v3  ;;  %1114 = vmatprep.subr.mxu0 %v153_v4 }
  0x25   :  { %v149_v8 = vld [vmem:[%s7249_s1 + $0x3a8] sm:$0xff]  ;;  %1185 = vmatprep.subr.mxu1 %v281_v5  ;;  %v148_v10 = vld [vmem:[%s7249_s1 + $0x3a0] sm:$0xff]  ;;  %1115 = vmatpush2.msra.mxu0 %v152_v6 }
  0x26   :  { %v277_v9 = vld [vmem:[%s7249_s1 + $0x7a8] sm:$0xff]  ;;  %v276_v11 = vld [vmem:[%s7249_s1 + $0x7a0] sm:$0xff]  ;;  %1186 = vmatpush2.msra.mxu1 %v280_v7  ;;  %1116 = vmatprep.subr.mxu0 %v149_v8 }
  0x27   :  { %v145_v12 = vld [vmem:[%s7249_s1 + $0x388] sm:$0xff]  ;;  %1187 = vmatprep.subr.mxu1 %v277_v9  ;;  %v144_v14 = vld [vmem:[%s7249_s1 + $0x380] sm:$0xff]  ;;  %1117 = vmatpush2.msra.mxu0 %v148_v10 }
  0x28   :  { %v273_v13 = vld [vmem:[%s7249_s1 + $0x788] sm:$0xff]  ;;  %v272_v15 = vld [vmem:[%s7249_s1 + $0x780] sm:$0xff]  ;;  %1188 = vmatpush2.msra.mxu1 %v276_v11  ;;  %1118 = vmatprep.subr.mxu0 %v145_v12 }
  0x29   :  { %v141_v16 = vld [vmem:[%s7249_s1 + $0x368] sm:$0xff]  ;;  %1189 = vmatprep.subr.mxu1 %v273_v13  ;;  %v140_v18 = vld [vmem:[%s7249_s1 + $0x360] sm:$0xff]  ;;  %1119 = vmatpush2.msra.mxu0 %v144_v14 }
  0x2a   :  { %v269_v17 = vld [vmem:[%s7249_s1 + $0x768] sm:$0xff]  ;;  %v268_v19 = vld [vmem:[%s7249_s1 + $0x760] sm:$0xff]  ;;  %1190 = vmatpush2.msra.mxu1 %v272_v15  ;;  %1120 = vmatprep.subr.mxu0 %v141_v16 }
  0x2b   :  { %v137_v20 = vld [vmem:[%s7249_s1 + $0x348] sm:$0xff]  ;;  %1191 = vmatprep.subr.mxu1 %v269_v17  ;;  %v136_v22 = vld [vmem:[%s7249_s1 + $0x340] sm:$0xff]  ;;  %1121 = vmatpush2.msra.mxu0 %v140_v18 }
  0x2c   :  { %v265_v21 = vld [vmem:[%s7249_s1 + $0x748] sm:$0xff]  ;;  %v264_v23 = vld [vmem:[%s7249_s1 + $0x740] sm:$0xff]  ;;  %1192 = vmatpush2.msra.mxu1 %v268_v19  ;;  %1122 = vmatprep.subr.mxu0 %v137_v20 }
  0x2d   :  { %v133_v24 = vld [vmem:[%s7249_s1 + $0x328] sm:$0xff]  ;;  %1193 = vmatprep.subr.mxu1 %v265_v21  ;;  %v132_v26 = vld [vmem:[%s7249_s1 + $0x320] sm:$0xff]  ;;  %1123 = vmatpush2.msra.mxu0 %v136_v22 }
  0x2e   :  { %v261_v25 = vld [vmem:[%s7249_s1 + $0x728] sm:$0xff]  ;;  %v260_v27 = vld [vmem:[%s7249_s1 + $0x720] sm:$0xff]  ;;  %1194 = vmatpush2.msra.mxu1 %v264_v23  ;;  %1124 = vmatprep.subr.mxu0 %v133_v24 }
  0x2f   :  { %v129_v28 = vld [vmem:[%s7249_s1 + $0x308] sm:$0xff]  ;;  %1195 = vmatprep.subr.mxu1 %v261_v25  ;;  %v128_v30 = vld [vmem:[%s7249_s1 + $0x300] sm:$0xff]  ;;  %1125 = vmatpush2.msra.mxu0 %v132_v26 }
  0x30   :  { %v257_v29 = vld [vmem:[%s7249_s1 + $0x708] sm:$0xff]  ;;  %v256_v31 = vld [vmem:[%s7249_s1 + $0x700] sm:$0xff]  ;;  %1196 = vmatpush2.msra.mxu1 %v260_v27  ;;  %1126 = vmatprep.subr.mxu0 %v129_v28 }
  0x31   :  { %v125_v32 = vld [vmem:[%s7249_s1 + $0x2e8] sm:$0xff]  ;;  %1197 = vmatprep.subr.mxu1 %v257_v29  ;;  %v124_v34 = vld [vmem:[%s7249_s1 + $0x2e0] sm:$0xff]  ;;  %1127 = vmatpush2.msra.mxu0 %v128_v30 }
  0x32   :  { %v253_v33 = vld [vmem:[%s7249_s1 + $0x6e8] sm:$0xff]  ;;  %v252_v35 = vld [vmem:[%s7249_s1 + $0x6e0] sm:$0xff]  ;;  %1198 = vmatpush2.msra.mxu1 %v256_v31  ;;  %1128 = vmatprep.subr.mxu0 %v125_v32 }
  0x33   :  { %v121_v36 = vld [vmem:[%s7249_s1 + $0x2c8] sm:$0xff]  ;;  %1199 = vmatprep.subr.mxu1 %v253_v33  ;;  %v120_v38 = vld [vmem:[%s7249_s1 + $0x2c0] sm:$0xff]  ;;  %1129 = vmatpush2.msra.mxu0 %v124_v34 }
  0x34   :  { %v249_v37 = vld [vmem:[%s7249_s1 + $0x6c8] sm:$0xff]  ;;  %v248_v39 = vld [vmem:[%s7249_s1 + $0x6c0] sm:$0xff]  ;;  %1200 = vmatpush2.msra.mxu1 %v252_v35  ;;  %1130 = vmatprep.subr.mxu0 %v121_v36 }
  0x35   :  { %v117_v40 = vld [vmem:[%s7249_s1 + $0x2a8] sm:$0xff]  ;;  %1201 = vmatprep.subr.mxu1 %v249_v37  ;;  %v116_v42 = vld [vmem:[%s7249_s1 + $0x2a0] sm:$0xff]  ;;  %1131 = vmatpush2.msra.mxu0 %v120_v38 }
  0x36   :  { %v245_v41 = vld [vmem:[%s7249_s1 + $0x6a8] sm:$0xff]  ;;  %v244_v43 = vld [vmem:[%s7249_s1 + $0x6a0] sm:$0xff]  ;;  %1202 = vmatpush2.msra.mxu1 %v248_v39  ;;  %1132 = vmatprep.subr.mxu0 %v117_v40 }
  0x37   :  { %v113_v44 = vld [vmem:[%s7249_s1 + $0x288] sm:$0xff]  ;;  %1203 = vmatprep.subr.mxu1 %v245_v41  ;;  %v112_v46 = vld [vmem:[%s7249_s1 + $0x280] sm:$0xff]  ;;  %1133 = vmatpush2.msra.mxu0 %v116_v42 }
  0x38   :  { %v241_v45 = vld [vmem:[%s7249_s1 + $0x688] sm:$0xff]  ;;  %v240_v47 = vld [vmem:[%s7249_s1 + $0x680] sm:$0xff]  ;;  %1204 = vmatpush2.msra.mxu1 %v244_v43  ;;  %1134 = vmatprep.subr.mxu0 %v113_v44 }
  0x39   :  { %v109_v48 = vld [vmem:[%s7249_s1 + $0x268] sm:$0xff]  ;;  %1205 = vmatprep.subr.mxu1 %v241_v45  ;;  %v108_v50 = vld [vmem:[%s7249_s1 + $0x260] sm:$0xff]  ;;  %1135 = vmatpush2.msra.mxu0 %v112_v46 }
  0x3a   :  { %v237_v49 = vld [vmem:[%s7249_s1 + $0x668] sm:$0xff]  ;;  %v236_v51 = vld [vmem:[%s7249_s1 + $0x660] sm:$0xff]  ;;  %1206 = vmatpush2.msra.mxu1 %v240_v47  ;;  %1136 = vmatprep.subr.mxu0 %v109_v48 }
  0x3b   :  { %v105_v52 = vld [vmem:[%s7249_s1 + $0x248] sm:$0xff]  ;;  %1207 = vmatprep.subr.mxu1 %v237_v49  ;;  %v104_v54 = vld [vmem:[%s7249_s1 + $0x240] sm:$0xff]  ;;  %1137 = vmatpush2.msra.mxu0 %v108_v50 }
  0x3c   :  { %v233_v53 = vld [vmem:[%s7249_s1 + $0x648] sm:$0xff]  ;;  %v232_v55 = vld [vmem:[%s7249_s1 + $0x640] sm:$0xff]  ;;  %1208 = vmatpush2.msra.mxu1 %v236_v51  ;;  %1138 = vmatprep.subr.mxu0 %v105_v52 }
  0x3d   :  { %v24_v56 = vld [vmem:[%s7248_s0] sm:$0xff]  ;;  %v101_v57 = vld [vmem:[%s7249_s1 + $0x228] sm:$0xff]  ;;  %1209 = vmatprep.subr.mxu1 %v233_v53  ;;  %1139 = vmatpush2.msra.mxu0 %v104_v54 }
  0x3e   :  { %v229_v58 = vld [vmem:[%s7249_s1 + $0x628] sm:$0xff]  ;;  %v100_v60 = vld [vmem:[%s7249_s1 + $0x220] sm:$0xff]  ;;  %1210 = vmatpush2.msra.mxu1 %v232_v55  ;;  %v3757_v0 = vcombine.high %v24_v56, %v24_v56  ;;  %1140 = vmatprep.subr.mxu0 %v101_v57 }
  0x3f   :  { %v25_v59 = vld [vmem:[%s7248_s0 + $0x8] sm:$0xff]  ;;  %v228_v61 = vld [vmem:[%s7249_s1 + $0x620] sm:$0xff]  ;;  %1211 = vmatprep.subr.mxu1 %v229_v58  ;;  %1141 = vmatpush2.msra.mxu0 %v100_v60 }
  0x40   :  { %v97_v62 = vld [vmem:[%s7249_s1 + $0x208] sm:$0xff]  ;;  %v96_v1 = vld [vmem:[%s7249_s1 + $0x200] sm:$0xff]  ;;  %v3762_v2 = vcombine.high %v25_v59, %v25_v59  ;;  %1212 = vmatpush2.msra.mxu1 %v228_v61  ;;  %1144 = vmatprep.mubr.f32.mxu0 %v3757_v0 }
  0x41   :  { %v225_v63 = vld [vmem:[%s7249_s1 + $0x608] sm:$0xff]  ;;  %v224_v3 = vld [vmem:[%s7249_s1 + $0x600] sm:$0xff]  ;;  %1142 = vmatprep.subr.mxu0 %v97_v62 }
  0x42   :  { %1213 = vmatprep.subr.mxu1 %v225_v63  ;;  %1143 = vmatpush2.msra.mxu0 %v96_v1  ;;  %v349_v4 = vld [vmem:[%s7249_s1 + $0x9e8] sm:$0xff]  ;;  %v348_v6 = vld [vmem:[%s7249_s1 + $0x9e0] sm:$0xff] }
  0x43   :  { %v477_v5 = vld [vmem:[%s7249_s1 + $0xde8] sm:$0xff]  ;;  %1214 = vmatpush2.msra.mxu1 %v224_v3  ;;  %1215 = vmatprep.mubr.f32.mxu1 %v3762_v2  ;;  %v476_v7 = vld [vmem:[%s7249_s1 + $0xde0] sm:$0xff] }
  0x44   :  { %1145 = vmatmul.mubr.f32.vlgmr.msra.gmra.mxu0 %v24_v56  ;;  %1216 = vmatmul.mubr.f32.vlgmr.msra.gmra.mxu1 %v25_v59  ;;  %v345_v8 = vld [vmem:[%s7249_s1 + $0x9c8] sm:$0xff]  ;;  %v344_v10 = vld [vmem:[%s7249_s1 + $0x9c0] sm:$0xff] }
  0x45   :  { %v473_v9 = vld [vmem:[%s7249_s1 + $0xdc8] sm:$0xff]  ;;  %1222 = vmatprep.subr.mxu0 %v349_v4  ;;  %1293 = vmatprep.subr.mxu1 %v477_v5  ;;  %v472_v11 = vld [vmem:[%s7249_s1 + $0xdc0] sm:$0xff] }
  0x46   :  { %1223 = vmatpush1.msra.mxu0 %v348_v6  ;;  %1294 = vmatpush1.msra.mxu1 %v476_v7  ;;  %v341_v12 = vld [vmem:[%s7249_s1 + $0x9a8] sm:$0xff]  ;;  %v340_v14 = vld [vmem:[%s7249_s1 + $0x9a0] sm:$0xff] }
  0x47   :  { %v469_v13 = vld [vmem:[%s7249_s1 + $0xda8] sm:$0xff]  ;;  %1224 = vmatprep.subr.mxu0 %v345_v8  ;;  %1295 = vmatprep.subr.mxu1 %v473_v9  ;;  %v468_v15 = vld [vmem:[%s7249_s1 + $0xda0] sm:$0xff] }
  0x48   :  { %1225 = vmatpush1.msra.mxu0 %v344_v10  ;;  %1296 = vmatpush1.msra.mxu1 %v472_v11  ;;  %v337_v16 = vld [vmem:[%s7249_s1 + $0x988] sm:$0xff]  ;;  %v336_v18 = vld [vmem:[%s7249_s1 + $0x980] sm:$0xff] }
  0x49   :  { %v465_v17 = vld [vmem:[%s7249_s1 + $0xd88] sm:$0xff]  ;;  %1226 = vmatprep.subr.mxu0 %v341_v12  ;;  %1297 = vmatprep.subr.mxu1 %v469_v13  ;;  %v464_v19 = vld [vmem:[%s7249_s1 + $0xd80] sm:$0xff] }
  0x4a   :  { %1227 = vmatpush1.msra.mxu0 %v340_v14  ;;  %1298 = vmatpush1.msra.mxu1 %v468_v15  ;;  %v333_v20 = vld [vmem:[%s7249_s1 + $0x968] sm:$0xff]  ;;  %v332_v22 = vld [vmem:[%s7249_s1 + $0x960] sm:$0xff] }
  0x4b   :  { %v461_v21 = vld [vmem:[%s7249_s1 + $0xd68] sm:$0xff]  ;;  %1228 = vmatprep.subr.mxu0 %v337_v16  ;;  %1299 = vmatprep.subr.mxu1 %v465_v17  ;;  %v460_v23 = vld [vmem:[%s7249_s1 + $0xd60] sm:$0xff] }
  0x4c   :  { %1229 = vmatpush1.msra.mxu0 %v336_v18  ;;  %1300 = vmatpush1.msra.mxu1 %v464_v19  ;;  %v329_v24 = vld [vmem:[%s7249_s1 + $0x948] sm:$0xff]  ;;  %v328_v26 = vld [vmem:[%s7249_s1 + $0x940] sm:$0xff] }
  0x4d   :  { %v457_v25 = vld [vmem:[%s7249_s1 + $0xd48] sm:$0xff]  ;;  %1230 = vmatprep.subr.mxu0 %v333_v20  ;;  %1301 = vmatprep.subr.mxu1 %v461_v21  ;;  %v456_v27 = vld [vmem:[%s7249_s1 + $0xd40] sm:$0xff] }
  0x4e   :  { %1231 = vmatpush1.msra.mxu0 %v332_v22  ;;  %1302 = vmatpush1.msra.mxu1 %v460_v23  ;;  %v325_v28 = vld [vmem:[%s7249_s1 + $0x928] sm:$0xff]  ;;  %v324_v30 = vld [vmem:[%s7249_s1 + $0x920] sm:$0xff] }
  0x4f   :  { %v453_v29 = vld [vmem:[%s7249_s1 + $0xd28] sm:$0xff]  ;;  %1232 = vmatprep.subr.mxu0 %v329_v24  ;;  %1303 = vmatprep.subr.mxu1 %v457_v25  ;;  %v452_v31 = vld [vmem:[%s7249_s1 + $0xd20] sm:$0xff] }
  0x50   :  { %1233 = vmatpush1.msra.mxu0 %v328_v26  ;;  %1304 = vmatpush1.msra.mxu1 %v456_v27  ;;  %v321_v32 = vld [vmem:[%s7249_s1 + $0x908] sm:$0xff]  ;;  %v320_v34 = vld [vmem:[%s7249_s1 + $0x900] sm:$0xff] }
  0x51   :  { %v449_v33 = vld [vmem:[%s7249_s1 + $0xd08] sm:$0xff]  ;;  %1234 = vmatprep.subr.mxu0 %v325_v28  ;;  %1305 = vmatprep.subr.mxu1 %v453_v29  ;;  %v448_v35 = vld [vmem:[%s7249_s1 + $0xd00] sm:$0xff] }
  0x52   :  { %1235 = vmatpush1.msra.mxu0 %v324_v30  ;;  %1306 = vmatpush1.msra.mxu1 %v452_v31  ;;  %v317_v36 = vld [vmem:[%s7249_s1 + $0x8e8] sm:$0xff]  ;;  %v316_v38 = vld [vmem:[%s7249_s1 + $0x8e0] sm:$0xff] }
  0x53   :  { %v445_v37 = vld [vmem:[%s7249_s1 + $0xce8] sm:$0xff]  ;;  %1236 = vmatprep.subr.mxu0 %v321_v32  ;;  %1307 = vmatprep.subr.mxu1 %v449_v33  ;;  %v444_v39 = vld [vmem:[%s7249_s1 + $0xce0] sm:$0xff] }
  0x54   :  { %1237 = vmatpush1.msra.mxu0 %v320_v34  ;;  %1308 = vmatpush1.msra.mxu1 %v448_v35  ;;  %v313_v40 = vld [vmem:[%s7249_s1 + $0x8c8] sm:$0xff]  ;;  %v312_v42 = vld [vmem:[%s7249_s1 + $0x8c0] sm:$0xff] }
  0x55   :  { %v441_v41 = vld [vmem:[%s7249_s1 + $0xcc8] sm:$0xff]  ;;  %1238 = vmatprep.subr.mxu0 %v317_v36  ;;  %1309 = vmatprep.subr.mxu1 %v445_v37  ;;  %v440_v43 = vld [vmem:[%s7249_s1 + $0xcc0] sm:$0xff] }
  0x56   :  { %1239 = vmatpush1.msra.mxu0 %v316_v38  ;;  %1310 = vmatpush1.msra.mxu1 %v444_v39  ;;  %v309_v44 = vld [vmem:[%s7249_s1 + $0x8a8] sm:$0xff]  ;;  %v308_v46 = vld [vmem:[%s7249_s1 + $0x8a0] sm:$0xff] }
  0x57   :  { %v437_v45 = vld [vmem:[%s7249_s1 + $0xca8] sm:$0xff]  ;;  %1240 = vmatprep.subr.mxu0 %v313_v40  ;;  %1311 = vmatprep.subr.mxu1 %v441_v41  ;;  %v436_v47 = vld [vmem:[%s7249_s1 + $0xca0] sm:$0xff] }
  0x58   :  { %1241 = vmatpush1.msra.mxu0 %v312_v42  ;;  %1312 = vmatpush1.msra.mxu1 %v440_v43  ;;  %v305_v48 = vld [vmem:[%s7249_s1 + $0x888] sm:$0xff]  ;;  %v304_v50 = vld [vmem:[%s7249_s1 + $0x880] sm:$0xff] }
  0x59   :  { %v433_v49 = vld [vmem:[%s7249_s1 + $0xc88] sm:$0xff]  ;;  %1242 = vmatprep.subr.mxu0 %v309_v44  ;;  %1313 = vmatprep.subr.mxu1 %v437_v45  ;;  %v432_v51 = vld [vmem:[%s7249_s1 + $0xc80] sm:$0xff] }
  0x5a   :  { %1243 = vmatpush1.msra.mxu0 %v308_v46  ;;  %1314 = vmatpush1.msra.mxu1 %v436_v47  ;;  %v301_v52 = vld [vmem:[%s7249_s1 + $0x868] sm:$0xff]  ;;  %v300_v54 = vld [vmem:[%s7249_s1 + $0x860] sm:$0xff] }
  0x5b   :  { %v429_v53 = vld [vmem:[%s7249_s1 + $0xc68] sm:$0xff]  ;;  %1244 = vmatprep.subr.mxu0 %v305_v48  ;;  %1315 = vmatprep.subr.mxu1 %v433_v49  ;;  %v428_v55 = vld [vmem:[%s7249_s1 + $0xc60] sm:$0xff] }
  0x5c   :  { %1245 = vmatpush1.msra.mxu0 %v304_v50  ;;  %1316 = vmatpush1.msra.mxu1 %v432_v51  ;;  %v297_v56 = vld [vmem:[%s7249_s1 + $0x848] sm:$0xff]  ;;  %v296_v58 = vld [vmem:[%s7249_s1 + $0x840] sm:$0xff] }
  0x5d   :  { %v425_v57 = vld [vmem:[%s7249_s1 + $0xc48] sm:$0xff]  ;;  %1246 = vmatprep.subr.mxu0 %v301_v52  ;;  %1317 = vmatprep.subr.mxu1 %v429_v53  ;;  %v424_v59 = vld [vmem:[%s7249_s1 + $0xc40] sm:$0xff] }
  0x5e   :  { %1247 = vmatpush1.msra.mxu0 %v300_v54  ;;  %1318 = vmatpush1.msra.mxu1 %v428_v55  ;;  %v293_v60 = vld [vmem:[%s7249_s1 + $0x828] sm:$0xff]  ;;  %v292_v62 = vld [vmem:[%s7249_s1 + $0x820] sm:$0xff] }
  0x5f   :  { %v421_v61 = vld [vmem:[%s7249_s1 + $0xc28] sm:$0xff]  ;;  %1248 = vmatprep.subr.mxu0 %v297_v56  ;;  %1319 = vmatprep.subr.mxu1 %v425_v57  ;;  %v420_v63 = vld [vmem:[%s7249_s1 + $0xc20] sm:$0xff] }
  0x60   :  { %1249 = vmatpush1.msra.mxu0 %v296_v58  ;;  %1320 = vmatpush1.msra.mxu1 %v424_v59  ;;  %v289_v1 = vld [vmem:[%s7249_s1 + $0x808] sm:$0xff]  ;;  %v288_v4 = vld [vmem:[%s7249_s1 + $0x800] sm:$0xff] }
  0x61   :  { %v417_v3 = vld [vmem:[%s7249_s1 + $0xc08] sm:$0xff]  ;;  %1250 = vmatprep.subr.mxu0 %v293_v60  ;;  %1321 = vmatprep.subr.mxu1 %v421_v61  ;;  %v416_v5 = vld [vmem:[%s7249_s1 + $0xc00] sm:$0xff] }
  0x62   :  { %1251 = vmatpush1.msra.mxu0 %v292_v62  ;;  %1322 = vmatpush1.msra.mxu1 %v420_v63  ;;  %v413_v6 = vld [vmem:[%s7249_s1 + $0xbe8] sm:$0xff]  ;;  %v412_v8 = vld [vmem:[%s7249_s1 + $0xbe0] sm:$0xff]  ;;  %v26_v62 = vld [vmem:[%s7248_s0 + $0x10] sm:$0xff] }
  0x63   :  { %v541_v7 = vld [vmem:[%s7249_s1 + $0xfe8] sm:$0xff]  ;;  %1252 = vmatprep.subr.mxu0 %v289_v1  ;;  %1323 = vmatprep.subr.mxu1 %v417_v3  ;;  %v540_v9 = vld [vmem:[%s7249_s1 + $0xfe0] sm:$0xff] }
  0x64   :  { %1253 = vmatpush1.msra.mxu0 %v288_v4  ;;  %1324 = vmatpush1.msra.mxu1 %v416_v5  ;;  %v409_v10 = vld [vmem:[%s7249_s1 + $0xbc8] sm:$0xff]  ;;  %v408_v12 = vld [vmem:[%s7249_s1 + $0xbc0] sm:$0xff]  ;;  %v27_v5 = vld [vmem:[%s7248_s0 + $0x18] sm:$0xff] }
  0x65   :  { %v537_v11 = vld [vmem:[%s7249_s1 + $0xfc8] sm:$0xff]  ;;  %1254 = vmatprep.subr.mxu0 %v413_v6  ;;  %1325 = vmatprep.subr.mxu1 %v541_v7  ;;  %v536_v13 = vld [vmem:[%s7249_s1 + $0xfc0] sm:$0xff] }
  0x66   :  { %1255 = vmatpush2.msra.mxu0 %v412_v8  ;;  %1326 = vmatpush2.msra.mxu1 %v540_v9  ;;  %v405_v14 = vld [vmem:[%s7249_s1 + $0xba8] sm:$0xff]  ;;  %v404_v16 = vld [vmem:[%s7249_s1 + $0xba0] sm:$0xff]  ;;  %v4153_v8 = vcombine.high %v26_v62, %v26_v62 }
  0x67   :  { %v533_v15 = vld [vmem:[%s7249_s1 + $0xfa8] sm:$0xff]  ;;  %1256 = vmatprep.subr.mxu0 %v409_v10  ;;  %1327 = vmatprep.subr.mxu1 %v537_v11  ;;  %v532_v17 = vld [vmem:[%s7249_s1 + $0xfa0] sm:$0xff]  ;;  %v4161_v11 = vcombine.high %v27_v5, %v27_v5 }
  0x68   :  { %1257 = vmatpush2.msra.mxu0 %v408_v12  ;;  %1328 = vmatpush2.msra.mxu1 %v536_v13  ;;  %v401_v18 = vld [vmem:[%s7249_s1 + $0xb88] sm:$0xff]  ;;  %v400_v20 = vld [vmem:[%s7249_s1 + $0xb80] sm:$0xff] }
  0x69   :  { %v529_v19 = vld [vmem:[%s7249_s1 + $0xf88] sm:$0xff]  ;;  %1258 = vmatprep.subr.mxu0 %v405_v14  ;;  %1329 = vmatprep.subr.mxu1 %v533_v15  ;;  %v528_v21 = vld [vmem:[%s7249_s1 + $0xf80] sm:$0xff] }
  0x6a   :  { %1259 = vmatpush2.msra.mxu0 %v404_v16  ;;  %1330 = vmatpush2.msra.mxu1 %v532_v17  ;;  %v397_v22 = vld [vmem:[%s7249_s1 + $0xb68] sm:$0xff]  ;;  %v396_v24 = vld [vmem:[%s7249_s1 + $0xb60] sm:$0xff] }
  0x6b   :  { %v525_v23 = vld [vmem:[%s7249_s1 + $0xf68] sm:$0xff]  ;;  %1260 = vmatprep.subr.mxu0 %v401_v18  ;;  %1331 = vmatprep.subr.mxu1 %v529_v19  ;;  %v524_v25 = vld [vmem:[%s7249_s1 + $0xf60] sm:$0xff] }
  0x6c   :  { %1261 = vmatpush2.msra.mxu0 %v400_v20  ;;  %1332 = vmatpush2.msra.mxu1 %v528_v21  ;;  %v393_v26 = vld [vmem:[%s7249_s1 + $0xb48] sm:$0xff]  ;;  %v392_v28 = vld [vmem:[%s7249_s1 + $0xb40] sm:$0xff] }
  0x6d   :  { %v521_v27 = vld [vmem:[%s7249_s1 + $0xf48] sm:$0xff]  ;;  %1262 = vmatprep.subr.mxu0 %v397_v22  ;;  %1333 = vmatprep.subr.mxu1 %v525_v23  ;;  %v520_v29 = vld [vmem:[%s7249_s1 + $0xf40] sm:$0xff] }
  0x6e   :  { %1263 = vmatpush2.msra.mxu0 %v396_v24  ;;  %1334 = vmatpush2.msra.mxu1 %v524_v25  ;;  %v389_v30 = vld [vmem:[%s7249_s1 + $0xb28] sm:$0xff]  ;;  %v388_v32 = vld [vmem:[%s7249_s1 + $0xb20] sm:$0xff] }
  0x6f   :  { %v517_v31 = vld [vmem:[%s7249_s1 + $0xf28] sm:$0xff]  ;;  %1264 = vmatprep.subr.mxu0 %v393_v26  ;;  %1335 = vmatprep.subr.mxu1 %v521_v27  ;;  %v516_v33 = vld [vmem:[%s7249_s1 + $0xf20] sm:$0xff] }
  0x70   :  { %1265 = vmatpush2.msra.mxu0 %v392_v28  ;;  %1336 = vmatpush2.msra.mxu1 %v520_v29  ;;  %v385_v34 = vld [vmem:[%s7249_s1 + $0xb08] sm:$0xff]  ;;  %v384_v36 = vld [vmem:[%s7249_s1 + $0xb00] sm:$0xff] }
  0x71   :  { %v513_v35 = vld [vmem:[%s7249_s1 + $0xf08] sm:$0xff]  ;;  %1266 = vmatprep.subr.mxu0 %v389_v30  ;;  %1337 = vmatprep.subr.mxu1 %v517_v31  ;;  %v512_v37 = vld [vmem:[%s7249_s1 + $0xf00] sm:$0xff] }
  0x72   :  { %1267 = vmatpush2.msra.mxu0 %v388_v32  ;;  %1338 = vmatpush2.msra.mxu1 %v516_v33  ;;  %v381_v38 = vld [vmem:[%s7249_s1 + $0xae8] sm:$0xff]  ;;  %v380_v40 = vld [vmem:[%s7249_s1 + $0xae0] sm:$0xff] }
  0x73   :  { %v509_v39 = vld [vmem:[%s7249_s1 + $0xee8] sm:$0xff]  ;;  %1268 = vmatprep.subr.mxu0 %v385_v34  ;;  %1339 = vmatprep.subr.mxu1 %v513_v35  ;;  %v508_v41 = vld [vmem:[%s7249_s1 + $0xee0] sm:$0xff] }
  0x74   :  { %1269 = vmatpush2.msra.mxu0 %v384_v36  ;;  %1340 = vmatpush2.msra.mxu1 %v512_v37  ;;  %v377_v42 = vld [vmem:[%s7249_s1 + $0xac8] sm:$0xff]  ;;  %v376_v44 = vld [vmem:[%s7249_s1 + $0xac0] sm:$0xff] }
  0x75   :  { %v505_v43 = vld [vmem:[%s7249_s1 + $0xec8] sm:$0xff]  ;;  %1270 = vmatprep.subr.mxu0 %v381_v38  ;;  %1341 = vmatprep.subr.mxu1 %v509_v39  ;;  %v504_v45 = vld [vmem:[%s7249_s1 + $0xec0] sm:$0xff] }
  0x76   :  { %1271 = vmatpush2.msra.mxu0 %v380_v40  ;;  %1342 = vmatpush2.msra.mxu1 %v508_v41  ;;  %v373_v46 = vld [vmem:[%s7249_s1 + $0xaa8] sm:$0xff]  ;;  %v372_v48 = vld [vmem:[%s7249_s1 + $0xaa0] sm:$0xff] }
  0x77   :  { %v501_v47 = vld [vmem:[%s7249_s1 + $0xea8] sm:$0xff]  ;;  %1272 = vmatprep.subr.mxu0 %v377_v42  ;;  %1343 = vmatprep.subr.mxu1 %v505_v43  ;;  %v500_v49 = vld [vmem:[%s7249_s1 + $0xea0] sm:$0xff] }
  0x78   :  { %1273 = vmatpush2.msra.mxu0 %v376_v44  ;;  %1344 = vmatpush2.msra.mxu1 %v504_v45  ;;  %v369_v50 = vld [vmem:[%s7249_s1 + $0xa88] sm:$0xff]  ;;  %v368_v52 = vld [vmem:[%s7249_s1 + $0xa80] sm:$0xff] }
  0x79   :  { %v497_v51 = vld [vmem:[%s7249_s1 + $0xe88] sm:$0xff]  ;;  %1274 = vmatprep.subr.mxu0 %v373_v46  ;;  %1345 = vmatprep.subr.mxu1 %v501_v47  ;;  %v496_v53 = vld [vmem:[%s7249_s1 + $0xe80] sm:$0xff] }
  0x7a   :  { %1275 = vmatpush2.msra.mxu0 %v372_v48  ;;  %1346 = vmatpush2.msra.mxu1 %v500_v49  ;;  %v365_v54 = vld [vmem:[%s7249_s1 + $0xa68] sm:$0xff]  ;;  %v364_v56 = vld [vmem:[%s7249_s1 + $0xa60] sm:$0xff] }
  0x7b   :  { %v493_v55 = vld [vmem:[%s7249_s1 + $0xe68] sm:$0xff]  ;;  %1276 = vmatprep.subr.mxu0 %v369_v50  ;;  %1347 = vmatprep.subr.mxu1 %v497_v51  ;;  %v492_v57 = vld [vmem:[%s7249_s1 + $0xe60] sm:$0xff] }
  0x7c   :  { %1277 = vmatpush2.msra.mxu0 %v368_v52  ;;  %1348 = vmatpush2.msra.mxu1 %v496_v53  ;;  %v361_v58 = vld [vmem:[%s7249_s1 + $0xa48] sm:$0xff]  ;;  %v360_v60 = vld [vmem:[%s7249_s1 + $0xa40] sm:$0xff] }
  0x7d   :  { %v489_v59 = vld [vmem:[%s7249_s1 + $0xe48] sm:$0xff]  ;;  %1278 = vmatprep.subr.mxu0 %v365_v54  ;;  %1349 = vmatprep.subr.mxu1 %v493_v55  ;;  %v488_v61 = vld [vmem:[%s7249_s1 + $0xe40] sm:$0xff] }
  0x7e   :  { %1279 = vmatpush2.msra.mxu0 %v364_v56  ;;  %1350 = vmatpush2.msra.mxu1 %v492_v57  ;;  %v357_v63 = vld [vmem:[%s7249_s1 + $0xa28] sm:$0xff]  ;;  %v356_v3 = vld [vmem:[%s7249_s1 + $0xa20] sm:$0xff] }
  0x7f   :  { %v485_v1 = vld [vmem:[%s7249_s1 + $0xe28] sm:$0xff]  ;;  %1280 = vmatprep.subr.mxu0 %v361_v58  ;;  %1351 = vmatprep.subr.mxu1 %v489_v59  ;;  %v484_v4 = vld [vmem:[%s7249_s1 + $0xe20] sm:$0xff] }
  0x80   :  { %1281 = vmatpush2.msra.mxu0 %v360_v60  ;;  %1352 = vmatpush2.msra.mxu1 %v488_v61  ;;  %v353_v6 = vld [vmem:[%s7249_s1 + $0xa08] sm:$0xff]  ;;  %v352_v9 = vld [vmem:[%s7249_s1 + $0xa00] sm:$0xff] }
  0x81   :  { %v481_v7 = vld [vmem:[%s7249_s1 + $0xe08] sm:$0xff]  ;;  %1282 = vmatprep.subr.mxu0 %v357_v63  ;;  %1353 = vmatprep.subr.mxu1 %v485_v1  ;;  %v480_v10 = vld [vmem:[%s7249_s1 + $0xe00] sm:$0xff] }
  0x82   :  { %1283 = vmatpush2.msra.mxu0 %v356_v3  ;;  %1354 = vmatpush2.msra.mxu1 %v484_v4  ;;  %v605_v12 = vld [vmem:[%s7249_s1 + $0x11e8] sm:$0xff]  ;;  %v604_v14 = vld [vmem:[%s7249_s1 + $0x11e0] sm:$0xff] }
  0x83   :  { %1284 = vmatprep.subr.mxu0 %v353_v6  ;;  %1355 = vmatprep.subr.mxu1 %v481_v7  ;;  %v733_v13 = vld [vmem:[%s7249_s1 + $0x15e8] sm:$0xff]  ;;  %v732_v15 = vld [vmem:[%s7249_s1 + $0x15e0] sm:$0xff] }
  0x84   :  { %1285 = vmatpush2.msra.mxu0 %v352_v9  ;;  %1286 = vmatprep.mubr.f32.mxu0 %v4153_v8  ;;  %v601_v16 = vld [vmem:[%s7249_s1 + $0x11c8] sm:$0xff]  ;;  %v600_v18 = vld [vmem:[%s7249_s1 + $0x11c0] sm:$0xff] }
  0x85   :  { %1356 = vmatpush2.msra.mxu1 %v480_v10  ;;  %1287 = vmatmul.mubr.f32.vlgmr.msra.gmra.mxu0 %v26_v62  ;;  %v729_v17 = vld [vmem:[%s7249_s1 + $0x15c8] sm:$0xff]  ;;  %v728_v19 = vld [vmem:[%s7249_s1 + $0x15c0] sm:$0xff] }
  0x86   :  { %1357 = vmatprep.mubr.f32.mxu1 %v4161_v11  ;;  %1364 = vmatprep.subr.mxu0 %v605_v12  ;;  %v597_v20 = vld [vmem:[%s7249_s1 + $0x11a8] sm:$0xff]  ;;  %v596_v22 = vld [vmem:[%s7249_s1 + $0x11a0] sm:$0xff] }
  0x87   :  { %1435 = vmatprep.subr.mxu1 %v733_v13  ;;  %1358 = vmatmul.mubr.f32.vlgmr.msra.gmra.mxu1 %v27_v5  ;;  %v725_v21 = vld [vmem:[%s7249_s1 + $0x15a8] sm:$0xff]  ;;  %v724_v23 = vld [vmem:[%s7249_s1 + $0x15a0] sm:$0xff] }
  0x88   :  { %1365 = vmatpush1.msra.mxu0 %v604_v14  ;;  %1436 = vmatpush1.msra.mxu1 %v732_v15  ;;  %v593_v24 = vld [vmem:[%s7249_s1 + $0x1188] sm:$0xff]  ;;  %v592_v26 = vld [vmem:[%s7249_s1 + $0x1180] sm:$0xff] }
  0x89   :  { %1366 = vmatprep.subr.mxu0 %v601_v16  ;;  %1437 = vmatprep.subr.mxu1 %v729_v17  ;;  %v721_v25 = vld [vmem:[%s7249_s1 + $0x1588] sm:$0xff]  ;;  %v720_v27 = vld [vmem:[%s7249_s1 + $0x1580] sm:$0xff] }
  0x8a   :  { %1367 = vmatpush1.msra.mxu0 %v600_v18  ;;  %1438 = vmatpush1.msra.mxu1 %v728_v19  ;;  %v589_v28 = vld [vmem:[%s7249_s1 + $0x1168] sm:$0xff]  ;;  %v588_v30 = vld [vmem:[%s7249_s1 + $0x1160] sm:$0xff] }
  0x8b   :  { %1368 = vmatprep.subr.mxu0 %v597_v20  ;;  %1439 = vmatprep.subr.mxu1 %v725_v21  ;;  %v717_v29 = vld [vmem:[%s7249_s1 + $0x1568] sm:$0xff]  ;;  %v716_v31 = vld [vmem:[%s7249_s1 + $0x1560] sm:$0xff] }
  0x8c   :  { %1369 = vmatpush1.msra.mxu0 %v596_v22  ;;  %1440 = vmatpush1.msra.mxu1 %v724_v23  ;;  %v585_v32 = vld [vmem:[%s7249_s1 + $0x1148] sm:$0xff]  ;;  %v584_v34 = vld [vmem:[%s7249_s1 + $0x1140] sm:$0xff] }
  0x8d   :  { %1370 = vmatprep.subr.mxu0 %v593_v24  ;;  %1441 = vmatprep.subr.mxu1 %v721_v25  ;;  %v713_v33 = vld [vmem:[%s7249_s1 + $0x1548] sm:$0xff]  ;;  %v712_v35 = vld [vmem:[%s7249_s1 + $0x1540] sm:$0xff] }
  0x8e   :  { %1371 = vmatpush1.msra.mxu0 %v592_v26  ;;  %1442 = vmatpush1.msra.mxu1 %v720_v27  ;;  %v581_v36 = vld [vmem:[%s7249_s1 + $0x1128] sm:$0xff]  ;;  %v580_v38 = vld [vmem:[%s7249_s1 + $0x1120] sm:$0xff] }
  0x8f   :  { %1372 = vmatprep.subr.mxu0 %v589_v28  ;;  %1443 = vmatprep.subr.mxu1 %v717_v29  ;;  %v709_v37 = vld [vmem:[%s7249_s1 + $0x1528] sm:$0xff]  ;;  %v708_v39 = vld [vmem:[%s7249_s1 + $0x1520] sm:$0xff] }
  0x90   :  { %1373 = vmatpush1.msra.mxu0 %v588_v30  ;;  %1444 = vmatpush1.msra.mxu1 %v716_v31  ;;  %v577_v40 = vld [vmem:[%s7249_s1 + $0x1108] sm:$0xff]  ;;  %v576_v42 = vld [vmem:[%s7249_s1 + $0x1100] sm:$0xff] }
  0x91   :  { %1374 = vmatprep.subr.mxu0 %v585_v32  ;;  %1445 = vmatprep.subr.mxu1 %v713_v33  ;;  %v705_v41 = vld [vmem:[%s7249_s1 + $0x1508] sm:$0xff]  ;;  %v704_v43 = vld [vmem:[%s7249_s1 + $0x1500] sm:$0xff] }
  0x92   :  { %1375 = vmatpush1.msra.mxu0 %v584_v34  ;;  %1446 = vmatpush1.msra.mxu1 %v712_v35  ;;  %v573_v44 = vld [vmem:[%s7249_s1 + $0x10e8] sm:$0xff]  ;;  %v572_v46 = vld [vmem:[%s7249_s1 + $0x10e0] sm:$0xff] }
  0x93   :  { %1376 = vmatprep.subr.mxu0 %v581_v36  ;;  %1447 = vmatprep.subr.mxu1 %v709_v37  ;;  %v701_v45 = vld [vmem:[%s7249_s1 + $0x14e8] sm:$0xff]  ;;  %v700_v47 = vld [vmem:[%s7249_s1 + $0x14e0] sm:$0xff] }
  0x94   :  { %1377 = vmatpush1.msra.mxu0 %v580_v38  ;;  %1448 = vmatpush1.msra.mxu1 %v708_v39  ;;  %v569_v48 = vld [vmem:[%s7249_s1 + $0x10c8] sm:$0xff]  ;;  %v568_v50 = vld [vmem:[%s7249_s1 + $0x10c0] sm:$0xff] }
  0x95   :  { %1378 = vmatprep.subr.mxu0 %v577_v40  ;;  %1449 = vmatprep.subr.mxu1 %v705_v41  ;;  %v697_v49 = vld [vmem:[%s7249_s1 + $0x14c8] sm:$0xff]  ;;  %v696_v51 = vld [vmem:[%s7249_s1 + $0x14c0] sm:$0xff] }
  0x96   :  { %1379 = vmatpush1.msra.mxu0 %v576_v42  ;;  %1450 = vmatpush1.msra.mxu1 %v704_v43  ;;  %v565_v52 = vld [vmem:[%s7249_s1 + $0x10a8] sm:$0xff]  ;;  %v564_v54 = vld [vmem:[%s7249_s1 + $0x10a0] sm:$0xff] }
  0x97   :  { %1380 = vmatprep.subr.mxu0 %v573_v44  ;;  %1451 = vmatprep.subr.mxu1 %v701_v45  ;;  %v693_v53 = vld [vmem:[%s7249_s1 + $0x14a8] sm:$0xff]  ;;  %v692_v55 = vld [vmem:[%s7249_s1 + $0x14a0] sm:$0xff] }
  0x98   :  { %1381 = vmatpush1.msra.mxu0 %v572_v46  ;;  %1452 = vmatpush1.msra.mxu1 %v700_v47  ;;  %v561_v56 = vld [vmem:[%s7249_s1 + $0x1088] sm:$0xff]  ;;  %v560_v58 = vld [vmem:[%s7249_s1 + $0x1080] sm:$0xff] }
  0x99   :  { %1382 = vmatprep.subr.mxu0 %v569_v48  ;;  %1453 = vmatprep.subr.mxu1 %v697_v49  ;;  %v689_v57 = vld [vmem:[%s7249_s1 + $0x1488] sm:$0xff]  ;;  %v688_v59 = vld [vmem:[%s7249_s1 + $0x1480] sm:$0xff] }
  0x9a   :  { %1383 = vmatpush1.msra.mxu0 %v568_v50  ;;  %1454 = vmatpush1.msra.mxu1 %v696_v51  ;;  %v557_v60 = vld [vmem:[%s7249_s1 + $0x1068] sm:$0xff]  ;;  %v556_v62 = vld [vmem:[%s7249_s1 + $0x1060] sm:$0xff] }
  0x9b   :  { %1384 = vmatprep.subr.mxu0 %v565_v52  ;;  %1455 = vmatprep.subr.mxu1 %v693_v53  ;;  %v685_v61 = vld [vmem:[%s7249_s1 + $0x1468] sm:$0xff]  ;;  %v684_v63 = vld [vmem:[%s7249_s1 + $0x1460] sm:$0xff] }
  0x9c   :  { %1385 = vmatpush1.msra.mxu0 %v564_v54  ;;  %1456 = vmatpush1.msra.mxu1 %v692_v55  ;;  %v553_v1 = vld [vmem:[%s7249_s1 + $0x1048] sm:$0xff]  ;;  %v552_v4 = vld [vmem:[%s7249_s1 + $0x1040] sm:$0xff] }
  0x9d   :  { %1386 = vmatprep.subr.mxu0 %v561_v56  ;;  %1457 = vmatprep.subr.mxu1 %v689_v57  ;;  %v681_v3 = vld [vmem:[%s7249_s1 + $0x1448] sm:$0xff]  ;;  %v680_v5 = vld [vmem:[%s7249_s1 + $0x1440] sm:$0xff] }
  0x9e   :  { %1387 = vmatpush1.msra.mxu0 %v560_v58  ;;  %1458 = vmatpush1.msra.mxu1 %v688_v59  ;;  %v549_v6 = vld [vmem:[%s7249_s1 + $0x1028] sm:$0xff]  ;;  %v548_v9 = vld [vmem:[%s7249_s1 + $0x1020] sm:$0xff] }
  0x9f   :  { %1388 = vmatprep.subr.mxu0 %v557_v60  ;;  %1459 = vmatprep.subr.mxu1 %v685_v61  ;;  %v677_v7 = vld [vmem:[%s7249_s1 + $0x1428] sm:$0xff]  ;;  %v676_v10 = vld [vmem:[%s7249_s1 + $0x1420] sm:$0xff] }
  0xa0   :  { %1389 = vmatpush1.msra.mxu0 %v556_v62  ;;  %1460 = vmatpush1.msra.mxu1 %v684_v63  ;;  %v545_v12 = vld [vmem:[%s7249_s1 + $0x1008] sm:$0xff]  ;;  %v544_v14 = vld [vmem:[%s7249_s1 + $0x1000] sm:$0xff] }
  0xa1   :  { %1390 = vmatprep.subr.mxu0 %v553_v1  ;;  %1461 = vmatprep.subr.mxu1 %v681_v3  ;;  %v673_v13 = vld [vmem:[%s7249_s1 + $0x1408] sm:$0xff]  ;;  %v672_v15 = vld [vmem:[%s7249_s1 + $0x1400] sm:$0xff] }
  0xa2   :  { %1391 = vmatpush1.msra.mxu0 %v552_v4  ;;  %1462 = vmatpush1.msra.mxu1 %v680_v5  ;;  %v669_v16 = vld [vmem:[%s7249_s1 + $0x13e8] sm:$0xff]  ;;  %v668_v18 = vld [vmem:[%s7249_s1 + $0x13e0] sm:$0xff] }
  0xa3   :  { %1392 = vmatprep.subr.mxu0 %v549_v6  ;;  %1463 = vmatprep.subr.mxu1 %v677_v7  ;;  %v797_v17 = vld [vmem:[%s7249_s1 + $0x17e8] sm:$0xff]  ;;  %v796_v19 = vld [vmem:[%s7249_s1 + $0x17e0] sm:$0xff] }
  0xa4   :  { %1393 = vmatpush1.msra.mxu0 %v548_v9  ;;  %1464 = vmatpush1.msra.mxu1 %v676_v10  ;;  %v665_v20 = vld [vmem:[%s7249_s1 + $0x13c8] sm:$0xff]  ;;  %v664_v22 = vld [vmem:[%s7249_s1 + $0x13c0] sm:$0xff] }
  0xa5   :  { %1394 = vmatprep.subr.mxu0 %v545_v12  ;;  %1465 = vmatprep.subr.mxu1 %v673_v13  ;;  %v793_v21 = vld [vmem:[%s7249_s1 + $0x17c8] sm:$0xff]  ;;  %v792_v23 = vld [vmem:[%s7249_s1 + $0x17c0] sm:$0xff] }
  0xa6   :  { %1395 = vmatpush1.msra.mxu0 %v544_v14  ;;  %1466 = vmatpush1.msra.mxu1 %v672_v15  ;;  %v661_v24 = vld [vmem:[%s7249_s1 + $0x13a8] sm:$0xff]  ;;  %v660_v26 = vld [vmem:[%s7249_s1 + $0x13a0] sm:$0xff] }
  0xa7   :  { %1396 = vmatprep.subr.mxu0 %v669_v16  ;;  %1467 = vmatprep.subr.mxu1 %v797_v17  ;;  %v789_v25 = vld [vmem:[%s7249_s1 + $0x17a8] sm:$0xff]  ;;  %v788_v27 = vld [vmem:[%s7249_s1 + $0x17a0] sm:$0xff] }
  0xa8   :  { %1397 = vmatpush2.msra.mxu0 %v668_v18  ;;  %1468 = vmatpush2.msra.mxu1 %v796_v19  ;;  %v657_v28 = vld [vmem:[%s7249_s1 + $0x1388] sm:$0xff]  ;;  %v656_v30 = vld [vmem:[%s7249_s1 + $0x1380] sm:$0xff] }
  0xa9   :  { %1398 = vmatprep.subr.mxu0 %v665_v20  ;;  %1469 = vmatprep.subr.mxu1 %v793_v21  ;;  %v785_v29 = vld [vmem:[%s7249_s1 + $0x1788] sm:$0xff]  ;;  %v784_v31 = vld [vmem:[%s7249_s1 + $0x1780] sm:$0xff] }
  0xaa   :  { %1399 = vmatpush2.msra.mxu0 %v664_v22  ;;  %1470 = vmatpush2.msra.mxu1 %v792_v23  ;;  %v653_v32 = vld [vmem:[%s7249_s1 + $0x1368] sm:$0xff]  ;;  %v652_v34 = vld [vmem:[%s7249_s1 + $0x1360] sm:$0xff] }
  0xab   :  { %1400 = vmatprep.subr.mxu0 %v661_v24  ;;  %1471 = vmatprep.subr.mxu1 %v789_v25  ;;  %v781_v33 = vld [vmem:[%s7249_s1 + $0x1768] sm:$0xff]  ;;  %v780_v35 = vld [vmem:[%s7249_s1 + $0x1760] sm:$0xff] }
  0xac   :  { %1401 = vmatpush2.msra.mxu0 %v660_v26  ;;  %1472 = vmatpush2.msra.mxu1 %v788_v27  ;;  %v649_v36 = vld [vmem:[%s7249_s1 + $0x1348] sm:$0xff]  ;;  %v648_v38 = vld [vmem:[%s7249_s1 + $0x1340] sm:$0xff] }
  0xad   :  { %1402 = vmatprep.subr.mxu0 %v657_v28  ;;  %1473 = vmatprep.subr.mxu1 %v785_v29  ;;  %v777_v37 = vld [vmem:[%s7249_s1 + $0x1748] sm:$0xff]  ;;  %v776_v39 = vld [vmem:[%s7249_s1 + $0x1740] sm:$0xff] }
  0xae   :  { %1403 = vmatpush2.msra.mxu0 %v656_v30  ;;  %1474 = vmatpush2.msra.mxu1 %v784_v31  ;;  %v645_v40 = vld [vmem:[%s7249_s1 + $0x1328] sm:$0xff]  ;;  %v644_v42 = vld [vmem:[%s7249_s1 + $0x1320] sm:$0xff] }
  0xaf   :  { %1404 = vmatprep.subr.mxu0 %v653_v32  ;;  %1475 = vmatprep.subr.mxu1 %v781_v33  ;;  %v773_v41 = vld [vmem:[%s7249_s1 + $0x1728] sm:$0xff]  ;;  %v772_v43 = vld [vmem:[%s7249_s1 + $0x1720] sm:$0xff] }
  0xb0   :  { %1405 = vmatpush2.msra.mxu0 %v652_v34  ;;  %1476 = vmatpush2.msra.mxu1 %v780_v35  ;;  %v641_v44 = vld [vmem:[%s7249_s1 + $0x1308] sm:$0xff]  ;;  %v640_v46 = vld [vmem:[%s7249_s1 + $0x1300] sm:$0xff] }
  0xb1   :  { %1406 = vmatprep.subr.mxu0 %v649_v36  ;;  %1477 = vmatprep.subr.mxu1 %v777_v37  ;;  %v769_v45 = vld [vmem:[%s7249_s1 + $0x1708] sm:$0xff]  ;;  %v768_v47 = vld [vmem:[%s7249_s1 + $0x1700] sm:$0xff] }
  0xb2   :  { %1407 = vmatpush2.msra.mxu0 %v648_v38  ;;  %1478 = vmatpush2.msra.mxu1 %v776_v39  ;;  %v637_v48 = vld [vmem:[%s7249_s1 + $0x12e8] sm:$0xff]  ;;  %v636_v50 = vld [vmem:[%s7249_s1 + $0x12e0] sm:$0xff] }
  0xb3   :  { %1408 = vmatprep.subr.mxu0 %v645_v40  ;;  %1479 = vmatprep.subr.mxu1 %v773_v41  ;;  %v765_v49 = vld [vmem:[%s7249_s1 + $0x16e8] sm:$0xff]  ;;  %v764_v51 = vld [vmem:[%s7249_s1 + $0x16e0] sm:$0xff] }
  0xb4   :  { %1409 = vmatpush2.msra.mxu0 %v644_v42  ;;  %1480 = vmatpush2.msra.mxu1 %v772_v43  ;;  %v633_v52 = vld [vmem:[%s7249_s1 + $0x12c8] sm:$0xff]  ;;  %v632_v54 = vld [vmem:[%s7249_s1 + $0x12c0] sm:$0xff] }
  0xb5   :  { %1410 = vmatprep.subr.mxu0 %v641_v44  ;;  %1481 = vmatprep.subr.mxu1 %v769_v45  ;;  %v761_v53 = vld [vmem:[%s7249_s1 + $0x16c8] sm:$0xff]  ;;  %v760_v55 = vld [vmem:[%s7249_s1 + $0x16c0] sm:$0xff] }
  0xb6   :  { %1411 = vmatpush2.msra.mxu0 %v640_v46  ;;  %1482 = vmatpush2.msra.mxu1 %v768_v47  ;;  %v629_v56 = vld [vmem:[%s7249_s1 + $0x12a8] sm:$0xff]  ;;  %v628_v58 = vld [vmem:[%s7249_s1 + $0x12a0] sm:$0xff] }
  0xb7   :  { %1412 = vmatprep.subr.mxu0 %v637_v48  ;;  %1483 = vmatprep.subr.mxu1 %v765_v49  ;;  %v757_v57 = vld [vmem:[%s7249_s1 + $0x16a8] sm:$0xff]  ;;  %v756_v59 = vld [vmem:[%s7249_s1 + $0x16a0] sm:$0xff] }
  0xb8   :  { %1413 = vmatpush2.msra.mxu0 %v636_v50  ;;  %1484 = vmatpush2.msra.mxu1 %v764_v51  ;;  %v625_v60 = vld [vmem:[%s7249_s1 + $0x1288] sm:$0xff]  ;;  %v624_v62 = vld [vmem:[%s7249_s1 + $0x1280] sm:$0xff] }
  0xb9   :  { %1414 = vmatprep.subr.mxu0 %v633_v52  ;;  %1485 = vmatprep.subr.mxu1 %v761_v53  ;;  %v753_v61 = vld [vmem:[%s7249_s1 + $0x1688] sm:$0xff]  ;;  %v752_v63 = vld [vmem:[%s7249_s1 + $0x1680] sm:$0xff] }
  0xba   :  { %1415 = vmatpush2.msra.mxu0 %v632_v54  ;;  %1486 = vmatpush2.msra.mxu1 %v760_v55  ;;  %v621_v1 = vld [vmem:[%s7249_s1 + $0x1268] sm:$0xff]  ;;  %v620_v4 = vld [vmem:[%s7249_s1 + $0x1260] sm:$0xff] }
  0xbb   :  { %1416 = vmatprep.subr.mxu0 %v629_v56  ;;  %1487 = vmatprep.subr.mxu1 %v757_v57  ;;  %v749_v3 = vld [vmem:[%s7249_s1 + $0x1668] sm:$0xff]  ;;  %v748_v5 = vld [vmem:[%s7249_s1 + $0x1660] sm:$0xff] }
  0xbc   :  { %1417 = vmatpush2.msra.mxu0 %v628_v58  ;;  %1488 = vmatpush2.msra.mxu1 %v756_v59  ;;  %v617_v6 = vld [vmem:[%s7249_s1 + $0x1248] sm:$0xff]  ;;  %v616_v9 = vld [vmem:[%s7249_s1 + $0x1240] sm:$0xff] }
  0xbd   :  { %1418 = vmatprep.subr.mxu0 %v625_v60  ;;  %1489 = vmatprep.subr.mxu1 %v753_v61  ;;  %v745_v7 = vld [vmem:[%s7249_s1 + $0x1648] sm:$0xff]  ;;  %v744_v10 = vld [vmem:[%s7249_s1 + $0x1640] sm:$0xff] }
  0xbe   :  { %1419 = vmatpush2.msra.mxu0 %v624_v62  ;;  %1490 = vmatpush2.msra.mxu1 %v752_v63  ;;  %v28_v12 = vld [vmem:[%s7248_s0 + $0x20] sm:$0xff]  ;;  %v613_v13 = vld [vmem:[%s7249_s1 + $0x1228] sm:$0xff] }
  0xbf   :  { %1420 = vmatprep.subr.mxu0 %v621_v1  ;;  %1491 = vmatprep.subr.mxu1 %v749_v3  ;;  %v741_v14 = vld [vmem:[%s7249_s1 + $0x1628] sm:$0xff]  ;;  %v612_v15 = vld [vmem:[%s7249_s1 + $0x1220] sm:$0xff]  ;;  %v4549_v20 = vcombine.high %v28_v12, %v28_v12 }
  0xc0   :  { %1421 = vmatpush2.msra.mxu0 %v620_v4  ;;  %1492 = vmatpush2.msra.mxu1 %v748_v5  ;;  %v740_v16 = vld [vmem:[%s7249_s1 + $0x1620] sm:$0xff]  ;;  %v29_v17 = vld [vmem:[%s7248_s0 + $0x28] sm:$0xff] }
  0xc1   :  { %1422 = vmatprep.subr.mxu0 %v617_v6  ;;  %1493 = vmatprep.subr.mxu1 %v745_v7  ;;  %v609_v18 = vld [vmem:[%s7249_s1 + $0x1208] sm:$0xff]  ;;  %v608_v21 = vld [vmem:[%s7249_s1 + $0x1200] sm:$0xff]  ;;  %v4557_v23 = vcombine.high %v29_v17, %v29_v17 }
  0xc2   :  { %1423 = vmatpush2.msra.mxu0 %v616_v9  ;;  %1494 = vmatpush2.msra.mxu1 %v744_v10  ;;  %v737_v19 = vld [vmem:[%s7249_s1 + $0x1608] sm:$0xff]  ;;  %v736_v22 = vld [vmem:[%s7249_s1 + $0x1600] sm:$0xff] }
  0xc3   :  { %1424 = vmatprep.subr.mxu0 %v613_v13  ;;  %1495 = vmatprep.subr.mxu1 %v741_v14  ;;  %v861_v24 = vld [vmem:[%s7249_s1 + $0x19e8] sm:$0xff]  ;;  %v860_v26 = vld [vmem:[%s7249_s1 + $0x19e0] sm:$0xff] }
  0xc4   :  { %1425 = vmatpush2.msra.mxu0 %v612_v15  ;;  %1496 = vmatpush2.msra.mxu1 %v740_v16  ;;  %v989_v25 = vld [vmem:[%s7249_s1 + $0x1de8] sm:$0xff]  ;;  %v988_v27 = vld [vmem:[%s7249_s1 + $0x1de0] sm:$0xff] }
  0xc5   :  { %1426 = vmatprep.subr.mxu0 %v609_v18  ;;  %1497 = vmatprep.subr.mxu1 %v737_v19  ;;  %v857_v28 = vld [vmem:[%s7249_s1 + $0x19c8] sm:$0xff]  ;;  %v856_v30 = vld [vmem:[%s7249_s1 + $0x19c0] sm:$0xff] }
  0xc6   :  { %1427 = vmatpush2.msra.mxu0 %v608_v21  ;;  %1428 = vmatprep.mubr.f32.mxu0 %v4549_v20  ;;  %v985_v29 = vld [vmem:[%s7249_s1 + $0x1dc8] sm:$0xff]  ;;  %v984_v31 = vld [vmem:[%s7249_s1 + $0x1dc0] sm:$0xff] }
  0xc7   :  { %1498 = vmatpush2.msra.mxu1 %v736_v22  ;;  %1429 = vmatmul.mubr.f32.vlgmr.msra.gmra.mxu0 %v28_v12  ;;  %v853_v32 = vld [vmem:[%s7249_s1 + $0x19a8] sm:$0xff]  ;;  %v852_v34 = vld [vmem:[%s7249_s1 + $0x19a0] sm:$0xff] }
  0xc8   :  { %1499 = vmatprep.mubr.f32.mxu1 %v4557_v23  ;;  %1506 = vmatprep.subr.mxu0 %v861_v24  ;;  %v981_v33 = vld [vmem:[%s7249_s1 + $0x1da8] sm:$0xff]  ;;  %v980_v35 = vld [vmem:[%s7249_s1 + $0x1da0] sm:$0xff] }
  0xc9   :  { %1577 = vmatprep.subr.mxu1 %v989_v25  ;;  %1500 = vmatmul.mubr.f32.vlgmr.msra.gmra.mxu1 %v29_v17  ;;  %v849_v36 = vld [vmem:[%s7249_s1 + $0x1988] sm:$0xff]  ;;  %v848_v38 = vld [vmem:[%s7249_s1 + $0x1980] sm:$0xff] }
  0xca   :  { %1507 = vmatpush1.msra.mxu0 %v860_v26  ;;  %1578 = vmatpush1.msra.mxu1 %v988_v27  ;;  %v977_v37 = vld [vmem:[%s7249_s1 + $0x1d88] sm:$0xff]  ;;  %v976_v39 = vld [vmem:[%s7249_s1 + $0x1d80] sm:$0xff] }
  0xcb   :  { %1508 = vmatprep.subr.mxu0 %v857_v28  ;;  %1579 = vmatprep.subr.mxu1 %v985_v29  ;;  %v845_v40 = vld [vmem:[%s7249_s1 + $0x1968] sm:$0xff]  ;;  %v844_v42 = vld [vmem:[%s7249_s1 + $0x1960] sm:$0xff] }
  0xcc   :  { %1509 = vmatpush1.msra.mxu0 %v856_v30  ;;  %1580 = vmatpush1.msra.mxu1 %v984_v31  ;;  %v973_v41 = vld [vmem:[%s7249_s1 + $0x1d68] sm:$0xff]  ;;  %v972_v43 = vld [vmem:[%s7249_s1 + $0x1d60] sm:$0xff] }
  0xcd   :  { %1510 = vmatprep.subr.mxu0 %v853_v32  ;;  %1581 = vmatprep.subr.mxu1 %v981_v33  ;;  %v841_v44 = vld [vmem:[%s7249_s1 + $0x1948] sm:$0xff]  ;;  %v840_v46 = vld [vmem:[%s7249_s1 + $0x1940] sm:$0xff] }
  0xce   :  { %1511 = vmatpush1.msra.mxu0 %v852_v34  ;;  %1582 = vmatpush1.msra.mxu1 %v980_v35  ;;  %v969_v45 = vld [vmem:[%s7249_s1 + $0x1d48] sm:$0xff]  ;;  %v968_v47 = vld [vmem:[%s7249_s1 + $0x1d40] sm:$0xff] }
  0xcf   :  { %1512 = vmatprep.subr.mxu0 %v849_v36  ;;  %1583 = vmatprep.subr.mxu1 %v977_v37  ;;  %v837_v48 = vld [vmem:[%s7249_s1 + $0x1928] sm:$0xff]  ;;  %v836_v50 = vld [vmem:[%s7249_s1 + $0x1920] sm:$0xff] }
  0xd0   :  { %1513 = vmatpush1.msra.mxu0 %v848_v38  ;;  %1584 = vmatpush1.msra.mxu1 %v976_v39  ;;  %v965_v49 = vld [vmem:[%s7249_s1 + $0x1d28] sm:$0xff]  ;;  %v964_v51 = vld [vmem:[%s7249_s1 + $0x1d20] sm:$0xff] }
  0xd1   :  { %1514 = vmatprep.subr.mxu0 %v845_v40  ;;  %1585 = vmatprep.subr.mxu1 %v973_v41  ;;  %v833_v52 = vld [vmem:[%s7249_s1 + $0x1908] sm:$0xff]  ;;  %v832_v54 = vld [vmem:[%s7249_s1 + $0x1900] sm:$0xff] }
  0xd2   :  { %1515 = vmatpush1.msra.mxu0 %v844_v42  ;;  %1586 = vmatpush1.msra.mxu1 %v972_v43  ;;  %v961_v53 = vld [vmem:[%s7249_s1 + $0x1d08] sm:$0xff]  ;;  %v960_v55 = vld [vmem:[%s7249_s1 + $0x1d00] sm:$0xff] }
  0xd3   :  { %1516 = vmatprep.subr.mxu0 %v841_v44  ;;  %1587 = vmatprep.subr.mxu1 %v969_v45  ;;  %v829_v56 = vld [vmem:[%s7249_s1 + $0x18e8] sm:$0xff]  ;;  %v828_v58 = vld [vmem:[%s7249_s1 + $0x18e0] sm:$0xff] }
  0xd4   :  { %1517 = vmatpush1.msra.mxu0 %v840_v46  ;;  %1588 = vmatpush1.msra.mxu1 %v968_v47  ;;  %v957_v57 = vld [vmem:[%s7249_s1 + $0x1ce8] sm:$0xff]  ;;  %v956_v59 = vld [vmem:[%s7249_s1 + $0x1ce0] sm:$0xff] }
  0xd5   :  { %1518 = vmatprep.subr.mxu0 %v837_v48  ;;  %1589 = vmatprep.subr.mxu1 %v965_v49  ;;  %v825_v60 = vld [vmem:[%s7249_s1 + $0x18c8] sm:$0xff]  ;;  %v824_v62 = vld [vmem:[%s7249_s1 + $0x18c0] sm:$0xff] }
  0xd6   :  { %1519 = vmatpush1.msra.mxu0 %v836_v50  ;;  %1590 = vmatpush1.msra.mxu1 %v964_v51  ;;  %v953_v61 = vld [vmem:[%s7249_s1 + $0x1cc8] sm:$0xff]  ;;  %v952_v63 = vld [vmem:[%s7249_s1 + $0x1cc0] sm:$0xff] }
  0xd7   :  { %1520 = vmatprep.subr.mxu0 %v833_v52  ;;  %1591 = vmatprep.subr.mxu1 %v961_v53  ;;  %v821_v1 = vld [vmem:[%s7249_s1 + $0x18a8] sm:$0xff]  ;;  %v820_v4 = vld [vmem:[%s7249_s1 + $0x18a0] sm:$0xff] }
  0xd8   :  { %1521 = vmatpush1.msra.mxu0 %v832_v54  ;;  %1592 = vmatpush1.msra.mxu1 %v960_v55  ;;  %v949_v3 = vld [vmem:[%s7249_s1 + $0x1ca8] sm:$0xff]  ;;  %v948_v5 = vld [vmem:[%s7249_s1 + $0x1ca0] sm:$0xff] }
  0xd9   :  { %1522 = vmatprep.subr.mxu0 %v829_v56  ;;  %1593 = vmatprep.subr.mxu1 %v957_v57  ;;  %v817_v6 = vld [vmem:[%s7249_s1 + $0x1888] sm:$0xff]  ;;  %v816_v9 = vld [vmem:[%s7249_s1 + $0x1880] sm:$0xff] }
  0xda   :  { %1523 = vmatpush1.msra.mxu0 %v828_v58  ;;  %1594 = vmatpush1.msra.mxu1 %v956_v59  ;;  %v945_v7 = vld [vmem:[%s7249_s1 + $0x1c88] sm:$0xff]  ;;  %v944_v10 = vld [vmem:[%s7249_s1 + $0x1c80] sm:$0xff] }
  0xdb   :  { %1524 = vmatprep.subr.mxu0 %v825_v60  ;;  %1595 = vmatprep.subr.mxu1 %v953_v61  ;;  %v813_v12 = vld [vmem:[%s7249_s1 + $0x1868] sm:$0xff]  ;;  %v812_v14 = vld [vmem:[%s7249_s1 + $0x1860] sm:$0xff] }
  0xdc   :  { %1525 = vmatpush1.msra.mxu0 %v824_v62  ;;  %1596 = vmatpush1.msra.mxu1 %v952_v63  ;;  %v941_v13 = vld [vmem:[%s7249_s1 + $0x1c68] sm:$0xff]  ;;  %v940_v15 = vld [vmem:[%s7249_s1 + $0x1c60] sm:$0xff] }
  0xdd   :  { %1526 = vmatprep.subr.mxu0 %v821_v1  ;;  %1597 = vmatprep.subr.mxu1 %v949_v3  ;;  %v809_v16 = vld [vmem:[%s7249_s1 + $0x1848] sm:$0xff]  ;;  %v808_v18 = vld [vmem:[%s7249_s1 + $0x1840] sm:$0xff] }
  0xde   :  { %1527 = vmatpush1.msra.mxu0 %v820_v4  ;;  %1598 = vmatpush1.msra.mxu1 %v948_v5  ;;  %v937_v17 = vld [vmem:[%s7249_s1 + $0x1c48] sm:$0xff]  ;;  %v936_v19 = vld [vmem:[%s7249_s1 + $0x1c40] sm:$0xff] }
  0xdf   :  { %1528 = vmatprep.subr.mxu0 %v817_v6  ;;  %1599 = vmatprep.subr.mxu1 %v945_v7  ;;  %v805_v21 = vld [vmem:[%s7249_s1 + $0x1828] sm:$0xff]  ;;  %v804_v24 = vld [vmem:[%s7249_s1 + $0x1820] sm:$0xff] }
  0xe0   :  { %1529 = vmatpush1.msra.mxu0 %v816_v9  ;;  %1600 = vmatpush1.msra.mxu1 %v944_v10  ;;  %v933_v22 = vld [vmem:[%s7249_s1 + $0x1c28] sm:$0xff]  ;;  %v932_v25 = vld [vmem:[%s7249_s1 + $0x1c20] sm:$0xff] }
  0xe1   :  { %1530 = vmatprep.subr.mxu0 %v813_v12  ;;  %1601 = vmatprep.subr.mxu1 %v941_v13  ;;  %v801_v26 = vld [vmem:[%s7249_s1 + $0x1808] sm:$0xff]  ;;  %v800_v28 = vld [vmem:[%s7249_s1 + $0x1800] sm:$0xff] }
  0xe2   :  { %1531 = vmatpush1.msra.mxu0 %v812_v14  ;;  %1602 = vmatpush1.msra.mxu1 %v940_v15  ;;  %v929_v27 = vld [vmem:[%s7249_s1 + $0x1c08] sm:$0xff]  ;;  %v928_v29 = vld [vmem:[%s7249_s1 + $0x1c00] sm:$0xff] }
  0xe3   :  { %1532 = vmatprep.subr.mxu0 %v809_v16  ;;  %1603 = vmatprep.subr.mxu1 %v937_v17  ;;  %v925_v30 = vld [vmem:[%s7249_s1 + $0x1be8] sm:$0xff]  ;;  %v924_v32 = vld [vmem:[%s7249_s1 + $0x1be0] sm:$0xff] }
  0xe4   :  { %1533 = vmatpush1.msra.mxu0 %v808_v18  ;;  %1604 = vmatpush1.msra.mxu1 %v936_v19  ;;  %v1053_v31 = vld [vmem:[%s7249_s1 + $0x1fe8] sm:$0xff]  ;;  %v1052_v33 = vld [vmem:[%s7249_s1 + $0x1fe0] sm:$0xff] }
  0xe5   :  { %1534 = vmatprep.subr.mxu0 %v805_v21  ;;  %1605 = vmatprep.subr.mxu1 %v933_v22  ;;  %v921_v34 = vld [vmem:[%s7249_s1 + $0x1bc8] sm:$0xff]  ;;  %v920_v36 = vld [vmem:[%s7249_s1 + $0x1bc0] sm:$0xff] }
  0xe6   :  { %1535 = vmatpush1.msra.mxu0 %v804_v24  ;;  %1606 = vmatpush1.msra.mxu1 %v932_v25  ;;  %v1049_v35 = vld [vmem:[%s7249_s1 + $0x1fc8] sm:$0xff]  ;;  %v1048_v37 = vld [vmem:[%s7249_s1 + $0x1fc0] sm:$0xff] }
  0xe7   :  { %1536 = vmatprep.subr.mxu0 %v801_v26  ;;  %1607 = vmatprep.subr.mxu1 %v929_v27  ;;  %v917_v38 = vld [vmem:[%s7249_s1 + $0x1ba8] sm:$0xff]  ;;  %v916_v40 = vld [vmem:[%s7249_s1 + $0x1ba0] sm:$0xff] }
  0xe8   :  { %1537 = vmatpush1.msra.mxu0 %v800_v28  ;;  %1608 = vmatpush1.msra.mxu1 %v928_v29  ;;  %v1045_v39 = vld [vmem:[%s7249_s1 + $0x1fa8] sm:$0xff]  ;;  %v1044_v41 = vld [vmem:[%s7249_s1 + $0x1fa0] sm:$0xff] }
  0xe9   :  { %1538 = vmatprep.subr.mxu0 %v925_v30  ;;  %1609 = vmatprep.subr.mxu1 %v1053_v31  ;;  %v913_v42 = vld [vmem:[%s7249_s1 + $0x1b88] sm:$0xff]  ;;  %v912_v44 = vld [vmem:[%s7249_s1 + $0x1b80] sm:$0xff] }
  0xea   :  { %1539 = vmatpush2.msra.mxu0 %v924_v32  ;;  %1610 = vmatpush2.msra.mxu1 %v1052_v33  ;;  %v1041_v43 = vld [vmem:[%s7249_s1 + $0x1f88] sm:$0xff]  ;;  %v1040_v45 = vld [vmem:[%s7249_s1 + $0x1f80] sm:$0xff] }
  0xeb   :  { %1540 = vmatprep.subr.mxu0 %v921_v34  ;;  %1611 = vmatprep.subr.mxu1 %v1049_v35  ;;  %v909_v46 = vld [vmem:[%s7249_s1 + $0x1b68] sm:$0xff]  ;;  %v908_v48 = vld [vmem:[%s7249_s1 + $0x1b60] sm:$0xff] }
  0xec   :  { %1541 = vmatpush2.msra.mxu0 %v920_v36  ;;  %1612 = vmatpush2.msra.mxu1 %v1048_v37  ;;  %v1037_v47 = vld [vmem:[%s7249_s1 + $0x1f68] sm:$0xff]  ;;  %v1036_v49 = vld [vmem:[%s7249_s1 + $0x1f60] sm:$0xff] }
  0xed   :  { %1542 = vmatprep.subr.mxu0 %v917_v38  ;;  %1613 = vmatprep.subr.mxu1 %v1045_v39  ;;  %v905_v50 = vld [vmem:[%s7249_s1 + $0x1b48] sm:$0xff]  ;;  %v904_v52 = vld [vmem:[%s7249_s1 + $0x1b40] sm:$0xff] }
  0xee   :  { %1543 = vmatpush2.msra.mxu0 %v916_v40  ;;  %1614 = vmatpush2.msra.mxu1 %v1044_v41  ;;  %v1033_v51 = vld [vmem:[%s7249_s1 + $0x1f48] sm:$0xff]  ;;  %v1032_v53 = vld [vmem:[%s7249_s1 + $0x1f40] sm:$0xff] }
  0xef   :  { %1544 = vmatprep.subr.mxu0 %v913_v42  ;;  %1615 = vmatprep.subr.mxu1 %v1041_v43  ;;  %v901_v54 = vld [vmem:[%s7249_s1 + $0x1b28] sm:$0xff]  ;;  %v900_v56 = vld [vmem:[%s7249_s1 + $0x1b20] sm:$0xff] }
  0xf0   :  { %1545 = vmatpush2.msra.mxu0 %v912_v44  ;;  %1616 = vmatpush2.msra.mxu1 %v1040_v45  ;;  %v1029_v55 = vld [vmem:[%s7249_s1 + $0x1f28] sm:$0xff]  ;;  %v1028_v57 = vld [vmem:[%s7249_s1 + $0x1f20] sm:$0xff] }
  0xf1   :  { %1546 = vmatprep.subr.mxu0 %v909_v46  ;;  %1617 = vmatprep.subr.mxu1 %v1037_v47  ;;  %v897_v58 = vld [vmem:[%s7249_s1 + $0x1b08] sm:$0xff]  ;;  %v896_v60 = vld [vmem:[%s7249_s1 + $0x1b00] sm:$0xff] }
  0xf2   :  { %1547 = vmatpush2.msra.mxu0 %v908_v48  ;;  %1618 = vmatpush2.msra.mxu1 %v1036_v49  ;;  %v1025_v59 = vld [vmem:[%s7249_s1 + $0x1f08] sm:$0xff]  ;;  %v1024_v61 = vld [vmem:[%s7249_s1 + $0x1f00] sm:$0xff] }
  0xf3   :  { %1548 = vmatprep.subr.mxu0 %v905_v50  ;;  %1619 = vmatprep.subr.mxu1 %v1033_v51  ;;  %v893_v62 = vld [vmem:[%s7249_s1 + $0x1ae8] sm:$0xff] }
  0xf4   :  { %1549 = vmatpush2.msra.mxu0 %v904_v52  ;;  %1620 = vmatpush2.msra.mxu1 %v1032_v53  ;;  %v1021_v63 = vld [vmem:[%s7249_s1 + $0x1ee8] sm:$0xff] }
  0xf5   :  { %1550 = vmatprep.subr.mxu0 %v901_v54  ;;  %1621 = vmatprep.subr.mxu1 %v1029_v55 }
  0xf6   :  { %1551 = vmatpush2.msra.mxu0 %v900_v56  ;;  %1622 = vmatpush2.msra.mxu1 %v1028_v57 }
  0xf7   :  { %11 = vsyncpa [#allocation4], 0  ;;  %1552 = vmatprep.subr.mxu0 %v897_v58  ;;  %1623 = vmatprep.subr.mxu1 %v1025_v59  ;;  %v892_v1 = vld [vmem:[%s7249_s1 + $0x1ae0] sm:$0xff]  ;;  %v889_v4 = vld [vmem:[%s7249_s1 + $0x1ac8] sm:$0xff]  ;;  %vm3336_vm0 = vmmov 0   ;;  %s3337_s15 = smov [#allocation3]  }
  0xf8   :  { %v1020_v3 = vld [vmem:[%s7249_s1 + $0x1ee0] sm:$0xff]  ;;  %1553 = vmatpush2.msra.mxu0 %v896_v60  ;;  %1624 = vmatpush2.msra.mxu1 %v1024_v61  ;;  %v1017_v5 = vld [vmem:[%s7249_s1 + $0x1ec8] sm:$0xff]  ;;  %v30_v28 = vld [vmem:[%s7248_s0 + $0x30] sm:$0xff]  ;;  %s3156_s16 = sshll.u32 %s3337_s15, 4  ;;  %vm3148_vm1 = vcmask 35840   ;;  %s3157_s16 = int_to_ptr.vmem [resolvable:$true] %s3156_s16 }
  0xf9   :  { %1554 = vmatprep.subr.mxu0 %v893_v62  ;;  %1625 = vmatprep.subr.mxu1 %v1021_v63  ;;  %v888_v6 = vld [vmem:[%s7249_s1 + $0x1ac0] sm:$0xff]  ;;  %v885_v9 = vld [vmem:[%s7249_s1 + $0x1aa8] sm:$0xff]  ;;  %v31_v33 = vld [vmem:[%s7248_s0 + $0x38] sm:$0xff]  ;;  %v4945_v36 = vcombine.high %v30_v28, %v30_v28  ;;  %s3313_s17 = scalar_lea.vmem %s3157_s16, 64  ;;  %p3318_p1 = scmp.lt.s32.totalorder %s3157_s16, %s3157_s16 }
  0xfa   :  { %v1016_v7 = vld [vmem:[%s7249_s1 + $0x1ec0] sm:$0xff]  ;;  %1555 = vmatpush2.msra.mxu0 %v892_v1  ;;  %1626 = vmatpush2.msra.mxu1 %v1020_v3  ;;  %v1013_v10 = vld [vmem:[%s7249_s1 + $0x1ea8] sm:$0xff]  ;;  %v4953_v39 = vcombine.high %v31_v33, %v31_v33  ;;  %v95_v40 = vld [vmem:[%s7249_s1 + $0x1f8] sm:$0xff]  ;;  %p3314_p0 = scmp.ne.s32.totalorder %s3157_s16, %s3313_s17  ;;  %p3319_p2 = scmp.lt.s32.totalorder %s3313_s17, %s3313_s17 }
  0xfb   :  { %1556 = vmatprep.subr.mxu0 %v889_v4  ;;  %1627 = vmatprep.subr.mxu1 %v1017_v5  ;;  %v884_v12 = vld [vmem:[%s7249_s1 + $0x1aa0] sm:$0xff]  ;;  %v881_v14 = vld [vmem:[%s7249_s1 + $0x1a88] sm:$0xff]  ;;  %v223_v41 = vld [vmem:[%s7249_s1 + $0x5f8] sm:$0xff] }
  0xfc   :  { %v1012_v13 = vld [vmem:[%s7249_s1 + $0x1ea0] sm:$0xff]  ;;  %1557 = vmatpush2.msra.mxu0 %v888_v6  ;;  %1628 = vmatpush2.msra.mxu1 %v1016_v7  ;;  %v1009_v15 = vld [vmem:[%s7249_s1 + $0x1e88] sm:$0xff]  ;;  %v94_v42 = vld [vmem:[%s7249_s1 + $0x1f0] sm:$0xff]  ;;  %p3320_p3 = por %p3319_p2, %p3318_p1 }
  0xfd   :  { %1558 = vmatprep.subr.mxu0 %v885_v9  ;;  %1629 = vmatprep.subr.mxu1 %v1013_v10  ;;  %v880_v16 = vld [vmem:[%s7249_s1 + $0x1a80] sm:$0xff]  ;;  %v877_v18 = vld [vmem:[%s7249_s1 + $0x1a68] sm:$0xff]  ;;  %v222_v43 = vld [vmem:[%s7249_s1 + $0x5f0] sm:$0xff] }
  0xfe   :  { %v1008_v17 = vld [vmem:[%s7249_s1 + $0x1e80] sm:$0xff]  ;;  %1559 = vmatpush2.msra.mxu0 %v884_v12  ;;  %1630 = vmatpush2.msra.mxu1 %v1012_v13  ;;  %v1005_v19 = vld [vmem:[%s7249_s1 + $0x1e68] sm:$0xff]  ;;  %v91_v44 = vld [vmem:[%s7249_s1 + $0x1d8] sm:$0xff]  ;;  %p3321_p4 = pnand %p3320_p3, %p3314_p0 }
  0xff   :  { %1560 = vmatprep.subr.mxu0 %v881_v14  ;;  %1631 = vmatprep.subr.mxu1 %v1009_v15  ;;  %v876_v21 = vld [vmem:[%s7249_s1 + $0x1a60] sm:$0xff]  ;;  %v873_v24 = vld [vmem:[%s7249_s1 + $0x1a48] sm:$0xff]  ;;  %v219_v45 = vld [vmem:[%s7249_s1 + $0x5d8] sm:$0xff] }
 0x100   :  { %v1004_v22 = vld [vmem:[%s7249_s1 + $0x1e60] sm:$0xff]  ;;  %1561 = vmatpush2.msra.mxu0 %v880_v16  ;;  %1632 = vmatpush2.msra.mxu1 %v1008_v17  ;;  %v1001_v25 = vld [vmem:[%s7249_s1 + $0x1e48] sm:$0xff]  ;;  %v90_v46 = vld [vmem:[%s7249_s1 + $0x1d0] sm:$0xff] }
 0x101   :  { %1562 = vmatprep.subr.mxu0 %v877_v18  ;;  %1633 = vmatprep.subr.mxu1 %v1005_v19  ;;  %v872_v26 = vld [vmem:[%s7249_s1 + $0x1a40] sm:$0xff]  ;;  %v869_v29 = vld [vmem:[%s7249_s1 + $0x1a28] sm:$0xff]  ;;  %v218_v47 = vld [vmem:[%s7249_s1 + $0x5d0] sm:$0xff] }
 0x102   :  { %v1000_v27 = vld [vmem:[%s7249_s1 + $0x1e40] sm:$0xff]  ;;  %1563 = vmatpush2.msra.mxu0 %v876_v21  ;;  %1634 = vmatpush2.msra.mxu1 %v1004_v22  ;;  %v997_v30 = vld [vmem:[%s7249_s1 + $0x1e28] sm:$0xff]  ;;  %v87_v48 = vld [vmem:[%s7249_s1 + $0x1b8] sm:$0xff] }
 0x103   :  { %1564 = vmatprep.subr.mxu0 %v873_v24  ;;  %1635 = vmatprep.subr.mxu1 %v1001_v25  ;;  %v868_v31 = vld [vmem:[%s7249_s1 + $0x1a20] sm:$0xff]  ;;  %v865_v34 = vld [vmem:[%s7249_s1 + $0x1a08] sm:$0xff]  ;;  %v215_v49 = vld [vmem:[%s7249_s1 + $0x5b8] sm:$0xff] }
 0x104   :  { %v996_v32 = vld [vmem:[%s7249_s1 + $0x1e20] sm:$0xff]  ;;  %1565 = vmatpush2.msra.mxu0 %v872_v26  ;;  %1636 = vmatpush2.msra.mxu1 %v1000_v27  ;;  %v993_v35 = vld [vmem:[%s7249_s1 + $0x1e08] sm:$0xff]  ;;  %v86_v50 = vld [vmem:[%s7249_s1 + $0x1b0] sm:$0xff] }
 0x105   :  { %1566 = vmatprep.subr.mxu0 %v869_v29  ;;  %1637 = vmatprep.subr.mxu1 %v997_v30  ;;  %v864_v37 = vld [vmem:[%s7249_s1 + $0x1a00] sm:$0xff]  ;;  %v214_v51 = vld [vmem:[%s7249_s1 + $0x5b0] sm:$0xff]  ;;  %v83_v52 = vld [vmem:[%s7249_s1 + $0x198] sm:$0xff] }
 0x106   :  { %1567 = vmatpush2.msra.mxu0 %v868_v31  ;;  %1638 = vmatpush2.msra.mxu1 %v996_v32  ;;  %v992_v38 = vld [vmem:[%s7249_s1 + $0x1e00] sm:$0xff]  ;;  %v211_v53 = vld [vmem:[%s7249_s1 + $0x598] sm:$0xff]  ;;  %v82_v54 = vld [vmem:[%s7249_s1 + $0x190] sm:$0xff] }
 0x107   :  { %1568 = vmatprep.subr.mxu0 %v865_v34  ;;  %1639 = vmatprep.subr.mxu1 %v993_v35  ;;  %v210_v55 = vld [vmem:[%s7249_s1 + $0x590] sm:$0xff]  ;;  %v79_v56 = vld [vmem:[%s7249_s1 + $0x178] sm:$0xff] }
 0x108   :  { %1569 = vmatpush2.msra.mxu0 %v864_v37  ;;  %1570 = vmatprep.mubr.f32.mxu0 %v4945_v36  ;;  %v207_v57 = vld [vmem:[%s7249_s1 + $0x578] sm:$0xff]  ;;  %v78_v58 = vld [vmem:[%s7249_s1 + $0x170] sm:$0xff] }
 0x109   :  { %1640 = vmatpush2.msra.mxu1 %v992_v38  ;;  %1571 = vmatmul.mubr.f32.vlgmr.msra.gmra.mxu0 %v30_v28  ;;  %v206_v59 = vld [vmem:[%s7249_s1 + $0x570] sm:$0xff]  ;;  %v75_v60 = vld [vmem:[%s7249_s1 + $0x158] sm:$0xff] }
 0x10a   :  { %1641 = vmatprep.mubr.f32.mxu1 %v4953_v39  ;;  %1648 = vmatprep.subr.mxu0 %v95_v40  ;;  %v203_v61 = vld [vmem:[%s7249_s1 + $0x558] sm:$0xff]  ;;  %v74_v62 = vld [vmem:[%s7249_s1 + $0x150] sm:$0xff] }
 0x10b   :  { %1719 = vmatprep.subr.mxu1 %v223_v41  ;;  %1642 = vmatmul.mubr.f32.vlgmr.msra.gmra.mxu1 %v31_v33  ;;  %v202_v63 = vld [vmem:[%s7249_s1 + $0x550] sm:$0xff]  ;;  %v71_v1 = vld [vmem:[%s7249_s1 + $0x138] sm:$0xff] }
 0x10c   :  { %1649 = vmatpush1.msra.mxu0 %v94_v42  ;;  %1720 = vmatpush1.msra.mxu1 %v222_v43  ;;  %v199_v3 = vld [vmem:[%s7249_s1 + $0x538] sm:$0xff]  ;;  %v70_v4 = vld [vmem:[%s7249_s1 + $0x130] sm:$0xff] }
 0x10d   :  { %1650 = vmatprep.subr.mxu0 %v91_v44  ;;  %1721 = vmatprep.subr.mxu1 %v219_v45  ;;  %v198_v5 = vld [vmem:[%s7249_s1 + $0x530] sm:$0xff]  ;;  %v67_v6 = vld [vmem:[%s7249_s1 + $0x118] sm:$0xff] }
 0x10e   :  { %1651 = vmatpush1.msra.mxu0 %v90_v46  ;;  %1722 = vmatpush1.msra.mxu1 %v218_v47  ;;  %v195_v7 = vld [vmem:[%s7249_s1 + $0x518] sm:$0xff]  ;;  %v66_v9 = vld [vmem:[%s7249_s1 + $0x110] sm:$0xff] }
 0x10f   :  { %1652 = vmatprep.subr.mxu0 %v87_v48  ;;  %1723 = vmatprep.subr.mxu1 %v215_v49  ;;  %v194_v10 = vld [vmem:[%s7249_s1 + $0x510] sm:$0xff]  ;;  %v63_v12 = vld [vmem:[%s7249_s1 + $0xf8] sm:$0xff] }
 0x110   :  { %1653 = vmatpush1.msra.mxu0 %v86_v50  ;;  %1724 = vmatpush1.msra.mxu1 %v214_v51  ;;  %v191_v13 = vld [vmem:[%s7249_s1 + $0x4f8] sm:$0xff]  ;;  %v62_v14 = vld [vmem:[%s7249_s1 + $0xf0] sm:$0xff] }
 0x111   :  { %1654 = vmatprep.subr.mxu0 %v83_v52  ;;  %1725 = vmatprep.subr.mxu1 %v211_v53  ;;  %v190_v15 = vld [vmem:[%s7249_s1 + $0x4f0] sm:$0xff]  ;;  %v59_v16 = vld [vmem:[%s7249_s1 + $0xd8] sm:$0xff] }
 0x112   :  { %1655 = vmatpush1.msra.mxu0 %v82_v54  ;;  %1726 = vmatpush1.msra.mxu1 %v210_v55  ;;  %v187_v17 = vld [vmem:[%s7249_s1 + $0x4d8] sm:$0xff]  ;;  %v58_v18 = vld [vmem:[%s7249_s1 + $0xd0] sm:$0xff] }
 0x113   :  { %1656 = vmatprep.subr.mxu0 %v79_v56  ;;  %1727 = vmatprep.subr.mxu1 %v207_v57  ;;  %v186_v19 = vld [vmem:[%s7249_s1 + $0x4d0] sm:$0xff]  ;;  %v55_v21 = vld [vmem:[%s7249_s1 + $0xb8] sm:$0xff] }
 0x114   :  { %1657 = vmatpush1.msra.mxu0 %v78_v58  ;;  %1728 = vmatpush1.msra.mxu1 %v206_v59  ;;  %v183_v22 = vld [vmem:[%s7249_s1 + $0x4b8] sm:$0xff]  ;;  %v54_v24 = vld [vmem:[%s7249_s1 + $0xb0] sm:$0xff] }
 0x115   :  { %1658 = vmatprep.subr.mxu0 %v75_v60  ;;  %1729 = vmatprep.subr.mxu1 %v203_v61  ;;  %v182_v25 = vld [vmem:[%s7249_s1 + $0x4b0] sm:$0xff]  ;;  %v51_v26 = vld [vmem:[%s7249_s1 + $0x98] sm:$0xff] }
 0x116   :  { %1659 = vmatpush1.msra.mxu0 %v74_v62  ;;  %1730 = vmatpush1.msra.mxu1 %v202_v63  ;;  %v179_v27 = vld [vmem:[%s7249_s1 + $0x498] sm:$0xff]  ;;  %v50_v28 = vld [vmem:[%s7249_s1 + $0x90] sm:$0xff] }
 0x117   :  { %1660 = vmatprep.subr.mxu0 %v71_v1  ;;  %1731 = vmatprep.subr.mxu1 %v199_v3  ;;  %v178_v29 = vld [vmem:[%s7249_s1 + $0x490] sm:$0xff]  ;;  %v47_v30 = vld [vmem:[%s7249_s1 + $0x78] sm:$0xff] }
 0x118   :  { %1661 = vmatpush1.msra.mxu0 %v70_v4  ;;  %1732 = vmatpush1.msra.mxu1 %v198_v5  ;;  %v175_v31 = vld [vmem:[%s7249_s1 + $0x478] sm:$0xff]  ;;  %v46_v32 = vld [vmem:[%s7249_s1 + $0x70] sm:$0xff] }
 0x119   :  { %1662 = vmatprep.subr.mxu0 %v67_v6  ;;  %1733 = vmatprep.subr.mxu1 %v195_v7  ;;  %v174_v33 = vld [vmem:[%s7249_s1 + $0x470] sm:$0xff]  ;;  %v43_v34 = vld [vmem:[%s7249_s1 + $0x58] sm:$0xff] }
 0x11a   :  { %1663 = vmatpush1.msra.mxu0 %v66_v9  ;;  %1734 = vmatpush1.msra.mxu1 %v194_v10  ;;  %v171_v35 = vld [vmem:[%s7249_s1 + $0x458] sm:$0xff]  ;;  %v42_v37 = vld [vmem:[%s7249_s1 + $0x50] sm:$0xff] }
 0x11b   :  { %1664 = vmatprep.subr.mxu0 %v63_v12  ;;  %1735 = vmatprep.subr.mxu1 %v191_v13  ;;  %v170_v38 = vld [vmem:[%s7249_s1 + $0x450] sm:$0xff]  ;;  %v39_v40 = vld [vmem:[%s7249_s1 + $0x38] sm:$0xff] }
 0x11c   :  { %1665 = vmatpush1.msra.mxu0 %v62_v14  ;;  %1736 = vmatpush1.msra.mxu1 %v190_v15  ;;  %v167_v41 = vld [vmem:[%s7249_s1 + $0x438] sm:$0xff]  ;;  %v38_v42 = vld [vmem:[%s7249_s1 + $0x30] sm:$0xff] }
 0x11d   :  { %1666 = vmatprep.subr.mxu0 %v59_v16  ;;  %1737 = vmatprep.subr.mxu1 %v187_v17  ;;  %v166_v43 = vld [vmem:[%s7249_s1 + $0x430] sm:$0xff]  ;;  %v35_v44 = vld [vmem:[%s7249_s1 + $0x18] sm:$0xff] }
 0x11e   :  { %1667 = vmatpush1.msra.mxu0 %v58_v18  ;;  %1738 = vmatpush1.msra.mxu1 %v186_v19  ;;  %v163_v45 = vld [vmem:[%s7249_s1 + $0x418] sm:$0xff]  ;;  %v34_v46 = vld [vmem:[%s7249_s1 + $0x10] sm:$0xff] }
 0x11f   :  { %1668 = vmatprep.subr.mxu0 %v55_v21  ;;  %1739 = vmatprep.subr.mxu1 %v183_v22  ;;  %v162_v47 = vld [vmem:[%s7249_s1 + $0x410] sm:$0xff]  ;;  %v159_v48 = vld [vmem:[%s7249_s1 + $0x3f8] sm:$0xff] }
 0x120   :  { %1669 = vmatpush1.msra.mxu0 %v54_v24  ;;  %1740 = vmatpush1.msra.mxu1 %v182_v25  ;;  %v287_v49 = vld [vmem:[%s7249_s1 + $0x7f8] sm:$0xff]  ;;  %v158_v50 = vld [vmem:[%s7249_s1 + $0x3f0] sm:$0xff] }
 0x121   :  { %1670 = vmatprep.subr.mxu0 %v51_v26  ;;  %1741 = vmatprep.subr.mxu1 %v179_v27  ;;  %v286_v51 = vld [vmem:[%s7249_s1 + $0x7f0] sm:$0xff]  ;;  %v155_v52 = vld [vmem:[%s7249_s1 + $0x3d8] sm:$0xff] }
 0x122   :  { %1671 = vmatpush1.msra.mxu0 %v50_v28  ;;  %1742 = vmatpush1.msra.mxu1 %v178_v29  ;;  %v283_v53 = vld [vmem:[%s7249_s1 + $0x7d8] sm:$0xff]  ;;  %v154_v54 = vld [vmem:[%s7249_s1 + $0x3d0] sm:$0xff] }
 0x123   :  { %1672 = vmatprep.subr.mxu0 %v47_v30  ;;  %1743 = vmatprep.subr.mxu1 %v175_v31  ;;  %v282_v55 = vld [vmem:[%s7249_s1 + $0x7d0] sm:$0xff]  ;;  %v151_v56 = vld [vmem:[%s7249_s1 + $0x3b8] sm:$0xff] }
 0x124   :  { %1673 = vmatpush1.msra.mxu0 %v46_v32  ;;  %1744 = vmatpush1.msra.mxu1 %v174_v33  ;;  %v279_v57 = vld [vmem:[%s7249_s1 + $0x7b8] sm:$0xff]  ;;  %v150_v58 = vld [vmem:[%s7249_s1 + $0x3b0] sm:$0xff] }
 0x125   :  { %1674 = vmatprep.subr.mxu0 %v43_v34  ;;  %1745 = vmatprep.subr.mxu1 %v171_v35  ;;  %v278_v59 = vld [vmem:[%s7249_s1 + $0x7b0] sm:$0xff]  ;;  %v147_v60 = vld [vmem:[%s7249_s1 + $0x398] sm:$0xff] }
 0x126   :  { %1675 = vmatpush1.msra.mxu0 %v42_v37  ;;  %1746 = vmatpush1.msra.mxu1 %v170_v38  ;;  %v275_v61 = vld [vmem:[%s7249_s1 + $0x798] sm:$0xff]  ;;  %v146_v62 = vld [vmem:[%s7249_s1 + $0x390] sm:$0xff] }
 0x127   :  { %1676 = vmatprep.subr.mxu0 %v39_v40  ;;  %1747 = vmatprep.subr.mxu1 %v167_v41  ;;  %v274_v63 = vld [vmem:[%s7249_s1 + $0x790] sm:$0xff]  ;;  %v143_v1 = vld [vmem:[%s7249_s1 + $0x378] sm:$0xff] }
 0x128   :  { %1677 = vmatpush1.msra.mxu0 %v38_v42  ;;  %1748 = vmatpush1.msra.mxu1 %v166_v43  ;;  %v271_v3 = vld [vmem:[%s7249_s1 + $0x778] sm:$0xff]  ;;  %v142_v4 = vld [vmem:[%s7249_s1 + $0x370] sm:$0xff] }
 0x129   :  { %1678 = vmatprep.subr.mxu0 %v35_v44  ;;  %1749 = vmatprep.subr.mxu1 %v163_v45  ;;  %v270_v5 = vld [vmem:[%s7249_s1 + $0x770] sm:$0xff]  ;;  %v139_v6 = vld [vmem:[%s7249_s1 + $0x358] sm:$0xff] }
 0x12a   :  { %1679 = vmatpush1.msra.mxu0 %v34_v46  ;;  %1750 = vmatpush1.msra.mxu1 %v162_v47  ;;  %v267_v7 = vld [vmem:[%s7249_s1 + $0x758] sm:$0xff]  ;;  %v138_v9 = vld [vmem:[%s7249_s1 + $0x350] sm:$0xff] }
 0x12b   :  { %1680 = vmatprep.subr.mxu0 %v159_v48  ;;  %1751 = vmatprep.subr.mxu1 %v287_v49  ;;  %v266_v10 = vld [vmem:[%s7249_s1 + $0x750] sm:$0xff]  ;;  %v135_v12 = vld [vmem:[%s7249_s1 + $0x338] sm:$0xff] }
 0x12c   :  { %1681 = vmatpush2.msra.mxu0 %v158_v50  ;;  %1752 = vmatpush2.msra.mxu1 %v286_v51  ;;  %v263_v13 = vld [vmem:[%s7249_s1 + $0x738] sm:$0xff]  ;;  %v134_v14 = vld [vmem:[%s7249_s1 + $0x330] sm:$0xff] }
 0x12d   :  { %1682 = vmatprep.subr.mxu0 %v155_v52  ;;  %1753 = vmatprep.subr.mxu1 %v283_v53  ;;  %v262_v15 = vld [vmem:[%s7249_s1 + $0x730] sm:$0xff]  ;;  %v131_v16 = vld [vmem:[%s7249_s1 + $0x318] sm:$0xff] }
 0x12e   :  { %1683 = vmatpush2.msra.mxu0 %v154_v54  ;;  %1754 = vmatpush2.msra.mxu1 %v282_v55  ;;  %v259_v17 = vld [vmem:[%s7249_s1 + $0x718] sm:$0xff]  ;;  %v130_v18 = vld [vmem:[%s7249_s1 + $0x310] sm:$0xff] }
 0x12f   :  { %1684 = vmatprep.subr.mxu0 %v151_v56  ;;  %1755 = vmatprep.subr.mxu1 %v279_v57  ;;  %v258_v19 = vld [vmem:[%s7249_s1 + $0x710] sm:$0xff]  ;;  %v127_v21 = vld [vmem:[%s7249_s1 + $0x2f8] sm:$0xff] }
 0x130   :  { %1685 = vmatpush2.msra.mxu0 %v150_v58  ;;  %1756 = vmatpush2.msra.mxu1 %v278_v59  ;;  %v255_v22 = vld [vmem:[%s7249_s1 + $0x6f8] sm:$0xff]  ;;  %v126_v24 = vld [vmem:[%s7249_s1 + $0x2f0] sm:$0xff] }
 0x131   :  { %1686 = vmatprep.subr.mxu0 %v147_v60  ;;  %1757 = vmatprep.subr.mxu1 %v275_v61  ;;  %v254_v25 = vld [vmem:[%s7249_s1 + $0x6f0] sm:$0xff]  ;;  %v123_v26 = vld [vmem:[%s7249_s1 + $0x2d8] sm:$0xff]  ;;  %v3305_v60 = vld [vmem:[%s7248_s0 + $0x8] sm:$0xff] }
 0x132   :  { %1687 = vmatpush2.msra.mxu0 %v146_v62  ;;  %1758 = vmatpush2.msra.mxu1 %v274_v63  ;;  %v251_v27 = vld [vmem:[%s7249_s1 + $0x6d8] sm:$0xff]  ;;  %v122_v28 = vld [vmem:[%s7249_s1 + $0x2d0] sm:$0xff] }
 0x133   :  { %1688 = vmatprep.subr.mxu0 %v143_v1  ;;  %1759 = vmatprep.subr.mxu1 %v271_v3  ;;  %v250_v29 = vld [vmem:[%s7249_s1 + $0x6d0] sm:$0xff]  ;;  %v119_v30 = vld [vmem:[%s7249_s1 + $0x2b8] sm:$0xff] }
 0x134   :  { %1689 = vmatpush2.msra.mxu0 %v142_v4  ;;  %1760 = vmatpush2.msra.mxu1 %v270_v5  ;;  %v247_v31 = vld [vmem:[%s7249_s1 + $0x6b8] sm:$0xff]  ;;  %v118_v32 = vld [vmem:[%s7249_s1 + $0x2b0] sm:$0xff] }
 0x135   :  { %1690 = vmatprep.subr.mxu0 %v139_v6  ;;  %1761 = vmatprep.subr.mxu1 %v267_v7  ;;  %v246_v33 = vld [vmem:[%s7249_s1 + $0x6b0] sm:$0xff]  ;;  %v115_v34 = vld [vmem:[%s7249_s1 + $0x298] sm:$0xff] }
 0x136   :  { %1691 = vmatpush2.msra.mxu0 %v138_v9  ;;  %1762 = vmatpush2.msra.mxu1 %v266_v10  ;;  %v243_v35 = vld [vmem:[%s7249_s1 + $0x698] sm:$0xff]  ;;  %v114_v37 = vld [vmem:[%s7249_s1 + $0x290] sm:$0xff] }
 0x137   :  { %1692 = vmatprep.subr.mxu0 %v135_v12  ;;  %1763 = vmatprep.subr.mxu1 %v263_v13  ;;  %v242_v38 = vld [vmem:[%s7249_s1 + $0x690] sm:$0xff]  ;;  %v111_v40 = vld [vmem:[%s7249_s1 + $0x278] sm:$0xff] }
 0x138   :  { %1693 = vmatpush2.msra.mxu0 %v134_v14  ;;  %1764 = vmatpush2.msra.mxu1 %v262_v15  ;;  %v239_v41 = vld [vmem:[%s7249_s1 + $0x678] sm:$0xff]  ;;  %v110_v42 = vld [vmem:[%s7249_s1 + $0x270] sm:$0xff] }
 0x139   :  { %1694 = vmatprep.subr.mxu0 %v131_v16  ;;  %1765 = vmatprep.subr.mxu1 %v259_v17  ;;  %v238_v43 = vld [vmem:[%s7249_s1 + $0x670] sm:$0xff]  ;;  %v107_v44 = vld [vmem:[%s7249_s1 + $0x258] sm:$0xff] }
 0x13a   :  { %1695 = vmatpush2.msra.mxu0 %v130_v18  ;;  %1766 = vmatpush2.msra.mxu1 %v258_v19  ;;  %v235_v45 = vld [vmem:[%s7249_s1 + $0x658] sm:$0xff]  ;;  %v106_v46 = vld [vmem:[%s7249_s1 + $0x250] sm:$0xff] }
 0x13b   :  { %1696 = vmatprep.subr.mxu0 %v127_v21  ;;  %1767 = vmatprep.subr.mxu1 %v255_v22  ;;  %v234_v47 = vld [vmem:[%s7249_s1 + $0x650] sm:$0xff]  ;;  %v103_v48 = vld [vmem:[%s7249_s1 + $0x238] sm:$0xff] }
 0x13c   :  { %1697 = vmatpush2.msra.mxu0 %v126_v24  ;;  %1768 = vmatpush2.msra.mxu1 %v254_v25  ;;  %v231_v49 = vld [vmem:[%s7249_s1 + $0x638] sm:$0xff]  ;;  %v102_v50 = vld [vmem:[%s7249_s1 + $0x230] sm:$0xff] }
 0x13d   :  { %1698 = vmatprep.subr.mxu0 %v123_v26  ;;  %1769 = vmatprep.subr.mxu1 %v251_v27  ;;  %v230_v51 = vld [vmem:[%s7249_s1 + $0x630] sm:$0xff]  ;;  %v99_v52 = vld [vmem:[%s7249_s1 + $0x218] sm:$0xff] }
 0x13e   :  { %1699 = vmatpush2.msra.mxu0 %v122_v28  ;;  %1770 = vmatpush2.msra.mxu1 %v250_v29  ;;  %v227_v53 = vld [vmem:[%s7249_s1 + $0x618] sm:$0xff]  ;;  %v98_v54 = vld [vmem:[%s7249_s1 + $0x210] sm:$0xff] }
 0x13f   :  { %1700 = vmatprep.subr.mxu0 %v119_v30  ;;  %1771 = vmatprep.subr.mxu1 %v247_v31  ;;  %v226_v55 = vld [vmem:[%s7249_s1 + $0x610] sm:$0xff]  ;;  %v351_v56 = vld [vmem:[%s7249_s1 + $0x9f8] sm:$0xff] }
 0x140   :  { %1701 = vmatpush2.msra.mxu0 %v118_v32  ;;  %1772 = vmatpush2.msra.mxu1 %v246_v33  ;;  %v479_v57 = vld [vmem:[%s7249_s1 + $0xdf8] sm:$0xff]  ;;  %v350_v58 = vld [vmem:[%s7249_s1 + $0x9f0] sm:$0xff] }
 0x141   :  { %1702 = vmatprep.subr.mxu0 %v115_v34  ;;  %1773 = vmatprep.subr.mxu1 %v243_v35  ;;  %v478_v59 = vld [vmem:[%s7249_s1 + $0xdf0] sm:$0xff]  ;;  %v475_v61 = vld [vmem:[%s7249_s1 + $0xdd8] sm:$0xff] }
 0x142   :  { %1703 = vmatpush2.msra.mxu0 %v114_v37  ;;  %1774 = vmatpush2.msra.mxu1 %v242_v38  ;;  %v346_v62 = vld [vmem:[%s7249_s1 + $0x9d0] sm:$0xff]  ;;  %v343_v1 = vld [vmem:[%s7249_s1 + $0x9b8] sm:$0xff] }
 0x143   :  { %1704 = vmatprep.subr.mxu0 %v111_v40  ;;  %1775 = vmatprep.subr.mxu1 %v239_v41  ;;  %v474_v63 = vld [vmem:[%s7249_s1 + $0xdd0] sm:$0xff]  ;;  %v471_v3 = vld [vmem:[%s7249_s1 + $0xdb8] sm:$0xff] }
 0x144   :  { %1705 = vmatpush2.msra.mxu0 %v110_v42  ;;  %1776 = vmatpush2.msra.mxu1 %v238_v43  ;;  %v342_v4 = vld [vmem:[%s7249_s1 + $0x9b0] sm:$0xff]  ;;  %v339_v6 = vld [vmem:[%s7249_s1 + $0x998] sm:$0xff] }
 0x145   :  { %1706 = vmatprep.subr.mxu0 %v107_v44  ;;  %1777 = vmatprep.subr.mxu1 %v235_v45  ;;  %v470_v5 = vld [vmem:[%s7249_s1 + $0xdb0] sm:$0xff]  ;;  %v467_v7 = vld [vmem:[%s7249_s1 + $0xd98] sm:$0xff] }
 0x146   :  { %1707 = vmatpush2.msra.mxu0 %v106_v46  ;;  %1778 = vmatpush2.msra.mxu1 %v234_v47  ;;  %v338_v9 = vld [vmem:[%s7249_s1 + $0x990] sm:$0xff]  ;;  %v335_v12 = vld [vmem:[%s7249_s1 + $0x978] sm:$0xff] }
 0x147   :  { %1708 = vmatprep.subr.mxu0 %v103_v48  ;;  %1779 = vmatprep.subr.mxu1 %v231_v49  ;;  %v466_v10 = vld [vmem:[%s7249_s1 + $0xd90] sm:$0xff]  ;;  %v463_v13 = vld [vmem:[%s7249_s1 + $0xd78] sm:$0xff] }
 0x148   :  { %1709 = vmatpush2.msra.mxu0 %v102_v50  ;;  %1780 = vmatpush2.msra.mxu1 %v230_v51  ;;  %v334_v14 = vld [vmem:[%s7249_s1 + $0x970] sm:$0xff]  ;;  %v331_v16 = vld [vmem:[%s7249_s1 + $0x958] sm:$0xff] }
 0x149   :  { %1710 = vmatprep.subr.mxu0 %v99_v52  ;;  %1781 = vmatprep.subr.mxu1 %v227_v53  ;;  %v462_v15 = vld [vmem:[%s7249_s1 + $0xd70] sm:$0xff]  ;;  %v459_v17 = vld [vmem:[%s7249_s1 + $0xd58] sm:$0xff] }
 0x14a   :  { %1711 = vmatpush2.msra.mxu0 %v98_v54  ;;  %1712 = vmatprep.mubr.f32.mxu0 %v3757_v0  ;;  %v3304_v0 = vld [vmem:[%s7248_s0] sm:$0xff]  ;;  %v330_v18 = vld [vmem:[%s7249_s1 + $0x950] sm:$0xff]  ;;  %v327_v21 = vld [vmem:[%s7249_s1 + $0x938] sm:$0xff] }
 0x14b   :  { %1782 = vmatpush2.msra.mxu1 %v226_v55  ;;  %1783 = vmatprep.mubr.f32.mxu1 %v3762_v2  ;;  %v347_v2 = vld [vmem:[%s7249_s1 + $0x9d8] sm:$0xff]  ;;  %v458_v19 = vld [vmem:[%s7249_s1 + $0xd50] sm:$0xff] }
 0x14c   :  { %1713 = vmatmul.mubr.f32.vlgmr.msra.gmra.mxu0 %v3304_v0  ;;  %1784 = vmatmul.mubr.f32.vlgmr.msra.gmra.mxu1 %v3305_v60  ;;  %v455_v22 = vld [vmem:[%s7249_s1 + $0xd38] sm:$0xff]  ;;  %v326_v24 = vld [vmem:[%s7249_s1 + $0x930] sm:$0xff] }
 0x14d   :  { %1790 = vmatprep.subr.mxu0 %v351_v56  ;;  %1861 = vmatprep.subr.mxu1 %v479_v57  ;;  %v454_v25 = vld [vmem:[%s7249_s1 + $0xd30] sm:$0xff]  ;;  %v323_v26 = vld [vmem:[%s7249_s1 + $0x918] sm:$0xff] }
 0x14e   :  { %1791 = vmatpush1.msra.mxu0 %v350_v58  ;;  %1862 = vmatpush1.msra.mxu1 %v478_v59  ;;  %v451_v27 = vld [vmem:[%s7249_s1 + $0xd18] sm:$0xff]  ;;  %v322_v28 = vld [vmem:[%s7249_s1 + $0x910] sm:$0xff] }
 0x14f   :  { %1792 = vmatprep.subr.mxu0 %v347_v2  ;;  %1863 = vmatprep.subr.mxu1 %v475_v61  ;;  %v450_v29 = vld [vmem:[%s7249_s1 + $0xd10] sm:$0xff]  ;;  %v319_v30 = vld [vmem:[%s7249_s1 + $0x8f8] sm:$0xff] }
 0x150   :  { %1793 = vmatpush1.msra.mxu0 %v346_v62  ;;  %1864 = vmatpush1.msra.mxu1 %v474_v63  ;;  %v447_v31 = vld [vmem:[%s7249_s1 + $0xcf8] sm:$0xff]  ;;  %v318_v32 = vld [vmem:[%s7249_s1 + $0x8f0] sm:$0xff] }
 0x151   :  { %1794 = vmatprep.subr.mxu0 %v343_v1  ;;  %1865 = vmatprep.subr.mxu1 %v471_v3  ;;  %v446_v33 = vld [vmem:[%s7249_s1 + $0xcf0] sm:$0xff]  ;;  %v315_v34 = vld [vmem:[%s7249_s1 + $0x8d8] sm:$0xff] }
 0x152   :  { %1795 = vmatpush1.msra.mxu0 %v342_v4  ;;  %1866 = vmatpush1.msra.mxu1 %v470_v5  ;;  %v443_v35 = vld [vmem:[%s7249_s1 + $0xcd8] sm:$0xff]  ;;  %v314_v37 = vld [vmem:[%s7249_s1 + $0x8d0] sm:$0xff] }
 0x153   :  { %1796 = vmatprep.subr.mxu0 %v339_v6  ;;  %1867 = vmatprep.subr.mxu1 %v467_v7  ;;  %v442_v38 = vld [vmem:[%s7249_s1 + $0xcd0] sm:$0xff]  ;;  %v311_v40 = vld [vmem:[%s7249_s1 + $0x8b8] sm:$0xff] }
 0x154   :  { %1797 = vmatpush1.msra.mxu0 %v338_v9  ;;  %1868 = vmatpush1.msra.mxu1 %v466_v10  ;;  %v439_v41 = vld [vmem:[%s7249_s1 + $0xcb8] sm:$0xff]  ;;  %v310_v42 = vld [vmem:[%s7249_s1 + $0x8b0] sm:$0xff] }
 0x155   :  { %1798 = vmatprep.subr.mxu0 %v335_v12  ;;  %1869 = vmatprep.subr.mxu1 %v463_v13  ;;  %v438_v43 = vld [vmem:[%s7249_s1 + $0xcb0] sm:$0xff]  ;;  %v307_v44 = vld [vmem:[%s7249_s1 + $0x898] sm:$0xff] }
 0x156   :  { %1799 = vmatpush1.msra.mxu0 %v334_v14  ;;  %1870 = vmatpush1.msra.mxu1 %v462_v15  ;;  %v435_v45 = vld [vmem:[%s7249_s1 + $0xc98] sm:$0xff]  ;;  %v306_v46 = vld [vmem:[%s7249_s1 + $0x890] sm:$0xff] }
 0x157   :  { %1800 = vmatprep.subr.mxu0 %v331_v16  ;;  %1871 = vmatprep.subr.mxu1 %v459_v17  ;;  %v434_v47 = vld [vmem:[%s7249_s1 + $0xc90] sm:$0xff]  ;;  %v303_v48 = vld [vmem:[%s7249_s1 + $0x878] sm:$0xff] }
 0x158   :  { %1801 = vmatpush1.msra.mxu0 %v330_v18  ;;  %1872 = vmatpush1.msra.mxu1 %v458_v19  ;;  %v431_v49 = vld [vmem:[%s7249_s1 + $0xc78] sm:$0xff]  ;;  %v302_v50 = vld [vmem:[%s7249_s1 + $0x870] sm:$0xff] }
 0x159   :  { %1802 = vmatprep.subr.mxu0 %v327_v21  ;;  %1873 = vmatprep.subr.mxu1 %v455_v22  ;;  %v430_v51 = vld [vmem:[%s7249_s1 + $0xc70] sm:$0xff]  ;;  %v299_v52 = vld [vmem:[%s7249_s1 + $0x858] sm:$0xff] }
 0x15a   :  { %1803 = vmatpush1.msra.mxu0 %v326_v24  ;;  %1874 = vmatpush1.msra.mxu1 %v454_v25  ;;  %v427_v53 = vld [vmem:[%s7249_s1 + $0xc58] sm:$0xff]  ;;  %v298_v54 = vld [vmem:[%s7249_s1 + $0x850] sm:$0xff] }
 0x15b   :  { %1804 = vmatprep.subr.mxu0 %v323_v26  ;;  %1875 = vmatprep.subr.mxu1 %v451_v27  ;;  %v426_v55 = vld [vmem:[%s7249_s1 + $0xc50] sm:$0xff]  ;;  %v295_v56 = vld [vmem:[%s7249_s1 + $0x838] sm:$0xff] }
 0x15c   :  { %1805 = vmatpush1.msra.mxu0 %v322_v28  ;;  %1876 = vmatpush1.msra.mxu1 %v450_v29  ;;  %v423_v57 = vld [vmem:[%s7249_s1 + $0xc38] sm:$0xff]  ;;  %v294_v58 = vld [vmem:[%s7249_s1 + $0x830] sm:$0xff] }
 0x15d   :  { %1806 = vmatprep.subr.mxu0 %v319_v30  ;;  %1877 = vmatprep.subr.mxu1 %v447_v31  ;;  %v422_v59 = vld [vmem:[%s7249_s1 + $0xc30] sm:$0xff]  ;;  %v291_v0 = vld [vmem:[%s7249_s1 + $0x818] sm:$0xff] }
 0x15e   :  { %1807 = vmatpush1.msra.mxu0 %v318_v32  ;;  %1878 = vmatpush1.msra.mxu1 %v446_v33  ;;  %v419_v60 = vld [vmem:[%s7249_s1 + $0xc18] sm:$0xff]  ;;  %v290_v2 = vld [vmem:[%s7249_s1 + $0x810] sm:$0xff] }
 0x15f   :  { %1808 = vmatprep.subr.mxu0 %v315_v34  ;;  %1879 = vmatprep.subr.mxu1 %v443_v35  ;;  %v418_v61 = vld [vmem:[%s7249_s1 + $0xc10] sm:$0xff]  ;;  %v415_v62 = vld [vmem:[%s7249_s1 + $0xbf8] sm:$0xff] }
 0x160   :  { %1809 = vmatpush1.msra.mxu0 %v314_v37  ;;  %1880 = vmatpush1.msra.mxu1 %v442_v38  ;;  %v543_v63 = vld [vmem:[%s7249_s1 + $0xff8] sm:$0xff]  ;;  %v414_v1 = vld [vmem:[%s7249_s1 + $0xbf0] sm:$0xff] }
 0x161   :  { %1810 = vmatprep.subr.mxu0 %v311_v40  ;;  %1881 = vmatprep.subr.mxu1 %v439_v41  ;;  %v542_v3 = vld [vmem:[%s7249_s1 + $0xff0] sm:$0xff]  ;;  %v411_v4 = vld [vmem:[%s7249_s1 + $0xbd8] sm:$0xff] }
 0x162   :  { %1811 = vmatpush1.msra.mxu0 %v310_v42  ;;  %1882 = vmatpush1.msra.mxu1 %v438_v43  ;;  %v539_v5 = vld [vmem:[%s7249_s1 + $0xfd8] sm:$0xff]  ;;  %v410_v6 = vld [vmem:[%s7249_s1 + $0xbd0] sm:$0xff] }
 0x163   :  { %1812 = vmatprep.subr.mxu0 %v307_v44  ;;  %1883 = vmatprep.subr.mxu1 %v435_v45  ;;  %v538_v7 = vld [vmem:[%s7249_s1 + $0xfd0] sm:$0xff]  ;;  %v407_v9 = vld [vmem:[%s7249_s1 + $0xbb8] sm:$0xff] }
 0x164   :  { %1813 = vmatpush1.msra.mxu0 %v306_v46  ;;  %1884 = vmatpush1.msra.mxu1 %v434_v47  ;;  %v535_v10 = vld [vmem:[%s7249_s1 + $0xfb8] sm:$0xff]  ;;  %v406_v12 = vld [vmem:[%s7249_s1 + $0xbb0] sm:$0xff] }
 0x165   :  { %1814 = vmatprep.subr.mxu0 %v303_v48  ;;  %1885 = vmatprep.subr.mxu1 %v431_v49  ;;  %v534_v13 = vld [vmem:[%s7249_s1 + $0xfb0] sm:$0xff]  ;;  %v403_v14 = vld [vmem:[%s7249_s1 + $0xb98] sm:$0xff] }
 0x166   :  { %1815 = vmatpush1.msra.mxu0 %v302_v50  ;;  %1886 = vmatpush1.msra.mxu1 %v430_v51  ;;  %v531_v15 = vld [vmem:[%s7249_s1 + $0xf98] sm:$0xff]  ;;  %v402_v16 = vld [vmem:[%s7249_s1 + $0xb90] sm:$0xff] }
 0x167   :  { %1816 = vmatprep.subr.mxu0 %v299_v52  ;;  %1887 = vmatprep.subr.mxu1 %v427_v53  ;;  %v530_v17 = vld [vmem:[%s7249_s1 + $0xf90] sm:$0xff]  ;;  %v399_v18 = vld [vmem:[%s7249_s1 + $0xb78] sm:$0xff] }
 0x168   :  { %1817 = vmatpush1.msra.mxu0 %v298_v54  ;;  %1888 = vmatpush1.msra.mxu1 %v426_v55  ;;  %v527_v19 = vld [vmem:[%s7249_s1 + $0xf78] sm:$0xff]  ;;  %v398_v21 = vld [vmem:[%s7249_s1 + $0xb70] sm:$0xff] }
 0x169   :  { %1818 = vmatprep.subr.mxu0 %v295_v56  ;;  %1889 = vmatprep.subr.mxu1 %v423_v57  ;;  %v526_v22 = vld [vmem:[%s7249_s1 + $0xf70] sm:$0xff]  ;;  %v395_v24 = vld [vmem:[%s7249_s1 + $0xb58] sm:$0xff] }
 0x16a   :  { %1819 = vmatpush1.msra.mxu0 %v294_v58  ;;  %1890 = vmatpush1.msra.mxu1 %v422_v59  ;;  %v523_v25 = vld [vmem:[%s7249_s1 + $0xf58] sm:$0xff]  ;;  %v394_v26 = vld [vmem:[%s7249_s1 + $0xb50] sm:$0xff] }
 0x16b   :  { %1820 = vmatprep.subr.mxu0 %v291_v0  ;;  %1891 = vmatprep.subr.mxu1 %v419_v60  ;;  %v522_v27 = vld [vmem:[%s7249_s1 + $0xf50] sm:$0xff]  ;;  %v391_v28 = vld [vmem:[%s7249_s1 + $0xb38] sm:$0xff] }
 0x16c   :  { %1821 = vmatpush1.msra.mxu0 %v290_v2  ;;  %1892 = vmatpush1.msra.mxu1 %v418_v61  ;;  %v519_v29 = vld [vmem:[%s7249_s1 + $0xf38] sm:$0xff]  ;;  %v390_v30 = vld [vmem:[%s7249_s1 + $0xb30] sm:$0xff] }
 0x16d   :  { %1822 = vmatprep.subr.mxu0 %v415_v62  ;;  %1893 = vmatprep.subr.mxu1 %v543_v63  ;;  %v518_v31 = vld [vmem:[%s7249_s1 + $0xf30] sm:$0xff]  ;;  %v387_v32 = vld [vmem:[%s7249_s1 + $0xb18] sm:$0xff] }
 0x16e   :  { %1823 = vmatpush2.msra.mxu0 %v414_v1  ;;  %1894 = vmatpush2.msra.mxu1 %v542_v3  ;;  %v515_v33 = vld [vmem:[%s7249_s1 + $0xf18] sm:$0xff]  ;;  %v386_v34 = vld [vmem:[%s7249_s1 + $0xb10] sm:$0xff] }
 0x16f   :  { %1824 = vmatprep.subr.mxu0 %v411_v4  ;;  %1895 = vmatprep.subr.mxu1 %v539_v5  ;;  %v514_v35 = vld [vmem:[%s7249_s1 + $0xf10] sm:$0xff]  ;;  %v383_v37 = vld [vmem:[%s7249_s1 + $0xaf8] sm:$0xff] }
 0x170   :  { %1825 = vmatpush2.msra.mxu0 %v410_v6  ;;  %1896 = vmatpush2.msra.mxu1 %v538_v7  ;;  %v511_v38 = vld [vmem:[%s7249_s1 + $0xef8] sm:$0xff]  ;;  %v382_v40 = vld [vmem:[%s7249_s1 + $0xaf0] sm:$0xff] }
 0x171   :  { %1826 = vmatprep.subr.mxu0 %v407_v9  ;;  %1897 = vmatprep.subr.mxu1 %v535_v10  ;;  %v510_v41 = vld [vmem:[%s7249_s1 + $0xef0] sm:$0xff]  ;;  %v379_v42 = vld [vmem:[%s7249_s1 + $0xad8] sm:$0xff] }
 0x172   :  { %1827 = vmatpush2.msra.mxu0 %v406_v12  ;;  %1898 = vmatpush2.msra.mxu1 %v534_v13  ;;  %v507_v43 = vld [vmem:[%s7249_s1 + $0xed8] sm:$0xff]  ;;  %v378_v44 = vld [vmem:[%s7249_s1 + $0xad0] sm:$0xff] }
 0x173   :  { %1828 = vmatprep.subr.mxu0 %v403_v14  ;;  %1899 = vmatprep.subr.mxu1 %v531_v15  ;;  %v506_v45 = vld [vmem:[%s7249_s1 + $0xed0] sm:$0xff]  ;;  %v375_v46 = vld [vmem:[%s7249_s1 + $0xab8] sm:$0xff] }
 0x174   :  { %1829 = vmatpush2.msra.mxu0 %v402_v16  ;;  %1900 = vmatpush2.msra.mxu1 %v530_v17  ;;  %v503_v47 = vld [vmem:[%s7249_s1 + $0xeb8] sm:$0xff]  ;;  %v374_v48 = vld [vmem:[%s7249_s1 + $0xab0] sm:$0xff] }
 0x175   :  { %1830 = vmatprep.subr.mxu0 %v399_v18  ;;  %1901 = vmatprep.subr.mxu1 %v527_v19  ;;  %v502_v49 = vld [vmem:[%s7249_s1 + $0xeb0] sm:$0xff]  ;;  %v371_v50 = vld [vmem:[%s7249_s1 + $0xa98] sm:$0xff] }
 0x176   :  { %1831 = vmatpush2.msra.mxu0 %v398_v21  ;;  %1902 = vmatpush2.msra.mxu1 %v526_v22  ;;  %v499_v51 = vld [vmem:[%s7249_s1 + $0xe98] sm:$0xff]  ;;  %v370_v52 = vld [vmem:[%s7249_s1 + $0xa90] sm:$0xff] }
 0x177   :  { %1832 = vmatprep.subr.mxu0 %v395_v24  ;;  %1903 = vmatprep.subr.mxu1 %v523_v25  ;;  %v498_v53 = vld [vmem:[%s7249_s1 + $0xe90] sm:$0xff]  ;;  %v367_v54 = vld [vmem:[%s7249_s1 + $0xa78] sm:$0xff] }
 0x178   :  { %1833 = vmatpush2.msra.mxu0 %v394_v26  ;;  %1904 = vmatpush2.msra.mxu1 %v522_v27  ;;  %v495_v55 = vld [vmem:[%s7249_s1 + $0xe78] sm:$0xff]  ;;  %v366_v56 = vld [vmem:[%s7249_s1 + $0xa70] sm:$0xff] }
 0x179   :  { %1834 = vmatprep.subr.mxu0 %v391_v28  ;;  %1905 = vmatprep.subr.mxu1 %v519_v29  ;;  %v494_v57 = vld [vmem:[%s7249_s1 + $0xe70] sm:$0xff]  ;;  %v363_v58 = vld [vmem:[%s7249_s1 + $0xa58] sm:$0xff] }
 0x17a   :  { %1835 = vmatpush2.msra.mxu0 %v390_v30  ;;  %1906 = vmatpush2.msra.mxu1 %v518_v31  ;;  %v491_v59 = vld [vmem:[%s7249_s1 + $0xe58] sm:$0xff]  ;;  %v362_v0 = vld [vmem:[%s7249_s1 + $0xa50] sm:$0xff] }
 0x17b   :  { %1836 = vmatprep.subr.mxu0 %v387_v32  ;;  %1907 = vmatprep.subr.mxu1 %v515_v33  ;;  %v490_v60 = vld [vmem:[%s7249_s1 + $0xe50] sm:$0xff]  ;;  %v359_v2 = vld [vmem:[%s7249_s1 + $0xa38] sm:$0xff] }
 0x17c   :  { %1837 = vmatpush2.msra.mxu0 %v386_v34  ;;  %1908 = vmatpush2.msra.mxu1 %v514_v35  ;;  %v487_v61 = vld [vmem:[%s7249_s1 + $0xe38] sm:$0xff]  ;;  %v358_v62 = vld [vmem:[%s7249_s1 + $0xa30] sm:$0xff] }
 0x17d   :  { %1838 = vmatprep.subr.mxu0 %v383_v37  ;;  %1909 = vmatprep.subr.mxu1 %v511_v38  ;;  %v486_v63 = vld [vmem:[%s7249_s1 + $0xe30] sm:$0xff]  ;;  %v355_v1 = vld [vmem:[%s7249_s1 + $0xa18] sm:$0xff] }
 0x17e   :  { %1839 = vmatpush2.msra.mxu0 %v382_v40  ;;  %1910 = vmatpush2.msra.mxu1 %v510_v41  ;;  %v483_v3 = vld [vmem:[%s7249_s1 + $0xe18] sm:$0xff]  ;;  %v354_v4 = vld [vmem:[%s7249_s1 + $0xa10] sm:$0xff] }
 0x17f   :  { %1840 = vmatprep.subr.mxu0 %v379_v42  ;;  %1911 = vmatprep.subr.mxu1 %v507_v43  ;;  %v482_v5 = vld [vmem:[%s7249_s1 + $0xe10] sm:$0xff]  ;;  %v607_v6 = vld [vmem:[%s7249_s1 + $0x11f8] sm:$0xff] }
 0x180   :  { %1841 = vmatpush2.msra.mxu0 %v378_v44  ;;  %1912 = vmatpush2.msra.mxu1 %v506_v45  ;;  %v735_v7 = vld [vmem:[%s7249_s1 + $0x15f8] sm:$0xff]  ;;  %v3306_v9 = vld [vmem:[%s7248_s0 + $0x10] sm:$0xff] }
 0x181   :  { %1842 = vmatprep.subr.mxu0 %v375_v46  ;;  %1913 = vmatprep.subr.mxu1 %v503_v47  ;;  %v606_v10 = vld [vmem:[%s7249_s1 + $0x11f0] sm:$0xff]  ;;  %v731_v13 = vld [vmem:[%s7249_s1 + $0x15d8] sm:$0xff] }
 0x182   :  { %1843 = vmatpush2.msra.mxu0 %v374_v48  ;;  %1914 = vmatpush2.msra.mxu1 %v502_v49  ;;  %v734_v12 = vld [vmem:[%s7249_s1 + $0x15f0] sm:$0xff]  ;;  %v3307_v14 = vld [vmem:[%s7248_s0 + $0x18] sm:$0xff] }
 0x183   :  { %1844 = vmatprep.subr.mxu0 %v371_v50  ;;  %1915 = vmatprep.subr.mxu1 %v499_v51  ;;  %v602_v15 = vld [vmem:[%s7249_s1 + $0x11d0] sm:$0xff]  ;;  %v599_v16 = vld [vmem:[%s7249_s1 + $0x11b8] sm:$0xff] }
 0x184   :  { %1845 = vmatpush2.msra.mxu0 %v370_v52  ;;  %1916 = vmatpush2.msra.mxu1 %v498_v53  ;;  %v727_v17 = vld [vmem:[%s7249_s1 + $0x15b8] sm:$0xff]  ;;  %v598_v18 = vld [vmem:[%s7249_s1 + $0x11b0] sm:$0xff] }
 0x185   :  { %1846 = vmatprep.subr.mxu0 %v367_v54  ;;  %1917 = vmatprep.subr.mxu1 %v495_v55  ;;  %v726_v19 = vld [vmem:[%s7249_s1 + $0x15b0] sm:$0xff]  ;;  %v595_v21 = vld [vmem:[%s7249_s1 + $0x1198] sm:$0xff] }
 0x186   :  { %1847 = vmatpush2.msra.mxu0 %v366_v56  ;;  %1918 = vmatpush2.msra.mxu1 %v494_v57  ;;  %v723_v22 = vld [vmem:[%s7249_s1 + $0x1598] sm:$0xff]  ;;  %v594_v24 = vld [vmem:[%s7249_s1 + $0x1190] sm:$0xff] }
 0x187   :  { %1848 = vmatprep.subr.mxu0 %v363_v58  ;;  %1919 = vmatprep.subr.mxu1 %v491_v59  ;;  %v722_v25 = vld [vmem:[%s7249_s1 + $0x1590] sm:$0xff]  ;;  %v591_v26 = vld [vmem:[%s7249_s1 + $0x1178] sm:$0xff] }
 0x188   :  { %1849 = vmatpush2.msra.mxu0 %v362_v0  ;;  %1920 = vmatpush2.msra.mxu1 %v490_v60  ;;  %v719_v27 = vld [vmem:[%s7249_s1 + $0x1578] sm:$0xff]  ;;  %v590_v28 = vld [vmem:[%s7249_s1 + $0x1170] sm:$0xff] }
 0x189   :  { %1850 = vmatprep.subr.mxu0 %v359_v2  ;;  %1921 = vmatprep.subr.mxu1 %v487_v61  ;;  %v718_v29 = vld [vmem:[%s7249_s1 + $0x1570] sm:$0xff]  ;;  %v587_v30 = vld [vmem:[%s7249_s1 + $0x1158] sm:$0xff] }
 0x18a   :  { %1851 = vmatpush2.msra.mxu0 %v358_v62  ;;  %1922 = vmatpush2.msra.mxu1 %v486_v63  ;;  %v715_v31 = vld [vmem:[%s7249_s1 + $0x1558] sm:$0xff]  ;;  %v586_v32 = vld [vmem:[%s7249_s1 + $0x1150] sm:$0xff] }
 0x18b   :  { %1852 = vmatprep.subr.mxu0 %v355_v1  ;;  %1923 = vmatprep.subr.mxu1 %v483_v3  ;;  %v714_v33 = vld [vmem:[%s7249_s1 + $0x1550] sm:$0xff]  ;;  %v583_v34 = vld [vmem:[%s7249_s1 + $0x1138] sm:$0xff] }
 0x18c   :  { %1853 = vmatpush2.msra.mxu0 %v354_v4  ;;  %1854 = vmatprep.mubr.f32.mxu0 %v4153_v8  ;;  %v603_v8 = vld [vmem:[%s7249_s1 + $0x11d8] sm:$0xff]  ;;  %v582_v37 = vld [vmem:[%s7249_s1 + $0x1130] sm:$0xff] }
 0x18d   :  { %1924 = vmatpush2.msra.mxu1 %v482_v5  ;;  %1855 = vmatmul.mubr.f32.vlgmr.msra.gmra.mxu0 %v3306_v9  ;;  %v711_v35 = vld [vmem:[%s7249_s1 + $0x1538] sm:$0xff]  ;;  %v710_v38 = vld [vmem:[%s7249_s1 + $0x1530] sm:$0xff] }
 0x18e   :  { %1925 = vmatprep.mubr.f32.mxu1 %v4161_v11  ;;  %1932 = vmatprep.subr.mxu0 %v607_v6  ;;  %v730_v11 = vld [vmem:[%s7249_s1 + $0x15d0] sm:$0xff]  ;;  %v579_v40 = vld [vmem:[%s7249_s1 + $0x1118] sm:$0xff] }
 0x18f   :  { %2003 = vmatprep.subr.mxu1 %v735_v7  ;;  %1926 = vmatmul.mubr.f32.vlgmr.msra.gmra.mxu1 %v3307_v14  ;;  %v707_v41 = vld [vmem:[%s7249_s1 + $0x1518] sm:$0xff]  ;;  %v578_v42 = vld [vmem:[%s7249_s1 + $0x1110] sm:$0xff] }
 0x190   :  { %1933 = vmatpush1.msra.mxu0 %v606_v10  ;;  %2004 = vmatpush1.msra.mxu1 %v734_v12  ;;  %v706_v43 = vld [vmem:[%s7249_s1 + $0x1510] sm:$0xff]  ;;  %v575_v44 = vld [vmem:[%s7249_s1 + $0x10f8] sm:$0xff] }
 0x191   :  { %1934 = vmatprep.subr.mxu0 %v603_v8  ;;  %2005 = vmatprep.subr.mxu1 %v731_v13  ;;  %v703_v45 = vld [vmem:[%s7249_s1 + $0x14f8] sm:$0xff]  ;;  %v574_v46 = vld [vmem:[%s7249_s1 + $0x10f0] sm:$0xff] }
 0x192   :  { %1935 = vmatpush1.msra.mxu0 %v602_v15  ;;  %2006 = vmatpush1.msra.mxu1 %v730_v11  ;;  %v702_v47 = vld [vmem:[%s7249_s1 + $0x14f0] sm:$0xff]  ;;  %v571_v48 = vld [vmem:[%s7249_s1 + $0x10d8] sm:$0xff] }
 0x193   :  { %1936 = vmatprep.subr.mxu0 %v599_v16  ;;  %2007 = vmatprep.subr.mxu1 %v727_v17  ;;  %v699_v49 = vld [vmem:[%s7249_s1 + $0x14d8] sm:$0xff]  ;;  %v570_v50 = vld [vmem:[%s7249_s1 + $0x10d0] sm:$0xff] }
 0x194   :  { %1937 = vmatpush1.msra.mxu0 %v598_v18  ;;  %2008 = vmatpush1.msra.mxu1 %v726_v19  ;;  %v698_v51 = vld [vmem:[%s7249_s1 + $0x14d0] sm:$0xff]  ;;  %v567_v52 = vld [vmem:[%s7249_s1 + $0x10b8] sm:$0xff] }
 0x195   :  { %1938 = vmatprep.subr.mxu0 %v595_v21  ;;  %2009 = vmatprep.subr.mxu1 %v723_v22  ;;  %v695_v53 = vld [vmem:[%s7249_s1 + $0x14b8] sm:$0xff]  ;;  %v566_v54 = vld [vmem:[%s7249_s1 + $0x10b0] sm:$0xff] }
 0x196   :  { %1939 = vmatpush1.msra.mxu0 %v594_v24  ;;  %2010 = vmatpush1.msra.mxu1 %v722_v25  ;;  %v694_v55 = vld [vmem:[%s7249_s1 + $0x14b0] sm:$0xff]  ;;  %v563_v56 = vld [vmem:[%s7249_s1 + $0x1098] sm:$0xff] }
 0x197   :  { %1940 = vmatprep.subr.mxu0 %v591_v26  ;;  %2011 = vmatprep.subr.mxu1 %v719_v27  ;;  %v691_v57 = vld [vmem:[%s7249_s1 + $0x1498] sm:$0xff]  ;;  %v562_v58 = vld [vmem:[%s7249_s1 + $0x1090] sm:$0xff] }
 0x198   :  { %1941 = vmatpush1.msra.mxu0 %v590_v28  ;;  %2012 = vmatpush1.msra.mxu1 %v718_v29  ;;  %v690_v59 = vld [vmem:[%s7249_s1 + $0x1490] sm:$0xff]  ;;  %v559_v0 = vld [vmem:[%s7249_s1 + $0x1078] sm:$0xff]  ;;  %v7255_v28 = vmov 0.0  }
 0x199   :  { %1942 = vmatprep.subr.mxu0 %v587_v30  ;;  %2013 = vmatprep.subr.mxu1 %v715_v31  ;;  %v687_v60 = vld [vmem:[%s7249_s1 + $0x1478] sm:$0xff]  ;;  %v558_v2 = vld [vmem:[%s7249_s1 + $0x1070] sm:$0xff]  ;;  %2281 = vst [vmem:[#allocation2] sm:$0xff] %v7255_v28 }
 0x19a   :  { %1943 = vmatpush1.msra.mxu0 %v586_v32  ;;  %2014 = vmatpush1.msra.mxu1 %v714_v33  ;;  %v686_v61 = vld [vmem:[%s7249_s1 + $0x1470] sm:$0xff]  ;;  %v555_v62 = vld [vmem:[%s7249_s1 + $0x1058] sm:$0xff] }
 0x19b   :  { %1944 = vmatprep.subr.mxu0 %v583_v34  ;;  %2015 = vmatprep.subr.mxu1 %v711_v35  ;;  %v683_v63 = vld [vmem:[%s7249_s1 + $0x1458] sm:$0xff]  ;;  %v554_v1 = vld [vmem:[%s7249_s1 + $0x1050] sm:$0xff] }
 0x19c   :  { %1945 = vmatpush1.msra.mxu0 %v582_v37  ;;  %2016 = vmatpush1.msra.mxu1 %v710_v38  ;;  %v682_v3 = vld [vmem:[%s7249_s1 + $0x1450] sm:$0xff]  ;;  %v551_v4 = vld [vmem:[%s7249_s1 + $0x1038] sm:$0xff] }
 0x19d   :  { %1946 = vmatprep.subr.mxu0 %v579_v40  ;;  %2017 = vmatprep.subr.mxu1 %v707_v41  ;;  %v679_v5 = vld [vmem:[%s7249_s1 + $0x1438] sm:$0xff]  ;;  %v550_v6 = vld [vmem:[%s7249_s1 + $0x1030] sm:$0xff] }
 0x19e   :  { %1947 = vmatpush1.msra.mxu0 %v578_v42  ;;  %2018 = vmatpush1.msra.mxu1 %v706_v43  ;;  %v678_v7 = vld [vmem:[%s7249_s1 + $0x1430] sm:$0xff]  ;;  %v547_v9 = vld [vmem:[%s7249_s1 + $0x1018] sm:$0xff] }
 0x19f   :  { %1948 = vmatprep.subr.mxu0 %v575_v44  ;;  %2019 = vmatprep.subr.mxu1 %v703_v45  ;;  %v675_v10 = vld [vmem:[%s7249_s1 + $0x1418] sm:$0xff]  ;;  %v546_v12 = vld [vmem:[%s7249_s1 + $0x1010] sm:$0xff] }
 0x1a0   :  { %1949 = vmatpush1.msra.mxu0 %v574_v46  ;;  %2020 = vmatpush1.msra.mxu1 %v702_v47  ;;  %v674_v8 = vld [vmem:[%s7249_s1 + $0x1410] sm:$0xff]  ;;  %v671_v13 = vld [vmem:[%s7249_s1 + $0x13f8] sm:$0xff] }
 0x1a1   :  { %1950 = vmatprep.subr.mxu0 %v571_v48  ;;  %2021 = vmatprep.subr.mxu1 %v699_v49  ;;  %v799_v14 = vld [vmem:[%s7249_s1 + $0x17f8] sm:$0xff]  ;;  %v670_v15 = vld [vmem:[%s7249_s1 + $0x13f0] sm:$0xff] }
 0x1a2   :  { %1951 = vmatpush1.msra.mxu0 %v570_v50  ;;  %2022 = vmatpush1.msra.mxu1 %v698_v51  ;;  %v798_v11 = vld [vmem:[%s7249_s1 + $0x17f0] sm:$0xff]  ;;  %v667_v16 = vld [vmem:[%s7249_s1 + $0x13d8] sm:$0xff] }
 0x1a3   :  { %1952 = vmatprep.subr.mxu0 %v567_v52  ;;  %2023 = vmatprep.subr.mxu1 %v695_v53  ;;  %v795_v17 = vld [vmem:[%s7249_s1 + $0x17d8] sm:$0xff]  ;;  %v666_v18 = vld [vmem:[%s7249_s1 + $0x13d0] sm:$0xff] }
 0x1a4   :  { %1953 = vmatpush1.msra.mxu0 %v566_v54  ;;  %2024 = vmatpush1.msra.mxu1 %v694_v55  ;;  %v794_v19 = vld [vmem:[%s7249_s1 + $0x17d0] sm:$0xff]  ;;  %v663_v21 = vld [vmem:[%s7249_s1 + $0x13b8] sm:$0xff] }
 0x1a5   :  { %1954 = vmatprep.subr.mxu0 %v563_v56  ;;  %2025 = vmatprep.subr.mxu1 %v691_v57  ;;  %v791_v22 = vld [vmem:[%s7249_s1 + $0x17b8] sm:$0xff]  ;;  %v662_v24 = vld [vmem:[%s7249_s1 + $0x13b0] sm:$0xff] }
 0x1a6   :  { %1955 = vmatpush1.msra.mxu0 %v562_v58  ;;  %2026 = vmatpush1.msra.mxu1 %v690_v59  ;;  %v790_v25 = vld [vmem:[%s7249_s1 + $0x17b0] sm:$0xff]  ;;  %v659_v26 = vld [vmem:[%s7249_s1 + $0x1398] sm:$0xff] }
 0x1a7   :  { %1956 = vmatprep.subr.mxu0 %v559_v0  ;;  %2027 = vmatprep.subr.mxu1 %v687_v60  ;;  %v787_v27 = vld [vmem:[%s7249_s1 + $0x1798] sm:$0xff]  ;;  %v658_v29 = vld [vmem:[%s7249_s1 + $0x1390] sm:$0xff] }
 0x1a8   :  { %1957 = vmatpush1.msra.mxu0 %v558_v2  ;;  %2028 = vmatpush1.msra.mxu1 %v686_v61  ;;  %v786_v30 = vld [vmem:[%s7249_s1 + $0x1790] sm:$0xff]  ;;  %v655_v31 = vld [vmem:[%s7249_s1 + $0x1378] sm:$0xff] }
 0x1a9   :  { %1958 = vmatprep.subr.mxu0 %v555_v62  ;;  %2029 = vmatprep.subr.mxu1 %v683_v63  ;;  %v783_v32 = vld [vmem:[%s7249_s1 + $0x1778] sm:$0xff]  ;;  %v654_v33 = vld [vmem:[%s7249_s1 + $0x1370] sm:$0xff] }
 0x1aa   :  { %1959 = vmatpush1.msra.mxu0 %v554_v1  ;;  %2030 = vmatpush1.msra.mxu1 %v682_v3  ;;  %v782_v34 = vld [vmem:[%s7249_s1 + $0x1770] sm:$0xff]  ;;  %v651_v35 = vld [vmem:[%s7249_s1 + $0x1358] sm:$0xff] }
 0x1ab   :  { %1960 = vmatprep.subr.mxu0 %v551_v4  ;;  %2031 = vmatprep.subr.mxu1 %v679_v5  ;;  %v779_v37 = vld [vmem:[%s7249_s1 + $0x1758] sm:$0xff]  ;;  %v650_v38 = vld [vmem:[%s7249_s1 + $0x1350] sm:$0xff] }
 0x1ac   :  { %1961 = vmatpush1.msra.mxu0 %v550_v6  ;;  %2032 = vmatpush1.msra.mxu1 %v678_v7  ;;  %v778_v40 = vld [vmem:[%s7249_s1 + $0x1750] sm:$0xff]  ;;  %v647_v41 = vld [vmem:[%s7249_s1 + $0x1338] sm:$0xff] }
 0x1ad   :  { %1962 = vmatprep.subr.mxu0 %v547_v9  ;;  %2033 = vmatprep.subr.mxu1 %v675_v10  ;;  %v775_v42 = vld [vmem:[%s7249_s1 + $0x1738] sm:$0xff]  ;;  %v646_v43 = vld [vmem:[%s7249_s1 + $0x1330] sm:$0xff] }
 0x1ae   :  { %1963 = vmatpush1.msra.mxu0 %v546_v12  ;;  %2034 = vmatpush1.msra.mxu1 %v674_v8  ;;  %v774_v44 = vld [vmem:[%s7249_s1 + $0x1730] sm:$0xff]  ;;  %v643_v45 = vld [vmem:[%s7249_s1 + $0x1318] sm:$0xff] }
 0x1af   :  { %1964 = vmatprep.subr.mxu0 %v671_v13  ;;  %2035 = vmatprep.subr.mxu1 %v799_v14  ;;  %v771_v46 = vld [vmem:[%s7249_s1 + $0x1718] sm:$0xff]  ;;  %v642_v47 = vld [vmem:[%s7249_s1 + $0x1310] sm:$0xff] }
 0x1b0   :  { %1965 = vmatpush2.msra.mxu0 %v670_v15  ;;  %2036 = vmatpush2.msra.mxu1 %v798_v11  ;;  %v770_v48 = vld [vmem:[%s7249_s1 + $0x1710] sm:$0xff]  ;;  %v639_v49 = vld [vmem:[%s7249_s1 + $0x12f8] sm:$0xff] }
 0x1b1   :  { %1966 = vmatprep.subr.mxu0 %v667_v16  ;;  %2037 = vmatprep.subr.mxu1 %v795_v17  ;;  %v767_v50 = vld [vmem:[%s7249_s1 + $0x16f8] sm:$0xff]  ;;  %v638_v51 = vld [vmem:[%s7249_s1 + $0x12f0] sm:$0xff] }
 0x1b2   :  { %1967 = vmatpush2.msra.mxu0 %v666_v18  ;;  %2038 = vmatpush2.msra.mxu1 %v794_v19  ;;  %v766_v52 = vld [vmem:[%s7249_s1 + $0x16f0] sm:$0xff]  ;;  %v635_v53 = vld [vmem:[%s7249_s1 + $0x12d8] sm:$0xff]  ;;  %v3308_v19 = vld [vmem:[%s7248_s0 + $0x20] sm:$0xff] }
 0x1b3   :  { %1968 = vmatprep.subr.mxu0 %v663_v21  ;;  %2039 = vmatprep.subr.mxu1 %v791_v22  ;;  %v763_v54 = vld [vmem:[%s7249_s1 + $0x16d8] sm:$0xff]  ;;  %v634_v55 = vld [vmem:[%s7249_s1 + $0x12d0] sm:$0xff] }
 0x1b4   :  { %1969 = vmatpush2.msra.mxu0 %v662_v24  ;;  %2040 = vmatpush2.msra.mxu1 %v790_v25  ;;  %v762_v56 = vld [vmem:[%s7249_s1 + $0x16d0] sm:$0xff]  ;;  %v631_v57 = vld [vmem:[%s7249_s1 + $0x12b8] sm:$0xff]  ;;  %v3309_v25 = vld [vmem:[%s7248_s0 + $0x28] sm:$0xff] }
 0x1b5   :  { %1970 = vmatprep.subr.mxu0 %v659_v26  ;;  %2041 = vmatprep.subr.mxu1 %v787_v27  ;;  %v759_v58 = vld [vmem:[%s7249_s1 + $0x16b8] sm:$0xff]  ;;  %v630_v59 = vld [vmem:[%s7249_s1 + $0x12b0] sm:$0xff] }
 0x1b6   :  { %1971 = vmatpush2.msra.mxu0 %v658_v29  ;;  %2042 = vmatpush2.msra.mxu1 %v786_v30  ;;  %v758_v0 = vld [vmem:[%s7249_s1 + $0x16b0] sm:$0xff]  ;;  %v627_v60 = vld [vmem:[%s7249_s1 + $0x1298] sm:$0xff] }
 0x1b7   :  { %1972 = vmatprep.subr.mxu0 %v655_v31  ;;  %2043 = vmatprep.subr.mxu1 %v783_v32  ;;  %v755_v2 = vld [vmem:[%s7249_s1 + $0x1698] sm:$0xff]  ;;  %v626_v61 = vld [vmem:[%s7249_s1 + $0x1290] sm:$0xff] }
 0x1b8   :  { %1973 = vmatpush2.msra.mxu0 %v654_v33  ;;  %2044 = vmatpush2.msra.mxu1 %v782_v34  ;;  %v754_v62 = vld [vmem:[%s7249_s1 + $0x1690] sm:$0xff]  ;;  %v623_v63 = vld [vmem:[%s7249_s1 + $0x1278] sm:$0xff] }
 0x1b9   :  { %1974 = vmatprep.subr.mxu0 %v651_v35  ;;  %2045 = vmatprep.subr.mxu1 %v779_v37  ;;  %v751_v1 = vld [vmem:[%s7249_s1 + $0x1678] sm:$0xff]  ;;  %v622_v3 = vld [vmem:[%s7249_s1 + $0x1270] sm:$0xff] }
 0x1ba   :  { %1975 = vmatpush2.msra.mxu0 %v650_v38  ;;  %2046 = vmatpush2.msra.mxu1 %v778_v40  ;;  %v750_v4 = vld [vmem:[%s7249_s1 + $0x1670] sm:$0xff]  ;;  %v619_v5 = vld [vmem:[%s7249_s1 + $0x1258] sm:$0xff] }
 0x1bb   :  { %1976 = vmatprep.subr.mxu0 %v647_v41  ;;  %2047 = vmatprep.subr.mxu1 %v775_v42  ;;  %v747_v6 = vld [vmem:[%s7249_s1 + $0x1658] sm:$0xff]  ;;  %v618_v7 = vld [vmem:[%s7249_s1 + $0x1250] sm:$0xff] }
 0x1bc   :  { %1977 = vmatpush2.msra.mxu0 %v646_v43  ;;  %2048 = vmatpush2.msra.mxu1 %v774_v44  ;;  %v746_v9 = vld [vmem:[%s7249_s1 + $0x1650] sm:$0xff]  ;;  %v615_v10 = vld [vmem:[%s7249_s1 + $0x1238] sm:$0xff] }
 0x1bd   :  { %1978 = vmatprep.subr.mxu0 %v643_v45  ;;  %2049 = vmatprep.subr.mxu1 %v771_v46  ;;  %v743_v12 = vld [vmem:[%s7249_s1 + $0x1638] sm:$0xff]  ;;  %v614_v8 = vld [vmem:[%s7249_s1 + $0x1230] sm:$0xff] }
 0x1be   :  { %1979 = vmatpush2.msra.mxu0 %v642_v47  ;;  %2050 = vmatpush2.msra.mxu1 %v770_v48  ;;  %v742_v13 = vld [vmem:[%s7249_s1 + $0x1630] sm:$0xff]  ;;  %v611_v14 = vld [vmem:[%s7249_s1 + $0x1218] sm:$0xff] }
 0x1bf   :  { %1980 = vmatprep.subr.mxu0 %v639_v49  ;;  %2051 = vmatprep.subr.mxu1 %v767_v50  ;;  %v739_v15 = vld [vmem:[%s7249_s1 + $0x1618] sm:$0xff]  ;;  %v610_v11 = vld [vmem:[%s7249_s1 + $0x1210] sm:$0xff] }
 0x1c0   :  { %1981 = vmatpush2.msra.mxu0 %v638_v51  ;;  %2052 = vmatpush2.msra.mxu1 %v766_v52  ;;  %v738_v16 = vld [vmem:[%s7249_s1 + $0x1610] sm:$0xff]  ;;  %v863_v17 = vld [vmem:[%s7249_s1 + $0x19f8] sm:$0xff] }
 0x1c1   :  { %1982 = vmatprep.subr.mxu0 %v635_v53  ;;  %2053 = vmatprep.subr.mxu1 %v763_v54  ;;  %v991_v18 = vld [vmem:[%s7249_s1 + $0x1df8] sm:$0xff]  ;;  %v862_v21 = vld [vmem:[%s7249_s1 + $0x19f0] sm:$0xff] }
 0x1c2   :  { %1983 = vmatpush2.msra.mxu0 %v634_v55  ;;  %2054 = vmatpush2.msra.mxu1 %v762_v56  ;;  %v990_v22 = vld [vmem:[%s7249_s1 + $0x1df0] sm:$0xff]  ;;  %v987_v24 = vld [vmem:[%s7249_s1 + $0x1dd8] sm:$0xff] }
 0x1c3   :  { %1984 = vmatprep.subr.mxu0 %v631_v57  ;;  %2055 = vmatprep.subr.mxu1 %v759_v58  ;;  %v858_v26 = vld [vmem:[%s7249_s1 + $0x19d0] sm:$0xff]  ;;  %v855_v27 = vld [vmem:[%s7249_s1 + $0x19b8] sm:$0xff] }
 0x1c4   :  { %1985 = vmatpush2.msra.mxu0 %v630_v59  ;;  %2056 = vmatpush2.msra.mxu1 %v758_v0  ;;  %v983_v29 = vld [vmem:[%s7249_s1 + $0x1db8] sm:$0xff]  ;;  %v854_v30 = vld [vmem:[%s7249_s1 + $0x19b0] sm:$0xff] }
 0x1c5   :  { %1986 = vmatprep.subr.mxu0 %v627_v60  ;;  %2057 = vmatprep.subr.mxu1 %v755_v2  ;;  %v982_v31 = vld [vmem:[%s7249_s1 + $0x1db0] sm:$0xff]  ;;  %v851_v32 = vld [vmem:[%s7249_s1 + $0x1998] sm:$0xff] }
 0x1c6   :  { %1987 = vmatpush2.msra.mxu0 %v626_v61  ;;  %2058 = vmatpush2.msra.mxu1 %v754_v62  ;;  %v979_v33 = vld [vmem:[%s7249_s1 + $0x1d98] sm:$0xff]  ;;  %v850_v34 = vld [vmem:[%s7249_s1 + $0x1990] sm:$0xff] }
 0x1c7   :  { %1988 = vmatprep.subr.mxu0 %v623_v63  ;;  %2059 = vmatprep.subr.mxu1 %v751_v1  ;;  %v978_v35 = vld [vmem:[%s7249_s1 + $0x1d90] sm:$0xff]  ;;  %v847_v37 = vld [vmem:[%s7249_s1 + $0x1978] sm:$0xff] }
 0x1c8   :  { %1989 = vmatpush2.msra.mxu0 %v622_v3  ;;  %2060 = vmatpush2.msra.mxu1 %v750_v4  ;;  %v975_v38 = vld [vmem:[%s7249_s1 + $0x1d78] sm:$0xff]  ;;  %v846_v40 = vld [vmem:[%s7249_s1 + $0x1970] sm:$0xff] }
 0x1c9   :  { %1990 = vmatprep.subr.mxu0 %v619_v5  ;;  %2061 = vmatprep.subr.mxu1 %v747_v6  ;;  %v974_v41 = vld [vmem:[%s7249_s1 + $0x1d70] sm:$0xff]  ;;  %v843_v42 = vld [vmem:[%s7249_s1 + $0x1958] sm:$0xff] }
 0x1ca   :  { %1991 = vmatpush2.msra.mxu0 %v618_v7  ;;  %2062 = vmatpush2.msra.mxu1 %v746_v9  ;;  %v971_v43 = vld [vmem:[%s7249_s1 + $0x1d58] sm:$0xff]  ;;  %v842_v44 = vld [vmem:[%s7249_s1 + $0x1950] sm:$0xff] }
 0x1cb   :  { %1992 = vmatprep.subr.mxu0 %v615_v10  ;;  %2063 = vmatprep.subr.mxu1 %v743_v12  ;;  %v970_v45 = vld [vmem:[%s7249_s1 + $0x1d50] sm:$0xff]  ;;  %v839_v46 = vld [vmem:[%s7249_s1 + $0x1938] sm:$0xff] }
 0x1cc   :  { %1993 = vmatpush2.msra.mxu0 %v614_v8  ;;  %2064 = vmatpush2.msra.mxu1 %v742_v13  ;;  %v967_v47 = vld [vmem:[%s7249_s1 + $0x1d38] sm:$0xff]  ;;  %v838_v48 = vld [vmem:[%s7249_s1 + $0x1930] sm:$0xff] }
 0x1cd   :  { %1994 = vmatprep.subr.mxu0 %v611_v14  ;;  %2065 = vmatprep.subr.mxu1 %v739_v15  ;;  %v966_v49 = vld [vmem:[%s7249_s1 + $0x1d30] sm:$0xff]  ;;  %v835_v50 = vld [vmem:[%s7249_s1 + $0x1918] sm:$0xff] }
 0x1ce   :  { %1995 = vmatpush2.msra.mxu0 %v610_v11  ;;  %1996 = vmatprep.mubr.f32.mxu0 %v4549_v20  ;;  %v859_v20 = vld [vmem:[%s7249_s1 + $0x19d8] sm:$0xff]  ;;  %v834_v52 = vld [vmem:[%s7249_s1 + $0x1910] sm:$0xff] }
 0x1cf   :  { %2066 = vmatpush2.msra.mxu1 %v738_v16  ;;  %1997 = vmatmul.mubr.f32.vlgmr.msra.gmra.mxu0 %v3308_v19  ;;  %v963_v51 = vld [vmem:[%s7249_s1 + $0x1d18] sm:$0xff]  ;;  %v962_v53 = vld [vmem:[%s7249_s1 + $0x1d10] sm:$0xff] }
 0x1d0   :  { %2067 = vmatprep.mubr.f32.mxu1 %v4557_v23  ;;  %2074 = vmatprep.subr.mxu0 %v863_v17  ;;  %v986_v23 = vld [vmem:[%s7249_s1 + $0x1dd0] sm:$0xff]  ;;  %v831_v54 = vld [vmem:[%s7249_s1 + $0x18f8] sm:$0xff] }
 0x1d1   :  { %2145 = vmatprep.subr.mxu1 %v991_v18  ;;  %2068 = vmatmul.mubr.f32.vlgmr.msra.gmra.mxu1 %v3309_v25  ;;  %v959_v55 = vld [vmem:[%s7249_s1 + $0x1cf8] sm:$0xff]  ;;  %v830_v56 = vld [vmem:[%s7249_s1 + $0x18f0] sm:$0xff] }
 0x1d2   :  { %2075 = vmatpush1.msra.mxu0 %v862_v21  ;;  %2146 = vmatpush1.msra.mxu1 %v990_v22  ;;  %v958_v57 = vld [vmem:[%s7249_s1 + $0x1cf0] sm:$0xff]  ;;  %v827_v58 = vld [vmem:[%s7249_s1 + $0x18d8] sm:$0xff] }
 0x1d3   :  { %2076 = vmatprep.subr.mxu0 %v859_v20  ;;  %2147 = vmatprep.subr.mxu1 %v987_v24  ;;  %v955_v59 = vld [vmem:[%s7249_s1 + $0x1cd8] sm:$0xff]  ;;  %v826_v0 = vld [vmem:[%s7249_s1 + $0x18d0] sm:$0xff] }
 0x1d4   :  { %2077 = vmatpush1.msra.mxu0 %v858_v26  ;;  %2148 = vmatpush1.msra.mxu1 %v986_v23  ;;  %v954_v60 = vld [vmem:[%s7249_s1 + $0x1cd0] sm:$0xff]  ;;  %v823_v2 = vld [vmem:[%s7249_s1 + $0x18b8] sm:$0xff] }
 0x1d5   :  { %2078 = vmatprep.subr.mxu0 %v855_v27  ;;  %2149 = vmatprep.subr.mxu1 %v983_v29  ;;  %v951_v61 = vld [vmem:[%s7249_s1 + $0x1cb8] sm:$0xff]  ;;  %v822_v62 = vld [vmem:[%s7249_s1 + $0x18b0] sm:$0xff] }
 0x1d6   :  { %2079 = vmatpush1.msra.mxu0 %v854_v30  ;;  %2150 = vmatpush1.msra.mxu1 %v982_v31  ;;  %v950_v63 = vld [vmem:[%s7249_s1 + $0x1cb0] sm:$0xff]  ;;  %v819_v1 = vld [vmem:[%s7249_s1 + $0x1898] sm:$0xff] }
 0x1d7   :  { %2080 = vmatprep.subr.mxu0 %v851_v32  ;;  %2151 = vmatprep.subr.mxu1 %v979_v33  ;;  %v947_v3 = vld [vmem:[%s7249_s1 + $0x1c98] sm:$0xff]  ;;  %v818_v4 = vld [vmem:[%s7249_s1 + $0x1890] sm:$0xff] }
 0x1d8   :  { %2081 = vmatpush1.msra.mxu0 %v850_v34  ;;  %2152 = vmatpush1.msra.mxu1 %v978_v35  ;;  %v946_v5 = vld [vmem:[%s7249_s1 + $0x1c90] sm:$0xff]  ;;  %v815_v6 = vld [vmem:[%s7249_s1 + $0x1878] sm:$0xff] }
 0x1d9   :  { %2082 = vmatprep.subr.mxu0 %v847_v37  ;;  %2153 = vmatprep.subr.mxu1 %v975_v38  ;;  %v943_v7 = vld [vmem:[%s7249_s1 + $0x1c78] sm:$0xff]  ;;  %v814_v9 = vld [vmem:[%s7249_s1 + $0x1870] sm:$0xff] }
 0x1da   :  { %2083 = vmatpush1.msra.mxu0 %v846_v40  ;;  %2154 = vmatpush1.msra.mxu1 %v974_v41  ;;  %v942_v10 = vld [vmem:[%s7249_s1 + $0x1c70] sm:$0xff]  ;;  %v811_v12 = vld [vmem:[%s7249_s1 + $0x1858] sm:$0xff] }
 0x1db   :  { %2084 = vmatprep.subr.mxu0 %v843_v42  ;;  %2155 = vmatprep.subr.mxu1 %v971_v43  ;;  %v939_v8 = vld [vmem:[%s7249_s1 + $0x1c58] sm:$0xff]  ;;  %v810_v13 = vld [vmem:[%s7249_s1 + $0x1850] sm:$0xff] }
 0x1dc   :  { %2085 = vmatpush1.msra.mxu0 %v842_v44  ;;  %2156 = vmatpush1.msra.mxu1 %v970_v45  ;;  %v938_v14 = vld [vmem:[%s7249_s1 + $0x1c50] sm:$0xff]  ;;  %v807_v15 = vld [vmem:[%s7249_s1 + $0x1838] sm:$0xff] }
 0x1dd   :  { %2086 = vmatprep.subr.mxu0 %v839_v46  ;;  %2157 = vmatprep.subr.mxu1 %v967_v47  ;;  %v935_v11 = vld [vmem:[%s7249_s1 + $0x1c38] sm:$0xff]  ;;  %v806_v16 = vld [vmem:[%s7249_s1 + $0x1830] sm:$0xff] }
 0x1de   :  { %2087 = vmatpush1.msra.mxu0 %v838_v48  ;;  %2158 = vmatpush1.msra.mxu1 %v966_v49  ;;  %v934_v17 = vld [vmem:[%s7249_s1 + $0x1c30] sm:$0xff]  ;;  %v803_v18 = vld [vmem:[%s7249_s1 + $0x1818] sm:$0xff] }
 0x1df   :  { %2088 = vmatprep.subr.mxu0 %v835_v50  ;;  %2159 = vmatprep.subr.mxu1 %v963_v51  ;;  %v931_v19 = vld [vmem:[%s7249_s1 + $0x1c18] sm:$0xff]  ;;  %v802_v21 = vld [vmem:[%s7249_s1 + $0x1810] sm:$0xff] }
 0x1e0   :  { %2089 = vmatpush1.msra.mxu0 %v834_v52  ;;  %2160 = vmatpush1.msra.mxu1 %v962_v53  ;;  %v930_v22 = vld [vmem:[%s7249_s1 + $0x1c10] sm:$0xff]  ;;  %v927_v20 = vld [vmem:[%s7249_s1 + $0x1bf8] sm:$0xff] }
 0x1e1   :  { %2090 = vmatprep.subr.mxu0 %v831_v54  ;;  %2161 = vmatprep.subr.mxu1 %v959_v55  ;;  %v1055_v24 = vld [vmem:[%s7249_s1 + $0x1ff8] sm:$0xff]  ;;  %v926_v25 = vld [vmem:[%s7249_s1 + $0x1bf0] sm:$0xff] }
 0x1e2   :  { %2091 = vmatpush1.msra.mxu0 %v830_v56  ;;  %2162 = vmatpush1.msra.mxu1 %v958_v57  ;;  %v1054_v26 = vld [vmem:[%s7249_s1 + $0x1ff0] sm:$0xff]  ;;  %v923_v23 = vld [vmem:[%s7249_s1 + $0x1bd8] sm:$0xff] }
 0x1e3   :  { %2092 = vmatprep.subr.mxu0 %v827_v58  ;;  %2163 = vmatprep.subr.mxu1 %v955_v59  ;;  %v1051_v27 = vld [vmem:[%s7249_s1 + $0x1fd8] sm:$0xff]  ;;  %v922_v29 = vld [vmem:[%s7249_s1 + $0x1bd0] sm:$0xff] }
 0x1e4   :  { %2093 = vmatpush1.msra.mxu0 %v826_v0  ;;  %2164 = vmatpush1.msra.mxu1 %v954_v60  ;;  %v1050_v30 = vld [vmem:[%s7249_s1 + $0x1fd0] sm:$0xff]  ;;  %v919_v31 = vld [vmem:[%s7249_s1 + $0x1bb8] sm:$0xff] }
 0x1e5   :  { %2094 = vmatprep.subr.mxu0 %v823_v2  ;;  %2165 = vmatprep.subr.mxu1 %v951_v61  ;;  %v1047_v32 = vld [vmem:[%s7249_s1 + $0x1fb8] sm:$0xff]  ;;  %v918_v33 = vld [vmem:[%s7249_s1 + $0x1bb0] sm:$0xff] }
 0x1e6   :  { %2095 = vmatpush1.msra.mxu0 %v822_v62  ;;  %2166 = vmatpush1.msra.mxu1 %v950_v63  ;;  %v1046_v34 = vld [vmem:[%s7249_s1 + $0x1fb0] sm:$0xff]  ;;  %v915_v35 = vld [vmem:[%s7249_s1 + $0x1b98] sm:$0xff] }
 0x1e7   :  { %2096 = vmatprep.subr.mxu0 %v819_v1  ;;  %2167 = vmatprep.subr.mxu1 %v947_v3  ;;  %v1043_v37 = vld [vmem:[%s7249_s1 + $0x1f98] sm:$0xff]  ;;  %v914_v38 = vld [vmem:[%s7249_s1 + $0x1b90] sm:$0xff] }
 0x1e8   :  { %2097 = vmatpush1.msra.mxu0 %v818_v4  ;;  %2168 = vmatpush1.msra.mxu1 %v946_v5  ;;  %v1042_v40 = vld [vmem:[%s7249_s1 + $0x1f90] sm:$0xff]  ;;  %v911_v41 = vld [vmem:[%s7249_s1 + $0x1b78] sm:$0xff] }
 0x1e9   :  { %2098 = vmatprep.subr.mxu0 %v815_v6  ;;  %2169 = vmatprep.subr.mxu1 %v943_v7  ;;  %v1039_v42 = vld [vmem:[%s7249_s1 + $0x1f78] sm:$0xff]  ;;  %v910_v43 = vld [vmem:[%s7249_s1 + $0x1b70] sm:$0xff] }
 0x1ea   :  { %2099 = vmatpush1.msra.mxu0 %v814_v9  ;;  %2170 = vmatpush1.msra.mxu1 %v942_v10  ;;  %v1038_v44 = vld [vmem:[%s7249_s1 + $0x1f70] sm:$0xff]  ;;  %v907_v45 = vld [vmem:[%s7249_s1 + $0x1b58] sm:$0xff] }
 0x1eb   :  { %2100 = vmatprep.subr.mxu0 %v811_v12  ;;  %2171 = vmatprep.subr.mxu1 %v939_v8  ;;  %v1035_v46 = vld [vmem:[%s7249_s1 + $0x1f58] sm:$0xff]  ;;  %v906_v47 = vld [vmem:[%s7249_s1 + $0x1b50] sm:$0xff] }
 0x1ec   :  { %2101 = vmatpush1.msra.mxu0 %v810_v13  ;;  %2172 = vmatpush1.msra.mxu1 %v938_v14  ;;  %v1034_v48 = vld [vmem:[%s7249_s1 + $0x1f50] sm:$0xff]  ;;  %v903_v49 = vld [vmem:[%s7249_s1 + $0x1b38] sm:$0xff] }
 0x1ed   :  { %2102 = vmatprep.subr.mxu0 %v807_v15  ;;  %2173 = vmatprep.subr.mxu1 %v935_v11  ;;  %v1031_v50 = vld [vmem:[%s7249_s1 + $0x1f38] sm:$0xff]  ;;  %v902_v51 = vld [vmem:[%s7249_s1 + $0x1b30] sm:$0xff] }
 0x1ee   :  { %2103 = vmatpush1.msra.mxu0 %v806_v16  ;;  %2174 = vmatpush1.msra.mxu1 %v934_v17  ;;  %v1030_v52 = vld [vmem:[%s7249_s1 + $0x1f30] sm:$0xff]  ;;  %v899_v53 = vld [vmem:[%s7249_s1 + $0x1b18] sm:$0xff] }
 0x1ef   :  { %2104 = vmatprep.subr.mxu0 %v803_v18  ;;  %2175 = vmatprep.subr.mxu1 %v931_v19  ;;  %v1027_v54 = vld [vmem:[%s7249_s1 + $0x1f18] sm:$0xff]  ;;  %v898_v55 = vld [vmem:[%s7249_s1 + $0x1b10] sm:$0xff] }
 0x1f0   :  { %2105 = vmatpush1.msra.mxu0 %v802_v21  ;;  %2176 = vmatpush1.msra.mxu1 %v930_v22  ;;  %v1026_v56 = vld [vmem:[%s7249_s1 + $0x1f10] sm:$0xff]  ;;  %v895_v57 = vld [vmem:[%s7249_s1 + $0x1af8] sm:$0xff] }
 0x1f1   :  { %2106 = vmatprep.subr.mxu0 %v927_v20  ;;  %2177 = vmatprep.subr.mxu1 %v1055_v24  ;;  %v1023_v58 = vld [vmem:[%s7249_s1 + $0x1ef8] sm:$0xff]  ;;  %v894_v59 = vld [vmem:[%s7249_s1 + $0x1af0] sm:$0xff] }
 0x1f2   :  { %2107 = vmatpush2.msra.mxu0 %v926_v25  ;;  %2178 = vmatpush2.msra.mxu1 %v1054_v26  ;;  %v1022_v0 = vld [vmem:[%s7249_s1 + $0x1ef0] sm:$0xff]  ;;  %v891_v60 = vld [vmem:[%s7249_s1 + $0x1ad8] sm:$0xff]  ;;  %v6521_v26 = vld [vmem:[%s7250_s2 + $0x1e8] sm:$0xff] }
 0x1f3   :  { %2108 = vmatprep.subr.mxu0 %v923_v23  ;;  %2179 = vmatprep.subr.mxu1 %v1051_v27  ;;  %v1019_v2 = vld [vmem:[%s7249_s1 + $0x1ed8] sm:$0xff]  ;;  %v890_v61 = vld [vmem:[%s7249_s1 + $0x1ad0] sm:$0xff]  ;;  %7340 = vst [vmem:[#allocation6_spill] sm:$0xff] %v6521_v26 }
 0x1f4   :  { %2109 = vmatpush2.msra.mxu0 %v922_v29  ;;  %2180 = vmatpush2.msra.mxu1 %v1050_v30  ;;  %v1018_v62 = vld [vmem:[%s7249_s1 + $0x1ed0] sm:$0xff]  ;;  %v887_v63 = vld [vmem:[%s7249_s1 + $0x1ab8] sm:$0xff]  ;;  %v6535_v29 = vld [vmem:[%s7250_s2 + $0x1e0] sm:$0xff] }
 0x1f5   :  { %2110 = vmatprep.subr.mxu0 %v919_v31  ;;  %2181 = vmatprep.subr.mxu1 %v1047_v32  ;;  %v1015_v1 = vld [vmem:[%s7249_s1 + $0x1eb8] sm:$0xff]  ;;  %v886_v3 = vld [vmem:[%s7249_s1 + $0x1ab0] sm:$0xff]  ;;  %v6547_v30 = vld [vmem:[%s7250_s2 + $0x1c8] sm:$0xff] }
 0x1f6   :  { %2111 = vmatpush2.msra.mxu0 %v918_v33  ;;  %2182 = vmatpush2.msra.mxu1 %v1046_v34  ;;  %v1014_v4 = vld [vmem:[%s7249_s1 + $0x1eb0] sm:$0xff]  ;;  %v883_v5 = vld [vmem:[%s7249_s1 + $0x1a98] sm:$0xff]  ;;  %v6573_v34 = vld [vmem:[%s7250_s2 + $0x1a8] sm:$0xff] }
 0x1f7   :  { %2112 = vmatprep.subr.mxu0 %v915_v35  ;;  %2183 = vmatprep.subr.mxu1 %v1043_v37  ;;  %v1011_v6 = vld [vmem:[%s7249_s1 + $0x1e98] sm:$0xff]  ;;  %v882_v7 = vld [vmem:[%s7249_s1 + $0x1a90] sm:$0xff]  ;;  %v6585_v37 = vld [vmem:[%s7250_s2 + $0x1a0] sm:$0xff] }
 0x1f8   :  { %2113 = vmatpush2.msra.mxu0 %v914_v38  ;;  %2184 = vmatpush2.msra.mxu1 %v1042_v40  ;;  %v1010_v9 = vld [vmem:[%s7249_s1 + $0x1e90] sm:$0xff]  ;;  %v879_v10 = vld [vmem:[%s7249_s1 + $0x1a78] sm:$0xff]  ;;  %v6597_v40 = vld [vmem:[%s7250_s2 + $0x188] sm:$0xff] }
 0x1f9   :  { %2114 = vmatprep.subr.mxu0 %v911_v41  ;;  %2185 = vmatprep.subr.mxu1 %v1039_v42  ;;  %v1007_v12 = vld [vmem:[%s7249_s1 + $0x1e78] sm:$0xff]  ;;  %v878_v8 = vld [vmem:[%s7249_s1 + $0x1a70] sm:$0xff]  ;;  %v6609_v42 = vld [vmem:[%s7250_s2 + $0x180] sm:$0xff] }
 0x1fa   :  { %2115 = vmatpush2.msra.mxu0 %v910_v43  ;;  %2186 = vmatpush2.msra.mxu1 %v1038_v44  ;;  %v1006_v13 = vld [vmem:[%s7249_s1 + $0x1e70] sm:$0xff]  ;;  %v875_v14 = vld [vmem:[%s7249_s1 + $0x1a58] sm:$0xff]  ;;  %v6621_v44 = vld [vmem:[%s7250_s2 + $0x168] sm:$0xff] }
 0x1fb   :  { %2116 = vmatprep.subr.mxu0 %v907_v45  ;;  %2187 = vmatprep.subr.mxu1 %v1035_v46  ;;  %v1003_v15 = vld [vmem:[%s7249_s1 + $0x1e58] sm:$0xff]  ;;  %v874_v11 = vld [vmem:[%s7249_s1 + $0x1a50] sm:$0xff]  ;;  %v6633_v46 = vld [vmem:[%s7250_s2 + $0x160] sm:$0xff] }
 0x1fc   :  { %2117 = vmatpush2.msra.mxu0 %v906_v47  ;;  %2188 = vmatpush2.msra.mxu1 %v1034_v48  ;;  %v1002_v16 = vld [vmem:[%s7249_s1 + $0x1e50] sm:$0xff]  ;;  %v871_v17 = vld [vmem:[%s7249_s1 + $0x1a38] sm:$0xff]  ;;  %v6645_v48 = vld [vmem:[%s7250_s2 + $0x148] sm:$0xff] }
 0x1fd   :  { %2118 = vmatprep.subr.mxu0 %v903_v49  ;;  %2189 = vmatprep.subr.mxu1 %v1031_v50  ;;  %v999_v18 = vld [vmem:[%s7249_s1 + $0x1e38] sm:$0xff]  ;;  %v870_v19 = vld [vmem:[%s7249_s1 + $0x1a30] sm:$0xff]  ;;  %v6657_v50 = vld [vmem:[%s7250_s2 + $0x140] sm:$0xff] }
 0x1fe   :  { %2119 = vmatpush2.msra.mxu0 %v902_v51  ;;  %2190 = vmatpush2.msra.mxu1 %v1030_v52  ;;  %v998_v21 = vld [vmem:[%s7249_s1 + $0x1e30] sm:$0xff]  ;;  %v867_v22 = vld [vmem:[%s7249_s1 + $0x1a18] sm:$0xff]  ;;  %v6669_v52 = vld [vmem:[%s7250_s2 + $0x128] sm:$0xff] }
 0x1ff   :  { %2120 = vmatprep.subr.mxu0 %v899_v53  ;;  %2191 = vmatprep.subr.mxu1 %v1027_v54  ;;  %v995_v20 = vld [vmem:[%s7249_s1 + $0x1e18] sm:$0xff]  ;;  %v866_v24 = vld [vmem:[%s7249_s1 + $0x1a10] sm:$0xff]  ;;  %v6681_v54 = vld [vmem:[%s7250_s2 + $0x120] sm:$0xff] }
 0x200   :  { %2121 = vmatpush2.msra.mxu0 %v898_v55  ;;  %2192 = vmatpush2.msra.mxu1 %v1026_v56  ;;  %v994_v25 = vld [vmem:[%s7249_s1 + $0x1e10] sm:$0xff]  ;;  %v6527_v23 = vld [vmem:[%s7250_s2 + $0x1f8] sm:$0xff]  ;;  %v6693_v56 = vld [vmem:[%s7250_s2 + $0x108] sm:$0xff] }
 0x201   :  { %2122 = vmatprep.subr.mxu0 %v895_v57  ;;  %2193 = vmatprep.subr.mxu1 %v1023_v58  ;;  %7341 = vst [vmem:[#allocation7_spill] sm:$0xff] %v6527_v23  ;;  %v3310_v27 = vld [vmem:[%s7248_s0 + $0x30] sm:$0xff]  ;;  %v6552_v31 = vld [vmem:[%s7250_s2 + $0x1d8] sm:$0xff]  ;;  %7343 = vst [vmem:[#allocation9_spill] sm:$0xff] %v6693_v56 }
 0x202   :  { %2123 = vmatpush2.msra.mxu0 %v894_v59  ;;  %2194 = vmatpush2.msra.mxu1 %v1022_v0  ;;  %v3311_v32 = vld [vmem:[%s7248_s0 + $0x38] sm:$0xff]  ;;  %v6566_v33 = vld [vmem:[%s7250_s2 + $0x1d0] sm:$0xff]  ;;  %v6705_v58 = vld [vmem:[%s7250_s2 + $0x100] sm:$0xff] }
 0x203   :  { %2124 = vmatprep.subr.mxu0 %v891_v60  ;;  %2195 = vmatprep.subr.mxu1 %v1019_v2  ;;  %v6578_v35 = vld [vmem:[%s7250_s2 + $0x1b8] sm:$0xff]  ;;  %v6590_v38 = vld [vmem:[%s7250_s2 + $0x1b0] sm:$0xff]  ;;  %7345 = vst [vmem:[#allocation11_spill] sm:$0xff] %v6705_v58  ;;  %v6717_v0 = vld [vmem:[%s7250_s2 + $0xe8] sm:$0xff] }
 0x204   :  { %2125 = vmatpush2.msra.mxu0 %v890_v61  ;;  %2196 = vmatpush2.msra.mxu1 %v1018_v62  ;;  %v6602_v41 = vld [vmem:[%s7250_s2 + $0x198] sm:$0xff]  ;;  %v6614_v43 = vld [vmem:[%s7250_s2 + $0x190] sm:$0xff]  ;;  %7347 = vst [vmem:[#allocation13_spill] sm:$0xff] %v6717_v0  ;;  %v6729_v2 = vld [vmem:[%s7250_s2 + $0xe0] sm:$0xff] }
 0x205   :  { %2126 = vmatprep.subr.mxu0 %v887_v63  ;;  %2197 = vmatprep.subr.mxu1 %v1015_v1  ;;  %v6626_v45 = vld [vmem:[%s7250_s2 + $0x178] sm:$0xff]  ;;  %v6638_v47 = vld [vmem:[%s7250_s2 + $0x170] sm:$0xff]  ;;  %7349 = vst [vmem:[#allocation15_spill] sm:$0xff] %v6729_v2  ;;  %v6741_v62 = vld [vmem:[%s7250_s2 + $0xc8] sm:$0xff] }
 0x206   :  { %2127 = vmatpush2.msra.mxu0 %v886_v3  ;;  %2198 = vmatpush2.msra.mxu1 %v1014_v4  ;;  %v6650_v49 = vld [vmem:[%s7250_s2 + $0x158] sm:$0xff]  ;;  %v6662_v51 = vld [vmem:[%s7250_s2 + $0x150] sm:$0xff]  ;;  %7351 = vst [vmem:[#allocation17_spill] sm:$0xff] %v6741_v62  ;;  %v6753_v1 = vld [vmem:[%s7250_s2 + $0xc0] sm:$0xff] }
 0x207   :  { %2128 = vmatprep.subr.mxu0 %v883_v5  ;;  %2199 = vmatprep.subr.mxu1 %v1011_v6  ;;  %v6674_v53 = vld [vmem:[%s7250_s2 + $0x138] sm:$0xff]  ;;  %v6686_v55 = vld [vmem:[%s7250_s2 + $0x130] sm:$0xff]  ;;  %7353 = vst [vmem:[#allocation19_spill] sm:$0xff] %v6753_v1  ;;  %v6765_v4 = vld [vmem:[%s7250_s2 + $0xa8] sm:$0xff] }
 0x208   :  { %2129 = vmatpush2.msra.mxu0 %v882_v7  ;;  %2200 = vmatpush2.msra.mxu1 %v1010_v9  ;;  %7342 = vst [vmem:[#allocation8_spill] sm:$0xff] %v6686_v55  ;;  %v6698_v57 = vld [vmem:[%s7250_s2 + $0x118] sm:$0xff]  ;;  %v6710_v59 = vld [vmem:[%s7250_s2 + $0x110] sm:$0xff]  ;;  %7355 = vst [vmem:[#allocation21_spill] sm:$0xff] %v6765_v4 }
 0x209   :  { %2130 = vmatprep.subr.mxu0 %v879_v10  ;;  %2201 = vmatprep.subr.mxu1 %v1007_v12  ;;  %7344 = vst [vmem:[#allocation10_spill] sm:$0xff] %v6698_v57  ;;  %7346 = vst [vmem:[#allocation12_spill] sm:$0xff] %v6710_v59  ;;  %v6722_v60 = vld [vmem:[%s7250_s2 + $0xf8] sm:$0xff]  ;;  %v6734_v61 = vld [vmem:[%s7250_s2 + $0xf0] sm:$0xff] }
 0x20a   :  { %2131 = vmatpush2.msra.mxu0 %v878_v8  ;;  %2202 = vmatpush2.msra.mxu1 %v1006_v13  ;;  %7348 = vst [vmem:[#allocation14_spill] sm:$0xff] %v6722_v60  ;;  %7350 = vst [vmem:[#allocation16_spill] sm:$0xff] %v6734_v61  ;;  %v6746_v63 = vld [vmem:[%s7250_s2 + $0xd8] sm:$0xff]  ;;  %v6758_v3 = vld [vmem:[%s7250_s2 + $0xd0] sm:$0xff] }
 0x20b   :  { %2132 = vmatprep.subr.mxu0 %v875_v14  ;;  %2203 = vmatprep.subr.mxu1 %v1003_v15  ;;  %7352 = vst [vmem:[#allocation18_spill] sm:$0xff] %v6746_v63  ;;  %7354 = vst [vmem:[#allocation20_spill] sm:$0xff] %v6758_v3  ;;  %v6770_v5 = vld [vmem:[%s7250_s2 + $0xb8] sm:$0xff]  ;;  %v6777_v6 = vld [vmem:[%s7250_s2 + $0xa0] sm:$0xff] }
 0x20c   :  { %2133 = vmatpush2.msra.mxu0 %v874_v11  ;;  %2204 = vmatpush2.msra.mxu1 %v1002_v16  ;;  %7356 = vst [vmem:[#allocation22_spill] sm:$0xff] %v6770_v5  ;;  %7357 = vst [vmem:[#allocation23_spill] sm:$0xff] %v6777_v6  ;;  %v6782_v7 = vld [vmem:[%s7250_s2 + $0xb0] sm:$0xff]  ;;  %v6789_v9 = vld [vmem:[%s7250_s2 + $0x88] sm:$0xff] }
 0x20d   :  { %2134 = vmatprep.subr.mxu0 %v871_v17  ;;  %2205 = vmatprep.subr.mxu1 %v999_v18  ;;  %7358 = vst [vmem:[#allocation24_spill] sm:$0xff] %v6782_v7  ;;  %7359 = vst [vmem:[#allocation25_spill] sm:$0xff] %v6789_v9  ;;  %v6794_v10 = vld [vmem:[%s7250_s2 + $0x98] sm:$0xff]  ;;  %v6801_v12 = vld [vmem:[%s7250_s2 + $0x80] sm:$0xff] }
 0x20e   :  { %2135 = vmatpush2.msra.mxu0 %v870_v19  ;;  %2206 = vmatpush2.msra.mxu1 %v998_v21  ;;  %7360 = vst [vmem:[#allocation26_spill] sm:$0xff] %v6794_v10  ;;  %7361 = vst [vmem:[#allocation27_spill] sm:$0xff] %v6801_v12  ;;  %v6806_v8 = vld [vmem:[%s7250_s2 + $0x90] sm:$0xff]  ;;  %v6813_v13 = vld [vmem:[%s7250_s2 + $0x68] sm:$0xff] }
 0x20f   :  { %2136 = vmatprep.subr.mxu0 %v867_v22  ;;  %2207 = vmatprep.subr.mxu1 %v995_v20  ;;  %7362 = vst [vmem:[#allocation28_spill] sm:$0xff] %v6806_v8  ;;  %7363 = vst [vmem:[#allocation29_spill] sm:$0xff] %v6813_v13  ;;  %v6818_v14 = vld [vmem:[%s7250_s2 + $0x78] sm:$0xff]  ;;  %v6825_v15 = vld [vmem:[%s7250_s2 + $0x60] sm:$0xff] }
 0x210   :  { %2137 = vmatpush2.msra.mxu0 %v866_v24  ;;  %2138 = vmatprep.mubr.f32.mxu0 %v4945_v36  ;;  %v6540_v36 = vld [vmem:[%s7250_s2 + $0x1f0] sm:$0xff]  ;;  %7364 = vst [vmem:[#allocation30_spill] sm:$0xff] %v6818_v14  ;;  %7365 = vst [vmem:[#allocation31_spill] sm:$0xff] %v6825_v15  ;;  %v6837_v16 = vld [vmem:[%s7250_s2 + $0x48] sm:$0xff] }
 0x211   :  { %2208 = vmatpush2.msra.mxu1 %v994_v25  ;;  %2139 = vmatmul.mubr.f32.vlgmr.msra.gmra.mxu0 %v3310_v27  ;;  %v6830_v11 = vld [vmem:[%s7250_s2 + $0x70] sm:$0xff]  ;;  %7367 = vst [vmem:[#allocation33_spill] sm:$0xff] %v6837_v16  ;;  %v6842_v17 = vld [vmem:[%s7250_s2 + $0x58] sm:$0xff]  ;;  %v6849_v18 = vld [vmem:[%s7250_s2 + $0x40] sm:$0xff] }
 0x212   :  { %2209 = vmatprep.mubr.f32.mxu1 %v4953_v39  ;;  %2282 = vmatprep.subr.mxu0 %v6521_v26  ;;  %v6561_v39 = vld [vmem:[%s7250_s2 + $0x1c0] sm:$0xff]  ;;  %7366 = vst [vmem:[#allocation32_spill] sm:$0xff] %v6830_v11  ;;  %7368 = vst [vmem:[#allocation34_spill] sm:$0xff] %v6842_v17  ;;  %v6854_v19 = vld [vmem:[%s7250_s2 + $0x50] sm:$0xff] }
 0x213   :  { %2353 = vmatprep.subr.mxu1 %v6527_v23  ;;  %2210 = vmatmul.mubr.f32.vlgmr.msra.gmra.mxu1 %v3311_v32  ;;  %7369 = vst [vmem:[#allocation35_spill] sm:$0xff] %v6849_v18  ;;  %7370 = vst [vmem:[#allocation36_spill] sm:$0xff] %v6854_v19  ;;  %v6861_v21 = vld [vmem:[%s7250_s2 + $0x28] sm:$0xff]  ;;  %v6866_v22 = vld [vmem:[%s7250_s2 + $0x38] sm:$0xff] }
 0x214   :  { %2283 = vmatpush1.msra.mxu0 %v6535_v29  ;;  %2354 = vmatpush1.msra.mxu1 %v6540_v36  ;;  %7371 = vst [vmem:[#allocation37_spill] sm:$0xff] %v6861_v21  ;;  %7372 = vst [vmem:[#allocation38_spill] sm:$0xff] %v6866_v22  ;;  %v6873_v20 = vld [vmem:[%s7250_s2 + $0x20] sm:$0xff]  ;;  %v6878_v24 = vld [vmem:[%s7250_s2 + $0x30] sm:$0xff] }
 0x215   :  { %2284 = vmatprep.subr.mxu0 %v6547_v30  ;;  %2355 = vmatprep.subr.mxu1 %v6552_v31  ;;  %7373 = vst [vmem:[#allocation39_spill] sm:$0xff] %v6873_v20  ;;  %7374 = vst [vmem:[#allocation40_spill] sm:$0xff] %v6878_v24  ;;  %v6885_v25 = vld [vmem:[%s7250_s2 + $0x8] sm:$0xff]  ;;  %v6890_v27 = vld [vmem:[%s7250_s2 + $0x18] sm:$0xff] }
 0x216   :  { %2285 = vmatpush1.msra.mxu0 %v6561_v39  ;;  %2356 = vmatpush1.msra.mxu1 %v6566_v33  ;;  %7375 = vst [vmem:[#allocation41_spill] sm:$0xff] %v6885_v25  ;;  %7376 = vst [vmem:[#allocation42_spill] sm:$0xff] %v6890_v27  ;;  %v6897_v32 = vld [vmem:[%s7250_s2] sm:$0xff]  ;;  %v6904_v28 = vld [vmem:[%s7250_s2 + $0x10] sm:$0xff] }
 0x217   :  { %2286 = vmatprep.subr.mxu0 %v6573_v34  ;;  %2357 = vmatprep.subr.mxu1 %v6578_v35  ;;  %7377 = vst [vmem:[#allocation43_spill] sm:$0xff] %v6897_v32  ;;  %7378 = vst [vmem:[#allocation44_spill] sm:$0xff] %v6904_v28 }
 0x218   :  { %2287 = vmatpush1.msra.mxu0 %v6585_v37  ;;  %2358 = vmatpush1.msra.mxu1 %v6590_v38 }
 0x219   :  { %2288 = vmatprep.subr.mxu0 %v6597_v40  ;;  %2359 = vmatprep.subr.mxu1 %v6602_v41 }
 0x21a   :  { %2289 = vmatpush1.msra.mxu0 %v6609_v42  ;;  %2360 = vmatpush1.msra.mxu1 %v6614_v43 }
 0x21b   :  { %2290 = vmatprep.subr.mxu0 %v6621_v44  ;;  %2361 = vmatprep.subr.mxu1 %v6626_v45 }
 0x21c   :  { %2291 = vmatpush1.msra.mxu0 %v6633_v46  ;;  %2362 = vmatpush1.msra.mxu1 %v6638_v47 }
 0x21d   :  { %2292 = vmatprep.subr.mxu0 %v6645_v48  ;;  %2363 = vmatprep.subr.mxu1 %v6650_v49 }
 0x21e   :  { %2293 = vmatpush1.msra.mxu0 %v6657_v50  ;;  %2364 = vmatpush1.msra.mxu1 %v6662_v51 }
 0x21f   :  { %2294 = vmatprep.subr.mxu0 %v6669_v52  ;;  %2365 = vmatprep.subr.mxu1 %v6674_v53 }
 0x220   :  { %2295 = vmatpush1.msra.mxu0 %v6681_v54  ;;  %2366 = vmatpush1.msra.mxu1 %v6686_v55 }
 0x221   :  { %2296 = vmatprep.subr.mxu0 %v6693_v56  ;;  %2367 = vmatprep.subr.mxu1 %v6698_v57 }
 0x222   :  { %2297 = vmatpush1.msra.mxu0 %v6705_v58  ;;  %2368 = vmatpush1.msra.mxu1 %v6710_v59 }
 0x223   :  { %2298 = vmatprep.subr.mxu0 %v6717_v0  ;;  %2369 = vmatprep.subr.mxu1 %v6722_v60 }
 0x224   :  { %2299 = vmatpush1.msra.mxu0 %v6729_v2  ;;  %2370 = vmatpush1.msra.mxu1 %v6734_v61 }
 0x225   :  { %2300 = vmatprep.subr.mxu0 %v6741_v62  ;;  %2371 = vmatprep.subr.mxu1 %v6746_v63 }
 0x226   :  { %2301 = vmatpush1.msra.mxu0 %v6753_v1  ;;  %2372 = vmatpush1.msra.mxu1 %v6758_v3 }
 0x227   :  { %2302 = vmatprep.subr.mxu0 %v6765_v4  ;;  %2373 = vmatprep.subr.mxu1 %v6770_v5 }
 0x228   :  { %2303 = vmatpush1.msra.mxu0 %v6777_v6  ;;  %2374 = vmatpush1.msra.mxu1 %v6782_v7 }
 0x229   :  { %2304 = vmatprep.subr.mxu0 %v6789_v9  ;;  %2375 = vmatprep.subr.mxu1 %v6794_v10 }
 0x22a   :  { %2305 = vmatpush1.msra.mxu0 %v6801_v12  ;;  %2376 = vmatpush1.msra.mxu1 %v6806_v8 }
 0x22b   :  { %2306 = vmatprep.subr.mxu0 %v6813_v13  ;;  %2377 = vmatprep.subr.mxu1 %v6818_v14 }
 0x22c   :  { %2307 = vmatpush1.msra.mxu0 %v6825_v15  ;;  %2378 = vmatpush1.msra.mxu1 %v6830_v11 }
 0x22d   :  { %2308 = vmatprep.subr.mxu0 %v6837_v16  ;;  %2379 = vmatprep.subr.mxu1 %v6842_v17 }
 0x22e   :  { %2309 = vmatpush1.msra.mxu0 %v6849_v18  ;;  %2380 = vmatpush1.msra.mxu1 %v6854_v19 }
 0x22f   :  { %2310 = vmatprep.subr.mxu0 %v6861_v21  ;;  %2381 = vmatprep.subr.mxu1 %v6866_v22  ;;  %v7379_v22 = vmov 0.0  }
 0x230   :  { %2311 = vmatpush1.msra.mxu0 %v6873_v20  ;;  %2382 = vmatpush1.msra.mxu1 %v6878_v24 }
 0x231   :  { %2312 = vmatprep.subr.mxu0 %v6885_v25  ;;  %2383 = vmatprep.subr.mxu1 %v6890_v27 }
 0x232   :  { %2313 = vmatpush1.msra.mxu0 %v6897_v32  ;;  %2346 = vmatprep.mubr.f32.mxu0 %v7379_v22 }
 0x233   :  { %2384 = vmatpush1.msra.mxu1 %v6904_v28  ;;  %2417 = vmatprep.mubr.f32.mxu1 %v7379_v22 }
 0x234   :  { %2347 = vmatmul.mubr.f32.vlgmr.msra.gmra.mxu0 %v7379_v22  ;;  %2418 = vmatmul.mubr.f32.vlgmr.msra.gmra.mxu1 %v7379_v22  ;;  %v7380_v22 = vld [vmem:[#allocation38_spill] sm:$0xff] }
 0x235   :  { %2478 = vmatprep.subr.mxu0 %v6521_v26  ;;  %2549 = vmatprep.subr.mxu1 %v6527_v23 }
 0x236   :  { %2479 = vmatpush1.msra.mxu0 %v6535_v29  ;;  %2550 = vmatpush1.msra.mxu1 %v6540_v36 }
 0x237   :  { %2480 = vmatprep.subr.mxu0 %v6547_v30  ;;  %2551 = vmatprep.subr.mxu1 %v6552_v31 }
 0x238   :  { %2481 = vmatpush1.msra.mxu0 %v6561_v39  ;;  %2552 = vmatpush1.msra.mxu1 %v6566_v33 }
 0x239   :  { %2482 = vmatprep.subr.mxu0 %v6573_v34  ;;  %2553 = vmatprep.subr.mxu1 %v6578_v35 }
 0x23a   :  { %2483 = vmatpush1.msra.mxu0 %v6585_v37  ;;  %2554 = vmatpush1.msra.mxu1 %v6590_v38 }
 0x23b   :  { %2484 = vmatprep.subr.mxu0 %v6597_v40  ;;  %2555 = vmatprep.subr.mxu1 %v6602_v41 }
 0x23c   :  { %2485 = vmatpush1.msra.mxu0 %v6609_v42  ;;  %2556 = vmatpush1.msra.mxu1 %v6614_v43 }
 0x23d   :  { %2486 = vmatprep.subr.mxu0 %v6621_v44  ;;  %2557 = vmatprep.subr.mxu1 %v6626_v45 }
 0x23e   :  { %2487 = vmatpush1.msra.mxu0 %v6633_v46  ;;  %2558 = vmatpush1.msra.mxu1 %v6638_v47 }
 0x23f   :  { %2488 = vmatprep.subr.mxu0 %v6645_v48  ;;  %2559 = vmatprep.subr.mxu1 %v6650_v49 }
 0x240   :  { %2489 = vmatpush1.msra.mxu0 %v6657_v50  ;;  %2560 = vmatpush1.msra.mxu1 %v6662_v51 }
 0x241   :  { %2490 = vmatprep.subr.mxu0 %v6669_v52  ;;  %2561 = vmatprep.subr.mxu1 %v6674_v53 }
 0x242   :  { %2491 = vmatpush1.msra.mxu0 %v6681_v54  ;;  %2562 = vmatpush1.msra.mxu1 %v6686_v55 }
 0x243   :  { %2492 = vmatprep.subr.mxu0 %v6693_v56  ;;  %2563 = vmatprep.subr.mxu1 %v6698_v57 }
 0x244   :  { %2493 = vmatpush1.msra.mxu0 %v6705_v58  ;;  %2564 = vmatpush1.msra.mxu1 %v6710_v59 }
 0x245   :  { %2494 = vmatprep.subr.mxu0 %v6717_v0  ;;  %2565 = vmatprep.subr.mxu1 %v6722_v60 }
 0x246   :  { %2495 = vmatpush1.msra.mxu0 %v6729_v2  ;;  %2566 = vmatpush1.msra.mxu1 %v6734_v61 }
 0x247   :  { %2496 = vmatprep.subr.mxu0 %v6741_v62  ;;  %2567 = vmatprep.subr.mxu1 %v6746_v63  ;;  %v2429_v63 = vlaneseq }
 0x248   :  { %2497 = vmatpush1.msra.mxu0 %v6753_v1  ;;  %2568 = vmatpush1.msra.mxu1 %v6758_v3 }
 0x249   :  { %2498 = vmatprep.subr.mxu0 %v6765_v4  ;;  %2569 = vmatprep.subr.mxu1 %v6770_v5  ;;  %v2430_v57 = vshrl.u32 %v2429_v63, 7 }
 0x24a   :  { %2499 = vmatpush1.msra.mxu0 %v6777_v6  ;;  %2570 = vmatpush1.msra.mxu1 %v6782_v7 }
 0x24b   :  { %2500 = vmatprep.subr.mxu0 %v6789_v9  ;;  %2571 = vmatprep.subr.mxu1 %v6794_v10 }
 0x24c   :  { %2501 = vmatpush1.msra.mxu0 %v6801_v12  ;;  %2572 = vmatpush1.msra.mxu1 %v6806_v8 }
 0x24d   :  { %2502 = vmatprep.subr.mxu0 %v6813_v13  ;;  %2573 = vmatprep.subr.mxu1 %v6818_v14 }
 0x24e   :  { %2503 = vmatpush1.msra.mxu0 %v6825_v15  ;;  %2574 = vmatpush1.msra.mxu1 %v6830_v11 }
 0x24f   :  { %2504 = vmatprep.subr.mxu0 %v6837_v16  ;;  %2575 = vmatprep.subr.mxu1 %v6842_v17  ;;  %v6977_v16 = vld [vmem:[#allocation2] sm:$0xff] }
 0x250   :  { %2505 = vmatpush1.msra.mxu0 %v6849_v18  ;;  %2576 = vmatpush1.msra.mxu1 %v6854_v19  ;;  %7381 = vst [vmem:[#allocation45_spill] sm:$0xff] %v6977_v16 }
 0x251   :  { %2506 = vmatprep.subr.mxu0 %v6861_v21  ;;  %2577 = vmatprep.subr.mxu1 %v7380_v22 }
 0x252   :  { %2507 = vmatpush1.msra.mxu0 %v6873_v20  ;;  %2578 = vmatpush1.msra.mxu1 %v6878_v24  ;;  %v1146_v20 = vpop.f32.mrf.mxu0  ;;  %v1217_v24 = vpop.f32.mrf.mxu1 }
 0x253   :  { %2508 = vmatprep.subr.mxu0 %v6885_v25  ;;  %2579 = vmatprep.subr.mxu1 %v6890_v27 }
 0x254   :  { %2509 = vmatpush1.msra.mxu0 %v6897_v32  ;;  %2542 = vmatprep.mubr.f32.mxu0 %v6977_v16  ;;  %v1148_v22 = vpop.f32.mrf.mxu0  ;;  %v1219_v21 = vpop.f32.mrf.mxu1 }
 0x255   :  { %2580 = vmatpush1.msra.mxu1 %v6904_v28  ;;  %2613 = vmatprep.mubr.f32.mxu1 %v6977_v16  ;;  %v1220_v9 = vadd.f32 %v1219_v21, %v1148_v22 }
 0x256   :  { %2671 = vmatprep.subr.mxu0 %v6521_v26  ;;  %2742 = vmatprep.subr.mxu1 %v6527_v23  ;;  %v1288_v25 = vpop.f32.mrf.mxu0  ;;  %v1359_v27 = vpop.f32.mrf.mxu1  ;;  %v1218_v23 = vadd.f32 %v1217_v24, %v1146_v20 }
 0x258   :  { %v1290_v19 = vpop.f32.mrf.mxu0  ;;  %v1361_v18 = vpop.f32.mrf.mxu1  ;;  %v1289_v7 = vadd.f32 %v1288_v25, %v1218_v23 }
 0x259   :  { %v1291_v5 = vadd.f32 %v1290_v19, %v1220_v9  ;;  %v2431_v9 = vsub.s32 0, %v2430_v57 }
 0x25a   :  { %v1430_v32 = vpop.f32.mrf.mxu0  ;;  %v1501_v17 = vpop.f32.mrf.mxu1  ;;  %v1360_v1 = vadd.f32 %v1359_v27, %v1289_v7 }
 0x25b   :  { %v1362_v61 = vadd.f32 %v1361_v18, %v1291_v5  ;;  %v2280_v5 = vld [vmem:[%s7251_s3] sm:$0xf] }
 0x25c   :  { %v1432_v11 = vpop.f32.mrf.mxu0  ;;  %v1503_v14 = vpop.f32.mrf.mxu1  ;;  %v1431_v2 = vadd.f32 %v1430_v32, %v1360_v1 }
 0x25d   :  { %v1433_v59 = vadd.f32 %v1432_v11, %v1362_v61 }
 0x25e   :  { %v1572_v15 = vpop.f32.mrf.mxu0  ;;  %v1643_v28 = vpop.f32.mrf.mxu1  ;;  %v1502_v20 = vadd.f32 %v1501_v17, %v1431_v2  ;;  %v6989_v2 = vrot.slane %v2280_v5, %v2431_v9  ;;  %v2439_v9 = vsub.s32 2, %v2430_v57 }
 0x25f   :  { %v1504_v21 = vadd.f32 %v1503_v14, %v1433_v59 }
 0x260   :  { %v1574_v13 = vpop.f32.mrf.mxu0  ;;  %v1645_v8 = vpop.f32.mrf.mxu1  ;;  %v1573_v23 = vadd.f32 %v1572_v15, %v1502_v20 }
 0x261   :  { %v1575_v1 = vadd.f32 %v1574_v13, %v1504_v21 }
 0x262   :  { %v1714_v16 = vpop.f32.mrf.mxu0  ;;  %v1785_v26 = vpop.f32.mrf.mxu1 }
 0x263   :  { %v1786_v19 = vadd.f32 %v1785_v26, %v1714_v16 }
 0x264   :  { %v1716_v12 = vpop.f32.mrf.mxu0  ;;  %v1787_v6 = vpop.f32.mrf.mxu1 }
 0x265   :  { %v1788_v0 = vadd.f32 %v1787_v6, %v1716_v12  ;;  %v2435_v6 = vsub.s32 1, %v2430_v57 }
 0x266   :  { %v1856_v10 = vpop.f32.mrf.mxu0  ;;  %v1927_v4 = vpop.f32.mrf.mxu1 }
 0x267   :  { %v1857_v61 = vadd.f32 %v1856_v10, %v1786_v19 }
 0x268   :  { %v1858_v3 = vpop.f32.mrf.mxu0  ;;  %v1929_v60 = vpop.f32.mrf.mxu1 }
 0x269   :  { %v1859_v56 = vadd.f32 %v1858_v3, %v1788_v0  ;;  %v6987_v0 = vadd.f32 %v1643_v28, %v1573_v23  ;;  %v6991_v3 = vadd.f32 %v1645_v8, %v1575_v1  ;;  %v2443_v8 = vsub.s32 3, %v2430_v57 }
 0x26a   :  { %v7008_v1 = vrot.slane %v2280_v5, %v2439_v9  ;;  %v7395_v9 = vld [vmem:[#allocation19_spill] sm:$0xff] }
 0x26b   :  { %v1930_v22 = vadd.f32 %v1929_v60, %v1859_v56  ;;  %7382 = vst [vmem:[#allocation46_spill] sm:$0xff] %v6987_v0  ;;  %7383 = vst [vmem:[#allocation47_spill] sm:$0xff] %v6991_v3  ;;  %v6994_v56 = vrot.slane %v2280_v5, %v2435_v6  ;;  %v1928_v60 = vadd.f32 %v1927_v4, %v1857_v61 }
 0x28f   :  { %v1998_v62 = vpop.f32.mrf.mxu0 }
 0x290   :  { %v1999_v28 = vadd.f32 %v1998_v62, %v1928_v60 }
 0x291   :  { %v2069_v58 = vpop.f32.mrf.mxu1  ;;  %v2000_v55 = vpop.f32.mrf.mxu0 }
 0x292   :  { %v2001_v12 = vadd.f32 %v2000_v55, %v1930_v22  ;;  %v2070_v20 = vadd.f32 %v2069_v58, %v1999_v28  ;;  %v7385_v28 = vld [vmem:[#allocation9_spill] sm:$0xff] }
 0x293   :  { %v2071_v25 = vpop.f32.mrf.mxu1 }
 0x294   :  { %v2072_v15 = vadd.f32 %v2071_v25, %v2001_v12  ;;  %v7002_v25 = vrot.slane %v2280_v5, %v2443_v8  ;;  %v7389_v8 = vld [vmem:[#allocation13_spill] sm:$0xff] }
 0x2d1   :  { %v2140_v24 = vpop.f32.mrf.mxu0 }
 0x2d2   :  { %v2141_v4 = vadd.f32 %v2140_v24, %v2070_v20  ;;  %v7392_v20 = vld [vmem:[#allocation16_spill] sm:$0xff] }
 0x2d3   :  { %v2211_v7 = vpop.f32.mrf.mxu1  ;;  %v2142_v63 = vpop.f32.mrf.mxu0 }
 0x2d4   :  { %v2143_v16 = vadd.f32 %v2142_v63, %v2072_v15  ;;  %v7004_v19 = vadd.f32 %v2211_v7, %v2141_v4  ;;  %v7393_v4 = vld [vmem:[#allocation17_spill] sm:$0xff] }
 0x2d5   :  { %v2213_v14 = vpop.f32.mrf.mxu1 }
 0x2d6   :  { %v6999_v21 = vadd.f32 %v2213_v14, %v2143_v16  ;;  %v7386_v16 = vld [vmem:[#allocation10_spill] sm:$0xff] }
 0x2f4   :  { %v2348_v59 = vpop.f32.mrf.mxu0  ;;  %v2419_v10 = vpop.f32.mrf.mxu1 }
 0x2f5   :  { %v2424_v26 = vadd.f32 %v2348_v59, %v6987_v0  ;;  %v2426_v22 = vadd.f32 %v2419_v10, %v7004_v19 }
 0x2f6   :  { %v2350_v13 = vpop.f32.mrf.mxu0  ;;  %v2421_v32 = vpop.f32.mrf.mxu1 }
 0x2f7   :  { %v2449_v11 = vadd.f32 %v6989_v2, %v2424_v26  ;;  %v2425_v55 = vadd.f32 %v2350_v13, %v6991_v3  ;;  %v2427_v23 = vadd.f32 %v2421_v32, %v6999_v21  ;;  %v2451_v58 = vadd.f32 %v7008_v1, %v2426_v22  ;;  %v7391_v32 = vld [vmem:[#allocation15_spill] sm:$0xff]  ;;  %v7397_v22 = vld [vmem:[#allocation21_spill] sm:$0xff] }
 0x2f9   :  { %v3164_v17 = vmul.f32 -1.442695, %v2449_v11  ;;  %v2450_v18 = vadd.f32 %v6994_v56, %v2425_v55  ;;  %v2452_v62 = vadd.f32 %v7002_v25, %v2427_v23  ;;  %v7384_v55 = vld [vmem:[#allocation8_spill] sm:$0xff]  ;;  %v7394_v23 = vld [vmem:[#allocation18_spill] sm:$0xff] }
 0x2fb   :  { %3240 = vpow2.f32 %v3164_v17  ;;  %v3165_v27 = vmul.f32 -1.442695, %v2450_v18  ;;  %v3166_v6 = vmul.f32 -1.442695, %v2452_v62  ;;  %v7387_v17 = vld [vmem:[#allocation11_spill] sm:$0xff]  ;;  %v7388_v18 = vld [vmem:[#allocation12_spill] sm:$0xff] }
 0x2fc   :  { %v7396_v62 = vld [vmem:[#allocation20_spill] sm:$0xff] }
 0x2fd   :  { %3242 = vpow2.f32 %v3165_v27  ;;  %v7390_v27 = vld [vmem:[#allocation14_spill] sm:$0xff] }
 0x2fe   :  { %3244 = vpow2.f32 %v3166_v6  ;;  %v7398_v6 = vld [vmem:[#allocation22_spill] sm:$0xff] }
 0x308   :  { %v3241_v61 = vpop.eup %3240 }
 0x309   :  { %v2456_v12 = vadd.f32 1.0, %v3241_v61  ;;  %v7399_v61 = vld [vmem:[#allocation23_spill] sm:$0xff] }
 0x30a   :  { %v3243_v63 = vpop.eup %3242 }
 0x30b   :  { %3246 = vrcp.f32 %v2456_v12  ;;  %v2462_v24 = vadd.f32 1.0, %v3243_v63  ;;  %v3245_v57 = vpop.eup %3244  ;;  %v7401_v12 = vld [vmem:[#allocation25_spill] sm:$0xff]  ;;  %v7402_v63 = vld [vmem:[#allocation26_spill] sm:$0xff] }
 0x30c   :  { %3248 = vtanh.f32 %v2451_v58  ;;  %v2469_v26 = vadd.f32 1.0, %v3245_v57  ;;  %v7400_v58 = vld [vmem:[#allocation24_spill] sm:$0xff] }
 0x30d   :  { %3250 = vrcp.f32 %v2462_v24  ;;  %v7403_v24 = vld [vmem:[#allocation27_spill] sm:$0xff]  ;;  %v7404_v57 = vld [vmem:[#allocation28_spill] sm:$0xff] }
 0x30e   :  { %3252 = vrcp.f32 %v2469_v26  ;;  %v7408_v26 = vld [vmem:[#allocation32_spill] sm:$0xff] }
 0x318   :  { %v3247_v7 = vpop.eup %3246 }
 0x319   :  { %v3249_v59 = vpop.eup %3248 }
 0x31a   :  { %v3251_v14 = vpop.eup %3250  ;;  %v2473_v15 = vmul.f32 %v3249_v59, %v3247_v7  ;;  %v7405_v7 = vld [vmem:[#allocation29_spill] sm:$0xff]  ;;  %v7406_v59 = vld [vmem:[#allocation30_spill] sm:$0xff] }
 0x31b   :  { %v2472_v60 = vmul.f32 0.0, %v3251_v14  ;;  %v3253_v13 = vpop.eup %3252  ;;  %v7407_v14 = vld [vmem:[#allocation31_spill] sm:$0xff] }
 0x31d   :  { %v7011_v5 = vadd.f32 %v2473_v15, %v2472_v60  ;;  %v7409_v60 = vld [vmem:[#allocation33_spill] sm:$0xff]  ;;  %v7410_v15 = vld [vmem:[#allocation34_spill] sm:$0xff] }
 0x31f   :  { %3254 = vtanh.f32 %v7011_v5 }
 0x32c   :  { %v3255_v11 = vpop.eup %3254 }
 0x32d   :  { %v2476_v10 = vmul.f32 %v3255_v11, %v3253_v13  ;;  %v7411_v13 = vld [vmem:[#allocation35_spill] sm:$0xff]  ;;  %v7412_v11 = vld [vmem:[#allocation36_spill] sm:$0xff] }
 0x32f   :  { %2477 = vst [vmem:[#allocation2] sm:$0x1] %v2476_v10  ;;  %2543 = vmatmul.mubr.f32.vlgmr.msra.gmra.mxu0 %v2476_v10  ;;  %2614 = vmatmul.mubr.f32.vlgmr.msra.gmra.mxu1 %v2476_v10  ;;  %v7413_v10 = vld [vmem:[#allocation37_spill] sm:$0xff] }
 0x330   :  { %2672 = vmatpush1.msra.mxu0 %v6535_v29  ;;  %2743 = vmatpush1.msra.mxu1 %v6540_v36 }
 0x331   :  { %2673 = vmatprep.subr.mxu0 %v6547_v30  ;;  %2744 = vmatprep.subr.mxu1 %v6552_v31 }
 0x332   :  { %2674 = vmatpush1.msra.mxu0 %v6561_v39  ;;  %2745 = vmatpush1.msra.mxu1 %v6566_v33 }
 0x333   :  { %2675 = vmatprep.subr.mxu0 %v6573_v34  ;;  %2746 = vmatprep.subr.mxu1 %v6578_v35 }
 0x334   :  { %2676 = vmatpush1.msra.mxu0 %v6585_v37  ;;  %2747 = vmatpush1.msra.mxu1 %v6590_v38 }
 0x335   :  { %2677 = vmatprep.subr.mxu0 %v6597_v40  ;;  %2748 = vmatprep.subr.mxu1 %v6602_v41 }
 0x336   :  { %2678 = vmatpush1.msra.mxu0 %v6609_v42  ;;  %2749 = vmatpush1.msra.mxu1 %v6614_v43 }
 0x337   :  { %2679 = vmatprep.subr.mxu0 %v6621_v44  ;;  %2750 = vmatprep.subr.mxu1 %v6626_v45 }
 0x338   :  { %2680 = vmatpush1.msra.mxu0 %v6633_v46  ;;  %2751 = vmatpush1.msra.mxu1 %v6638_v47 }
 0x339   :  { %2681 = vmatprep.subr.mxu0 %v6645_v48  ;;  %2752 = vmatprep.subr.mxu1 %v6650_v49 }
 0x33a   :  { %2682 = vmatpush1.msra.mxu0 %v6657_v50  ;;  %2753 = vmatpush1.msra.mxu1 %v6662_v51 }
 0x33b   :  { %2683 = vmatprep.subr.mxu0 %v6669_v52  ;;  %2754 = vmatprep.subr.mxu1 %v6674_v53 }
 0x33c   :  { %2684 = vmatpush1.msra.mxu0 %v6681_v54  ;;  %2755 = vmatpush1.msra.mxu1 %v7384_v55 }
 0x33d   :  { %2685 = vmatprep.subr.mxu0 %v7385_v28  ;;  %2756 = vmatprep.subr.mxu1 %v7386_v16 }
 0x33e   :  { %2686 = vmatpush1.msra.mxu0 %v7387_v17  ;;  %2757 = vmatpush1.msra.mxu1 %v7388_v18 }
 0x33f   :  { %2687 = vmatprep.subr.mxu0 %v7389_v8  ;;  %2758 = vmatprep.subr.mxu1 %v7390_v27 }
 0x340   :  { %2688 = vmatpush1.msra.mxu0 %v7391_v32  ;;  %2759 = vmatpush1.msra.mxu1 %v7392_v20 }
 0x341   :  { %2689 = vmatprep.subr.mxu0 %v7393_v4  ;;  %2760 = vmatprep.subr.mxu1 %v7394_v23 }
 0x342   :  { %2690 = vmatpush1.msra.mxu0 %v7395_v9  ;;  %2761 = vmatpush1.msra.mxu1 %v7396_v62 }
 0x343   :  { %2691 = vmatprep.subr.mxu0 %v7397_v22  ;;  %2762 = vmatprep.subr.mxu1 %v7398_v6 }
 0x344   :  { %2692 = vmatpush1.msra.mxu0 %v7399_v61  ;;  %2763 = vmatpush1.msra.mxu1 %v7400_v58 }
 0x345   :  { %2693 = vmatprep.subr.mxu0 %v7401_v12  ;;  %2764 = vmatprep.subr.mxu1 %v7402_v63 }
 0x346   :  { %2694 = vmatpush1.msra.mxu0 %v7403_v24  ;;  %2765 = vmatpush1.msra.mxu1 %v7404_v57  ;;  %v7414_v24 = vld [vmem:[#allocation38_spill] sm:$0xff]  ;;  %v7415_v57 = vld [vmem:[#allocation39_spill] sm:$0xff] }
 0x347   :  { %2695 = vmatprep.subr.mxu0 %v7405_v7  ;;  %2766 = vmatprep.subr.mxu1 %v7406_v59  ;;  %v7416_v7 = vld [vmem:[#allocation40_spill] sm:$0xff]  ;;  %v7417_v59 = vld [vmem:[#allocation41_spill] sm:$0xff] }
 0x348   :  { %2696 = vmatpush1.msra.mxu0 %v7407_v14  ;;  %2767 = vmatpush1.msra.mxu1 %v7408_v26  ;;  %v7418_v14 = vld [vmem:[#allocation42_spill] sm:$0xff]  ;;  %v7419_v26 = vld [vmem:[#allocation43_spill] sm:$0xff] }
 0x349   :  { %2697 = vmatprep.subr.mxu0 %v7409_v60  ;;  %2768 = vmatprep.subr.mxu1 %v7410_v15  ;;  %v7420_v60 = vld [vmem:[#allocation45_spill] sm:$0xff]  ;;  %v7421_v15 = vld [vmem:[#allocation44_spill] sm:$0xff] }
 0x34a   :  { %2698 = vmatpush1.msra.mxu0 %v7411_v13  ;;  %2769 = vmatpush1.msra.mxu1 %v7412_v11  ;;  %v7422_v11 = vld [vmem:[#allocation6_spill] sm:$0xff] }
 0x34b   :  { %2699 = vmatprep.subr.mxu0 %v7413_v10  ;;  %2770 = vmatprep.subr.mxu1 %v7414_v24  ;;  %v7423_v10 = vld [vmem:[#allocation7_spill] sm:$0xff] }
 0x34c   :  { %2700 = vmatpush1.msra.mxu0 %v7415_v57  ;;  %2771 = vmatpush1.msra.mxu1 %v7416_v7 }
 0x34d   :  { %2701 = vmatprep.subr.mxu0 %v7417_v59  ;;  %2772 = vmatprep.subr.mxu1 %v7418_v14 }
 0x34e   :  { %2702 = vmatpush1.msra.mxu0 %v7419_v26  ;;  %2735 = vmatprep.mubr.f32.mxu0 %v7420_v60 }
 0x34f   :  { %2773 = vmatpush1.msra.mxu1 %v7421_v15  ;;  %2806 = vmatprep.mubr.f32.mxu1 %v7420_v60 }
 0x350   :  { %2864 = vmatprep.subr.mxu0 %v7422_v11  ;;  %2935 = vmatprep.subr.mxu1 %v7423_v10 }
 0x3ef   :  { %v2544_v24 = vpop.f32.mrf.mxu0  ;;  %v2615_v13 = vpop.f32.mrf.mxu1 }
 0x3f0   :  { %v2624_v57 = vrot.slane %v2544_v24, 7  ;;  %v2626_v24 = vrot.slane %v2615_v13, 7 }
 0x3f1   :  { %v2546_v7 = vpop.f32.mrf.mxu0  ;;  %v2617_v12 = vpop.f32.mrf.mxu1 }
 0x3f2   :  { %v2632_v59 = vadd.f32 %v2624_v57, %v6987_v0  ;;  %v2625_v63 = vrot.slane %v2546_v7, 7  ;;  %v2627_v60 = vrot.slane %v2617_v12, 7  ;;  %v2634_v57 = vadd.f32 %v2626_v24, %v7004_v19 }
 0x3f4   :  { %v2636_v14 = vadd.f32 %v2632_v59, %v6989_v2  ;;  %v2633_v26 = vadd.f32 %v2625_v63, %v6991_v3  ;;  %v2635_v10 = vadd.f32 %v2627_v60, %v6999_v21  ;;  %v2638_v59 = vadd.f32 %v2634_v57, %v7008_v1 }
 0x3f5   :  { %v2660_v60 = vrot.slane %v7011_v5, 7 }
 0x3f6   :  { %v3167_v58 = vmul.f32 -1.442695, %v2636_v14  ;;  %v2637_v15 = vadd.f32 %v2633_v26, %v6994_v56  ;;  %v2639_v61 = vadd.f32 %v2635_v10, %v7002_v25 }
 0x3f8   :  { %3256 = vpow2.f32 %v3167_v58  ;;  %v3168_v11 = vmul.f32 -1.442695, %v2637_v15  ;;  %v3169_v7 = vmul.f32 -1.442695, %v2639_v61 }
 0x3fa   :  { %3258 = vpow2.f32 %v3168_v11 }
 0x3fb   :  { %3260 = vpow2.f32 %v3169_v7 }
 0x405   :  { %v3257_v0 = vpop.eup %3256 }
 0x406   :  { %v2643_v63 = vadd.f32 1.0, %v3257_v0 }
 0x407   :  { %v3259_v3 = vpop.eup %3258 }
 0x408   :  { %3262 = vrcp.f32 %v2643_v63  ;;  %v2649_v14 = vadd.f32 1.0, %v3259_v3  ;;  %v3261_v58 = vpop.eup %3260 }
 0x409   :  { %3264 = vtanh.f32 %v2638_v59  ;;  %v2656_v13 = vadd.f32 1.0, %v3261_v58 }
 0x40a   :  { %3266 = vrcp.f32 %v2649_v14 }
 0x40b   :  { %3268 = vrcp.f32 %v2656_v13 }
 0x415   :  { %v3263_v12 = vpop.eup %3262 }
 0x416   :  { %v3265_v26 = vpop.eup %3264 }
 0x417   :  { %v3267_v15 = vpop.eup %3266  ;;  %v2663_v11 = vmul.f32 %v3265_v26, %v3263_v12 }
 0x418   :  { %v2662_v10 = vmul.f32 %v3267_v15, %v2660_v60  ;;  %v3269_v0 = vpop.eup %3268 }
 0x41a   :  { %v7089_v61 = vadd.f32 %v2663_v11, %v2662_v10 }
 0x41c   :  { %3270 = vtanh.f32 %v7089_v61  ;;  %v2853_v11 = vrot.slane %v7089_v61, 7  ;;  %v3070_v61 = vld [vmem:[%s7252_s4 + $0x78] sm:$0xff] }
 0x429   :  { %v3271_v24 = vpop.eup %3270 }
 0x42a   :  { %v2666_v57 = vmul.f32 %v3271_v24, %v3269_v0 }
 0x42c   :  { %2667 = vst [vmem:[#allocation2] sm:$0x2] %v2666_v57  ;;  %v2669_v3 = vrot.slane %v2666_v57, 1 }
 0x42e   :  { %2736 = vmatmul.mubr.f32.vlgmr.msra.gmra.mxu0 %v2669_v3  ;;  %2807 = vmatmul.mubr.f32.vlgmr.msra.gmra.mxu1 %v2669_v3 }
 0x42f   :  { %2865 = vmatpush1.msra.mxu0 %v6535_v29  ;;  %2936 = vmatpush1.msra.mxu1 %v6540_v36  ;;  %v7424_v29 = vld [vmem:[#allocation23_spill] sm:$0xff]  ;;  %v7425_v36 = vld [vmem:[#allocation24_spill] sm:$0xff] }
 0x430   :  { %2866 = vmatprep.subr.mxu0 %v6547_v30  ;;  %2937 = vmatprep.subr.mxu1 %v6552_v31  ;;  %v7426_v30 = vld [vmem:[#allocation25_spill] sm:$0xff]  ;;  %v7427_v31 = vld [vmem:[#allocation26_spill] sm:$0xff] }
 0x431   :  { %2867 = vmatpush1.msra.mxu0 %v6561_v39  ;;  %2938 = vmatpush1.msra.mxu1 %v6566_v33  ;;  %v7428_v39 = vld [vmem:[#allocation27_spill] sm:$0xff]  ;;  %v7429_v33 = vld [vmem:[#allocation28_spill] sm:$0xff] }
 0x432   :  { %2868 = vmatprep.subr.mxu0 %v6573_v34  ;;  %2939 = vmatprep.subr.mxu1 %v6578_v35  ;;  %v7430_v34 = vld [vmem:[#allocation29_spill] sm:$0xff]  ;;  %v7431_v35 = vld [vmem:[#allocation30_spill] sm:$0xff] }
 0x433   :  { %2869 = vmatpush1.msra.mxu0 %v6585_v37  ;;  %2940 = vmatpush1.msra.mxu1 %v6590_v38  ;;  %v7432_v37 = vld [vmem:[#allocation31_spill] sm:$0xff]  ;;  %v7433_v38 = vld [vmem:[#allocation32_spill] sm:$0xff] }
 0x434   :  { %2870 = vmatprep.subr.mxu0 %v6597_v40  ;;  %2941 = vmatprep.subr.mxu1 %v6602_v41  ;;  %v7434_v40 = vld [vmem:[#allocation33_spill] sm:$0xff]  ;;  %v7435_v41 = vld [vmem:[#allocation34_spill] sm:$0xff] }
 0x435   :  { %2871 = vmatpush1.msra.mxu0 %v6609_v42  ;;  %2942 = vmatpush1.msra.mxu1 %v6614_v43  ;;  %v7436_v42 = vld [vmem:[#allocation35_spill] sm:$0xff]  ;;  %v7437_v43 = vld [vmem:[#allocation36_spill] sm:$0xff] }
 0x436   :  { %2872 = vmatprep.subr.mxu0 %v6621_v44  ;;  %2943 = vmatprep.subr.mxu1 %v6626_v45  ;;  %v7438_v44 = vld [vmem:[#allocation37_spill] sm:$0xff]  ;;  %v7439_v45 = vld [vmem:[#allocation38_spill] sm:$0xff] }
 0x437   :  { %2873 = vmatpush1.msra.mxu0 %v6633_v46  ;;  %2944 = vmatpush1.msra.mxu1 %v6638_v47  ;;  %v7440_v46 = vld [vmem:[#allocation39_spill] sm:$0xff]  ;;  %v7441_v47 = vld [vmem:[#allocation40_spill] sm:$0xff] }
 0x438   :  { %2874 = vmatprep.subr.mxu0 %v6645_v48  ;;  %2945 = vmatprep.subr.mxu1 %v6650_v49  ;;  %v7442_v48 = vld [vmem:[#allocation41_spill] sm:$0xff]  ;;  %v7443_v49 = vld [vmem:[#allocation42_spill] sm:$0xff] }
 0x439   :  { %2875 = vmatpush1.msra.mxu0 %v6657_v50  ;;  %2946 = vmatpush1.msra.mxu1 %v6662_v51  ;;  %v7444_v50 = vld [vmem:[#allocation43_spill] sm:$0xff]  ;;  %v7445_v51 = vld [vmem:[#allocation45_spill] sm:$0xff] }
 0x43a   :  { %2876 = vmatprep.subr.mxu0 %v6669_v52  ;;  %2947 = vmatprep.subr.mxu1 %v6674_v53  ;;  %v7446_v52 = vld [vmem:[#allocation44_spill] sm:$0xff] }
 0x43b   :  { %2877 = vmatpush1.msra.mxu0 %v6681_v54  ;;  %2948 = vmatpush1.msra.mxu1 %v7384_v55 }
 0x43c   :  { %2878 = vmatprep.subr.mxu0 %v7385_v28  ;;  %2949 = vmatprep.subr.mxu1 %v7386_v16  ;;  %v7447_v28 = vld [vmem:[#allocation46_spill] sm:$0xff] }
 0x43d   :  { %2879 = vmatpush1.msra.mxu0 %v7387_v17  ;;  %2950 = vmatpush1.msra.mxu1 %v7388_v18 }
 0x43e   :  { %2880 = vmatprep.subr.mxu0 %v7389_v8  ;;  %2951 = vmatprep.subr.mxu1 %v7390_v27  ;;  %v7448_v8 = vld [vmem:[#allocation47_spill] sm:$0xff] }
 0x43f   :  { %2881 = vmatpush1.msra.mxu0 %v7391_v32  ;;  %2952 = vmatpush1.msra.mxu1 %v7392_v20 }
 0x440   :  { %2882 = vmatprep.subr.mxu0 %v7393_v4  ;;  %2953 = vmatprep.subr.mxu1 %v7394_v23 }
 0x441   :  { %2883 = vmatpush1.msra.mxu0 %v7395_v9  ;;  %2954 = vmatpush1.msra.mxu1 %v7396_v62 }
 0x442   :  { %2884 = vmatprep.subr.mxu0 %v7397_v22  ;;  %2955 = vmatprep.subr.mxu1 %v7398_v6 }
 0x443   :  { %2885 = vmatpush1.msra.mxu0 %v7424_v29  ;;  %2956 = vmatpush1.msra.mxu1 %v7425_v36 }
 0x444   :  { %2886 = vmatprep.subr.mxu0 %v7426_v30  ;;  %2957 = vmatprep.subr.mxu1 %v7427_v31 }
 0x445   :  { %2887 = vmatpush1.msra.mxu0 %v7428_v39  ;;  %2958 = vmatpush1.msra.mxu1 %v7429_v33  ;;  %v3069_v39 = vld [vmem:[%s7252_s4 + $0x70] sm:$0xff]  ;;  %v3068_v33 = vld [vmem:[%s7252_s4 + $0x68] sm:$0xff] }
 0x446   :  { %2888 = vmatprep.subr.mxu0 %v7430_v34  ;;  %2959 = vmatprep.subr.mxu1 %v7431_v35  ;;  %v3067_v34 = vld [vmem:[%s7252_s4 + $0x60] sm:$0xff]  ;;  %v3066_v35 = vld [vmem:[%s7252_s4 + $0x58] sm:$0xff] }
 0x447   :  { %2889 = vmatpush1.msra.mxu0 %v7432_v37  ;;  %2960 = vmatpush1.msra.mxu1 %v7433_v38  ;;  %v3065_v37 = vld [vmem:[%s7252_s4 + $0x50] sm:$0xff]  ;;  %v3064_v38 = vld [vmem:[%s7252_s4 + $0x48] sm:$0xff] }
 0x448   :  { %2890 = vmatprep.subr.mxu0 %v7434_v40  ;;  %2961 = vmatprep.subr.mxu1 %v7435_v41  ;;  %v3063_v40 = vld [vmem:[%s7252_s4 + $0x40] sm:$0xff]  ;;  %v3062_v41 = vld [vmem:[%s7252_s4 + $0x38] sm:$0xff] }
 0x449   :  { %2891 = vmatpush1.msra.mxu0 %v7436_v42  ;;  %2962 = vmatpush1.msra.mxu1 %v7437_v43  ;;  %v3061_v42 = vld [vmem:[%s7252_s4 + $0x30] sm:$0xff]  ;;  %v3060_v43 = vld [vmem:[%s7252_s4 + $0x28] sm:$0xff] }
 0x44a   :  { %2892 = vmatprep.subr.mxu0 %v7438_v44  ;;  %2963 = vmatprep.subr.mxu1 %v7439_v45  ;;  %v3059_v44 = vld [vmem:[%s7252_s4 + $0x20] sm:$0xff]  ;;  %v3058_v45 = vld [vmem:[%s7252_s4 + $0x18] sm:$0xff] }
 0x44b   :  { %2893 = vmatpush1.msra.mxu0 %v7440_v46  ;;  %2964 = vmatpush1.msra.mxu1 %v7441_v47  ;;  %v3057_v46 = vld [vmem:[%s7252_s4 + $0x10] sm:$0xff]  ;;  %v3056_v47 = vld [vmem:[%s7252_s4 + $0x8] sm:$0xff] }
 0x44c   :  { %2894 = vmatprep.subr.mxu0 %v7442_v48  ;;  %2965 = vmatprep.subr.mxu1 %v7443_v49  ;;  %v3055_v48 = vld [vmem:[%s7252_s4] sm:$0xff] }
 0x44d   :  { %2895 = vmatpush1.msra.mxu0 %v7444_v50  ;;  %2928 = vmatprep.mubr.f32.mxu0 %v7445_v51 }
 0x44e   :  { %2966 = vmatpush1.msra.mxu1 %v7446_v52  ;;  %2999 = vmatprep.mubr.f32.mxu1 %v7445_v51 }
 0x44f   :  { %3194 = vmatprep.subr.mxu0 %v7445_v51 }
 0x4ee   :  { %v2737_v53 = vpop.f32.mrf.mxu0  ;;  %v2808_v5 = vpop.f32.mrf.mxu1 }
 0x4ef   :  { %v2817_v54 = vrot.slane %v2737_v53, 6  ;;  %v2819_v22 = vrot.slane %v2808_v5, 6 }
 0x4f0   :  { %v2739_v55 = vpop.f32.mrf.mxu0  ;;  %v2810_v32 = vpop.f32.mrf.mxu1 }
 0x4f1   :  { %v2825_v16 = vadd.f32 %v2817_v54, %v7447_v28  ;;  %v2818_v17 = vrot.slane %v2739_v55, 6  ;;  %v2820_v23 = vrot.slane %v2810_v32, 6  ;;  %v2827_v7 = vadd.f32 %v2819_v22, %v7004_v19 }
 0x4f3   :  { %v2829_v18 = vadd.f32 %v2825_v16, %v6989_v2  ;;  %v2826_v27 = vadd.f32 %v2818_v17, %v7448_v8  ;;  %v2828_v62 = vadd.f32 %v2820_v23, %v6999_v21  ;;  %v2831_v14 = vadd.f32 %v2827_v7, %v7008_v1 }
 0x4f5   :  { %v3170_v20 = vmul.f32 -1.442695, %v2829_v18  ;;  %v2830_v4 = vadd.f32 %v2826_v27, %v6994_v56  ;;  %v2832_v6 = vadd.f32 %v2828_v62, %v7002_v25 }
 0x4f7   :  { %3272 = vpow2.f32 %v3170_v20  ;;  %v3171_v9 = vmul.f32 -1.442695, %v2830_v4  ;;  %v3172_v59 = vmul.f32 -1.442695, %v2832_v6 }
 0x4f9   :  { %3274 = vpow2.f32 %v3171_v9 }
 0x4fa   :  { %3276 = vpow2.f32 %v3172_v59 }
 0x504   :  { %v3273_v63 = vpop.eup %3272 }
 0x505   :  { %v2836_v58 = vadd.f32 1.0, %v3273_v63 }
 0x506   :  { %v3275_v12 = vpop.eup %3274 }
 0x507   :  { %3278 = vrcp.f32 %v2836_v58  ;;  %v2842_v26 = vadd.f32 1.0, %v3275_v12  ;;  %v3277_v60 = vpop.eup %3276 }
 0x508   :  { %3280 = vtanh.f32 %v2831_v14  ;;  %v2849_v0 = vadd.f32 1.0, %v3277_v60 }
 0x509   :  { %3282 = vrcp.f32 %v2842_v26 }
 0x50a   :  { %3284 = vrcp.f32 %v2849_v0 }
 0x514   :  { %v3279_v15 = vpop.eup %3278 }
 0x515   :  { %v3281_v13 = vpop.eup %3280 }
 0x516   :  { %v3283_v10 = vpop.eup %3282  ;;  %v2856_v24 = vmul.f32 %v3281_v13, %v3279_v15  ;;  %v3176_v15 = vld [vmem:[%s7253_s5] ss:$0 sm:$0xff] }
 0x517   :  { %v2855_v57 = vmul.f32 %v3283_v10, %v2853_v11  ;;  %v3285_v29 = vpop.eup %3284 }
 0x519   :  { %v7166_v3 = vadd.f32 %v2856_v24, %v2855_v57 }
 0x51b   :  { %3286 = vtanh.f32 %v7166_v3 }
 0x528   :  { %v3287_v36 = vpop.eup %3286 }
 0x529   :  { %v2859_v30 = vmul.f32 %v3287_v36, %v3285_v29 }
 0x52b   :  { %2860 = vst [vmem:[#allocation2] sm:$0x4] %v2859_v30  ;;  %v2862_v31 = vrot.slane %v2859_v30, 2 }
 0x52d   :  { %2929 = vmatmul.mubr.f32.vlgmr.msra.gmra.mxu0 %v2862_v31  ;;  %3000 = vmatmul.mubr.f32.vlgmr.msra.gmra.mxu1 %v2862_v31 }
 0x52e   :  { %3195 = vmatpush3.msra.mxu0 %v3070_v61  ;;  %3226 = vmatprep.mubr.msk.f32.mxu0 %vm3336_vm0, %v7445_v51 }
 0x52f   :  { %3196 = vmatprep.subr.mxu0 %v7445_v51 }
 0x530   :  { %3197 = vmatpush3.msra.mxu0 %v3069_v39 }
 0x531   :  { %3198 = vmatprep.subr.mxu0 %v7445_v51 }
 0x532   :  { %3199 = vmatpush3.msra.mxu0 %v3068_v33 }
 0x533   :  { %3200 = vmatprep.subr.mxu0 %v7445_v51 }
 0x534   :  { %3201 = vmatpush3.msra.mxu0 %v3067_v34 }
 0x535   :  { %3202 = vmatprep.subr.mxu0 %v7445_v51 }
 0x536   :  { %3203 = vmatpush3.msra.mxu0 %v3066_v35 }
 0x537   :  { %3204 = vmatprep.subr.mxu0 %v7445_v51 }
 0x538   :  { %3205 = vmatpush3.msra.mxu0 %v3065_v37 }
 0x539   :  { %3206 = vmatprep.subr.mxu0 %v7445_v51 }
 0x53a   :  { %3207 = vmatpush3.msra.mxu0 %v3064_v38 }
 0x53b   :  { %3208 = vmatprep.subr.mxu0 %v7445_v51 }
 0x53c   :  { %3209 = vmatpush3.msra.mxu0 %v3063_v40 }
 0x53d   :  { %3210 = vmatprep.subr.mxu0 %v7445_v51 }
 0x53e   :  { %3211 = vmatpush3.msra.mxu0 %v3062_v41 }
 0x53f   :  { %3212 = vmatprep.subr.mxu0 %v7445_v51 }
 0x540   :  { %3213 = vmatpush3.msra.mxu0 %v3061_v42 }
 0x541   :  { %3214 = vmatprep.subr.mxu0 %v7445_v51 }
 0x542   :  { %3215 = vmatpush3.msra.mxu0 %v3060_v43 }
 0x543   :  { %3216 = vmatprep.subr.mxu0 %v7445_v51 }
 0x544   :  { %3217 = vmatpush3.msra.mxu0 %v3059_v44 }
 0x545   :  { %3218 = vmatprep.subr.mxu0 %v7445_v51 }
 0x546   :  { %3219 = vmatpush3.msra.mxu0 %v3058_v45 }
 0x547   :  { %3220 = vmatprep.subr.mxu0 %v7445_v51 }
 0x548   :  { %3221 = vmatpush3.msra.mxu0 %v3057_v46 }
 0x549   :  { %3222 = vmatprep.subr.mxu0 %v7445_v51 }
 0x54a   :  { %3223 = vmatpush3.msra.mxu0 %v3056_v47 }
 0x54b   :  { %3224 = vmatprep.subr.mxu0 %v7445_v51 }
 0x54c   :  { %3225 = vmatpush3.msra.mxu0 %v3055_v48 }
 0x5ed   :  { %v2930_v49 = vpop.f32.mrf.mxu0  ;;  %v3001_v52 = vpop.f32.mrf.mxu1 }
 0x5ee   :  { %v3010_v50 = vrot.slane %v2930_v49, 5  ;;  %v3012_v4 = vrot.slane %v3001_v52, 5 }
 0x5ef   :  { %v2932_v53 = vpop.f32.mrf.mxu0  ;;  %v3003_v17 = vpop.f32.mrf.mxu1 }
 0x5f0   :  { %v3018_v54 = vadd.f32 %v3010_v50, %v7447_v28  ;;  %v3011_v5 = vrot.slane %v2932_v53, 5  ;;  %v3013_v32 = vrot.slane %v3003_v17, 5  ;;  %v3020_v28 = vadd.f32 %v3012_v4, %v7004_v19 }
 0x5f2   :  { %v3022_v55 = vadd.f32 %v3018_v54, %v6989_v2  ;;  %v3019_v16 = vadd.f32 %v3011_v5, %v7448_v8  ;;  %v3021_v51 = vadd.f32 %v3013_v32, %v6999_v21  ;;  %v3024_v2 = vadd.f32 %v3020_v28, %v7008_v1 }
 0x5f3   :  { %v3046_v21 = vrot.slane %v7166_v3, 7 }
 0x5f4   :  { %v3173_v18 = vmul.f32 -1.442695, %v3022_v55  ;;  %v3023_v27 = vadd.f32 %v3019_v16, %v6994_v56  ;;  %v3025_v23 = vadd.f32 %v3021_v51, %v7002_v25 }
 0x5f6   :  { %3288 = vpow2.f32 %v3173_v18  ;;  %v3174_v20 = vmul.f32 -1.442695, %v3023_v27  ;;  %v3175_v9 = vmul.f32 -1.442695, %v3025_v23 }
 0x5f8   :  { %3290 = vpow2.f32 %v3174_v20 }
 0x5f9   :  { %3292 = vpow2.f32 %v3175_v9 }
 0x603   :  { %v3289_v62 = vpop.eup %3288 }
 0x604   :  { %v3029_v8 = vadd.f32 1.0, %v3289_v62 }
 0x605   :  { %v3291_v22 = vpop.eup %3290 }
 0x606   :  { %3294 = vrcp.f32 %v3029_v8  ;;  %v3035_v56 = vadd.f32 1.0, %v3291_v22  ;;  %v3293_v6 = vpop.eup %3292 }
 0x607   :  { %3296 = vtanh.f32 %v3024_v2  ;;  %v3042_v25 = vadd.f32 1.0, %v3293_v6 }
 0x608   :  { %3298 = vrcp.f32 %v3035_v56 }
 0x609   :  { %3300 = vrcp.f32 %v3042_v25 }
 0x613   :  { %v3295_v7 = vpop.eup %3294 }
 0x614   :  { %v3297_v59 = vpop.eup %3296 }
 0x615   :  { %v3299_v63 = vpop.eup %3298  ;;  %v3049_v14 = vmul.f32 %v3297_v59, %v3295_v7 }
 0x616   :  { %v3048_v19 = vmul.f32 %v3299_v63, %v3046_v21  ;;  %v3301_v1 = vpop.eup %3300 }
 0x618   :  { %v3050_v58 = vadd.f32 %v3049_v14, %v3048_v19 }
 0x61a   :  { %3302 = vtanh.f32 %v3050_v58 }
 0x627   :  { %v3303_v12 = vpop.eup %3302 }
 0x628   :  { %v3052_v26 = vmul.f32 %v3303_v12, %v3301_v1 }
 0x62a   :  { %3053 = vst [vmem:[#allocation2] sm:$0x8] %v3052_v26 }
 0x631   :  { %v3054_v60 = vld [vmem:[#allocation2] sm:$0xff] }
 0x632   :  { %3227 = vmatmul.mubr.f32.vlgmr.msra.gmra.mxu0 %v3054_v60 }
 0x6f2   :  { %v3144_v13 = vpop.f32.mrf.mxu0 }
 0x6f3   :  { %v3145_v11 = vadd.f32 %v3176_v15, %v3144_v13 }
 0x6f4   :  { %v3228_v10 = vpop.f32.mrf.mxu0 }
 0x6f5   :  { %3149 = vst.msk [vmem:[#allocation3] sm:$0xf] %vm3148_vm1, %v3145_v11 }
 0x6f6   :  { %3324 = shalt.err (!%p3321_p4)
}
 0x6f7   :  { %3159 = dma.vmem_to_hbm [thread:$0]  %s3157_s16, 64, %s7254_s6, [#allocation4]  }
 0x6f8   :  { %3333 = dma.done.wait [#allocation4], 64  }
 0x6f9   :  { %3334 = vsyncadd [#allocation4], 4294967232 }
 0x6fa   :  { %3163 = vsyncpa [#allocation4], 1 }

</bundles_post_ra>
